<compile_context>
chip_gen: v5e
topology: v5e:2x2
jax: 0.10.0
libtpu: 0.0.40
codegen_flags: <defaults>
</compile_context>

<pallas_src>
import jax
import jax.numpy as jnp
import numpy as np
from jax.experimental import pallas as pl
from jax.experimental.pallas import tpu as pltpu

PITCH_BINS = 360
BN_EPS = 0.0010000000474974513


# --------------------------------------------------------------------------
# Fused Pallas kernel
# --------------------------------------------------------------------------
def _make_fused_kernel(layer_plan, fc_rows, fc_chunk):
    """Build the fused CREPE forward kernel.

    layer_plan: tuple of (t_in, cin, cout, G, n_groups, m_rows, n_zero) for
                conv2..conv6 (K=64, stride 1, time padding (31, 32), each
                followed by a 2x max-pool over time).
    fc_rows:    time rows feeding the classifier (4 for tiny).
    fc_chunk:   channels per classifier row (= Cout of conv6).
    """

    def kernel(patches_ref, w1_ref, wg2_ref, wg3_ref, wg4_ref, wg5_ref,
               wg6_ref, fcw_ref, fcb_ref, pp_ref, probs_ref, embed_ref,
               act_scr, pool_scr):
        wg_refs = (wg2_ref, wg3_ref, wg4_ref, wg5_ref, wg6_ref)
        bf16 = jnp.bfloat16

        def bn_relu(acc, li, cout):
            # pp_ref[li] rows: 0 = conv bias, 1 = BN scale, 2 = BN shift.
            p = pp_ref[li]                                     # (3, 128) f32
            return (jnp.maximum(acc + p[0:1, :cout], 0.0)
                    * p[1:2, :cout] + p[2:3, :cout])

        def pool2(y):
            # max_pool2d((2,1),(2,1)) over time via sublane-strided VMEM reads.
            # NOTE: pool_scr is intentionally NOT zero-initialized; lanes
            # [c:128] / rows beyond t hold stale VMEM and are sliced away
            # below -- do not read outside [0:t, 0:c] without re-adding init.
            t, c = y.shape
            pool_scr[pl.ds(0, t), 0:c] = y
            even = pool_scr[pl.ds(0, t // 2, stride=2), :]
            odd = pool_scr[pl.ds(1, t // 2, stride=2), :]
            return jnp.maximum(even, odd)[:, 0:c]

        # Left conv-pad rows: never dirtied within a grid step, zero once.
        act_scr[pl.ds(0, 32), :] = jnp.zeros((32, 128), bf16)

        # ---- layer 1: pre-im2col'ed patches -> one MXU matmul -------------
        c1 = w1_ref.shape[1]
        acc = jnp.dot(patches_ref[0], w1_ref[...],
                      preferred_element_type=jnp.float32)      # (T1, C1) f32
        y = pool2(bn_relu(acc, 0, c1))

        # ---- layers 2..6: grouped 64-tap conv from bf16 padded scratch ----
        # Scratch row 32+s holds x[s]; row r therefore holds xpad[r-1] (time
        # padding (31, 32)).  Group g reads rows [g*G, g*G+m); its matmul
        # against the (cin, G*cout) grouped weight yields
        #   yg[r, j*cout+c] = sum_ci xpad[g*G + r - 1, ci] * w[g*G+j, ci, c]
        # and the layer output is out[t, c] = sum_j A[t+1+j, j*cout+c] with
        # A = sum_g yg (one shifted-sub-block reduction per layer).
        for li, (t_in, cin, cout, G, n_g, m_rows, n_zero) in enumerate(layer_plan):
            wg_ref = wg_refs[li]
            # Store this layer's input once as bf16 (cast hoisted out of the
            # tap loop), then zero only the right-pad / overshoot strip that
            # the grouped reads actually touch.
            act_scr[pl.ds(32, t_in), 0:cin] = y.astype(bf16)
            act_scr[pl.ds(32 + t_in, n_zero), :] = jnp.zeros((n_zero, 128), bf16)

            A = jnp.dot(act_scr[pl.ds(0, m_rows), 0:cin], wg_ref[0],
                        preferred_element_type=jnp.float32)    # (m, 128) f32
            for g in range(1, n_g):
                A = A + jnp.dot(act_scr[pl.ds(g * G, m_rows), 0:cin], wg_ref[g],
                                preferred_element_type=jnp.float32)

            acc = A[1:1 + t_in, 0:cout]
            for j in range(1, G):
                acc = acc + A[1 + j:1 + j + t_in, j * cout:(j + 1) * cout]

            y = pool2(bn_relu(acc, li + 1, cout))
            if li == len(layer_plan) - 2:        # pooled conv5 output == embed
                embed_ref[0] = y

        # ---- classifier: sigmoid(flat @ W + b), lane-dense (384) output ---
        yb = y.astype(bf16)                                    # (fc_rows, fc_chunk)
        n_out = fcw_ref.shape[1]
        logits = jnp.zeros((1, n_out), jnp.float32)
        for t in range(fc_rows):
            logits = logits + jnp.dot(
                yb[t:t + 1, :], fcw_ref[pl.ds(t * fc_chunk, fc_chunk), :],
                preferred_element_type=jnp.float32)
        probs_ref[0] = jax.nn.sigmoid(logits + fcb_ref[...])

    return kernel


# --------------------------------------------------------------------------
# Wrapper (single fused pallas_call)
# --------------------------------------------------------------------------
def crepe_forward(audio, params):
    """audio: (B, 1024) f32. Returns (probs (B, 360), embed (B, C5, 8, 1) NCHW)."""
    B, n_samples = audio.shape
    f32, bf16 = jnp.float32, jnp.bfloat16

    w1 = params["conv1"]["w"]                            # (512, 1, C1)
    k1, _, c1 = w1.shape
    stride1, pad1 = 4, (254, 254)
    if c1 > 128 or any(params[f"conv{i}"]["w"].shape[2] > 128 for i in range(2, 7)):
        raise NotImplementedError(
            "fused kernel supports the 'tiny' CREPE geometry only (channels <= 128)")

    t1 = (n_samples + sum(pad1) - k1) // stride1 + 1     # 256

    # ---- static per-layer plan for conv2..conv6 (grouped taps) ----
    def rup(x, k):
        return -(-x // k) * k

    plan, read_tops = [], []
    t = t1 // 2
    for i in range(2, 7):
        K, cin, cout = params[f"conv{i}"]["w"].shape
        assert K == 64 and 128 % cout == 0 and K % (128 // cout) == 0
        G = 128 // cout
        n_g = K // G
        m_rows = rup(t + G, 8)
        read_top = K - G + m_rows
        n_zero = read_top - (32 + t)
        plan.append((t, cin, cout, G, n_g, m_rows, n_zero))
        read_tops.append(read_top)
        t //= 2
    fc_rows, fc_chunk = t, plan[-1][2]                   # 4, 64
    assert params["fc"]["w"].shape[0] == fc_rows * fc_chunk
    scr_rows = rup(max(read_tops), 16)                   # 192

    # ---- layer-1 im2col in glue, gather-free ----
    # patches[b, t, 4a+p] = xpad[b, 4t + 4a + p]; stride 4 divides K=512, so
    # reshape to (B, 383, 4) and take 128 static window slices (no XLA gather).
    xp = jnp.pad(audio.astype(f32), ((0, 0), pad1))
    total = n_samples + sum(pad1)
    assert total % stride1 == 0 and k1 % stride1 == 0
    Z = xp.reshape(B, total // stride1, stride1)         # (B, 383, 4)
    wlen = k1 // stride1                                 # 128
    assert (wlen - 1) + t1 <= total // stride1
    patches = jnp.stack([Z[:, a:a + t1, :] for a in range(wlen)], axis=2)
    patches = patches.reshape(B, t1, k1).astype(bf16)    # (B, 256, 512)

    # ---- pack parameters (weights bf16; bias / BN affine f32) ----
    w1b = w1.reshape(k1, c1).astype(bf16)
    grouped = []
    for (t_in, cin, cout, G, n_g, m_rows, n_zero), i in zip(plan, range(2, 7)):
        w = params[f"conv{i}"]["w"]                      # (64, cin, cout)
        wg = (w.reshape(n_g, G, cin, cout)               # taps k = g*G + j
              .transpose(0, 2, 1, 3)                     # (n_g, cin, G, cout)
              .reshape(n_g, cin, G * cout))              # col j*cout + c
        grouped.append(wg.astype(bf16))

    fc_pad = (-PITCH_BINS) % 128                         # 360 -> 384 (lane dense)
    fc_w = jnp.pad(params["fc"]["w"], ((0, 0), (0, fc_pad))).astype(bf16)
    fc_b = jnp.pad(params["fc"]["b"], (0, fc_pad)).reshape(1, -1).astype(f32)
    n_out_pad = PITCH_BINS + fc_pad

    pp = jnp.zeros((6, 3, 128), f32)                     # (layer, {b,scale,shift}, 128)
    for i in range(6):
        p = params[f"conv{i + 1}"]
        c = p["b"].shape[0]
        pp = pp.at[i, 0, :c].set(p["b"])
        pp = pp.at[i, 1, :c].set(p["scale"])
        pp = pp.at[i, 2, :c].set(p["shift"])

    # ---- fused pallas_call: one grid step per batch element ----
    embed_t, embed_c = plan[-1][0], plan[-2][2]          # (8, 32)
    kernel = _make_fused_kernel(tuple(plan), fc_rows, fc_chunk)

    def rep(rank):
        return lambda b: (0,) * rank

    grid_spec = pltpu.PrefetchScalarGridSpec(
        num_scalar_prefetch=0,
        grid=(B,),
        in_specs=[
            pl.BlockSpec((1, t1, k1), lambda b: (b, 0, 0)),          # patches
            pl.BlockSpec((k1, c1), rep(2)),                          # w1
            *[pl.BlockSpec(g.shape, rep(3)) for g in grouped],       # w2..w6 grouped
            pl.BlockSpec(fc_w.shape, rep(2)),                        # fc weight
            pl.BlockSpec(fc_b.shape, rep(2)),                        # fc bias
            pl.BlockSpec(pp.shape, rep(3)),                          # bias/scale/shift
        ],
        out_specs=[
            pl.BlockSpec((1, 1, n_out_pad), lambda b: (b, 0, 0)),    # probs (padded)
            pl.BlockSpec((1, embed_t, embed_c), lambda b: (b, 0, 0)),
        ],
        scratch_shapes=[
            pltpu.VMEM((scr_rows, 128), bf16),      # padded activation (bf16)
            pltpu.VMEM((t1, 128), f32),             # pre-pool buffer
        ],
    )

    probs_pad, embed = pl.pallas_call(
        kernel,
        out_shape=(jax.ShapeDtypeStruct((B, 1, n_out_pad), f32),
                   jax.ShapeDtypeStruct((B, embed_t, embed_c), f32)),
        grid_spec=grid_spec,
        compiler_params=pltpu.CompilerParams(
            dimension_semantics=("parallel",),
            vmem_limit_bytes=32 * 1024 * 1024),
    )(patches, w1b, *grouped, fc_w, fc_b, pp)

    probs = probs_pad[:, 0, :PITCH_BINS]
    embed_nchw = jnp.transpose(embed, (0, 2, 1))[..., None]  # (B, C, T, 1) like torch
    return probs, embed_nchw


# --------------------------------------------------------------------------
# Model (tiny variant), deterministic synthetic parameters
# --------------------------------------------------------------------------
def init_params(key, model="tiny"):
    if model == "tiny":
        in_ch = [1, 128, 16, 16, 16, 32]
        out_ch = [128, 16, 16, 16, 32, 64]
        in_features = 256
    elif model == "full":
        in_ch = [1, 1024, 128, 128, 128, 256]
        out_ch = [1024, 128, 128, 128, 256, 512]
        in_features = 2048
    else:
        raise ValueError(model)
    ksz = [512] + [64] * 5

    params = {}
    for i in range(6):
        key, kw, kb, kg, kbe, km, kv = jax.random.split(key, 7)
        K, Cin, Cout = ksz[i], in_ch[i], out_ch[i]
        std = (2.0 / (K * Cin)) ** 0.5
        w = jax.random.normal(kw, (K, Cin, Cout), jnp.float32) * std
        b = jax.random.normal(kb, (Cout,), jnp.float32) * 0.05
        gamma = 1.0 + 0.1 * jax.random.normal(kg, (Cout,), jnp.float32)
        beta = 0.1 * jax.random.normal(kbe, (Cout,), jnp.float32)
        mean = 0.1 * jax.random.normal(km, (Cout,), jnp.float32)
        var = 1.0 + 0.2 * jnp.abs(jax.random.normal(kv, (Cout,), jnp.float32))
        scale = gamma / jnp.sqrt(var + BN_EPS)
        shift = beta - mean * scale
        params[f"conv{i + 1}"] = dict(w=w, b=b, scale=scale, shift=shift,
                                      gamma=gamma, beta=beta, mean=mean, var=var)
    key, kw, kb = jax.random.split(key, 3)
    params["fc"] = dict(
        w=jax.random.normal(kw, (in_features, PITCH_BINS), jnp.float32)
        * (1.0 / in_features) ** 0.5,
        b=jax.random.normal(kb, (PITCH_BINS,), jnp.float32) * 0.05,
    )
    return params, in_features


# --------------------------------------------------------------------------
# Pure-JAX reference (f32, for correctness checking)
# --------------------------------------------------------------------------
def _ref_layer(x, p, pad, stride):
    x = jnp.pad(x, ((0, 0), (0, 0), (pad[0], pad[1]), (0, 0)))
    w_oihw = jnp.transpose(p["w"], (2, 1, 0))[..., None]       # (Cout, Cin, K, 1)
    x = jax.lax.conv_general_dilated(
        x, w_oihw, (stride, 1), "VALID",
        dimension_numbers=("NCHW", "OIHW", "NCHW"),
        precision=jax.lax.Precision.HIGHEST)
    x = x + p["b"][None, :, None, None]
    x = jnp.maximum(x, 0.0)
    x = x * p["scale"][None, :, None, None] + p["shift"][None, :, None, None]
    B, C, T, W = x.shape
    return x.reshape(B, C, T // 2, 2, W).max(axis=3)


def ref_forward(audio, params):
    x = audio[:, None, :, None]
    x = _ref_layer(x, params["conv1"], (254, 254), 4)
    for name in ["conv2", "conv3", "conv4", "conv5"]:
        x = _ref_layer(x, params[name], (31, 32), 1)
    embed = x
    x = _ref_layer(x, params["conv6"], (31, 32), 1)
    B = x.shape[0]
    flat = jnp.transpose(x, (0, 2, 1, 3)).reshape(B, -1)
    logits = flat @ params["fc"]["w"] + params["fc"]["b"]
    return jax.nn.sigmoid(logits), embed


# --------------------------------------------------------------------------
if __name__ == "__main__":
    key = jax.random.PRNGKey(0)
    key, ka = jax.random.split(key)
    audio = jax.random.normal(ka, (2, 1024), jnp.float32)      # batch=2, 1024 samples
    params, in_features = init_params(key, model="tiny")

    probs, embed = jax.jit(crepe_forward)(audio, params)
    (probs, embed) = jax.block_until_ready((probs, embed))

    ref_probs, ref_embed = ref_forward(audio, params)

    assert probs.shape == (2, PITCH_BINS)
    assert embed.shape == (2, 32, 8, 1)
    assert np.all(np.isfinite(np.asarray(probs)))
    assert np.all(np.isfinite(np.asarray(embed)))
    # Tolerances account for bf16 MXU operands vs the f32 reference.
    assert np.allclose(np.asarray(probs), np.asarray(ref_probs), rtol=2e-2, atol=2e-2)
    assert np.allclose(np.asarray(embed), np.asarray(ref_embed), rtol=2e-2, atol=5e-2)

    print("KERNEL_OK")
</pallas_src>

<mosaic_0001>
module attributes {stable_mosaic.version = 11 : i64} {
  func.func @kernel(%arg0: i32, %arg1: memref<1x256x512xbf16, #tpu.memory_space<vmem>>, %arg2: memref<512x128xbf16, #tpu.memory_space<vmem>>, %arg3: memref<8x128x128xbf16, #tpu.memory_space<vmem>>, %arg4: memref<8x16x128xbf16, #tpu.memory_space<vmem>>, %arg5: memref<8x16x128xbf16, #tpu.memory_space<vmem>>, %arg6: memref<16x16x128xbf16, #tpu.memory_space<vmem>>, %arg7: memref<32x32x128xbf16, #tpu.memory_space<vmem>>, %arg8: memref<256x384xbf16, #tpu.memory_space<vmem>>, %arg9: memref<1x384xf32, #tpu.memory_space<vmem>>, %arg10: memref<6x3x128xf32, #tpu.memory_space<vmem>>, %arg11: memref<1x1x384xf32, #tpu.memory_space<vmem>>, %arg12: memref<1x8x32xf32, #tpu.memory_space<vmem>>, %arg13: memref<192x128xbf16, #tpu.memory_space<vmem>>, %arg14: memref<256x128xf32, #tpu.memory_space<vmem>>) attributes {dimension_semantics = [#tpu.dimension_semantics<parallel>], iteration_bounds = array<i64: 2>, scalar_prefetch = 0 : i64, scratch_operands = 2 : i64, tpu.core_type = #tpu.core_type<tc>, window_params = [{transform_indices = @transform_0, window_bounds = array<i64: 1, 256, 512>}, {pipeline_mode = #tpu.pipeline_mode<synchronous>, transform_indices = @transform_1, window_bounds = array<i64: 512, 128>}, {pipeline_mode = #tpu.pipeline_mode<synchronous>, transform_indices = @transform_2, window_bounds = array<i64: 8, 128, 128>}, {pipeline_mode = #tpu.pipeline_mode<synchronous>, transform_indices = @transform_3, window_bounds = array<i64: 8, 16, 128>}, {pipeline_mode = #tpu.pipeline_mode<synchronous>, transform_indices = @transform_4, window_bounds = array<i64: 8, 16, 128>}, {pipeline_mode = #tpu.pipeline_mode<synchronous>, transform_indices = @transform_5, window_bounds = array<i64: 16, 16, 128>}, {pipeline_mode = #tpu.pipeline_mode<synchronous>, transform_indices = @transform_6, window_bounds = array<i64: 32, 32, 128>}, {pipeline_mode = #tpu.pipeline_mode<synchronous>, transform_indices = @transform_7, window_bounds = array<i64: 256, 384>}, {pipeline_mode = #tpu.pipeline_mode<synchronous>, transform_indices = @transform_8, window_bounds = array<i64: 1, 384>}, {pipeline_mode = #tpu.pipeline_mode<synchronous>, transform_indices = @transform_9, window_bounds = array<i64: 6, 3, 128>}, {transform_indices = @transform_10, window_bounds = array<i64: 1, 1, 384>}, {transform_indices = @transform_11, window_bounds = array<i64: 1, 8, 32>}]} {
    %cst = arith.constant 0.000000e+00 : bf16
    %0 = vector.broadcast %cst : bf16 to vector<32x128xbf16>
    %c0 = arith.constant 0 : index
    %c0_0 = arith.constant 0 : index
    %1 = vector.load %arg13[%c0, %c0_0] : memref<192x128xbf16, #tpu.memory_space<vmem>>, vector<32x128xbf16>
    tpu.vector_store %arg13[%c0, %c0_0], %0 {strides = array<i32>} : memref<192x128xbf16, #tpu.memory_space<vmem>>, vector<32x128xbf16>,
    %c0_1 = arith.constant 0 : index
    %c0_2 = arith.constant 0 : index
    %c0_3 = arith.constant 0 : index
    %2 = vector.load %arg1[%c0_1, %c0_2, %c0_3] : memref<1x256x512xbf16, #tpu.memory_space<vmem>>, vector<1x256x512xbf16>
    %3 = vector.shape_cast %2 : vector<1x256x512xbf16> to vector<256x512xbf16>
    %c0_4 = arith.constant 0 : index
    %c0_5 = arith.constant 0 : index
    %4 = vector.load %arg2[%c0_4, %c0_5] : memref<512x128xbf16, #tpu.memory_space<vmem>>, vector<512x128xbf16>
    %cst_6 = arith.constant dense<0.000000e+00> : vector<256x128xf32>
    %5 = tpu.matmul %3, %4, %cst_6 {dimension_numbers = #tpu.dot_dimension_numbers<[1], [0], [0], [1], [0, 0, 1, 1], [], []>} : vector<256x512xbf16>, vector<512x128xbf16>, vector<256x128xf32> -> vector<256x128xf32>
    %c0_7 = arith.constant 0 : index
    %c0_8 = arith.constant 0 : index
    %c0_9 = arith.constant 0 : index
    %6 = vector.load %arg10[%c0_7, %c0_8, %c0_9] : memref<6x3x128xf32, #tpu.memory_space<vmem>>, vector<1x3x128xf32>
    %7 = vector.shape_cast %6 : vector<1x3x128xf32> to vector<3x128xf32>
    %8 = vector.extract_strided_slice %7 {offsets = [0, 0], sizes = [1, 128], strides = [1, 1]} : vector<3x128xf32> to vector<1x128xf32>
    %9 = vector.broadcast %8 : vector<1x128xf32> to vector<256x128xf32>
    %10 = arith.addf %5, %9 : vector<256x128xf32>
    %cst_10 = arith.constant 0.000000e+00 : f32
    %11 = vector.broadcast %cst_10 : f32 to vector<256x128xf32>
    %12 = arith.maximumf %10, %11 : vector<256x128xf32>
    %13 = vector.extract_strided_slice %7 {offsets = [1, 0], sizes = [1, 128], strides = [1, 1]} : vector<3x128xf32> to vector<1x128xf32>
    %14 = vector.broadcast %13 : vector<1x128xf32> to vector<256x128xf32>
    %15 = arith.mulf %12, %14 : vector<256x128xf32>
    %16 = vector.extract_strided_slice %7 {offsets = [2, 0], sizes = [1, 128], strides = [1, 1]} : vector<3x128xf32> to vector<1x128xf32>
    %17 = vector.broadcast %16 : vector<1x128xf32> to vector<256x128xf32>
    %18 = arith.addf %15, %17 : vector<256x128xf32>
    %c0_11 = arith.constant 0 : index
    %c0_12 = arith.constant 0 : index
    %19 = vector.load %arg14[%c0_11, %c0_12] : memref<256x128xf32, #tpu.memory_space<vmem>>, vector<256x128xf32>
    tpu.vector_store %arg14[%c0_11, %c0_12], %18 {strides = array<i32>} : memref<256x128xf32, #tpu.memory_space<vmem>>, vector<256x128xf32>,
    %c0_13 = arith.constant 0 : index
    %c0_14 = arith.constant 0 : index
    %20 = tpu.strided_load %arg14[%c0_13, %c0_14] {strides = array<i32: 2, 1>} : memref<256x128xf32, #tpu.memory_space<vmem>>, vector<128x128xf32>
    %c1 = arith.constant 1 : index
    %c0_15 = arith.constant 0 : index
    %21 = tpu.strided_load %arg14[%c1, %c0_15] {strides = array<i32: 2, 1>} : memref<256x128xf32, #tpu.memory_space<vmem>>, vector<128x128xf32>
    %22 = arith.maximumf %20, %21 : vector<128x128xf32>
    %23 = arith.truncf %22 : vector<128x128xf32> to vector<128x128xbf16>
    %c32 = arith.constant 32 : index
    %c0_16 = arith.constant 0 : index
    %24 = vector.load %arg13[%c32, %c0_16] : memref<192x128xbf16, #tpu.memory_space<vmem>>, vector<128x128xbf16>
    tpu.vector_store %arg13[%c32, %c0_16], %23 {strides = array<i32>} : memref<192x128xbf16, #tpu.memory_space<vmem>>, vector<128x128xbf16>,
    %cst_17 = arith.constant 0.000000e+00 : bf16
    %25 = vector.broadcast %cst_17 : bf16 to vector<32x128xbf16>
    %c160 = arith.constant 160 : index
    %c0_18 = arith.constant 0 : index
    %26 = vector.load %arg13[%c160, %c0_18] : memref<192x128xbf16, #tpu.memory_space<vmem>>, vector<32x128xbf16>
    tpu.vector_store %arg13[%c160, %c0_18], %25 {strides = array<i32>} : memref<192x128xbf16, #tpu.memory_space<vmem>>, vector<32x128xbf16>,
    %c0_19 = arith.constant 0 : index
    %c0_20 = arith.constant 0 : index
    %27 = vector.load %arg13[%c0_19, %c0_20] : memref<192x128xbf16, #tpu.memory_space<vmem>>, vector<136x128xbf16>
    %c0_21 = arith.constant 0 : index
    %c0_22 = arith.constant 0 : index
    %c0_23 = arith.constant 0 : index
    %28 = vector.load %arg3[%c0_21, %c0_22, %c0_23] : memref<8x128x128xbf16, #tpu.memory_space<vmem>>, vector<1x128x128xbf16>
    %29 = vector.shape_cast %28 : vector<1x128x128xbf16> to vector<128x128xbf16>
    %cst_24 = arith.constant dense<0.000000e+00> : vector<136x128xf32>
    %30 = tpu.matmul %27, %29, %cst_24 {dimension_numbers = #tpu.dot_dimension_numbers<[1], [0], [0], [1], [0, 0, 1, 1], [], []>} : vector<136x128xbf16>, vector<128x128xbf16>, vector<136x128xf32> -> vector<136x128xf32>
    %c8 = arith.constant 8 : index
    %c0_25 = arith.constant 0 : index
    %31 = vector.load %arg13[%c8, %c0_25] : memref<192x128xbf16, #tpu.memory_space<vmem>>, vector<136x128xbf16>
    %c1_26 = arith.constant 1 : index
    %c0_27 = arith.constant 0 : index
    %c0_28 = arith.constant 0 : index
    %32 = vector.load %arg3[%c1_26, %c0_27, %c0_28] : memref<8x128x128xbf16, #tpu.memory_space<vmem>>, vector<1x128x128xbf16>
    %33 = vector.shape_cast %32 : vector<1x128x128xbf16> to vector<128x128xbf16>
    %cst_29 = arith.constant dense<0.000000e+00> : vector<136x128xf32>
    %34 = tpu.matmul %31, %33, %cst_29 {dimension_numbers = #tpu.dot_dimension_numbers<[1], [0], [0], [1], [0, 0, 1, 1], [], []>} : vector<136x128xbf16>, vector<128x128xbf16>, vector<136x128xf32> -> vector<136x128xf32>
    %35 = arith.addf %30, %34 : vector<136x128xf32>
    %c16 = arith.constant 16 : index
    %c0_30 = arith.constant 0 : index
    %36 = vector.load %arg13[%c16, %c0_30] : memref<192x128xbf16, #tpu.memory_space<vmem>>, vector<136x128xbf16>
    %c2 = arith.constant 2 : index
    %c0_31 = arith.constant 0 : index
    %c0_32 = arith.constant 0 : index
    %37 = vector.load %arg3[%c2, %c0_31, %c0_32] : memref<8x128x128xbf16, #tpu.memory_space<vmem>>, vector<1x128x128xbf16>
    %38 = vector.shape_cast %37 : vector<1x128x128xbf16> to vector<128x128xbf16>
    %cst_33 = arith.constant dense<0.000000e+00> : vector<136x128xf32>
    %39 = tpu.matmul %36, %38, %cst_33 {dimension_numbers = #tpu.dot_dimension_numbers<[1], [0], [0], [1], [0, 0, 1, 1], [], []>} : vector<136x128xbf16>, vector<128x128xbf16>, vector<136x128xf32> -> vector<136x128xf32>
    %40 = arith.addf %35, %39 : vector<136x128xf32>
    %c24 = arith.constant 24 : index
    %c0_34 = arith.constant 0 : index
    %41 = vector.load %arg13[%c24, %c0_34] : memref<192x128xbf16, #tpu.memory_space<vmem>>, vector<136x128xbf16>
    %c3 = arith.constant 3 : index
    %c0_35 = arith.constant 0 : index
    %c0_36 = arith.constant 0 : index
    %42 = vector.load %arg3[%c3, %c0_35, %c0_36] : memref<8x128x128xbf16, #tpu.memory_space<vmem>>, vector<1x128x128xbf16>
    %43 = vector.shape_cast %42 : vector<1x128x128xbf16> to vector<128x128xbf16>
    %cst_37 = arith.constant dense<0.000000e+00> : vector<136x128xf32>
    %44 = tpu.matmul %41, %43, %cst_37 {dimension_numbers = #tpu.dot_dimension_numbers<[1], [0], [0], [1], [0, 0, 1, 1], [], []>} : vector<136x128xbf16>, vector<128x128xbf16>, vector<136x128xf32> -> vector<136x128xf32>
    %45 = arith.addf %40, %44 : vector<136x128xf32>
    %c32_38 = arith.constant 32 : index
    %c0_39 = arith.constant 0 : index
    %46 = vector.load %arg13[%c32_38, %c0_39] : memref<192x128xbf16, #tpu.memory_space<vmem>>, vector<136x128xbf16>
    %c4 = arith.constant 4 : index
    %c0_40 = arith.constant 0 : index
    %c0_41 = arith.constant 0 : index
    %47 = vector.load %arg3[%c4, %c0_40, %c0_41] : memref<8x128x128xbf16, #tpu.memory_space<vmem>>, vector<1x128x128xbf16>
    %48 = vector.shape_cast %47 : vector<1x128x128xbf16> to vector<128x128xbf16>
    %cst_42 = arith.constant dense<0.000000e+00> : vector<136x128xf32>
    %49 = tpu.matmul %46, %48, %cst_42 {dimension_numbers = #tpu.dot_dimension_numbers<[1], [0], [0], [1], [0, 0, 1, 1], [], []>} : vector<136x128xbf16>, vector<128x128xbf16>, vector<136x128xf32> -> vector<136x128xf32>
    %50 = arith.addf %45, %49 : vector<136x128xf32>
    %c40 = arith.constant 40 : index
    %c0_43 = arith.constant 0 : index
    %51 = vector.load %arg13[%c40, %c0_43] : memref<192x128xbf16, #tpu.memory_space<vmem>>, vector<136x128xbf16>
    %c5 = arith.constant 5 : index
    %c0_44 = arith.constant 0 : index
    %c0_45 = arith.constant 0 : index
    %52 = vector.load %arg3[%c5, %c0_44, %c0_45] : memref<8x128x128xbf16, #tpu.memory_space<vmem>>, vector<1x128x128xbf16>
    %53 = vector.shape_cast %52 : vector<1x128x128xbf16> to vector<128x128xbf16>
    %cst_46 = arith.constant dense<0.000000e+00> : vector<136x128xf32>
    %54 = tpu.matmul %51, %53, %cst_46 {dimension_numbers = #tpu.dot_dimension_numbers<[1], [0], [0], [1], [0, 0, 1, 1], [], []>} : vector<136x128xbf16>, vector<128x128xbf16>, vector<136x128xf32> -> vector<136x128xf32>
    %55 = arith.addf %50, %54 : vector<136x128xf32>
    %c48 = arith.constant 48 : index
    %c0_47 = arith.constant 0 : index
    %56 = vector.load %arg13[%c48, %c0_47] : memref<192x128xbf16, #tpu.memory_space<vmem>>, vector<136x128xbf16>
    %c6 = arith.constant 6 : index
    %c0_48 = arith.constant 0 : index
    %c0_49 = arith.constant 0 : index
    %57 = vector.load %arg3[%c6, %c0_48, %c0_49] : memref<8x128x128xbf16, #tpu.memory_space<vmem>>, vector<1x128x128xbf16>
    %58 = vector.shape_cast %57 : vector<1x128x128xbf16> to vector<128x128xbf16>
    %cst_50 = arith.constant dense<0.000000e+00> : vector<136x128xf32>
    %59 = tpu.matmul %56, %58, %cst_50 {dimension_numbers = #tpu.dot_dimension_numbers<[1], [0], [0], [1], [0, 0, 1, 1], [], []>} : vector<136x128xbf16>, vector<128x128xbf16>, vector<136x128xf32> -> vector<136x128xf32>
    %60 = arith.addf %55, %59 : vector<136x128xf32>
    %c56 = arith.constant 56 : index
    %c0_51 = arith.constant 0 : index
    %61 = vector.load %arg13[%c56, %c0_51] : memref<192x128xbf16, #tpu.memory_space<vmem>>, vector<136x128xbf16>
    %c7 = arith.constant 7 : index
    %c0_52 = arith.constant 0 : index
    %c0_53 = arith.constant 0 : index
    %62 = vector.load %arg3[%c7, %c0_52, %c0_53] : memref<8x128x128xbf16, #tpu.memory_space<vmem>>, vector<1x128x128xbf16>
    %63 = vector.shape_cast %62 : vector<1x128x128xbf16> to vector<128x128xbf16>
    %cst_54 = arith.constant dense<0.000000e+00> : vector<136x128xf32>
    %64 = tpu.matmul %61, %63, %cst_54 {dimension_numbers = #tpu.dot_dimension_numbers<[1], [0], [0], [1], [0, 0, 1, 1], [], []>} : vector<136x128xbf16>, vector<128x128xbf16>, vector<136x128xf32> -> vector<136x128xf32>
    %65 = arith.addf %60, %64 : vector<136x128xf32>
    %66 = vector.extract_strided_slice %65 {offsets = [1, 0], sizes = [128, 16], strides = [1, 1]} : vector<136x128xf32> to vector<128x16xf32>
    %67 = vector.extract_strided_slice %65 {offsets = [2, 16], sizes = [128, 16], strides = [1, 1]} : vector<136x128xf32> to vector<128x16xf32>
    %68 = arith.addf %66, %67 : vector<128x16xf32>
    %69 = vector.extract_strided_slice %65 {offsets = [3, 32], sizes = [128, 16], strides = [1, 1]} : vector<136x128xf32> to vector<128x16xf32>
    %70 = arith.addf %68, %69 : vector<128x16xf32>
    %71 = vector.extract_strided_slice %65 {offsets = [4, 48], sizes = [128, 16], strides = [1, 1]} : vector<136x128xf32> to vector<128x16xf32>
    %72 = arith.addf %70, %71 : vector<128x16xf32>
    %73 = vector.extract_strided_slice %65 {offsets = [5, 64], sizes = [128, 16], strides = [1, 1]} : vector<136x128xf32> to vector<128x16xf32>
    %74 = arith.addf %72, %73 : vector<128x16xf32>
    %75 = vector.extract_strided_slice %65 {offsets = [6, 80], sizes = [128, 16], strides = [1, 1]} : vector<136x128xf32> to vector<128x16xf32>
    %76 = arith.addf %74, %75 : vector<128x16xf32>
    %77 = vector.extract_strided_slice %65 {offsets = [7, 96], sizes = [128, 16], strides = [1, 1]} : vector<136x128xf32> to vector<128x16xf32>
    %78 = arith.addf %76, %77 : vector<128x16xf32>
    %79 = vector.extract_strided_slice %65 {offsets = [8, 112], sizes = [128, 16], strides = [1, 1]} : vector<136x128xf32> to vector<128x16xf32>
    %80 = arith.addf %78, %79 : vector<128x16xf32>
    %c1_55 = arith.constant 1 : index
    %c0_56 = arith.constant 0 : index
    %c0_57 = arith.constant 0 : index
    %81 = vector.load %arg10[%c1_55, %c0_56, %c0_57] : memref<6x3x128xf32, #tpu.memory_space<vmem>>, vector<1x3x128xf32>
    %82 = vector.shape_cast %81 : vector<1x3x128xf32> to vector<3x128xf32>
    %83 = vector.extract_strided_slice %82 {offsets = [0, 0], sizes = [1, 16], strides = [1, 1]} : vector<3x128xf32> to vector<1x16xf32>
    %84 = vector.broadcast %83 : vector<1x16xf32> to vector<128x16xf32>
    %85 = arith.addf %80, %84 : vector<128x16xf32>
    %cst_58 = arith.constant 0.000000e+00 : f32
    %86 = vector.broadcast %cst_58 : f32 to vector<128x16xf32>
    %87 = arith.maximumf %85, %86 : vector<128x16xf32>
    %88 = vector.extract_strided_slice %82 {offsets = [1, 0], sizes = [1, 16], strides = [1, 1]} : vector<3x128xf32> to vector<1x16xf32>
    %89 = vector.broadcast %88 : vector<1x16xf32> to vector<128x16xf32>
    %90 = arith.mulf %87, %89 : vector<128x16xf32>
    %91 = vector.extract_strided_slice %82 {offsets = [2, 0], sizes = [1, 16], strides = [1, 1]} : vector<3x128xf32> to vector<1x16xf32>
    %92 = vector.broadcast %91 : vector<1x16xf32> to vector<128x16xf32>
    %93 = arith.addf %90, %92 : vector<128x16xf32>
    %c0_59 = arith.constant 0 : index
    %c0_60 = arith.constant 0 : index
    %94 = vector.load %arg14[%c0_59, %c0_60] : memref<256x128xf32, #tpu.memory_space<vmem>>, vector<128x16xf32>
    tpu.vector_store %arg14[%c0_59, %c0_60], %93 {strides = array<i32>} : memref<256x128xf32, #tpu.memory_space<vmem>>, vector<128x16xf32>,
    %c0_61 = arith.constant 0 : index
    %c0_62 = arith.constant 0 : index
    %95 = tpu.strided_load %arg14[%c0_61, %c0_62] {strides = array<i32: 2, 1>} : memref<256x128xf32, #tpu.memory_space<vmem>>, vector<64x128xf32>
    %c1_63 = arith.constant 1 : index
    %c0_64 = arith.constant 0 : index
    %96 = tpu.strided_load %arg14[%c1_63, %c0_64] {strides = array<i32: 2, 1>} : memref<256x128xf32, #tpu.memory_space<vmem>>, vector<64x128xf32>
    %97 = arith.maximumf %95, %96 : vector<64x128xf32>
    %98 = vector.extract_strided_slice %97 {offsets = [0, 0], sizes = [64, 16], strides = [1, 1]} : vector<64x128xf32> to vector<64x16xf32>
    %99 = arith.truncf %98 : vector<64x16xf32> to vector<64x16xbf16>
    %c32_65 = arith.constant 32 : index
    %c0_66 = arith.constant 0 : index
    %100 = vector.load %arg13[%c32_65, %c0_66] : memref<192x128xbf16, #tpu.memory_space<vmem>>, vector<64x16xbf16>
    tpu.vector_store %arg13[%c32_65, %c0_66], %99 {strides = array<i32>} : memref<192x128xbf16, #tpu.memory_space<vmem>>, vector<64x16xbf16>,
    %cst_67 = arith.constant 0.000000e+00 : bf16
    %101 = vector.broadcast %cst_67 : bf16 to vector<32x128xbf16>
    %c96 = arith.constant 96 : index
    %c0_68 = arith.constant 0 : index
    %102 = vector.load %arg13[%c96, %c0_68] : memref<192x128xbf16, #tpu.memory_space<vmem>>, vector<32x128xbf16>
    tpu.vector_store %arg13[%c96, %c0_68], %101 {strides = array<i32>} : memref<192x128xbf16, #tpu.memory_space<vmem>>, vector<32x128xbf16>,
    %c0_69 = arith.constant 0 : index
    %c0_70 = arith.constant 0 : index
    %103 = vector.load %arg13[%c0_69, %c0_70] : memref<192x128xbf16, #tpu.memory_space<vmem>>, vector<72x16xbf16>
    %c0_71 = arith.constant 0 : index
    %c0_72 = arith.constant 0 : index
    %c0_73 = arith.constant 0 : index
    %104 = vector.load %arg4[%c0_71, %c0_72, %c0_73] : memref<8x16x128xbf16, #tpu.memory_space<vmem>>, vector<1x16x128xbf16>
    %105 = vector.shape_cast %104 : vector<1x16x128xbf16> to vector<16x128xbf16>
    %cst_74 = arith.constant dense<0.000000e+00> : vector<72x128xf32>
    %106 = tpu.matmul %103, %105, %cst_74 {dimension_numbers = #tpu.dot_dimension_numbers<[1], [0], [0], [1], [0, 0, 1, 1], [], []>} : vector<72x16xbf16>, vector<16x128xbf16>, vector<72x128xf32> -> vector<72x128xf32>
    %c8_75 = arith.constant 8 : index
    %c0_76 = arith.constant 0 : index
    %107 = vector.load %arg13[%c8_75, %c0_76] : memref<192x128xbf16, #tpu.memory_space<vmem>>, vector<72x16xbf16>
    %c1_77 = arith.constant 1 : index
    %c0_78 = arith.constant 0 : index
    %c0_79 = arith.constant 0 : index
    %108 = vector.load %arg4[%c1_77, %c0_78, %c0_79] : memref<8x16x128xbf16, #tpu.memory_space<vmem>>, vector<1x16x128xbf16>
    %109 = vector.shape_cast %108 : vector<1x16x128xbf16> to vector<16x128xbf16>
    %cst_80 = arith.constant dense<0.000000e+00> : vector<72x128xf32>
    %110 = tpu.matmul %107, %109, %cst_80 {dimension_numbers = #tpu.dot_dimension_numbers<[1], [0], [0], [1], [0, 0, 1, 1], [], []>} : vector<72x16xbf16>, vector<16x128xbf16>, vector<72x128xf32> -> vector<72x128xf32>
    %111 = arith.addf %106, %110 : vector<72x128xf32>
    %c16_81 = arith.constant 16 : index
    %c0_82 = arith.constant 0 : index
    %112 = vector.load %arg13[%c16_81, %c0_82] : memref<192x128xbf16, #tpu.memory_space<vmem>>, vector<72x16xbf16>
    %c2_83 = arith.constant 2 : index
    %c0_84 = arith.constant 0 : index
    %c0_85 = arith.constant 0 : index
    %113 = vector.load %arg4[%c2_83, %c0_84, %c0_85] : memref<8x16x128xbf16, #tpu.memory_space<vmem>>, vector<1x16x128xbf16>
    %114 = vector.shape_cast %113 : vector<1x16x128xbf16> to vector<16x128xbf16>
    %cst_86 = arith.constant dense<0.000000e+00> : vector<72x128xf32>
    %115 = tpu.matmul %112, %114, %cst_86 {dimension_numbers = #tpu.dot_dimension_numbers<[1], [0], [0], [1], [0, 0, 1, 1], [], []>} : vector<72x16xbf16>, vector<16x128xbf16>, vector<72x128xf32> -> vector<72x128xf32>
    %116 = arith.addf %111, %115 : vector<72x128xf32>
    %c24_87 = arith.constant 24 : index
    %c0_88 = arith.constant 0 : index
    %117 = vector.load %arg13[%c24_87, %c0_88] : memref<192x128xbf16, #tpu.memory_space<vmem>>, vector<72x16xbf16>
    %c3_89 = arith.constant 3 : index
    %c0_90 = arith.constant 0 : index
    %c0_91 = arith.constant 0 : index
    %118 = vector.load %arg4[%c3_89, %c0_90, %c0_91] : memref<8x16x128xbf16, #tpu.memory_space<vmem>>, vector<1x16x128xbf16>
    %119 = vector.shape_cast %118 : vector<1x16x128xbf16> to vector<16x128xbf16>
    %cst_92 = arith.constant dense<0.000000e+00> : vector<72x128xf32>
    %120 = tpu.matmul %117, %119, %cst_92 {dimension_numbers = #tpu.dot_dimension_numbers<[1], [0], [0], [1], [0, 0, 1, 1], [], []>} : vector<72x16xbf16>, vector<16x128xbf16>, vector<72x128xf32> -> vector<72x128xf32>
    %121 = arith.addf %116, %120 : vector<72x128xf32>
    %c32_93 = arith.constant 32 : index
    %c0_94 = arith.constant 0 : index
    %122 = vector.load %arg13[%c32_93, %c0_94] : memref<192x128xbf16, #tpu.memory_space<vmem>>, vector<72x16xbf16>
    %c4_95 = arith.constant 4 : index
    %c0_96 = arith.constant 0 : index
    %c0_97 = arith.constant 0 : index
    %123 = vector.load %arg4[%c4_95, %c0_96, %c0_97] : memref<8x16x128xbf16, #tpu.memory_space<vmem>>, vector<1x16x128xbf16>
    %124 = vector.shape_cast %123 : vector<1x16x128xbf16> to vector<16x128xbf16>
    %cst_98 = arith.constant dense<0.000000e+00> : vector<72x128xf32>
    %125 = tpu.matmul %122, %124, %cst_98 {dimension_numbers = #tpu.dot_dimension_numbers<[1], [0], [0], [1], [0, 0, 1, 1], [], []>} : vector<72x16xbf16>, vector<16x128xbf16>, vector<72x128xf32> -> vector<72x128xf32>
    %126 = arith.addf %121, %125 : vector<72x128xf32>
    %c40_99 = arith.constant 40 : index
    %c0_100 = arith.constant 0 : index
    %127 = vector.load %arg13[%c40_99, %c0_100] : memref<192x128xbf16, #tpu.memory_space<vmem>>, vector<72x16xbf16>
    %c5_101 = arith.constant 5 : index
    %c0_102 = arith.constant 0 : index
    %c0_103 = arith.constant 0 : index
    %128 = vector.load %arg4[%c5_101, %c0_102, %c0_103] : memref<8x16x128xbf16, #tpu.memory_space<vmem>>, vector<1x16x128xbf16>
    %129 = vector.shape_cast %128 : vector<1x16x128xbf16> to vector<16x128xbf16>
    %cst_104 = arith.constant dense<0.000000e+00> : vector<72x128xf32>
    %130 = tpu.matmul %127, %129, %cst_104 {dimension_numbers = #tpu.dot_dimension_numbers<[1], [0], [0], [1], [0, 0, 1, 1], [], []>} : vector<72x16xbf16>, vector<16x128xbf16>, vector<72x128xf32> -> vector<72x128xf32>
    %131 = arith.addf %126, %130 : vector<72x128xf32>
    %c48_105 = arith.constant 48 : index
    %c0_106 = arith.constant 0 : index
    %132 = vector.load %arg13[%c48_105, %c0_106] : memref<192x128xbf16, #tpu.memory_space<vmem>>, vector<72x16xbf16>
    %c6_107 = arith.constant 6 : index
    %c0_108 = arith.constant 0 : index
    %c0_109 = arith.constant 0 : index
    %133 = vector.load %arg4[%c6_107, %c0_108, %c0_109] : memref<8x16x128xbf16, #tpu.memory_space<vmem>>, vector<1x16x128xbf16>
    %134 = vector.shape_cast %133 : vector<1x16x128xbf16> to vector<16x128xbf16>
    %cst_110 = arith.constant dense<0.000000e+00> : vector<72x128xf32>
    %135 = tpu.matmul %132, %134, %cst_110 {dimension_numbers = #tpu.dot_dimension_numbers<[1], [0], [0], [1], [0, 0, 1, 1], [], []>} : vector<72x16xbf16>, vector<16x128xbf16>, vector<72x128xf32> -> vector<72x128xf32>
    %136 = arith.addf %131, %135 : vector<72x128xf32>
    %c56_111 = arith.constant 56 : index
    %c0_112 = arith.constant 0 : index
    %137 = vector.load %arg13[%c56_111, %c0_112] : memref<192x128xbf16, #tpu.memory_space<vmem>>, vector<72x16xbf16>
    %c7_113 = arith.constant 7 : index
    %c0_114 = arith.constant 0 : index
    %c0_115 = arith.constant 0 : index
    %138 = vector.load %arg4[%c7_113, %c0_114, %c0_115] : memref<8x16x128xbf16, #tpu.memory_space<vmem>>, vector<1x16x128xbf16>
    %139 = vector.shape_cast %138 : vector<1x16x128xbf16> to vector<16x128xbf16>
    %cst_116 = arith.constant dense<0.000000e+00> : vector<72x128xf32>
    %140 = tpu.matmul %137, %139, %cst_116 {dimension_numbers = #tpu.dot_dimension_numbers<[1], [0], [0], [1], [0, 0, 1, 1], [], []>} : vector<72x16xbf16>, vector<16x128xbf16>, vector<72x128xf32> -> vector<72x128xf32>
    %141 = arith.addf %136, %140 : vector<72x128xf32>
    %142 = vector.extract_strided_slice %141 {offsets = [1, 0], sizes = [64, 16], strides = [1, 1]} : vector<72x128xf32> to vector<64x16xf32>
    %143 = vector.extract_strided_slice %141 {offsets = [2, 16], sizes = [64, 16], strides = [1, 1]} : vector<72x128xf32> to vector<64x16xf32>
    %144 = arith.addf %142, %143 : vector<64x16xf32>
    %145 = vector.extract_strided_slice %141 {offsets = [3, 32], sizes = [64, 16], strides = [1, 1]} : vector<72x128xf32> to vector<64x16xf32>
    %146 = arith.addf %144, %145 : vector<64x16xf32>
    %147 = vector.extract_strided_slice %141 {offsets = [4, 48], sizes = [64, 16], strides = [1, 1]} : vector<72x128xf32> to vector<64x16xf32>
    %148 = arith.addf %146, %147 : vector<64x16xf32>
    %149 = vector.extract_strided_slice %141 {offsets = [5, 64], sizes = [64, 16], strides = [1, 1]} : vector<72x128xf32> to vector<64x16xf32>
    %150 = arith.addf %148, %149 : vector<64x16xf32>
    %151 = vector.extract_strided_slice %141 {offsets = [6, 80], sizes = [64, 16], strides = [1, 1]} : vector<72x128xf32> to vector<64x16xf32>
    %152 = arith.addf %150, %151 : vector<64x16xf32>
    %153 = vector.extract_strided_slice %141 {offsets = [7, 96], sizes = [64, 16], strides = [1, 1]} : vector<72x128xf32> to vector<64x16xf32>
    %154 = arith.addf %152, %153 : vector<64x16xf32>
    %155 = vector.extract_strided_slice %141 {offsets = [8, 112], sizes = [64, 16], strides = [1, 1]} : vector<72x128xf32> to vector<64x16xf32>
    %156 = arith.addf %154, %155 : vector<64x16xf32>
    %c2_117 = arith.constant 2 : index
    %c0_118 = arith.constant 0 : index
    %c0_119 = arith.constant 0 : index
    %157 = vector.load %arg10[%c2_117, %c0_118, %c0_119] : memref<6x3x128xf32, #tpu.memory_space<vmem>>, vector<1x3x128xf32>
    %158 = vector.shape_cast %157 : vector<1x3x128xf32> to vector<3x128xf32>
    %159 = vector.extract_strided_slice %158 {offsets = [0, 0], sizes = [1, 16], strides = [1, 1]} : vector<3x128xf32> to vector<1x16xf32>
    %160 = vector.broadcast %159 : vector<1x16xf32> to vector<64x16xf32>
    %161 = arith.addf %156, %160 : vector<64x16xf32>
    %cst_120 = arith.constant 0.000000e+00 : f32
    %162 = vector.broadcast %cst_120 : f32 to vector<64x16xf32>
    %163 = arith.maximumf %161, %162 : vector<64x16xf32>
    %164 = vector.extract_strided_slice %158 {offsets = [1, 0], sizes = [1, 16], strides = [1, 1]} : vector<3x128xf32> to vector<1x16xf32>
    %165 = vector.broadcast %164 : vector<1x16xf32> to vector<64x16xf32>
    %166 = arith.mulf %163, %165 : vector<64x16xf32>
    %167 = vector.extract_strided_slice %158 {offsets = [2, 0], sizes = [1, 16], strides = [1, 1]} : vector<3x128xf32> to vector<1x16xf32>
    %168 = vector.broadcast %167 : vector<1x16xf32> to vector<64x16xf32>
    %169 = arith.addf %166, %168 : vector<64x16xf32>
    %c0_121 = arith.constant 0 : index
    %c0_122 = arith.constant 0 : index
    %170 = vector.load %arg14[%c0_121, %c0_122] : memref<256x128xf32, #tpu.memory_space<vmem>>, vector<64x16xf32>
    tpu.vector_store %arg14[%c0_121, %c0_122], %169 {strides = array<i32>} : memref<256x128xf32, #tpu.memory_space<vmem>>, vector<64x16xf32>,
    %c0_123 = arith.constant 0 : index
    %c0_124 = arith.constant 0 : index
    %171 = tpu.strided_load %arg14[%c0_123, %c0_124] {strides = array<i32: 2, 1>} : memref<256x128xf32, #tpu.memory_space<vmem>>, vector<32x128xf32>
    %c1_125 = arith.constant 1 : index
    %c0_126 = arith.constant 0 : index
    %172 = tpu.strided_load %arg14[%c1_125, %c0_126] {strides = array<i32: 2, 1>} : memref<256x128xf32, #tpu.memory_space<vmem>>, vector<32x128xf32>
    %173 = arith.maximumf %171, %172 : vector<32x128xf32>
    %174 = vector.extract_strided_slice %173 {offsets = [0, 0], sizes = [32, 16], strides = [1, 1]} : vector<32x128xf32> to vector<32x16xf32>
    %175 = arith.truncf %174 : vector<32x16xf32> to vector<32x16xbf16>
    %c32_127 = arith.constant 32 : index
    %c0_128 = arith.constant 0 : index
    %176 = vector.load %arg13[%c32_127, %c0_128] : memref<192x128xbf16, #tpu.memory_space<vmem>>, vector<32x16xbf16>
    tpu.vector_store %arg13[%c32_127, %c0_128], %175 {strides = array<i32>} : memref<192x128xbf16, #tpu.memory_space<vmem>>, vector<32x16xbf16>,
    %cst_129 = arith.constant 0.000000e+00 : bf16
    %177 = vector.broadcast %cst_129 : bf16 to vector<32x128xbf16>
    %c64 = arith.constant 64 : index
    %c0_130 = arith.constant 0 : index
    %178 = vector.load %arg13[%c64, %c0_130] : memref<192x128xbf16, #tpu.memory_space<vmem>>, vector<32x128xbf16>
    tpu.vector_store %arg13[%c64, %c0_130], %177 {strides = array<i32>} : memref<192x128xbf16, #tpu.memory_space<vmem>>, vector<32x128xbf16>,
    %c0_131 = arith.constant 0 : index
    %c0_132 = arith.constant 0 : index
    %179 = vector.load %arg13[%c0_131, %c0_132] : memref<192x128xbf16, #tpu.memory_space<vmem>>, vector<40x16xbf16>
    %c0_133 = arith.constant 0 : index
    %c0_134 = arith.constant 0 : index
    %c0_135 = arith.constant 0 : index
    %180 = vector.load %arg5[%c0_133, %c0_134, %c0_135] : memref<8x16x128xbf16, #tpu.memory_space<vmem>>, vector<1x16x128xbf16>
    %181 = vector.shape_cast %180 : vector<1x16x128xbf16> to vector<16x128xbf16>
    %cst_136 = arith.constant dense<0.000000e+00> : vector<40x128xf32>
    %182 = tpu.matmul %179, %181, %cst_136 {dimension_numbers = #tpu.dot_dimension_numbers<[1], [0], [0], [1], [0, 0, 1, 1], [], []>} : vector<40x16xbf16>, vector<16x128xbf16>, vector<40x128xf32> -> vector<40x128xf32>
    %c8_137 = arith.constant 8 : index
    %c0_138 = arith.constant 0 : index
    %183 = vector.load %arg13[%c8_137, %c0_138] : memref<192x128xbf16, #tpu.memory_space<vmem>>, vector<40x16xbf16>
    %c1_139 = arith.constant 1 : index
    %c0_140 = arith.constant 0 : index
    %c0_141 = arith.constant 0 : index
    %184 = vector.load %arg5[%c1_139, %c0_140, %c0_141] : memref<8x16x128xbf16, #tpu.memory_space<vmem>>, vector<1x16x128xbf16>
    %185 = vector.shape_cast %184 : vector<1x16x128xbf16> to vector<16x128xbf16>
    %cst_142 = arith.constant dense<0.000000e+00> : vector<40x128xf32>
    %186 = tpu.matmul %183, %185, %cst_142 {dimension_numbers = #tpu.dot_dimension_numbers<[1], [0], [0], [1], [0, 0, 1, 1], [], []>} : vector<40x16xbf16>, vector<16x128xbf16>, vector<40x128xf32> -> vector<40x128xf32>
    %187 = arith.addf %182, %186 : vector<40x128xf32>
    %c16_143 = arith.constant 16 : index
    %c0_144 = arith.constant 0 : index
    %188 = vector.load %arg13[%c16_143, %c0_144] : memref<192x128xbf16, #tpu.memory_space<vmem>>, vector<40x16xbf16>
    %c2_145 = arith.constant 2 : index
    %c0_146 = arith.constant 0 : index
    %c0_147 = arith.constant 0 : index
    %189 = vector.load %arg5[%c2_145, %c0_146, %c0_147] : memref<8x16x128xbf16, #tpu.memory_space<vmem>>, vector<1x16x128xbf16>
    %190 = vector.shape_cast %189 : vector<1x16x128xbf16> to vector<16x128xbf16>
    %cst_148 = arith.constant dense<0.000000e+00> : vector<40x128xf32>
    %191 = tpu.matmul %188, %190, %cst_148 {dimension_numbers = #tpu.dot_dimension_numbers<[1], [0], [0], [1], [0, 0, 1, 1], [], []>} : vector<40x16xbf16>, vector<16x128xbf16>, vector<40x128xf32> -> vector<40x128xf32>
    %192 = arith.addf %187, %191 : vector<40x128xf32>
    %c24_149 = arith.constant 24 : index
    %c0_150 = arith.constant 0 : index
    %193 = vector.load %arg13[%c24_149, %c0_150] : memref<192x128xbf16, #tpu.memory_space<vmem>>, vector<40x16xbf16>
    %c3_151 = arith.constant 3 : index
    %c0_152 = arith.constant 0 : index
    %c0_153 = arith.constant 0 : index
    %194 = vector.load %arg5[%c3_151, %c0_152, %c0_153] : memref<8x16x128xbf16, #tpu.memory_space<vmem>>, vector<1x16x128xbf16>
    %195 = vector.shape_cast %194 : vector<1x16x128xbf16> to vector<16x128xbf16>
    %cst_154 = arith.constant dense<0.000000e+00> : vector<40x128xf32>
    %196 = tpu.matmul %193, %195, %cst_154 {dimension_numbers = #tpu.dot_dimension_numbers<[1], [0], [0], [1], [0, 0, 1, 1], [], []>} : vector<40x16xbf16>, vector<16x128xbf16>, vector<40x128xf32> -> vector<40x128xf32>
    %197 = arith.addf %192, %196 : vector<40x128xf32>
    %c32_155 = arith.constant 32 : index
    %c0_156 = arith.constant 0 : index
    %198 = vector.load %arg13[%c32_155, %c0_156] : memref<192x128xbf16, #tpu.memory_space<vmem>>, vector<40x16xbf16>
    %c4_157 = arith.constant 4 : index
    %c0_158 = arith.constant 0 : index
    %c0_159 = arith.constant 0 : index
    %199 = vector.load %arg5[%c4_157, %c0_158, %c0_159] : memref<8x16x128xbf16, #tpu.memory_space<vmem>>, vector<1x16x128xbf16>
    %200 = vector.shape_cast %199 : vector<1x16x128xbf16> to vector<16x128xbf16>
    %cst_160 = arith.constant dense<0.000000e+00> : vector<40x128xf32>
    %201 = tpu.matmul %198, %200, %cst_160 {dimension_numbers = #tpu.dot_dimension_numbers<[1], [0], [0], [1], [0, 0, 1, 1], [], []>} : vector<40x16xbf16>, vector<16x128xbf16>, vector<40x128xf32> -> vector<40x128xf32>
    %202 = arith.addf %197, %201 : vector<40x128xf32>
    %c40_161 = arith.constant 40 : index
    %c0_162 = arith.constant 0 : index
    %203 = vector.load %arg13[%c40_161, %c0_162] : memref<192x128xbf16, #tpu.memory_space<vmem>>, vector<40x16xbf16>
    %c5_163 = arith.constant 5 : index
    %c0_164 = arith.constant 0 : index
    %c0_165 = arith.constant 0 : index
    %204 = vector.load %arg5[%c5_163, %c0_164, %c0_165] : memref<8x16x128xbf16, #tpu.memory_space<vmem>>, vector<1x16x128xbf16>
    %205 = vector.shape_cast %204 : vector<1x16x128xbf16> to vector<16x128xbf16>
    %cst_166 = arith.constant dense<0.000000e+00> : vector<40x128xf32>
    %206 = tpu.matmul %203, %205, %cst_166 {dimension_numbers = #tpu.dot_dimension_numbers<[1], [0], [0], [1], [0, 0, 1, 1], [], []>} : vector<40x16xbf16>, vector<16x128xbf16>, vector<40x128xf32> -> vector<40x128xf32>
    %207 = arith.addf %202, %206 : vector<40x128xf32>
    %c48_167 = arith.constant 48 : index
    %c0_168 = arith.constant 0 : index
    %208 = vector.load %arg13[%c48_167, %c0_168] : memref<192x128xbf16, #tpu.memory_space<vmem>>, vector<40x16xbf16>
    %c6_169 = arith.constant 6 : index
    %c0_170 = arith.constant 0 : index
    %c0_171 = arith.constant 0 : index
    %209 = vector.load %arg5[%c6_169, %c0_170, %c0_171] : memref<8x16x128xbf16, #tpu.memory_space<vmem>>, vector<1x16x128xbf16>
    %210 = vector.shape_cast %209 : vector<1x16x128xbf16> to vector<16x128xbf16>
    %cst_172 = arith.constant dense<0.000000e+00> : vector<40x128xf32>
    %211 = tpu.matmul %208, %210, %cst_172 {dimension_numbers = #tpu.dot_dimension_numbers<[1], [0], [0], [1], [0, 0, 1, 1], [], []>} : vector<40x16xbf16>, vector<16x128xbf16>, vector<40x128xf32> -> vector<40x128xf32>
    %212 = arith.addf %207, %211 : vector<40x128xf32>
    %c56_173 = arith.constant 56 : index
    %c0_174 = arith.constant 0 : index
    %213 = vector.load %arg13[%c56_173, %c0_174] : memref<192x128xbf16, #tpu.memory_space<vmem>>, vector<40x16xbf16>
    %c7_175 = arith.constant 7 : index
    %c0_176 = arith.constant 0 : index
    %c0_177 = arith.constant 0 : index
    %214 = vector.load %arg5[%c7_175, %c0_176, %c0_177] : memref<8x16x128xbf16, #tpu.memory_space<vmem>>, vector<1x16x128xbf16>
    %215 = vector.shape_cast %214 : vector<1x16x128xbf16> to vector<16x128xbf16>
    %cst_178 = arith.constant dense<0.000000e+00> : vector<40x128xf32>
    %216 = tpu.matmul %213, %215, %cst_178 {dimension_numbers = #tpu.dot_dimension_numbers<[1], [0], [0], [1], [0, 0, 1, 1], [], []>} : vector<40x16xbf16>, vector<16x128xbf16>, vector<40x128xf32> -> vector<40x128xf32>
    %217 = arith.addf %212, %216 : vector<40x128xf32>
    %218 = vector.extract_strided_slice %217 {offsets = [1, 0], sizes = [32, 16], strides = [1, 1]} : vector<40x128xf32> to vector<32x16xf32>
    %219 = vector.extract_strided_slice %217 {offsets = [2, 16], sizes = [32, 16], strides = [1, 1]} : vector<40x128xf32> to vector<32x16xf32>
    %220 = arith.addf %218, %219 : vector<32x16xf32>
    %221 = vector.extract_strided_slice %217 {offsets = [3, 32], sizes = [32, 16], strides = [1, 1]} : vector<40x128xf32> to vector<32x16xf32>
    %222 = arith.addf %220, %221 : vector<32x16xf32>
    %223 = vector.extract_strided_slice %217 {offsets = [4, 48], sizes = [32, 16], strides = [1, 1]} : vector<40x128xf32> to vector<32x16xf32>
    %224 = arith.addf %222, %223 : vector<32x16xf32>
    %225 = vector.extract_strided_slice %217 {offsets = [5, 64], sizes = [32, 16], strides = [1, 1]} : vector<40x128xf32> to vector<32x16xf32>
    %226 = arith.addf %224, %225 : vector<32x16xf32>
    %227 = vector.extract_strided_slice %217 {offsets = [6, 80], sizes = [32, 16], strides = [1, 1]} : vector<40x128xf32> to vector<32x16xf32>
    %228 = arith.addf %226, %227 : vector<32x16xf32>
    %229 = vector.extract_strided_slice %217 {offsets = [7, 96], sizes = [32, 16], strides = [1, 1]} : vector<40x128xf32> to vector<32x16xf32>
    %230 = arith.addf %228, %229 : vector<32x16xf32>
    %231 = vector.extract_strided_slice %217 {offsets = [8, 112], sizes = [32, 16], strides = [1, 1]} : vector<40x128xf32> to vector<32x16xf32>
    %232 = arith.addf %230, %231 : vector<32x16xf32>
    %c3_179 = arith.constant 3 : index
    %c0_180 = arith.constant 0 : index
    %c0_181 = arith.constant 0 : index
    %233 = vector.load %arg10[%c3_179, %c0_180, %c0_181] : memref<6x3x128xf32, #tpu.memory_space<vmem>>, vector<1x3x128xf32>
    %234 = vector.shape_cast %233 : vector<1x3x128xf32> to vector<3x128xf32>
    %235 = vector.extract_strided_slice %234 {offsets = [0, 0], sizes = [1, 16], strides = [1, 1]} : vector<3x128xf32> to vector<1x16xf32>
    %236 = vector.broadcast %235 : vector<1x16xf32> to vector<32x16xf32>
    %237 = arith.addf %232, %236 : vector<32x16xf32>
    %cst_182 = arith.constant 0.000000e+00 : f32
    %238 = vector.broadcast %cst_182 : f32 to vector<32x16xf32>
    %239 = arith.maximumf %237, %238 : vector<32x16xf32>
    %240 = vector.extract_strided_slice %234 {offsets = [1, 0], sizes = [1, 16], strides = [1, 1]} : vector<3x128xf32> to vector<1x16xf32>
    %241 = vector.broadcast %240 : vector<1x16xf32> to vector<32x16xf32>
    %242 = arith.mulf %239, %241 : vector<32x16xf32>
    %243 = vector.extract_strided_slice %234 {offsets = [2, 0], sizes = [1, 16], strides = [1, 1]} : vector<3x128xf32> to vector<1x16xf32>
    %244 = vector.broadcast %243 : vector<1x16xf32> to vector<32x16xf32>
    %245 = arith.addf %242, %244 : vector<32x16xf32>
    %c0_183 = arith.constant 0 : index
    %c0_184 = arith.constant 0 : index
    %246 = vector.load %arg14[%c0_183, %c0_184] : memref<256x128xf32, #tpu.memory_space<vmem>>, vector<32x16xf32>
    tpu.vector_store %arg14[%c0_183, %c0_184], %245 {strides = array<i32>} : memref<256x128xf32, #tpu.memory_space<vmem>>, vector<32x16xf32>,
    %c0_185 = arith.constant 0 : index
    %c0_186 = arith.constant 0 : index
    %247 = tpu.strided_load %arg14[%c0_185, %c0_186] {strides = array<i32: 2, 1>} : memref<256x128xf32, #tpu.memory_space<vmem>>, vector<16x128xf32>
    %c1_187 = arith.constant 1 : index
    %c0_188 = arith.constant 0 : index
    %248 = tpu.strided_load %arg14[%c1_187, %c0_188] {strides = array<i32: 2, 1>} : memref<256x128xf32, #tpu.memory_space<vmem>>, vector<16x128xf32>
    %249 = arith.maximumf %247, %248 : vector<16x128xf32>
    %250 = vector.extract_strided_slice %249 {offsets = [0, 0], sizes = [16, 16], strides = [1, 1]} : vector<16x128xf32> to vector<16x16xf32>
    %251 = arith.truncf %250 : vector<16x16xf32> to vector<16x16xbf16>
    %c32_189 = arith.constant 32 : index
    %c0_190 = arith.constant 0 : index
    %252 = vector.load %arg13[%c32_189, %c0_190] : memref<192x128xbf16, #tpu.memory_space<vmem>>, vector<16x16xbf16>
    tpu.vector_store %arg13[%c32_189, %c0_190], %251 {strides = array<i32>} : memref<192x128xbf16, #tpu.memory_space<vmem>>, vector<16x16xbf16>,
    %cst_191 = arith.constant 0.000000e+00 : bf16
    %253 = vector.broadcast %cst_191 : bf16 to vector<36x128xbf16>
    %c48_192 = arith.constant 48 : index
    %c0_193 = arith.constant 0 : index
    %254 = vector.load %arg13[%c48_192, %c0_193] : memref<192x128xbf16, #tpu.memory_space<vmem>>, vector<36x128xbf16>
    tpu.vector_store %arg13[%c48_192, %c0_193], %253 {strides = array<i32>} : memref<192x128xbf16, #tpu.memory_space<vmem>>, vector<36x128xbf16>,
    %c0_194 = arith.constant 0 : index
    %c0_195 = arith.constant 0 : index
    %255 = vector.load %arg13[%c0_194, %c0_195] : memref<192x128xbf16, #tpu.memory_space<vmem>>, vector<24x16xbf16>
    %c0_196 = arith.constant 0 : index
    %c0_197 = arith.constant 0 : index
    %c0_198 = arith.constant 0 : index
    %256 = vector.load %arg6[%c0_196, %c0_197, %c0_198] : memref<16x16x128xbf16, #tpu.memory_space<vmem>>, vector<1x16x128xbf16>
    %257 = vector.shape_cast %256 : vector<1x16x128xbf16> to vector<16x128xbf16>
    %cst_199 = arith.constant dense<0.000000e+00> : vector<24x128xf32>
    %258 = tpu.matmul %255, %257, %cst_199 {dimension_numbers = #tpu.dot_dimension_numbers<[1], [0], [0], [1], [0, 0, 1, 1], [], []>} : vector<24x16xbf16>, vector<16x128xbf16>, vector<24x128xf32> -> vector<24x128xf32>
    %c4_200 = arith.constant 4 : index
    %c0_201 = arith.constant 0 : index
    %259 = vector.load %arg13[%c4_200, %c0_201] : memref<192x128xbf16, #tpu.memory_space<vmem>>, vector<24x16xbf16>
    %c1_202 = arith.constant 1 : index
    %c0_203 = arith.constant 0 : index
    %c0_204 = arith.constant 0 : index
    %260 = vector.load %arg6[%c1_202, %c0_203, %c0_204] : memref<16x16x128xbf16, #tpu.memory_space<vmem>>, vector<1x16x128xbf16>
    %261 = vector.shape_cast %260 : vector<1x16x128xbf16> to vector<16x128xbf16>
    %cst_205 = arith.constant dense<0.000000e+00> : vector<24x128xf32>
    %262 = tpu.matmul %259, %261, %cst_205 {dimension_numbers = #tpu.dot_dimension_numbers<[1], [0], [0], [1], [0, 0, 1, 1], [], []>} : vector<24x16xbf16>, vector<16x128xbf16>, vector<24x128xf32> -> vector<24x128xf32>
    %263 = arith.addf %258, %262 : vector<24x128xf32>
    %c8_206 = arith.constant 8 : index
    %c0_207 = arith.constant 0 : index
    %264 = vector.load %arg13[%c8_206, %c0_207] : memref<192x128xbf16, #tpu.memory_space<vmem>>, vector<24x16xbf16>
    %c2_208 = arith.constant 2 : index
    %c0_209 = arith.constant 0 : index
    %c0_210 = arith.constant 0 : index
    %265 = vector.load %arg6[%c2_208, %c0_209, %c0_210] : memref<16x16x128xbf16, #tpu.memory_space<vmem>>, vector<1x16x128xbf16>
    %266 = vector.shape_cast %265 : vector<1x16x128xbf16> to vector<16x128xbf16>
    %cst_211 = arith.constant dense<0.000000e+00> : vector<24x128xf32>
    %267 = tpu.matmul %264, %266, %cst_211 {dimension_numbers = #tpu.dot_dimension_numbers<[1], [0], [0], [1], [0, 0, 1, 1], [], []>} : vector<24x16xbf16>, vector<16x128xbf16>, vector<24x128xf32> -> vector<24x128xf32>
    %268 = arith.addf %263, %267 : vector<24x128xf32>
    %c12 = arith.constant 12 : index
    %c0_212 = arith.constant 0 : index
    %269 = vector.load %arg13[%c12, %c0_212] : memref<192x128xbf16, #tpu.memory_space<vmem>>, vector<24x16xbf16>
    %c3_213 = arith.constant 3 : index
    %c0_214 = arith.constant 0 : index
    %c0_215 = arith.constant 0 : index
    %270 = vector.load %arg6[%c3_213, %c0_214, %c0_215] : memref<16x16x128xbf16, #tpu.memory_space<vmem>>, vector<1x16x128xbf16>
    %271 = vector.shape_cast %270 : vector<1x16x128xbf16> to vector<16x128xbf16>
    %cst_216 = arith.constant dense<0.000000e+00> : vector<24x128xf32>
    %272 = tpu.matmul %269, %271, %cst_216 {dimension_numbers = #tpu.dot_dimension_numbers<[1], [0], [0], [1], [0, 0, 1, 1], [], []>} : vector<24x16xbf16>, vector<16x128xbf16>, vector<24x128xf32> -> vector<24x128xf32>
    %273 = arith.addf %268, %272 : vector<24x128xf32>
    %c16_217 = arith.constant 16 : index
    %c0_218 = arith.constant 0 : index
    %274 = vector.load %arg13[%c16_217, %c0_218] : memref<192x128xbf16, #tpu.memory_space<vmem>>, vector<24x16xbf16>
    %c4_219 = arith.constant 4 : index
    %c0_220 = arith.constant 0 : index
    %c0_221 = arith.constant 0 : index
    %275 = vector.load %arg6[%c4_219, %c0_220, %c0_221] : memref<16x16x128xbf16, #tpu.memory_space<vmem>>, vector<1x16x128xbf16>
    %276 = vector.shape_cast %275 : vector<1x16x128xbf16> to vector<16x128xbf16>
    %cst_222 = arith.constant dense<0.000000e+00> : vector<24x128xf32>
    %277 = tpu.matmul %274, %276, %cst_222 {dimension_numbers = #tpu.dot_dimension_numbers<[1], [0], [0], [1], [0, 0, 1, 1], [], []>} : vector<24x16xbf16>, vector<16x128xbf16>, vector<24x128xf32> -> vector<24x128xf32>
    %278 = arith.addf %273, %277 : vector<24x128xf32>
    %c20 = arith.constant 20 : index
    %c0_223 = arith.constant 0 : index
    %279 = vector.load %arg13[%c20, %c0_223] : memref<192x128xbf16, #tpu.memory_space<vmem>>, vector<24x16xbf16>
    %c5_224 = arith.constant 5 : index
    %c0_225 = arith.constant 0 : index
    %c0_226 = arith.constant 0 : index
    %280 = vector.load %arg6[%c5_224, %c0_225, %c0_226] : memref<16x16x128xbf16, #tpu.memory_space<vmem>>, vector<1x16x128xbf16>
    %281 = vector.shape_cast %280 : vector<1x16x128xbf16> to vector<16x128xbf16>
    %cst_227 = arith.constant dense<0.000000e+00> : vector<24x128xf32>
    %282 = tpu.matmul %279, %281, %cst_227 {dimension_numbers = #tpu.dot_dimension_numbers<[1], [0], [0], [1], [0, 0, 1, 1], [], []>} : vector<24x16xbf16>, vector<16x128xbf16>, vector<24x128xf32> -> vector<24x128xf32>
    %283 = arith.addf %278, %282 : vector<24x128xf32>
    %c24_228 = arith.constant 24 : index
    %c0_229 = arith.constant 0 : index
    %284 = vector.load %arg13[%c24_228, %c0_229] : memref<192x128xbf16, #tpu.memory_space<vmem>>, vector<24x16xbf16>
    %c6_230 = arith.constant 6 : index
    %c0_231 = arith.constant 0 : index
    %c0_232 = arith.constant 0 : index
    %285 = vector.load %arg6[%c6_230, %c0_231, %c0_232] : memref<16x16x128xbf16, #tpu.memory_space<vmem>>, vector<1x16x128xbf16>
    %286 = vector.shape_cast %285 : vector<1x16x128xbf16> to vector<16x128xbf16>
    %cst_233 = arith.constant dense<0.000000e+00> : vector<24x128xf32>
    %287 = tpu.matmul %284, %286, %cst_233 {dimension_numbers = #tpu.dot_dimension_numbers<[1], [0], [0], [1], [0, 0, 1, 1], [], []>} : vector<24x16xbf16>, vector<16x128xbf16>, vector<24x128xf32> -> vector<24x128xf32>
    %288 = arith.addf %283, %287 : vector<24x128xf32>
    %c28 = arith.constant 28 : index
    %c0_234 = arith.constant 0 : index
    %289 = vector.load %arg13[%c28, %c0_234] : memref<192x128xbf16, #tpu.memory_space<vmem>>, vector<24x16xbf16>
    %c7_235 = arith.constant 7 : index
    %c0_236 = arith.constant 0 : index
    %c0_237 = arith.constant 0 : index
    %290 = vector.load %arg6[%c7_235, %c0_236, %c0_237] : memref<16x16x128xbf16, #tpu.memory_space<vmem>>, vector<1x16x128xbf16>
    %291 = vector.shape_cast %290 : vector<1x16x128xbf16> to vector<16x128xbf16>
    %cst_238 = arith.constant dense<0.000000e+00> : vector<24x128xf32>
    %292 = tpu.matmul %289, %291, %cst_238 {dimension_numbers = #tpu.dot_dimension_numbers<[1], [0], [0], [1], [0, 0, 1, 1], [], []>} : vector<24x16xbf16>, vector<16x128xbf16>, vector<24x128xf32> -> vector<24x128xf32>
    %293 = arith.addf %288, %292 : vector<24x128xf32>
    %c32_239 = arith.constant 32 : index
    %c0_240 = arith.constant 0 : index
    %294 = vector.load %arg13[%c32_239, %c0_240] : memref<192x128xbf16, #tpu.memory_space<vmem>>, vector<24x16xbf16>
    %c8_241 = arith.constant 8 : index
    %c0_242 = arith.constant 0 : index
    %c0_243 = arith.constant 0 : index
    %295 = vector.load %arg6[%c8_241, %c0_242, %c0_243] : memref<16x16x128xbf16, #tpu.memory_space<vmem>>, vector<1x16x128xbf16>
    %296 = vector.shape_cast %295 : vector<1x16x128xbf16> to vector<16x128xbf16>
    %cst_244 = arith.constant dense<0.000000e+00> : vector<24x128xf32>
    %297 = tpu.matmul %294, %296, %cst_244 {dimension_numbers = #tpu.dot_dimension_numbers<[1], [0], [0], [1], [0, 0, 1, 1], [], []>} : vector<24x16xbf16>, vector<16x128xbf16>, vector<24x128xf32> -> vector<24x128xf32>
    %298 = arith.addf %293, %297 : vector<24x128xf32>
    %c36 = arith.constant 36 : index
    %c0_245 = arith.constant 0 : index
    %299 = vector.load %arg13[%c36, %c0_245] : memref<192x128xbf16, #tpu.memory_space<vmem>>, vector<24x16xbf16>
    %c9 = arith.constant 9 : index
    %c0_246 = arith.constant 0 : index
    %c0_247 = arith.constant 0 : index
    %300 = vector.load %arg6[%c9, %c0_246, %c0_247] : memref<16x16x128xbf16, #tpu.memory_space<vmem>>, vector<1x16x128xbf16>
    %301 = vector.shape_cast %300 : vector<1x16x128xbf16> to vector<16x128xbf16>
    %cst_248 = arith.constant dense<0.000000e+00> : vector<24x128xf32>
    %302 = tpu.matmul %299, %301, %cst_248 {dimension_numbers = #tpu.dot_dimension_numbers<[1], [0], [0], [1], [0, 0, 1, 1], [], []>} : vector<24x16xbf16>, vector<16x128xbf16>, vector<24x128xf32> -> vector<24x128xf32>
    %303 = arith.addf %298, %302 : vector<24x128xf32>
    %c40_249 = arith.constant 40 : index
    %c0_250 = arith.constant 0 : index
    %304 = vector.load %arg13[%c40_249, %c0_250] : memref<192x128xbf16, #tpu.memory_space<vmem>>, vector<24x16xbf16>
    %c10 = arith.constant 10 : index
    %c0_251 = arith.constant 0 : index
    %c0_252 = arith.constant 0 : index
    %305 = vector.load %arg6[%c10, %c0_251, %c0_252] : memref<16x16x128xbf16, #tpu.memory_space<vmem>>, vector<1x16x128xbf16>
    %306 = vector.shape_cast %305 : vector<1x16x128xbf16> to vector<16x128xbf16>
    %cst_253 = arith.constant dense<0.000000e+00> : vector<24x128xf32>
    %307 = tpu.matmul %304, %306, %cst_253 {dimension_numbers = #tpu.dot_dimension_numbers<[1], [0], [0], [1], [0, 0, 1, 1], [], []>} : vector<24x16xbf16>, vector<16x128xbf16>, vector<24x128xf32> -> vector<24x128xf32>
    %308 = arith.addf %303, %307 : vector<24x128xf32>
    %c44 = arith.constant 44 : index
    %c0_254 = arith.constant 0 : index
    %309 = vector.load %arg13[%c44, %c0_254] : memref<192x128xbf16, #tpu.memory_space<vmem>>, vector<24x16xbf16>
    %c11 = arith.constant 11 : index
    %c0_255 = arith.constant 0 : index
    %c0_256 = arith.constant 0 : index
    %310 = vector.load %arg6[%c11, %c0_255, %c0_256] : memref<16x16x128xbf16, #tpu.memory_space<vmem>>, vector<1x16x128xbf16>
    %311 = vector.shape_cast %310 : vector<1x16x128xbf16> to vector<16x128xbf16>
    %cst_257 = arith.constant dense<0.000000e+00> : vector<24x128xf32>
    %312 = tpu.matmul %309, %311, %cst_257 {dimension_numbers = #tpu.dot_dimension_numbers<[1], [0], [0], [1], [0, 0, 1, 1], [], []>} : vector<24x16xbf16>, vector<16x128xbf16>, vector<24x128xf32> -> vector<24x128xf32>
    %313 = arith.addf %308, %312 : vector<24x128xf32>
    %c48_258 = arith.constant 48 : index
    %c0_259 = arith.constant 0 : index
    %314 = vector.load %arg13[%c48_258, %c0_259] : memref<192x128xbf16, #tpu.memory_space<vmem>>, vector<24x16xbf16>
    %c12_260 = arith.constant 12 : index
    %c0_261 = arith.constant 0 : index
    %c0_262 = arith.constant 0 : index
    %315 = vector.load %arg6[%c12_260, %c0_261, %c0_262] : memref<16x16x128xbf16, #tpu.memory_space<vmem>>, vector<1x16x128xbf16>
    %316 = vector.shape_cast %315 : vector<1x16x128xbf16> to vector<16x128xbf16>
    %cst_263 = arith.constant dense<0.000000e+00> : vector<24x128xf32>
    %317 = tpu.matmul %314, %316, %cst_263 {dimension_numbers = #tpu.dot_dimension_numbers<[1], [0], [0], [1], [0, 0, 1, 1], [], []>} : vector<24x16xbf16>, vector<16x128xbf16>, vector<24x128xf32> -> vector<24x128xf32>
    %318 = arith.addf %313, %317 : vector<24x128xf32>
    %c52 = arith.constant 52 : index
    %c0_264 = arith.constant 0 : index
    %319 = vector.load %arg13[%c52, %c0_264] : memref<192x128xbf16, #tpu.memory_space<vmem>>, vector<24x16xbf16>
    %c13 = arith.constant 13 : index
    %c0_265 = arith.constant 0 : index
    %c0_266 = arith.constant 0 : index
    %320 = vector.load %arg6[%c13, %c0_265, %c0_266] : memref<16x16x128xbf16, #tpu.memory_space<vmem>>, vector<1x16x128xbf16>
    %321 = vector.shape_cast %320 : vector<1x16x128xbf16> to vector<16x128xbf16>
    %cst_267 = arith.constant dense<0.000000e+00> : vector<24x128xf32>
    %322 = tpu.matmul %319, %321, %cst_267 {dimension_numbers = #tpu.dot_dimension_numbers<[1], [0], [0], [1], [0, 0, 1, 1], [], []>} : vector<24x16xbf16>, vector<16x128xbf16>, vector<24x128xf32> -> vector<24x128xf32>
    %323 = arith.addf %318, %322 : vector<24x128xf32>
    %c56_268 = arith.constant 56 : index
    %c0_269 = arith.constant 0 : index
    %324 = vector.load %arg13[%c56_268, %c0_269] : memref<192x128xbf16, #tpu.memory_space<vmem>>, vector<24x16xbf16>
    %c14 = arith.constant 14 : index
    %c0_270 = arith.constant 0 : index
    %c0_271 = arith.constant 0 : index
    %325 = vector.load %arg6[%c14, %c0_270, %c0_271] : memref<16x16x128xbf16, #tpu.memory_space<vmem>>, vector<1x16x128xbf16>
    %326 = vector.shape_cast %325 : vector<1x16x128xbf16> to vector<16x128xbf16>
    %cst_272 = arith.constant dense<0.000000e+00> : vector<24x128xf32>
    %327 = tpu.matmul %324, %326, %cst_272 {dimension_numbers = #tpu.dot_dimension_numbers<[1], [0], [0], [1], [0, 0, 1, 1], [], []>} : vector<24x16xbf16>, vector<16x128xbf16>, vector<24x128xf32> -> vector<24x128xf32>
    %328 = arith.addf %323, %327 : vector<24x128xf32>
    %c60 = arith.constant 60 : index
    %c0_273 = arith.constant 0 : index
    %329 = vector.load %arg13[%c60, %c0_273] : memref<192x128xbf16, #tpu.memory_space<vmem>>, vector<24x16xbf16>
    %c15 = arith.constant 15 : index
    %c0_274 = arith.constant 0 : index
    %c0_275 = arith.constant 0 : index
    %330 = vector.load %arg6[%c15, %c0_274, %c0_275] : memref<16x16x128xbf16, #tpu.memory_space<vmem>>, vector<1x16x128xbf16>
    %331 = vector.shape_cast %330 : vector<1x16x128xbf16> to vector<16x128xbf16>
    %cst_276 = arith.constant dense<0.000000e+00> : vector<24x128xf32>
    %332 = tpu.matmul %329, %331, %cst_276 {dimension_numbers = #tpu.dot_dimension_numbers<[1], [0], [0], [1], [0, 0, 1, 1], [], []>} : vector<24x16xbf16>, vector<16x128xbf16>, vector<24x128xf32> -> vector<24x128xf32>
    %333 = arith.addf %328, %332 : vector<24x128xf32>
    %334 = vector.extract_strided_slice %333 {offsets = [1, 0], sizes = [16, 32], strides = [1, 1]} : vector<24x128xf32> to vector<16x32xf32>
    %335 = vector.extract_strided_slice %333 {offsets = [2, 32], sizes = [16, 32], strides = [1, 1]} : vector<24x128xf32> to vector<16x32xf32>
    %336 = arith.addf %334, %335 : vector<16x32xf32>
    %337 = vector.extract_strided_slice %333 {offsets = [3, 64], sizes = [16, 32], strides = [1, 1]} : vector<24x128xf32> to vector<16x32xf32>
    %338 = arith.addf %336, %337 : vector<16x32xf32>
    %339 = vector.extract_strided_slice %333 {offsets = [4, 96], sizes = [16, 32], strides = [1, 1]} : vector<24x128xf32> to vector<16x32xf32>
    %340 = arith.addf %338, %339 : vector<16x32xf32>
    %c4_277 = arith.constant 4 : index
    %c0_278 = arith.constant 0 : index
    %c0_279 = arith.constant 0 : index
    %341 = vector.load %arg10[%c4_277, %c0_278, %c0_279] : memref<6x3x128xf32, #tpu.memory_space<vmem>>, vector<1x3x128xf32>
    %342 = vector.shape_cast %341 : vector<1x3x128xf32> to vector<3x128xf32>
    %343 = vector.extract_strided_slice %342 {offsets = [0, 0], sizes = [1, 32], strides = [1, 1]} : vector<3x128xf32> to vector<1x32xf32>
    %344 = vector.broadcast %343 : vector<1x32xf32> to vector<16x32xf32>
    %345 = arith.addf %340, %344 : vector<16x32xf32>
    %cst_280 = arith.constant 0.000000e+00 : f32
    %346 = vector.broadcast %cst_280 : f32 to vector<16x32xf32>
    %347 = arith.maximumf %345, %346 : vector<16x32xf32>
    %348 = vector.extract_strided_slice %342 {offsets = [1, 0], sizes = [1, 32], strides = [1, 1]} : vector<3x128xf32> to vector<1x32xf32>
    %349 = vector.broadcast %348 : vector<1x32xf32> to vector<16x32xf32>
    %350 = arith.mulf %347, %349 : vector<16x32xf32>
    %351 = vector.extract_strided_slice %342 {offsets = [2, 0], sizes = [1, 32], strides = [1, 1]} : vector<3x128xf32> to vector<1x32xf32>
    %352 = vector.broadcast %351 : vector<1x32xf32> to vector<16x32xf32>
    %353 = arith.addf %350, %352 : vector<16x32xf32>
    %c0_281 = arith.constant 0 : index
    %c0_282 = arith.constant 0 : index
    %354 = vector.load %arg14[%c0_281, %c0_282] : memref<256x128xf32, #tpu.memory_space<vmem>>, vector<16x32xf32>
    tpu.vector_store %arg14[%c0_281, %c0_282], %353 {strides = array<i32>} : memref<256x128xf32, #tpu.memory_space<vmem>>, vector<16x32xf32>,
    %c0_283 = arith.constant 0 : index
    %c0_284 = arith.constant 0 : index
    %355 = tpu.strided_load %arg14[%c0_283, %c0_284] {strides = array<i32: 2, 1>} : memref<256x128xf32, #tpu.memory_space<vmem>>, vector<8x128xf32>
    %c1_285 = arith.constant 1 : index
    %c0_286 = arith.constant 0 : index
    %356 = tpu.strided_load %arg14[%c1_285, %c0_286] {strides = array<i32: 2, 1>} : memref<256x128xf32, #tpu.memory_space<vmem>>, vector<8x128xf32>
    %357 = arith.maximumf %355, %356 : vector<8x128xf32>
    %358 = vector.extract_strided_slice %357 {offsets = [0, 0], sizes = [8, 32], strides = [1, 1]} : vector<8x128xf32> to vector<8x32xf32>
    %c0_287 = arith.constant 0 : index
    %c0_288 = arith.constant 0 : index
    %c0_289 = arith.constant 0 : index
    %359 = vector.load %arg12[%c0_287, %c0_288, %c0_289] : memref<1x8x32xf32, #tpu.memory_space<vmem>>, vector<1x8x32xf32>
    %360 = vector.shape_cast %359 : vector<1x8x32xf32> to vector<8x32xf32>
    %361 = vector.shape_cast %358 : vector<8x32xf32> to vector<1x8x32xf32>
    tpu.vector_store %arg12[%c0_287, %c0_288, %c0_289], %361 {strides = array<i32>} : memref<1x8x32xf32, #tpu.memory_space<vmem>>, vector<1x8x32xf32>,
    %362 = arith.truncf %358 : vector<8x32xf32> to vector<8x32xbf16>
    %c32_290 = arith.constant 32 : index
    %c0_291 = arith.constant 0 : index
    %363 = vector.load %arg13[%c32_290, %c0_291] : memref<192x128xbf16, #tpu.memory_space<vmem>>, vector<8x32xbf16>
    tpu.vector_store %arg13[%c32_290, %c0_291], %362 {strides = array<i32>} : memref<192x128xbf16, #tpu.memory_space<vmem>>, vector<8x32xbf16>,
    %cst_292 = arith.constant 0.000000e+00 : bf16
    %364 = vector.broadcast %cst_292 : bf16 to vector<38x128xbf16>
    %c40_293 = arith.constant 40 : index
    %c0_294 = arith.constant 0 : index
    %365 = vector.load %arg13[%c40_293, %c0_294] : memref<192x128xbf16, #tpu.memory_space<vmem>>, vector<38x128xbf16>
    tpu.vector_store %arg13[%c40_293, %c0_294], %364 {strides = array<i32>} : memref<192x128xbf16, #tpu.memory_space<vmem>>, vector<38x128xbf16>,
    %c0_295 = arith.constant 0 : index
    %c0_296 = arith.constant 0 : index
    %366 = vector.load %arg13[%c0_295, %c0_296] : memref<192x128xbf16, #tpu.memory_space<vmem>>, vector<16x32xbf16>
    %c0_297 = arith.constant 0 : index
    %c0_298 = arith.constant 0 : index
    %c0_299 = arith.constant 0 : index
    %367 = vector.load %arg7[%c0_297, %c0_298, %c0_299] : memref<32x32x128xbf16, #tpu.memory_space<vmem>>, vector<1x32x128xbf16>
    %368 = vector.shape_cast %367 : vector<1x32x128xbf16> to vector<32x128xbf16>
    %cst_300 = arith.constant dense<0.000000e+00> : vector<16x128xf32>
    %369 = tpu.matmul %366, %368, %cst_300 {dimension_numbers = #tpu.dot_dimension_numbers<[1], [0], [0], [1], [0, 0, 1, 1], [], []>} : vector<16x32xbf16>, vector<32x128xbf16>, vector<16x128xf32> -> vector<16x128xf32>
    %c2_301 = arith.constant 2 : index
    %c0_302 = arith.constant 0 : index
    %370 = vector.load %arg13[%c2_301, %c0_302] : memref<192x128xbf16, #tpu.memory_space<vmem>>, vector<16x32xbf16>
    %c1_303 = arith.constant 1 : index
    %c0_304 = arith.constant 0 : index
    %c0_305 = arith.constant 0 : index
    %371 = vector.load %arg7[%c1_303, %c0_304, %c0_305] : memref<32x32x128xbf16, #tpu.memory_space<vmem>>, vector<1x32x128xbf16>
    %372 = vector.shape_cast %371 : vector<1x32x128xbf16> to vector<32x128xbf16>
    %cst_306 = arith.constant dense<0.000000e+00> : vector<16x128xf32>
    %373 = tpu.matmul %370, %372, %cst_306 {dimension_numbers = #tpu.dot_dimension_numbers<[1], [0], [0], [1], [0, 0, 1, 1], [], []>} : vector<16x32xbf16>, vector<32x128xbf16>, vector<16x128xf32> -> vector<16x128xf32>
    %374 = arith.addf %369, %373 : vector<16x128xf32>
    %c4_307 = arith.constant 4 : index
    %c0_308 = arith.constant 0 : index
    %375 = vector.load %arg13[%c4_307, %c0_308] : memref<192x128xbf16, #tpu.memory_space<vmem>>, vector<16x32xbf16>
    %c2_309 = arith.constant 2 : index
    %c0_310 = arith.constant 0 : index
    %c0_311 = arith.constant 0 : index
    %376 = vector.load %arg7[%c2_309, %c0_310, %c0_311] : memref<32x32x128xbf16, #tpu.memory_space<vmem>>, vector<1x32x128xbf16>
    %377 = vector.shape_cast %376 : vector<1x32x128xbf16> to vector<32x128xbf16>
    %cst_312 = arith.constant dense<0.000000e+00> : vector<16x128xf32>
    %378 = tpu.matmul %375, %377, %cst_312 {dimension_numbers = #tpu.dot_dimension_numbers<[1], [0], [0], [1], [0, 0, 1, 1], [], []>} : vector<16x32xbf16>, vector<32x128xbf16>, vector<16x128xf32> -> vector<16x128xf32>
    %379 = arith.addf %374, %378 : vector<16x128xf32>
    %c6_313 = arith.constant 6 : index
    %c0_314 = arith.constant 0 : index
    %380 = vector.load %arg13[%c6_313, %c0_314] : memref<192x128xbf16, #tpu.memory_space<vmem>>, vector<16x32xbf16>
    %c3_315 = arith.constant 3 : index
    %c0_316 = arith.constant 0 : index
    %c0_317 = arith.constant 0 : index
    %381 = vector.load %arg7[%c3_315, %c0_316, %c0_317] : memref<32x32x128xbf16, #tpu.memory_space<vmem>>, vector<1x32x128xbf16>
    %382 = vector.shape_cast %381 : vector<1x32x128xbf16> to vector<32x128xbf16>
    %cst_318 = arith.constant dense<0.000000e+00> : vector<16x128xf32>
    %383 = tpu.matmul %380, %382, %cst_318 {dimension_numbers = #tpu.dot_dimension_numbers<[1], [0], [0], [1], [0, 0, 1, 1], [], []>} : vector<16x32xbf16>, vector<32x128xbf16>, vector<16x128xf32> -> vector<16x128xf32>
    %384 = arith.addf %379, %383 : vector<16x128xf32>
    %c8_319 = arith.constant 8 : index
    %c0_320 = arith.constant 0 : index
    %385 = vector.load %arg13[%c8_319, %c0_320] : memref<192x128xbf16, #tpu.memory_space<vmem>>, vector<16x32xbf16>
    %c4_321 = arith.constant 4 : index
    %c0_322 = arith.constant 0 : index
    %c0_323 = arith.constant 0 : index
    %386 = vector.load %arg7[%c4_321, %c0_322, %c0_323] : memref<32x32x128xbf16, #tpu.memory_space<vmem>>, vector<1x32x128xbf16>
    %387 = vector.shape_cast %386 : vector<1x32x128xbf16> to vector<32x128xbf16>
    %cst_324 = arith.constant dense<0.000000e+00> : vector<16x128xf32>
    %388 = tpu.matmul %385, %387, %cst_324 {dimension_numbers = #tpu.dot_dimension_numbers<[1], [0], [0], [1], [0, 0, 1, 1], [], []>} : vector<16x32xbf16>, vector<32x128xbf16>, vector<16x128xf32> -> vector<16x128xf32>
    %389 = arith.addf %384, %388 : vector<16x128xf32>
    %c10_325 = arith.constant 10 : index
    %c0_326 = arith.constant 0 : index
    %390 = vector.load %arg13[%c10_325, %c0_326] : memref<192x128xbf16, #tpu.memory_space<vmem>>, vector<16x32xbf16>
    %c5_327 = arith.constant 5 : index
    %c0_328 = arith.constant 0 : index
    %c0_329 = arith.constant 0 : index
    %391 = vector.load %arg7[%c5_327, %c0_328, %c0_329] : memref<32x32x128xbf16, #tpu.memory_space<vmem>>, vector<1x32x128xbf16>
    %392 = vector.shape_cast %391 : vector<1x32x128xbf16> to vector<32x128xbf16>
    %cst_330 = arith.constant dense<0.000000e+00> : vector<16x128xf32>
    %393 = tpu.matmul %390, %392, %cst_330 {dimension_numbers = #tpu.dot_dimension_numbers<[1], [0], [0], [1], [0, 0, 1, 1], [], []>} : vector<16x32xbf16>, vector<32x128xbf16>, vector<16x128xf32> -> vector<16x128xf32>
    %394 = arith.addf %389, %393 : vector<16x128xf32>
    %c12_331 = arith.constant 12 : index
    %c0_332 = arith.constant 0 : index
    %395 = vector.load %arg13[%c12_331, %c0_332] : memref<192x128xbf16, #tpu.memory_space<vmem>>, vector<16x32xbf16>
    %c6_333 = arith.constant 6 : index
    %c0_334 = arith.constant 0 : index
    %c0_335 = arith.constant 0 : index
    %396 = vector.load %arg7[%c6_333, %c0_334, %c0_335] : memref<32x32x128xbf16, #tpu.memory_space<vmem>>, vector<1x32x128xbf16>
    %397 = vector.shape_cast %396 : vector<1x32x128xbf16> to vector<32x128xbf16>
    %cst_336 = arith.constant dense<0.000000e+00> : vector<16x128xf32>
    %398 = tpu.matmul %395, %397, %cst_336 {dimension_numbers = #tpu.dot_dimension_numbers<[1], [0], [0], [1], [0, 0, 1, 1], [], []>} : vector<16x32xbf16>, vector<32x128xbf16>, vector<16x128xf32> -> vector<16x128xf32>
    %399 = arith.addf %394, %398 : vector<16x128xf32>
    %c14_337 = arith.constant 14 : index
    %c0_338 = arith.constant 0 : index
    %400 = vector.load %arg13[%c14_337, %c0_338] : memref<192x128xbf16, #tpu.memory_space<vmem>>, vector<16x32xbf16>
    %c7_339 = arith.constant 7 : index
    %c0_340 = arith.constant 0 : index
    %c0_341 = arith.constant 0 : index
    %401 = vector.load %arg7[%c7_339, %c0_340, %c0_341] : memref<32x32x128xbf16, #tpu.memory_space<vmem>>, vector<1x32x128xbf16>
    %402 = vector.shape_cast %401 : vector<1x32x128xbf16> to vector<32x128xbf16>
    %cst_342 = arith.constant dense<0.000000e+00> : vector<16x128xf32>
    %403 = tpu.matmul %400, %402, %cst_342 {dimension_numbers = #tpu.dot_dimension_numbers<[1], [0], [0], [1], [0, 0, 1, 1], [], []>} : vector<16x32xbf16>, vector<32x128xbf16>, vector<16x128xf32> -> vector<16x128xf32>
    %404 = arith.addf %399, %403 : vector<16x128xf32>
    %c16_343 = arith.constant 16 : index
    %c0_344 = arith.constant 0 : index
    %405 = vector.load %arg13[%c16_343, %c0_344] : memref<192x128xbf16, #tpu.memory_space<vmem>>, vector<16x32xbf16>
    %c8_345 = arith.constant 8 : index
    %c0_346 = arith.constant 0 : index
    %c0_347 = arith.constant 0 : index
    %406 = vector.load %arg7[%c8_345, %c0_346, %c0_347] : memref<32x32x128xbf16, #tpu.memory_space<vmem>>, vector<1x32x128xbf16>
    %407 = vector.shape_cast %406 : vector<1x32x128xbf16> to vector<32x128xbf16>
    %cst_348 = arith.constant dense<0.000000e+00> : vector<16x128xf32>
    %408 = tpu.matmul %405, %407, %cst_348 {dimension_numbers = #tpu.dot_dimension_numbers<[1], [0], [0], [1], [0, 0, 1, 1], [], []>} : vector<16x32xbf16>, vector<32x128xbf16>, vector<16x128xf32> -> vector<16x128xf32>
    %409 = arith.addf %404, %408 : vector<16x128xf32>
    %c18 = arith.constant 18 : index
    %c0_349 = arith.constant 0 : index
    %410 = vector.load %arg13[%c18, %c0_349] : memref<192x128xbf16, #tpu.memory_space<vmem>>, vector<16x32xbf16>
    %c9_350 = arith.constant 9 : index
    %c0_351 = arith.constant 0 : index
    %c0_352 = arith.constant 0 : index
    %411 = vector.load %arg7[%c9_350, %c0_351, %c0_352] : memref<32x32x128xbf16, #tpu.memory_space<vmem>>, vector<1x32x128xbf16>
    %412 = vector.shape_cast %411 : vector<1x32x128xbf16> to vector<32x128xbf16>
    %cst_353 = arith.constant dense<0.000000e+00> : vector<16x128xf32>
    %413 = tpu.matmul %410, %412, %cst_353 {dimension_numbers = #tpu.dot_dimension_numbers<[1], [0], [0], [1], [0, 0, 1, 1], [], []>} : vector<16x32xbf16>, vector<32x128xbf16>, vector<16x128xf32> -> vector<16x128xf32>
    %414 = arith.addf %409, %413 : vector<16x128xf32>
    %c20_354 = arith.constant 20 : index
    %c0_355 = arith.constant 0 : index
    %415 = vector.load %arg13[%c20_354, %c0_355] : memref<192x128xbf16, #tpu.memory_space<vmem>>, vector<16x32xbf16>
    %c10_356 = arith.constant 10 : index
    %c0_357 = arith.constant 0 : index
    %c0_358 = arith.constant 0 : index
    %416 = vector.load %arg7[%c10_356, %c0_357, %c0_358] : memref<32x32x128xbf16, #tpu.memory_space<vmem>>, vector<1x32x128xbf16>
    %417 = vector.shape_cast %416 : vector<1x32x128xbf16> to vector<32x128xbf16>
    %cst_359 = arith.constant dense<0.000000e+00> : vector<16x128xf32>
    %418 = tpu.matmul %415, %417, %cst_359 {dimension_numbers = #tpu.dot_dimension_numbers<[1], [0], [0], [1], [0, 0, 1, 1], [], []>} : vector<16x32xbf16>, vector<32x128xbf16>, vector<16x128xf32> -> vector<16x128xf32>
    %419 = arith.addf %414, %418 : vector<16x128xf32>
    %c22 = arith.constant 22 : index
    %c0_360 = arith.constant 0 : index
    %420 = vector.load %arg13[%c22, %c0_360] : memref<192x128xbf16, #tpu.memory_space<vmem>>, vector<16x32xbf16>
    %c11_361 = arith.constant 11 : index
    %c0_362 = arith.constant 0 : index
    %c0_363 = arith.constant 0 : index
    %421 = vector.load %arg7[%c11_361, %c0_362, %c0_363] : memref<32x32x128xbf16, #tpu.memory_space<vmem>>, vector<1x32x128xbf16>
    %422 = vector.shape_cast %421 : vector<1x32x128xbf16> to vector<32x128xbf16>
    %cst_364 = arith.constant dense<0.000000e+00> : vector<16x128xf32>
    %423 = tpu.matmul %420, %422, %cst_364 {dimension_numbers = #tpu.dot_dimension_numbers<[1], [0], [0], [1], [0, 0, 1, 1], [], []>} : vector<16x32xbf16>, vector<32x128xbf16>, vector<16x128xf32> -> vector<16x128xf32>
    %424 = arith.addf %419, %423 : vector<16x128xf32>
    %c24_365 = arith.constant 24 : index
    %c0_366 = arith.constant 0 : index
    %425 = vector.load %arg13[%c24_365, %c0_366] : memref<192x128xbf16, #tpu.memory_space<vmem>>, vector<16x32xbf16>
    %c12_367 = arith.constant 12 : index
    %c0_368 = arith.constant 0 : index
    %c0_369 = arith.constant 0 : index
    %426 = vector.load %arg7[%c12_367, %c0_368, %c0_369] : memref<32x32x128xbf16, #tpu.memory_space<vmem>>, vector<1x32x128xbf16>
    %427 = vector.shape_cast %426 : vector<1x32x128xbf16> to vector<32x128xbf16>
    %cst_370 = arith.constant dense<0.000000e+00> : vector<16x128xf32>
    %428 = tpu.matmul %425, %427, %cst_370 {dimension_numbers = #tpu.dot_dimension_numbers<[1], [0], [0], [1], [0, 0, 1, 1], [], []>} : vector<16x32xbf16>, vector<32x128xbf16>, vector<16x128xf32> -> vector<16x128xf32>
    %429 = arith.addf %424, %428 : vector<16x128xf32>
    %c26 = arith.constant 26 : index
    %c0_371 = arith.constant 0 : index
    %430 = vector.load %arg13[%c26, %c0_371] : memref<192x128xbf16, #tpu.memory_space<vmem>>, vector<16x32xbf16>
    %c13_372 = arith.constant 13 : index
    %c0_373 = arith.constant 0 : index
    %c0_374 = arith.constant 0 : index
    %431 = vector.load %arg7[%c13_372, %c0_373, %c0_374] : memref<32x32x128xbf16, #tpu.memory_space<vmem>>, vector<1x32x128xbf16>
    %432 = vector.shape_cast %431 : vector<1x32x128xbf16> to vector<32x128xbf16>
    %cst_375 = arith.constant dense<0.000000e+00> : vector<16x128xf32>
    %433 = tpu.matmul %430, %432, %cst_375 {dimension_numbers = #tpu.dot_dimension_numbers<[1], [0], [0], [1], [0, 0, 1, 1], [], []>} : vector<16x32xbf16>, vector<32x128xbf16>, vector<16x128xf32> -> vector<16x128xf32>
    %434 = arith.addf %429, %433 : vector<16x128xf32>
    %c28_376 = arith.constant 28 : index
    %c0_377 = arith.constant 0 : index
    %435 = vector.load %arg13[%c28_376, %c0_377] : memref<192x128xbf16, #tpu.memory_space<vmem>>, vector<16x32xbf16>
    %c14_378 = arith.constant 14 : index
    %c0_379 = arith.constant 0 : index
    %c0_380 = arith.constant 0 : index
    %436 = vector.load %arg7[%c14_378, %c0_379, %c0_380] : memref<32x32x128xbf16, #tpu.memory_space<vmem>>, vector<1x32x128xbf16>
    %437 = vector.shape_cast %436 : vector<1x32x128xbf16> to vector<32x128xbf16>
    %cst_381 = arith.constant dense<0.000000e+00> : vector<16x128xf32>
    %438 = tpu.matmul %435, %437, %cst_381 {dimension_numbers = #tpu.dot_dimension_numbers<[1], [0], [0], [1], [0, 0, 1, 1], [], []>} : vector<16x32xbf16>, vector<32x128xbf16>, vector<16x128xf32> -> vector<16x128xf32>
    %439 = arith.addf %434, %438 : vector<16x128xf32>
    %c30 = arith.constant 30 : index
    %c0_382 = arith.constant 0 : index
    %440 = vector.load %arg13[%c30, %c0_382] : memref<192x128xbf16, #tpu.memory_space<vmem>>, vector<16x32xbf16>
    %c15_383 = arith.constant 15 : index
    %c0_384 = arith.constant 0 : index
    %c0_385 = arith.constant 0 : index
    %441 = vector.load %arg7[%c15_383, %c0_384, %c0_385] : memref<32x32x128xbf16, #tpu.memory_space<vmem>>, vector<1x32x128xbf16>
    %442 = vector.shape_cast %441 : vector<1x32x128xbf16> to vector<32x128xbf16>
    %cst_386 = arith.constant dense<0.000000e+00> : vector<16x128xf32>
    %443 = tpu.matmul %440, %442, %cst_386 {dimension_numbers = #tpu.dot_dimension_numbers<[1], [0], [0], [1], [0, 0, 1, 1], [], []>} : vector<16x32xbf16>, vector<32x128xbf16>, vector<16x128xf32> -> vector<16x128xf32>
    %444 = arith.addf %439, %443 : vector<16x128xf32>
    %c32_387 = arith.constant 32 : index
    %c0_388 = arith.constant 0 : index
    %445 = vector.load %arg13[%c32_387, %c0_388] : memref<192x128xbf16, #tpu.memory_space<vmem>>, vector<16x32xbf16>
    %c16_389 = arith.constant 16 : index
    %c0_390 = arith.constant 0 : index
    %c0_391 = arith.constant 0 : index
    %446 = vector.load %arg7[%c16_389, %c0_390, %c0_391] : memref<32x32x128xbf16, #tpu.memory_space<vmem>>, vector<1x32x128xbf16>
    %447 = vector.shape_cast %446 : vector<1x32x128xbf16> to vector<32x128xbf16>
    %cst_392 = arith.constant dense<0.000000e+00> : vector<16x128xf32>
    %448 = tpu.matmul %445, %447, %cst_392 {dimension_numbers = #tpu.dot_dimension_numbers<[1], [0], [0], [1], [0, 0, 1, 1], [], []>} : vector<16x32xbf16>, vector<32x128xbf16>, vector<16x128xf32> -> vector<16x128xf32>
    %449 = arith.addf %444, %448 : vector<16x128xf32>
    %c34 = arith.constant 34 : index
    %c0_393 = arith.constant 0 : index
    %450 = vector.load %arg13[%c34, %c0_393] : memref<192x128xbf16, #tpu.memory_space<vmem>>, vector<16x32xbf16>
    %c17 = arith.constant 17 : index
    %c0_394 = arith.constant 0 : index
    %c0_395 = arith.constant 0 : index
    %451 = vector.load %arg7[%c17, %c0_394, %c0_395] : memref<32x32x128xbf16, #tpu.memory_space<vmem>>, vector<1x32x128xbf16>
    %452 = vector.shape_cast %451 : vector<1x32x128xbf16> to vector<32x128xbf16>
    %cst_396 = arith.constant dense<0.000000e+00> : vector<16x128xf32>
    %453 = tpu.matmul %450, %452, %cst_396 {dimension_numbers = #tpu.dot_dimension_numbers<[1], [0], [0], [1], [0, 0, 1, 1], [], []>} : vector<16x32xbf16>, vector<32x128xbf16>, vector<16x128xf32> -> vector<16x128xf32>
    %454 = arith.addf %449, %453 : vector<16x128xf32>
    %c36_397 = arith.constant 36 : index
    %c0_398 = arith.constant 0 : index
    %455 = vector.load %arg13[%c36_397, %c0_398] : memref<192x128xbf16, #tpu.memory_space<vmem>>, vector<16x32xbf16>
    %c18_399 = arith.constant 18 : index
    %c0_400 = arith.constant 0 : index
    %c0_401 = arith.constant 0 : index
    %456 = vector.load %arg7[%c18_399, %c0_400, %c0_401] : memref<32x32x128xbf16, #tpu.memory_space<vmem>>, vector<1x32x128xbf16>
    %457 = vector.shape_cast %456 : vector<1x32x128xbf16> to vector<32x128xbf16>
    %cst_402 = arith.constant dense<0.000000e+00> : vector<16x128xf32>
    %458 = tpu.matmul %455, %457, %cst_402 {dimension_numbers = #tpu.dot_dimension_numbers<[1], [0], [0], [1], [0, 0, 1, 1], [], []>} : vector<16x32xbf16>, vector<32x128xbf16>, vector<16x128xf32> -> vector<16x128xf32>
    %459 = arith.addf %454, %458 : vector<16x128xf32>
    %c38 = arith.constant 38 : index
    %c0_403 = arith.constant 0 : index
    %460 = vector.load %arg13[%c38, %c0_403] : memref<192x128xbf16, #tpu.memory_space<vmem>>, vector<16x32xbf16>
    %c19 = arith.constant 19 : index
    %c0_404 = arith.constant 0 : index
    %c0_405 = arith.constant 0 : index
    %461 = vector.load %arg7[%c19, %c0_404, %c0_405] : memref<32x32x128xbf16, #tpu.memory_space<vmem>>, vector<1x32x128xbf16>
    %462 = vector.shape_cast %461 : vector<1x32x128xbf16> to vector<32x128xbf16>
    %cst_406 = arith.constant dense<0.000000e+00> : vector<16x128xf32>
    %463 = tpu.matmul %460, %462, %cst_406 {dimension_numbers = #tpu.dot_dimension_numbers<[1], [0], [0], [1], [0, 0, 1, 1], [], []>} : vector<16x32xbf16>, vector<32x128xbf16>, vector<16x128xf32> -> vector<16x128xf32>
    %464 = arith.addf %459, %463 : vector<16x128xf32>
    %c40_407 = arith.constant 40 : index
    %c0_408 = arith.constant 0 : index
    %465 = vector.load %arg13[%c40_407, %c0_408] : memref<192x128xbf16, #tpu.memory_space<vmem>>, vector<16x32xbf16>
    %c20_409 = arith.constant 20 : index
    %c0_410 = arith.constant 0 : index
    %c0_411 = arith.constant 0 : index
    %466 = vector.load %arg7[%c20_409, %c0_410, %c0_411] : memref<32x32x128xbf16, #tpu.memory_space<vmem>>, vector<1x32x128xbf16>
    %467 = vector.shape_cast %466 : vector<1x32x128xbf16> to vector<32x128xbf16>
    %cst_412 = arith.constant dense<0.000000e+00> : vector<16x128xf32>
    %468 = tpu.matmul %465, %467, %cst_412 {dimension_numbers = #tpu.dot_dimension_numbers<[1], [0], [0], [1], [0, 0, 1, 1], [], []>} : vector<16x32xbf16>, vector<32x128xbf16>, vector<16x128xf32> -> vector<16x128xf32>
    %469 = arith.addf %464, %468 : vector<16x128xf32>
    %c42 = arith.constant 42 : index
    %c0_413 = arith.constant 0 : index
    %470 = vector.load %arg13[%c42, %c0_413] : memref<192x128xbf16, #tpu.memory_space<vmem>>, vector<16x32xbf16>
    %c21 = arith.constant 21 : index
    %c0_414 = arith.constant 0 : index
    %c0_415 = arith.constant 0 : index
    %471 = vector.load %arg7[%c21, %c0_414, %c0_415] : memref<32x32x128xbf16, #tpu.memory_space<vmem>>, vector<1x32x128xbf16>
    %472 = vector.shape_cast %471 : vector<1x32x128xbf16> to vector<32x128xbf16>
    %cst_416 = arith.constant dense<0.000000e+00> : vector<16x128xf32>
    %473 = tpu.matmul %470, %472, %cst_416 {dimension_numbers = #tpu.dot_dimension_numbers<[1], [0], [0], [1], [0, 0, 1, 1], [], []>} : vector<16x32xbf16>, vector<32x128xbf16>, vector<16x128xf32> -> vector<16x128xf32>
    %474 = arith.addf %469, %473 : vector<16x128xf32>
    %c44_417 = arith.constant 44 : index
    %c0_418 = arith.constant 0 : index
    %475 = vector.load %arg13[%c44_417, %c0_418] : memref<192x128xbf16, #tpu.memory_space<vmem>>, vector<16x32xbf16>
    %c22_419 = arith.constant 22 : index
    %c0_420 = arith.constant 0 : index
    %c0_421 = arith.constant 0 : index
    %476 = vector.load %arg7[%c22_419, %c0_420, %c0_421] : memref<32x32x128xbf16, #tpu.memory_space<vmem>>, vector<1x32x128xbf16>
    %477 = vector.shape_cast %476 : vector<1x32x128xbf16> to vector<32x128xbf16>
    %cst_422 = arith.constant dense<0.000000e+00> : vector<16x128xf32>
    %478 = tpu.matmul %475, %477, %cst_422 {dimension_numbers = #tpu.dot_dimension_numbers<[1], [0], [0], [1], [0, 0, 1, 1], [], []>} : vector<16x32xbf16>, vector<32x128xbf16>, vector<16x128xf32> -> vector<16x128xf32>
    %479 = arith.addf %474, %478 : vector<16x128xf32>
    %c46 = arith.constant 46 : index
    %c0_423 = arith.constant 0 : index
    %480 = vector.load %arg13[%c46, %c0_423] : memref<192x128xbf16, #tpu.memory_space<vmem>>, vector<16x32xbf16>
    %c23 = arith.constant 23 : index
    %c0_424 = arith.constant 0 : index
    %c0_425 = arith.constant 0 : index
    %481 = vector.load %arg7[%c23, %c0_424, %c0_425] : memref<32x32x128xbf16, #tpu.memory_space<vmem>>, vector<1x32x128xbf16>
    %482 = vector.shape_cast %481 : vector<1x32x128xbf16> to vector<32x128xbf16>
    %cst_426 = arith.constant dense<0.000000e+00> : vector<16x128xf32>
    %483 = tpu.matmul %480, %482, %cst_426 {dimension_numbers = #tpu.dot_dimension_numbers<[1], [0], [0], [1], [0, 0, 1, 1], [], []>} : vector<16x32xbf16>, vector<32x128xbf16>, vector<16x128xf32> -> vector<16x128xf32>
    %484 = arith.addf %479, %483 : vector<16x128xf32>
    %c48_427 = arith.constant 48 : index
    %c0_428 = arith.constant 0 : index
    %485 = vector.load %arg13[%c48_427, %c0_428] : memref<192x128xbf16, #tpu.memory_space<vmem>>, vector<16x32xbf16>
    %c24_429 = arith.constant 24 : index
    %c0_430 = arith.constant 0 : index
    %c0_431 = arith.constant 0 : index
    %486 = vector.load %arg7[%c24_429, %c0_430, %c0_431] : memref<32x32x128xbf16, #tpu.memory_space<vmem>>, vector<1x32x128xbf16>
    %487 = vector.shape_cast %486 : vector<1x32x128xbf16> to vector<32x128xbf16>
    %cst_432 = arith.constant dense<0.000000e+00> : vector<16x128xf32>
    %488 = tpu.matmul %485, %487, %cst_432 {dimension_numbers = #tpu.dot_dimension_numbers<[1], [0], [0], [1], [0, 0, 1, 1], [], []>} : vector<16x32xbf16>, vector<32x128xbf16>, vector<16x128xf32> -> vector<16x128xf32>
    %489 = arith.addf %484, %488 : vector<16x128xf32>
    %c50 = arith.constant 50 : index
    %c0_433 = arith.constant 0 : index
    %490 = vector.load %arg13[%c50, %c0_433] : memref<192x128xbf16, #tpu.memory_space<vmem>>, vector<16x32xbf16>
    %c25 = arith.constant 25 : index
    %c0_434 = arith.constant 0 : index
    %c0_435 = arith.constant 0 : index
    %491 = vector.load %arg7[%c25, %c0_434, %c0_435] : memref<32x32x128xbf16, #tpu.memory_space<vmem>>, vector<1x32x128xbf16>
    %492 = vector.shape_cast %491 : vector<1x32x128xbf16> to vector<32x128xbf16>
    %cst_436 = arith.constant dense<0.000000e+00> : vector<16x128xf32>
    %493 = tpu.matmul %490, %492, %cst_436 {dimension_numbers = #tpu.dot_dimension_numbers<[1], [0], [0], [1], [0, 0, 1, 1], [], []>} : vector<16x32xbf16>, vector<32x128xbf16>, vector<16x128xf32> -> vector<16x128xf32>
    %494 = arith.addf %489, %493 : vector<16x128xf32>
    %c52_437 = arith.constant 52 : index
    %c0_438 = arith.constant 0 : index
    %495 = vector.load %arg13[%c52_437, %c0_438] : memref<192x128xbf16, #tpu.memory_space<vmem>>, vector<16x32xbf16>
    %c26_439 = arith.constant 26 : index
    %c0_440 = arith.constant 0 : index
    %c0_441 = arith.constant 0 : index
    %496 = vector.load %arg7[%c26_439, %c0_440, %c0_441] : memref<32x32x128xbf16, #tpu.memory_space<vmem>>, vector<1x32x128xbf16>
    %497 = vector.shape_cast %496 : vector<1x32x128xbf16> to vector<32x128xbf16>
    %cst_442 = arith.constant dense<0.000000e+00> : vector<16x128xf32>
    %498 = tpu.matmul %495, %497, %cst_442 {dimension_numbers = #tpu.dot_dimension_numbers<[1], [0], [0], [1], [0, 0, 1, 1], [], []>} : vector<16x32xbf16>, vector<32x128xbf16>, vector<16x128xf32> -> vector<16x128xf32>
    %499 = arith.addf %494, %498 : vector<16x128xf32>
    %c54 = arith.constant 54 : index
    %c0_443 = arith.constant 0 : index
    %500 = vector.load %arg13[%c54, %c0_443] : memref<192x128xbf16, #tpu.memory_space<vmem>>, vector<16x32xbf16>
    %c27 = arith.constant 27 : index
    %c0_444 = arith.constant 0 : index
    %c0_445 = arith.constant 0 : index
    %501 = vector.load %arg7[%c27, %c0_444, %c0_445] : memref<32x32x128xbf16, #tpu.memory_space<vmem>>, vector<1x32x128xbf16>
    %502 = vector.shape_cast %501 : vector<1x32x128xbf16> to vector<32x128xbf16>
    %cst_446 = arith.constant dense<0.000000e+00> : vector<16x128xf32>
    %503 = tpu.matmul %500, %502, %cst_446 {dimension_numbers = #tpu.dot_dimension_numbers<[1], [0], [0], [1], [0, 0, 1, 1], [], []>} : vector<16x32xbf16>, vector<32x128xbf16>, vector<16x128xf32> -> vector<16x128xf32>
    %504 = arith.addf %499, %503 : vector<16x128xf32>
    %c56_447 = arith.constant 56 : index
    %c0_448 = arith.constant 0 : index
    %505 = vector.load %arg13[%c56_447, %c0_448] : memref<192x128xbf16, #tpu.memory_space<vmem>>, vector<16x32xbf16>
    %c28_449 = arith.constant 28 : index
    %c0_450 = arith.constant 0 : index
    %c0_451 = arith.constant 0 : index
    %506 = vector.load %arg7[%c28_449, %c0_450, %c0_451] : memref<32x32x128xbf16, #tpu.memory_space<vmem>>, vector<1x32x128xbf16>
    %507 = vector.shape_cast %506 : vector<1x32x128xbf16> to vector<32x128xbf16>
    %cst_452 = arith.constant dense<0.000000e+00> : vector<16x128xf32>
    %508 = tpu.matmul %505, %507, %cst_452 {dimension_numbers = #tpu.dot_dimension_numbers<[1], [0], [0], [1], [0, 0, 1, 1], [], []>} : vector<16x32xbf16>, vector<32x128xbf16>, vector<16x128xf32> -> vector<16x128xf32>
    %509 = arith.addf %504, %508 : vector<16x128xf32>
    %c58 = arith.constant 58 : index
    %c0_453 = arith.constant 0 : index
    %510 = vector.load %arg13[%c58, %c0_453] : memref<192x128xbf16, #tpu.memory_space<vmem>>, vector<16x32xbf16>
    %c29 = arith.constant 29 : index
    %c0_454 = arith.constant 0 : index
    %c0_455 = arith.constant 0 : index
    %511 = vector.load %arg7[%c29, %c0_454, %c0_455] : memref<32x32x128xbf16, #tpu.memory_space<vmem>>, vector<1x32x128xbf16>
    %512 = vector.shape_cast %511 : vector<1x32x128xbf16> to vector<32x128xbf16>
    %cst_456 = arith.constant dense<0.000000e+00> : vector<16x128xf32>
    %513 = tpu.matmul %510, %512, %cst_456 {dimension_numbers = #tpu.dot_dimension_numbers<[1], [0], [0], [1], [0, 0, 1, 1], [], []>} : vector<16x32xbf16>, vector<32x128xbf16>, vector<16x128xf32> -> vector<16x128xf32>
    %514 = arith.addf %509, %513 : vector<16x128xf32>
    %c60_457 = arith.constant 60 : index
    %c0_458 = arith.constant 0 : index
    %515 = vector.load %arg13[%c60_457, %c0_458] : memref<192x128xbf16, #tpu.memory_space<vmem>>, vector<16x32xbf16>
    %c30_459 = arith.constant 30 : index
    %c0_460 = arith.constant 0 : index
    %c0_461 = arith.constant 0 : index
    %516 = vector.load %arg7[%c30_459, %c0_460, %c0_461] : memref<32x32x128xbf16, #tpu.memory_space<vmem>>, vector<1x32x128xbf16>
    %517 = vector.shape_cast %516 : vector<1x32x128xbf16> to vector<32x128xbf16>
    %cst_462 = arith.constant dense<0.000000e+00> : vector<16x128xf32>
    %518 = tpu.matmul %515, %517, %cst_462 {dimension_numbers = #tpu.dot_dimension_numbers<[1], [0], [0], [1], [0, 0, 1, 1], [], []>} : vector<16x32xbf16>, vector<32x128xbf16>, vector<16x128xf32> -> vector<16x128xf32>
    %519 = arith.addf %514, %518 : vector<16x128xf32>
    %c62 = arith.constant 62 : index
    %c0_463 = arith.constant 0 : index
    %520 = vector.load %arg13[%c62, %c0_463] : memref<192x128xbf16, #tpu.memory_space<vmem>>, vector<16x32xbf16>
    %c31 = arith.constant 31 : index
    %c0_464 = arith.constant 0 : index
    %c0_465 = arith.constant 0 : index
    %521 = vector.load %arg7[%c31, %c0_464, %c0_465] : memref<32x32x128xbf16, #tpu.memory_space<vmem>>, vector<1x32x128xbf16>
    %522 = vector.shape_cast %521 : vector<1x32x128xbf16> to vector<32x128xbf16>
    %cst_466 = arith.constant dense<0.000000e+00> : vector<16x128xf32>
    %523 = tpu.matmul %520, %522, %cst_466 {dimension_numbers = #tpu.dot_dimension_numbers<[1], [0], [0], [1], [0, 0, 1, 1], [], []>} : vector<16x32xbf16>, vector<32x128xbf16>, vector<16x128xf32> -> vector<16x128xf32>
    %524 = arith.addf %519, %523 : vector<16x128xf32>
    %525 = vector.extract_strided_slice %524 {offsets = [1, 0], sizes = [8, 64], strides = [1, 1]} : vector<16x128xf32> to vector<8x64xf32>
    %526 = vector.extract_strided_slice %524 {offsets = [2, 64], sizes = [8, 64], strides = [1, 1]} : vector<16x128xf32> to vector<8x64xf32>
    %527 = arith.addf %525, %526 : vector<8x64xf32>
    %c5_467 = arith.constant 5 : index
    %c0_468 = arith.constant 0 : index
    %c0_469 = arith.constant 0 : index
    %528 = vector.load %arg10[%c5_467, %c0_468, %c0_469] : memref<6x3x128xf32, #tpu.memory_space<vmem>>, vector<1x3x128xf32>
    %529 = vector.shape_cast %528 : vector<1x3x128xf32> to vector<3x128xf32>
    %530 = vector.extract_strided_slice %529 {offsets = [0, 0], sizes = [1, 64], strides = [1, 1]} : vector<3x128xf32> to vector<1x64xf32>
    %531 = vector.broadcast %530 : vector<1x64xf32> to vector<8x64xf32>
    %532 = arith.addf %527, %531 : vector<8x64xf32>
    %cst_470 = arith.constant 0.000000e+00 : f32
    %533 = vector.broadcast %cst_470 : f32 to vector<8x64xf32>
    %534 = arith.maximumf %532, %533 : vector<8x64xf32>
    %535 = vector.extract_strided_slice %529 {offsets = [1, 0], sizes = [1, 64], strides = [1, 1]} : vector<3x128xf32> to vector<1x64xf32>
    %536 = vector.broadcast %535 : vector<1x64xf32> to vector<8x64xf32>
    %537 = arith.mulf %534, %536 : vector<8x64xf32>
    %538 = vector.extract_strided_slice %529 {offsets = [2, 0], sizes = [1, 64], strides = [1, 1]} : vector<3x128xf32> to vector<1x64xf32>
    %539 = vector.broadcast %538 : vector<1x64xf32> to vector<8x64xf32>
    %540 = arith.addf %537, %539 : vector<8x64xf32>
    %c0_471 = arith.constant 0 : index
    %c0_472 = arith.constant 0 : index
    %541 = vector.load %arg14[%c0_471, %c0_472] : memref<256x128xf32, #tpu.memory_space<vmem>>, vector<8x64xf32>
    tpu.vector_store %arg14[%c0_471, %c0_472], %540 {strides = array<i32>} : memref<256x128xf32, #tpu.memory_space<vmem>>, vector<8x64xf32>,
    %c0_473 = arith.constant 0 : index
    %c0_474 = arith.constant 0 : index
    %542 = tpu.strided_load %arg14[%c0_473, %c0_474] {strides = array<i32: 2, 1>} : memref<256x128xf32, #tpu.memory_space<vmem>>, vector<4x128xf32>
    %c1_475 = arith.constant 1 : index
    %c0_476 = arith.constant 0 : index
    %543 = tpu.strided_load %arg14[%c1_475, %c0_476] {strides = array<i32: 2, 1>} : memref<256x128xf32, #tpu.memory_space<vmem>>, vector<4x128xf32>
    %544 = arith.maximumf %542, %543 : vector<4x128xf32>
    %545 = vector.extract_strided_slice %544 {offsets = [0, 0], sizes = [4, 64], strides = [1, 1]} : vector<4x128xf32> to vector<4x64xf32>
    %546 = arith.truncf %545 : vector<4x64xf32> to vector<4x64xbf16>
    %cst_477 = arith.constant 0.000000e+00 : f32
    %547 = vector.broadcast %cst_477 : f32 to vector<1x384xf32>
    %548 = vector.extract_strided_slice %546 {offsets = [0, 0], sizes = [1, 64], strides = [1, 1]} : vector<4x64xbf16> to vector<1x64xbf16>
    %c0_478 = arith.constant 0 : index
    %c0_479 = arith.constant 0 : index
    %549 = vector.load %arg8[%c0_478, %c0_479] : memref<256x384xbf16, #tpu.memory_space<vmem>>, vector<64x384xbf16>
    %cst_480 = arith.constant dense<0.000000e+00> : vector<1x384xf32>
    %550 = tpu.matmul %548, %549, %cst_480 {dimension_numbers = #tpu.dot_dimension_numbers<[1], [0], [0], [1], [0, 0, 1, 1], [], []>} : vector<1x64xbf16>, vector<64x384xbf16>, vector<1x384xf32> -> vector<1x384xf32>
    %551 = arith.addf %547, %550 : vector<1x384xf32>
    %552 = vector.extract_strided_slice %546 {offsets = [1, 0], sizes = [1, 64], strides = [1, 1]} : vector<4x64xbf16> to vector<1x64xbf16>
    %c64_481 = arith.constant 64 : index
    %c0_482 = arith.constant 0 : index
    %553 = vector.load %arg8[%c64_481, %c0_482] : memref<256x384xbf16, #tpu.memory_space<vmem>>, vector<64x384xbf16>
    %cst_483 = arith.constant dense<0.000000e+00> : vector<1x384xf32>
    %554 = tpu.matmul %552, %553, %cst_483 {dimension_numbers = #tpu.dot_dimension_numbers<[1], [0], [0], [1], [0, 0, 1, 1], [], []>} : vector<1x64xbf16>, vector<64x384xbf16>, vector<1x384xf32> -> vector<1x384xf32>
    %555 = arith.addf %551, %554 : vector<1x384xf32>
    %556 = vector.extract_strided_slice %546 {offsets = [2, 0], sizes = [1, 64], strides = [1, 1]} : vector<4x64xbf16> to vector<1x64xbf16>
    %c128 = arith.constant 128 : index
    %c0_484 = arith.constant 0 : index
    %557 = vector.load %arg8[%c128, %c0_484] : memref<256x384xbf16, #tpu.memory_space<vmem>>, vector<64x384xbf16>
    %cst_485 = arith.constant dense<0.000000e+00> : vector<1x384xf32>
    %558 = tpu.matmul %556, %557, %cst_485 {dimension_numbers = #tpu.dot_dimension_numbers<[1], [0], [0], [1], [0, 0, 1, 1], [], []>} : vector<1x64xbf16>, vector<64x384xbf16>, vector<1x384xf32> -> vector<1x384xf32>
    %559 = arith.addf %555, %558 : vector<1x384xf32>
    %560 = vector.extract_strided_slice %546 {offsets = [3, 0], sizes = [1, 64], strides = [1, 1]} : vector<4x64xbf16> to vector<1x64xbf16>
    %c192 = arith.constant 192 : index
    %c0_486 = arith.constant 0 : index
    %561 = vector.load %arg8[%c192, %c0_486] : memref<256x384xbf16, #tpu.memory_space<vmem>>, vector<64x384xbf16>
    %cst_487 = arith.constant dense<0.000000e+00> : vector<1x384xf32>
    %562 = tpu.matmul %560, %561, %cst_487 {dimension_numbers = #tpu.dot_dimension_numbers<[1], [0], [0], [1], [0, 0, 1, 1], [], []>} : vector<1x64xbf16>, vector<64x384xbf16>, vector<1x384xf32> -> vector<1x384xf32>
    %563 = arith.addf %559, %562 : vector<1x384xf32>
    %c0_488 = arith.constant 0 : index
    %c0_489 = arith.constant 0 : index
    %564 = vector.load %arg9[%c0_488, %c0_489] : memref<1x384xf32, #tpu.memory_space<vmem>>, vector<1x384xf32>
    %565 = arith.addf %563, %564 : vector<1x384xf32>
    %566 = arith.negf %565 : vector<1x384xf32>
    %567 = math.exp %566 : vector<1x384xf32>
    %cst_490 = arith.constant 1.000000e+00 : f32
    %568 = vector.broadcast %cst_490 : f32 to vector<1x384xf32>
    %569 = arith.addf %568, %567 : vector<1x384xf32>
    %570 = arith.divf %568, %569 : vector<1x384xf32>
    %c0_491 = arith.constant 0 : index
    %c0_492 = arith.constant 0 : index
    %c0_493 = arith.constant 0 : index
    %571 = vector.load %arg11[%c0_491, %c0_492, %c0_493] : memref<1x1x384xf32, #tpu.memory_space<vmem>>, vector<1x1x384xf32>
    %572 = vector.shape_cast %571 : vector<1x1x384xf32> to vector<1x384xf32>
    %573 = vector.shape_cast %570 : vector<1x384xf32> to vector<1x1x384xf32>
    tpu.vector_store %arg11[%c0_491, %c0_492, %c0_493], %573 {strides = array<i32>} : memref<1x1x384xf32, #tpu.memory_space<vmem>>, vector<1x1x384xf32>,
    return
  }
  func.func @transform_0(%arg0: i32) -> (i32, i32, i32) {
    %c0_i32 = arith.constant 0 : i32
    %c0_i32_0 = arith.constant 0 : i32
    %c0_i32_1 = arith.constant 0 : i32
    return %arg0, %c0_i32, %c0_i32_0 : i32, i32, i32
  }
  func.func @transform_1(%arg0: i32) -> (i32, i32) {
    %c0_i32 = arith.constant 0 : i32
    %c0_i32_0 = arith.constant 0 : i32
    %c0_i32_1 = arith.constant 0 : i32
    return %c0_i32, %c0_i32_0 : i32, i32
  }
  func.func @transform_2(%arg0: i32) -> (i32, i32, i32) {
    %c0_i32 = arith.constant 0 : i32
    %c0_i32_0 = arith.constant 0 : i32
    %c0_i32_1 = arith.constant 0 : i32
    %c0_i32_2 = arith.constant 0 : i32
    return %c0_i32, %c0_i32_0, %c0_i32_1 : i32, i32, i32
  }
  func.func @transform_3(%arg0: i32) -> (i32, i32, i32) {
    %c0_i32 = arith.constant 0 : i32
    %c0_i32_0 = arith.constant 0 : i32
    %c0_i32_1 = arith.constant 0 : i32
    %c0_i32_2 = arith.constant 0 : i32
    return %c0_i32, %c0_i32_0, %c0_i32_1 : i32, i32, i32
  }
  func.func @transform_4(%arg0: i32) -> (i32, i32, i32) {
    %c0_i32 = arith.constant 0 : i32
    %c0_i32_0 = arith.constant 0 : i32
    %c0_i32_1 = arith.constant 0 : i32
    %c0_i32_2 = arith.constant 0 : i32
    return %c0_i32, %c0_i32_0, %c0_i32_1 : i32, i32, i32
  }
  func.func @transform_5(%arg0: i32) -> (i32, i32, i32) {
    %c0_i32 = arith.constant 0 : i32
    %c0_i32_0 = arith.constant 0 : i32
    %c0_i32_1 = arith.constant 0 : i32
    %c0_i32_2 = arith.constant 0 : i32
    return %c0_i32, %c0_i32_0, %c0_i32_1 : i32, i32, i32
  }
  func.func @transform_6(%arg0: i32) -> (i32, i32, i32) {
    %c0_i32 = arith.constant 0 : i32
    %c0_i32_0 = arith.constant 0 : i32
    %c0_i32_1 = arith.constant 0 : i32
    %c0_i32_2 = arith.constant 0 : i32
    return %c0_i32, %c0_i32_0, %c0_i32_1 : i32, i32, i32
  }
  func.func @transform_7(%arg0: i32) -> (i32, i32) {
    %c0_i32 = arith.constant 0 : i32
    %c0_i32_0 = arith.constant 0 : i32
    %c0_i32_1 = arith.constant 0 : i32
    return %c0_i32, %c0_i32_0 : i32, i32
  }
  func.func @transform_8(%arg0: i32) -> (i32, i32) {
    %c0_i32 = arith.constant 0 : i32
    %c0_i32_0 = arith.constant 0 : i32
    %c0_i32_1 = arith.constant 0 : i32
    return %c0_i32, %c0_i32_0 : i32, i32
  }
  func.func @transform_9(%arg0: i32) -> (i32, i32, i32) {
    %c0_i32 = arith.constant 0 : i32
    %c0_i32_0 = arith.constant 0 : i32
    %c0_i32_1 = arith.constant 0 : i32
    %c0_i32_2 = arith.constant 0 : i32
    return %c0_i32, %c0_i32_0, %c0_i32_1 : i32, i32, i32
  }
  func.func @transform_10(%arg0: i32) -> (i32, i32, i32) {
    %c0_i32 = arith.constant 0 : i32
    %c0_i32_0 = arith.constant 0 : i32
    %c0_i32_1 = arith.constant 0 : i32
    return %arg0, %c0_i32, %c0_i32_0 : i32, i32, i32
  }
  func.func @transform_11(%arg0: i32) -> (i32, i32, i32) {
    %c0_i32 = arith.constant 0 : i32
    %c0_i32_0 = arith.constant 0 : i32
    %c0_i32_1 = arith.constant 0 : i32
    return %arg0, %c0_i32, %c0_i32_0 : i32, i32, i32
  }
}

</mosaic_0001>

<bundles_post_ra>
// kernel: crepe_forward.1
= control target key start
LH: loop header
LB: loop body
LE: loop exit
PB: predicated region body
PF: predicated region fallthrough
CT: control target
= control target key end

     0   :  { %s14955_s0 = inlined_call_operand.vmem [shape: bf16[2,256,512], index: 0, kind: input, shape index: {}]   ;;  %s14956_s1 = inlined_call_operand.vmem [shape: bf16[512,128], index: 1, kind: input, shape index: {}]   ;;  %s14957_s2 = inlined_call_operand.vmem [shape: bf16[8,128,128], index: 2, kind: input, shape index: {}]   ;;  %s14958_s3 = inlined_call_operand.vmem [shape: bf16[8,16,128], index: 3, kind: input, shape index: {}]   ;;  %s14959_s4 = inlined_call_operand.vmem [shape: bf16[8,16,128], index: 4, kind: input, shape index: {}]   ;;  %s14960_s5 = inlined_call_operand.vmem [shape: bf16[16,16,128], index: 5, kind: input, shape index: {}]   ;;  %s14961_s6 = inlined_call_operand.vmem [shape: bf16[32,32,128], index: 6, kind: input, shape index: {}]   ;;  %s14962_s7 = inlined_call_operand.vmem [shape: bf16[256,384], index: 7, kind: input, shape index: {}]   ;;  %s14963_s8 = inlined_call_operand.vmem [shape: f32[1,384], index: 8, kind: input, shape index: {}]   ;;  %s14964_s9 = inlined_call_operand.vmem [shape: f32[6,3,128], index: 9, kind: input, shape index: {}]   ;;  %s14965_s10 = inlined_call_operand.vmem [shape: f32[2,1,384], index: 10, kind: output, shape index: {0}]   ;;  %s14966_s11 = inlined_call_operand.hbm [shape: f32[2,8,32], index: 11, kind: output, shape index: {1}]  }
   0x1   :  { %14985 = sst [smem:[#allocation17_spill]] %s14955_s0 }
   0x2   :  { %14986 = sst [smem:[#allocation18_spill]] %s14956_s1 }
   0x3   :  { %14987 = sst [smem:[#allocation19_spill]] %s14957_s2 }
   0x4   :  { %17 = vsyncpa [#allocation5], 0 }
   0x5   :  { %19 = vsyncpa [#allocation5 + $0x1], 0  ;;  %s11921_s17 = smov 0   ;;  %s11923_s18 = smov 0  }
   0x6   :  { %s11925_s19 = smov 0   ;;  %s11927_s20 = smov 0  }
   0x7 LB: > { %14988 = sst [smem:[#allocation7_spill]] %s11847_s19  ;;  %s11942_s21 = sadd.s32 4294967295, %s11851_s20   ;;  %s11851_s20 = sphi %s11927_s20, %s15030_s20   ;;  %s11847_s19 = sphi %s11925_s19, %s15027_s19   ;;  %s11843_s18 = sphi %s11923_s18, %s15029_s18   ;;  %s11839_s17 = sphi %s11921_s17, %s15028_s17  }
   0x8   : > { %s9028_s22 = sadd.s32 4294967294, %s11851_s20   ;;  %s11946_s23 = sadd.s32 1, %s11851_s20  }
   0x9   : > { %s273_s24 = sadd.s32 1, %s11847_s19  ;;  %s270_s25 = ssub.s32 %s11851_s20, %s11946_s23 }
   0xa   : > { %p283_p0 = scmp.ne.s32.totalorder %s11847_s19, %s11843_s18  ;;  %p271_p1 = scmp.eq.s32.totalorder %s270_s25, 0 }
   0xb   : > { %p284_p2 = scmp.eq.s32.totalorder %s11942_s21, 1  ;;  %p289_p3 = scmp.ne.s32.totalorder %s11843_s18, %s11839_s17 }
   0xc   : > { %p290_p4 = scmp.eq.s32.totalorder %s9028_s22, 1  ;;  %p9031_p7 = scmp.ge.s32.totalorder %s11851_s20, 1 }
   0xd   : > { %s11957_s26 = scalar_select %p271_p1, %s11847_s19, %s273_s24  }
   0xe   : > { %p11959_p5 = por %p284_p2, %p283_p0  ;;  %p11963_p6 = por %p290_p4, %p289_p3 }
   0xf   : > { %14989 = sst [smem:[#allocation8_spill]] %s11957_s26  ;;  %p343_p8 = scmp.lt.s32.totalorder %s11851_s20, 3 }
  0x11   : > { %p344_p9 = pnand %p9031_p7, %p343_p8 }
  0x13   : > { %347 = sbr.rel (%p344_p9) target bundleno = 2972 (0xb9c), region = 60 }
  0x18   : > { %s14992_s1 = sld [smem:[#allocation18_spill]]  ;;  %p387_p10 = scmp.lt.s32.totalorder %s11942_s21, 1  ;;  %vm3312_vm0 = vcmask 1045504   ;;  %vm3210_vm1 = vcmask 1046528   ;;  %vm3414_vm2 = vcmask 1044480   ;;  %vm3516_vm3 = vcmask 1043456  }
  0x19   : > { %s14993_s0 = sld [smem:[#allocation17_spill]]  ;;  %s11854_s30 = smov 16   ;;  %vm3618_vm4 = vcmask 1042432   ;;  %vm3720_vm5 = vcmask 1041408   ;;  %vm3822_vm6 = vcmask 1040384   ;;  %vm3997_vm7 = vcmask 130048  }
  0x1a   : > { %s12031_s29 = scalar_select %p387_p10, %s11942_s21, 1  ;;  %vm3995_vm8 = vcmask 130049   ;;  %vm4054_vm9 = vcmask 125952   ;;  %vm4013_vm10 = vcmask 122880   ;;  %vm6819_vm11 = vcmask 261120  }
  0x1b   : > { %s14994_s2 = sld [smem:[#allocation19_spill]]  ;;  %s11855_s12 = smov 96   ;;  %vm6817_vm12 = vcmask 261121   ;;  %vm6821_vm13 = vcmask 253952   ;;  %vm6828_vm14 = vcmask 257024   ;;  %vm8332_vm15 = vcmask 516096  }
  0x1c   : > { %s11041_s25 = sshll.u32 %s12031_s29, 9  ;;  %s14981_s13 = smov 80  }
  0x1d   : > { %s14979_s14 = smov 64   ;;  %s14977_s16 = smov 48  }
  0x1e   : > { %v11113_v0 = vld [vmem:[%s14992_s1 + $0x38] sm:$0xff]  ;;  %v11112_v4 = vld [vmem:[%s14992_s1 + $0x30] sm:$0xff]  ;;  %v11111_v8 = vld [vmem:[%s14992_s1 + $0x28] sm:$0xff]  ;;  %s14975_s22 = smov 32   ;;  %s15018_s26 = smov 80  }
  0x1f   : > { %v11121_v1 = vld [vmem:[%s14992_s1 + $0x78] sm:$0xff]  ;;  %1043 = vmatpush.bf16.msra.mxu0 %v11113_v0  ;;  %v11120_v5 = vld [vmem:[%s14992_s1 + $0x70] sm:$0xff]  ;;  %v11119_v9 = vld [vmem:[%s14992_s1 + $0x68] sm:$0xff]  ;;  %s12055_s15 = scalar_lea.vmem %s14993_s0, %s11041_s25  ;;  %s15019_s24 = smov 64  }
  0x20   : > { %v11129_v2 = vld [vmem:[%s14992_s1 + $0xb8] sm:$0xff]  ;;  %1132 = vmatpush.bf16.msra.mxu1 %v11121_v1  ;;  %v11128_v6 = vld [vmem:[%s14992_s1 + $0xb0] sm:$0xff]  ;;  %v11127_v10 = vld [vmem:[%s14992_s1 + $0xa8] sm:$0xff] }
  0x21   : > { %v11137_v3 = vld [vmem:[%s14992_s1 + $0xf8] sm:$0xff]  ;;  %1221 = vmatpush.bf16.msra.mxu2 %v11129_v2  ;;  %v11136_v7 = vld [vmem:[%s14992_s1 + $0xf0] sm:$0xff]  ;;  %v11135_v11 = vld [vmem:[%s14992_s1 + $0xe8] sm:$0xff] }
  0x22   : > { %1310 = vmatpush.bf16.msra.mxu3 %v11137_v3  ;;  %v11110_v12 = vld [vmem:[%s14992_s1 + $0x20] sm:$0xff]  ;;  %v11109_v16 = vld [vmem:[%s14992_s1 + $0x18] sm:$0xff]  ;;  %v11108_v20 = vld [vmem:[%s14992_s1 + $0x10] sm:$0xff] }
  0x23   : > { %1044 = vmatpush.bf16.msra.mxu0 %v11112_v4  ;;  %v11118_v13 = vld [vmem:[%s14992_s1 + $0x60] sm:$0xff]  ;;  %v11117_v17 = vld [vmem:[%s14992_s1 + $0x58] sm:$0xff]  ;;  %v11116_v21 = vld [vmem:[%s14992_s1 + $0x50] sm:$0xff] }
  0x24   : > { %1133 = vmatpush.bf16.msra.mxu1 %v11120_v5  ;;  %v11126_v14 = vld [vmem:[%s14992_s1 + $0xa0] sm:$0xff]  ;;  %v11125_v18 = vld [vmem:[%s14992_s1 + $0x98] sm:$0xff]  ;;  %v11124_v22 = vld [vmem:[%s14992_s1 + $0x90] sm:$0xff] }
  0x25   : > { %1222 = vmatpush.bf16.msra.mxu2 %v11128_v6  ;;  %v11134_v15 = vld [vmem:[%s14992_s1 + $0xe0] sm:$0xff]  ;;  %v11133_v19 = vld [vmem:[%s14992_s1 + $0xd8] sm:$0xff]  ;;  %v11132_v23 = vld [vmem:[%s14992_s1 + $0xd0] sm:$0xff] }
  0x26   : > { %1311 = vmatpush.bf16.msra.mxu3 %v11136_v7  ;;  %v11107_v24 = vld [vmem:[%s14992_s1 + $0x8] sm:$0xff]  ;;  %v11106_v28 = vld [vmem:[%s14992_s1] sm:$0xff]  ;;  %v11044_v33 = vld [vmem:[%s12055_s15 + $0xc] sm:$0xf0] }
  0x27   : > { %1045 = vmatpush.bf16.msra.mxu0 %v11111_v8  ;;  %v11115_v25 = vld [vmem:[%s14992_s1 + $0x48] sm:$0xff]  ;;  %v11114_v29 = vld [vmem:[%s14992_s1 + $0x40] sm:$0xff]  ;;  %v9039_v35 = vld [vmem:[%s12055_s15 + $0x10] sm:$0xf0] }
  0x28   : > { %1134 = vmatpush.bf16.msra.mxu1 %v11119_v9  ;;  %v11123_v26 = vld [vmem:[%s14992_s1 + $0x88] sm:$0xff]  ;;  %v11122_v30 = vld [vmem:[%s14992_s1 + $0x80] sm:$0xff]  ;;  %v11045_v37 = vld [vmem:[%s12055_s15 + $0x14] sm:$0xf0] }
  0x29   : > { %1223 = vmatpush.bf16.msra.mxu2 %v11127_v10  ;;  %v11131_v27 = vld [vmem:[%s14992_s1 + $0xc8] sm:$0xff]  ;;  %v11130_v31 = vld [vmem:[%s14992_s1 + $0xc0] sm:$0xff]  ;;  %v9047_v39 = vld [vmem:[%s12055_s15 + $0x18] sm:$0xf0] }
  0x2a   : > { %1312 = vmatpush.bf16.msra.mxu3 %v11135_v11  ;;  %v9037_v32 = vld [vmem:[%s12055_s15] sm:$0xf]  ;;  %v11042_v34 = vld [vmem:[%s12055_s15 + $0x4] sm:$0xf]  ;;  %v9045_v36 = vld [vmem:[%s12055_s15 + $0x8] sm:$0xf] }
  0x2b   : > { %1046 = vmatpush.bf16.msra.mxu0 %v11110_v12  ;;  %v11043_v38 = vld [vmem:[%s12055_s15 + $0xc] sm:$0xf]  ;;  %v9038_v40 = vor.u32 %v11044_v33, %v9037_v32  ;;  %v9042_v41 = vor.u32 %v11042_v34, %v9039_v35  ;;  %v9046_v42 = vor.u32 %v11045_v37, %v9045_v36  ;;  %v11169_v44 = vld [vmem:[%s14994_s2 + $0xb8] sm:$0xff]  ;;  %v9053_v48 = vld [vmem:[%s12055_s15 + $0x20] sm:$0xf] }
  0x2c   : > { %1135 = vmatpush.bf16.msra.mxu1 %v11118_v13  ;;  %v9050_v43 = vor.u32 %v11043_v38, %v9047_v39  ;;  %v11153_v45 = vld [vmem:[%s14994_s2 + $0x78] sm:$0xff]  ;;  %v11048_v49 = vld [vmem:[%s12055_s15 + $0x2c] sm:$0xf0]  ;;  %v11046_v50 = vld [vmem:[%s12055_s15 + $0x24] sm:$0xf] }
  0x2d   : > { %1224 = vmatpush.bf16.msra.mxu2 %v11126_v14  ;;  %v11185_v46 = vld [vmem:[%s14994_s2 + $0xf8] sm:$0xff]  ;;  %v9055_v51 = vld [vmem:[%s12055_s15 + $0x30] sm:$0xf0]  ;;  %v9061_v52 = vld [vmem:[%s12055_s15 + $0x28] sm:$0xf]  ;;  %v9054_v56 = vor.u32 %v11048_v49, %v9053_v48 }
  0x2e   : > { %1313 = vmatpush.bf16.msra.mxu3 %v11134_v15  ;;  %v11145_v47 = vld [vmem:[%s14994_s2 + $0x38] sm:$0xff]  ;;  %v11047_v54 = vld [vmem:[%s12055_s15 + $0x2c] sm:$0xf]  ;;  %v9058_v57 = vor.u32 %v11046_v50, %v9055_v51  ;;  %v9069_v60 = vld [vmem:[%s12055_s15 + $0x40] sm:$0xf] }
  0x2f   : > { %1047 = vmatpush.bf16.msra.mxu0 %v11109_v16  ;;  %v11049_v53 = vld [vmem:[%s12055_s15 + $0x34] sm:$0xf0]  ;;  %v9063_v55 = vld [vmem:[%s12055_s15 + $0x38] sm:$0xf0]  ;;  %v11052_v61 = vld [vmem:[%s12055_s15 + $0x4c] sm:$0xf0] }
  0x30   : > { %1136 = vmatpush.bf16.msra.mxu1 %v11117_v17  ;;  %v9062_v58 = vor.u32 %v11049_v53, %v9061_v52  ;;  %v9066_v59 = vor.u32 %v11047_v54, %v9063_v55  ;;  %v11050_v62 = vld [vmem:[%s12055_s15 + $0x44] sm:$0xf]  ;;  %v9071_v63 = vld [vmem:[%s12055_s15 + $0x50] sm:$0xf0]  ;;  %v9077_v0 = vld [vmem:[%s12055_s15 + $0x48] sm:$0xf]  ;;  %v9070_v4 = vor.u32 %v11052_v61, %v9069_v60 }
  0x31   : > { %1225 = vmatpush.bf16.msra.mxu2 %v11125_v18  ;;  %v11053_v1 = vld [vmem:[%s12055_s15 + $0x54] sm:$0xf0]  ;;  %v11051_v2 = vld [vmem:[%s12055_s15 + $0x4c] sm:$0xf]  ;;  %v9079_v3 = vld [vmem:[%s12055_s15 + $0x58] sm:$0xf0]  ;;  %v9074_v5 = vor.u32 %v11050_v62, %v9071_v63 }
  0x32   : > { %1314 = vmatpush.bf16.msra.mxu3 %v11133_v19  ;;  %v9078_v6 = vor.u32 %v11053_v1, %v9077_v0  ;;  %v9082_v7 = vor.u32 %v11051_v2, %v9079_v3  ;;  %v11168_v8 = vld [vmem:[%s14994_s2 + $0xb0] sm:$0xff]  ;;  %v9085_v12 = vld [vmem:[%s12055_s15 + $0x60] sm:$0xf]  ;;  %v11054_v14 = vld [vmem:[%s12055_s15 + $0x64] sm:$0xf] }
  0x33   : > { %1048 = vmatpush.bf16.msra.mxu0 %v11108_v20  ;;  %v11152_v9 = vld [vmem:[%s14994_s2 + $0x70] sm:$0xff]  ;;  %v9093_v16 = vld [vmem:[%s12055_s15 + $0x68] sm:$0xf]  ;;  %v11057_v17 = vld [vmem:[%s12055_s15 + $0x74] sm:$0xf0] }
  0x34   : > { %1137 = vmatpush.bf16.msra.mxu1 %v11116_v21  ;;  %v11184_v10 = vld [vmem:[%s14994_s2 + $0xf0] sm:$0xff]  ;;  %v11055_v18 = vld [vmem:[%s12055_s15 + $0x6c] sm:$0xf]  ;;  %v9095_v19 = vld [vmem:[%s12055_s15 + $0x78] sm:$0xf0] }
  0x35   : > { %1226 = vmatpush.bf16.msra.mxu2 %v11124_v22  ;;  %v11144_v11 = vld [vmem:[%s14994_s2 + $0x30] sm:$0xff]  ;;  %v9094_v22 = vor.u32 %v11057_v17, %v9093_v16  ;;  %v11167_v36 = vld [vmem:[%s14994_s2 + $0xa8] sm:$0xff]  ;;  %v9133_v52 = vld [vmem:[%s12055_s15 + $0xc0] sm:$0xf] }
  0x36   : > { %1315 = vmatpush.bf16.msra.mxu3 %v11132_v23  ;;  %v11056_v13 = vld [vmem:[%s12055_s15 + $0x6c] sm:$0xf0]  ;;  %v9087_v15 = vld [vmem:[%s12055_s15 + $0x70] sm:$0xf0]  ;;  %v9098_v23 = vor.u32 %v11055_v18, %v9095_v19  ;;  %v11151_v37 = vld [vmem:[%s14994_s2 + $0x68] sm:$0xff] }
  0x37   : > { %1049 = vmatpush.bf16.msra.mxu0 %v11107_v24  ;;  %v9086_v20 = vor.u32 %v11056_v13, %v9085_v12  ;;  %v9090_v21 = vor.u32 %v11054_v14, %v9087_v15  ;;  %v9101_v24 = vld [vmem:[%s12055_s15 + $0x80] sm:$0xf]  ;;  %v11183_v38 = vld [vmem:[%s14994_s2 + $0xe8] sm:$0xff]  ;;  %v11068_v53 = vld [vmem:[%s12055_s15 + $0xcc] sm:$0xf0] }
  0x38   : > { %1138 = vmatpush.bf16.msra.mxu1 %v11115_v25  ;;  %v11060_v25 = vld [vmem:[%s12055_s15 + $0x8c] sm:$0xf0]  ;;  %v11143_v39 = vld [vmem:[%s14994_s2 + $0x28] sm:$0xff]  ;;  %v11066_v54 = vld [vmem:[%s12055_s15 + $0xc4] sm:$0xf]  ;;  %v9134_v60 = vor.u32 %v11068_v53, %v9133_v52 }
  0x39   : > { %1227 = vmatpush.bf16.msra.mxu2 %v11123_v26  ;;  %v11058_v26 = vld [vmem:[%s12055_s15 + $0x84] sm:$0xf]  ;;  %v9102_v32 = vor.u32 %v11060_v25, %v9101_v24  ;;  %v9135_v55 = vld [vmem:[%s12055_s15 + $0xd0] sm:$0xf0]  ;;  %v9149_v0 = vld [vmem:[%s12055_s15 + $0xe0] sm:$0xf] }
  0x3a   : > { %1316 = vmatpush.bf16.msra.mxu3 %v11131_v27  ;;  %v9103_v27 = vld [vmem:[%s12055_s15 + $0x90] sm:$0xf0]  ;;  %v9138_v61 = vor.u32 %v11066_v54, %v9135_v55  ;;  %v11072_v1 = vld [vmem:[%s12055_s15 + $0xec] sm:$0xf0]  ;;  %v11070_v2 = vld [vmem:[%s12055_s15 + $0xe4] sm:$0xf] }
  0x3b   : > { %1050 = vmatpush.bf16.msra.mxu0 %v11106_v28  ;;  %v9109_v28 = vld [vmem:[%s12055_s15 + $0x88] sm:$0xf]  ;;  %v9106_v33 = vor.u32 %v11058_v26, %v9103_v27  ;;  %v9151_v3 = vld [vmem:[%s12055_s15 + $0xf0] sm:$0xf0]  ;;  %v11166_v12 = vld [vmem:[%s14994_s2 + $0xa0] sm:$0xff] }
  0x3c   : > { %1139 = vmatpush.bf16.msra.mxu1 %v11114_v29  ;;  %v11061_v29 = vld [vmem:[%s12055_s15 + $0x94] sm:$0xf0]  ;;  %v529_v13 = vld [vmem:[%s14964_s9] sm:$0x7]  ;;  %v11076_v16 = vld [vmem:[%s12055_s15 + $0x10c] sm:$0xf0] }
  0x3d   : > { %1228 = vmatpush.bf16.msra.mxu2 %v11122_v30  ;;  %v11059_v30 = vld [vmem:[%s12055_s15 + $0x8c] sm:$0xf]  ;;  %v9110_v34 = vor.u32 %v11061_v29, %v9109_v28  ;;  %v12181_v14 = vperm.slane %v529_v13, 0  ;;  %v9165_v15 = vld [vmem:[%s12055_s15 + $0x100] sm:$0xf] }
  0x3e   : > { %1317 = vmatpush.bf16.msra.mxu3 %v11130_v31  ;;  %1051 = vmatmul.bf16.vlgmr.msra.gmra.mxu0 %v9038_v40  ;;  %v9111_v31 = vld [vmem:[%s12055_s15 + $0x98] sm:$0xf0]  ;;  %v9117_v40 = vld [vmem:[%s12055_s15 + $0xa0] sm:$0xf]  ;;  %v11074_v17 = vld [vmem:[%s12055_s15 + $0x104] sm:$0xf] }
  0x3f   : > { %1140 = vmatmul.bf16.vlgmr.msra.gmra.mxu1 %v9042_v41  ;;  %1795 = vmatpush.bf16.msrb.mxu0 %v11153_v45  ;;  %v9114_v35 = vor.u32 %v11059_v30, %v9111_v31  ;;  %v11064_v41 = vld [vmem:[%s12055_s15 + $0xac] sm:$0xf0]  ;;  %v11065_v45 = vld [vmem:[%s12055_s15 + $0xb4] sm:$0xf0]  ;;  %v9167_v18 = vld [vmem:[%s12055_s15 + $0x110] sm:$0xf0] }
  0x40   : > { %1229 = vmatmul.bf16.vlgmr.msra.gmra.mxu2 %v9046_v42  ;;  %1916 = vmatpush.bf16.msrb.mxu1 %v11145_v47  ;;  %v11062_v42 = vld [vmem:[%s12055_s15 + $0xa4] sm:$0xf]  ;;  %v9127_v47 = vld [vmem:[%s12055_s15 + $0xb8] sm:$0xf0]  ;;  %v9118_v48 = vor.u32 %v11064_v41, %v9117_v40  ;;  %v9173_v19 = vld [vmem:[%s12055_s15 + $0x108] sm:$0xf]  ;;  %v9170_v24 = vor.u32 %v11074_v17, %v9167_v18 }
  0x41   : > { %1318 = vmatmul.bf16.vlgmr.msra.gmra.mxu3 %v9050_v43  ;;  %2103 = vmatpush.bf16.msrb.mxu2 %v11169_v44  ;;  %v9119_v43 = vld [vmem:[%s12055_s15 + $0xb0] sm:$0xf0]  ;;  %v9125_v44 = vld [vmem:[%s12055_s15 + $0xa8] sm:$0xf]  ;;  %v11150_v30 = vld [vmem:[%s14994_s2 + $0x60] sm:$0xff]  ;;  %v12201_v40 = vperm.slane %v529_v13, 1 }
  0x42   : > { %2307 = vmatpush.bf16.msrb.mxu3 %v11185_v46  ;;  %v11063_v46 = vld [vmem:[%s12055_s15 + $0xac] sm:$0xf]  ;;  %v9122_v49 = vor.u32 %v11062_v42, %v9119_v43  ;;  %v9126_v50 = vor.u32 %v11065_v45, %v9125_v44  ;;  %v11182_v31 = vld [vmem:[%s14994_s2 + $0xe0] sm:$0xff]  ;;  %v11080_v43 = vld [vmem:[%s12055_s15 + $0x12c] sm:$0xf0] }
  0x43   : > { %1796 = vmatpush.bf16.msrb.mxu0 %v11152_v9  ;;  %v9130_v51 = vor.u32 %v11063_v46, %v9127_v47  ;;  %v9154_v9 = vor.u32 %v11070_v2, %v9151_v3  ;;  %v9181_v42 = vld [vmem:[%s12055_s15 + $0x120] sm:$0xf]  ;;  %v11078_v44 = vld [vmem:[%s12055_s15 + $0x124] sm:$0xf]  ;;  %v12207_v46 = vperm.slane %v529_v13, 2  ;;  %v11165_v2 = vld [vmem:[%s14994_s2 + $0x98] sm:$0xff] }
  0x44   : > { %1917 = vmatpush.bf16.msrb.mxu1 %v11144_v11  ;;  %v9183_v47 = vld [vmem:[%s12055_s15 + $0x130] sm:$0xf0]  ;;  %v11084_v17 = vld [vmem:[%s12055_s15 + $0x14c] sm:$0xf0]  ;;  %v11082_v18 = vld [vmem:[%s12055_s15 + $0x144] sm:$0xf] }
  0x45   : > { %2104 = vmatpush.bf16.msrb.mxu2 %v11168_v8  ;;  %v9150_v8 = vor.u32 %v11072_v1, %v9149_v0 }
  0x46   : > { %2308 = vmatpush.bf16.msrb.mxu3 %v11184_v10 }
  0x47   : > { %1797 = vmatpush.bf16.msrb.mxu0 %v11151_v37 }
  0x48   : > { %1918 = vmatpush.bf16.msrb.mxu1 %v11143_v39 }
  0x49   : > { %2105 = vmatpush.bf16.msrb.mxu2 %v11167_v36 }
  0x4a   : > { %2309 = vmatpush.bf16.msrb.mxu3 %v11183_v38 }
  0x4b   : > { %1798 = vmatpush.bf16.msrb.mxu0 %v11150_v30 }
  0x4d   : > { %2106 = vmatpush.bf16.msrb.mxu2 %v11166_v12 }
  0x4e   : > { %1056 = vmatmul.bf16.gmra.mxu0 %v9054_v56  ;;  %v9141_v56 = vld [vmem:[%s12055_s15 + $0xc8] sm:$0xf]  ;;  %2310 = vmatpush.bf16.msrb.mxu3 %v11182_v31 }
  0x4f   : > { %1145 = vmatmul.bf16.gmra.mxu1 %v9058_v57  ;;  %v11069_v57 = vld [vmem:[%s12055_s15 + $0xd4] sm:$0xf0] }
  0x50   : > { %1234 = vmatmul.bf16.gmra.mxu2 %v9062_v58  ;;  %v11067_v58 = vld [vmem:[%s12055_s15 + $0xcc] sm:$0xf]  ;;  %v9142_v62 = vor.u32 %v11069_v57, %v9141_v56  ;;  %v9182_v56 = vor.u32 %v11080_v43, %v9181_v42  ;;  %v9186_v57 = vor.u32 %v11078_v44, %v9183_v47  ;;  %v11141_v42 = vld [vmem:[%s14994_s2 + $0x18] sm:$0xff] }
  0x51   : > { %1323 = vmatmul.bf16.gmra.mxu3 %v9066_v59  ;;  %v9143_v59 = vld [vmem:[%s12055_s15 + $0xd8] sm:$0xf0]  ;;  %2107 = vmatpush.bf16.msrb.mxu2 %v11165_v2 }
  0x52   : > { %v9146_v63 = vor.u32 %v11067_v58, %v9143_v59 }
  0x5e   : > { %1061 = vmatmul.bf16.gmra.mxu0 %v9070_v4  ;;  %v9157_v4 = vld [vmem:[%s12055_s15 + $0xe8] sm:$0xf] }
  0x5f   : > { %1150 = vmatmul.bf16.gmra.mxu1 %v9074_v5  ;;  %v11073_v5 = vld [vmem:[%s12055_s15 + $0xf4] sm:$0xf0] }
  0x60   : > { %1239 = vmatmul.bf16.gmra.mxu2 %v9078_v6  ;;  %v11071_v6 = vld [vmem:[%s12055_s15 + $0xec] sm:$0xf]  ;;  %v9158_v10 = vor.u32 %v11073_v5, %v9157_v4 }
  0x61   : > { %1328 = vmatmul.bf16.gmra.mxu3 %v9082_v7  ;;  %v9159_v7 = vld [vmem:[%s12055_s15 + $0xf8] sm:$0xf0] }
  0x62   : > { %v9162_v11 = vor.u32 %v11071_v6, %v9159_v7  ;;  %v14968_v6 = vmov 0  }
  0x63   : > { %398 = vst [vmem:[#allocation2 + $0x4] sm:$0xf] %v14968_v6 }
  0x64   : > { %399 = vst [vmem:[#allocation2 + $0x8] sm:$0xf] %v14968_v6 }
  0x65   : > { %397 = vst [vmem:[#allocation2] sm:$0xf] %v14968_v6 }
  0x66   : > { %400 = vst [vmem:[#allocation2 + $0xc] sm:$0xf] %v14968_v6 }
  0x67   : > { %1640 = vst [vmem:[#allocation2 + $0x50] sm:$0xf] %v14968_v6 }
  0x68   : > { %1641 = vst [vmem:[#allocation2 + $0x54] sm:$0xf] %v14968_v6 }
  0x69   : > { %1642 = vst [vmem:[#allocation2 + $0x58] sm:$0xf] %v14968_v6 }
  0x6a   : > { %1643 = vst [vmem:[#allocation2 + $0x5c] sm:$0xf] %v14968_v6 }
  0x6e   : > { %1066 = vmatmul.bf16.gmra.mxu0 %v9086_v20  ;;  %v11077_v20 = vld [vmem:[%s12055_s15 + $0x114] sm:$0xf0] }
  0x6f   : > { %1155 = vmatmul.bf16.gmra.mxu1 %v9090_v21  ;;  %v11075_v21 = vld [vmem:[%s12055_s15 + $0x10c] sm:$0xf]  ;;  %v9174_v27 = vor.u32 %v11077_v20, %v9173_v19  ;;  %v9199_v19 = vld [vmem:[%s12055_s15 + $0x150] sm:$0xf0]  ;;  %v9205_v20 = vld [vmem:[%s12055_s15 + $0x148] sm:$0xf] }
  0x70   : > { %1244 = vmatmul.bf16.gmra.mxu2 %v9094_v22  ;;  %v9175_v22 = vld [vmem:[%s12055_s15 + $0x118] sm:$0xf0]  ;;  %v9202_v30 = vor.u32 %v11082_v18, %v9199_v19 }
  0x71   : > { %1333 = vmatmul.bf16.gmra.mxu3 %v9098_v23  ;;  %v9166_v23 = vor.u32 %v11076_v16, %v9165_v15  ;;  %v9178_v28 = vor.u32 %v11075_v21, %v9175_v22  ;;  %v9197_v16 = vld [vmem:[%s12055_s15 + $0x140] sm:$0xf]  ;;  %v11085_v22 = vld [vmem:[%s12055_s15 + $0x154] sm:$0xf0] }
  0x7e   : > { %1071 = vmatmul.bf16.gmra.mxu0 %v9102_v32  ;;  %v11142_v32 = vld [vmem:[%s14994_s2 + $0x20] sm:$0xff] }
  0x7f   : > { %1160 = vmatmul.bf16.gmra.mxu1 %v9106_v33 }
  0x80   : > { %1249 = vmatmul.bf16.gmra.mxu2 %v9110_v34  ;;  %1919 = vmatpush.bf16.msrb.mxu1 %v11142_v32 }
  0x81   : > { %1338 = vmatmul.bf16.gmra.mxu3 %v9114_v35 }
  0x84   : > { %1920 = vmatpush.bf16.msrb.mxu1 %v11141_v42  ;;  %v11093_v42 = vld [vmem:[%s12055_s15 + $0x194] sm:$0xf0] }
  0x8e   : > { %1076 = vmatmul.bf16.gmra.mxu0 %v9118_v48  ;;  %v9189_v48 = vld [vmem:[%s12055_s15 + $0x128] sm:$0xf] }
  0x8f   : > { %1165 = vmatmul.bf16.gmra.mxu1 %v9122_v49  ;;  %v11081_v49 = vld [vmem:[%s12055_s15 + $0x134] sm:$0xf0] }
  0x90   : > { %1254 = vmatmul.bf16.gmra.mxu2 %v9126_v50  ;;  %v11079_v50 = vld [vmem:[%s12055_s15 + $0x12c] sm:$0xf] }
  0x91   : > { %1343 = vmatmul.bf16.gmra.mxu3 %v9130_v51  ;;  %v9191_v51 = vld [vmem:[%s12055_s15 + $0x138] sm:$0xf0] }
  0x9e   : > { %1081 = vmatmul.bf16.gmra.mxu0 %v9134_v60 }
  0x9f   : > { %1170 = vmatmul.bf16.gmra.mxu1 %v9138_v61 }
  0xa0   : > { %1259 = vmatmul.bf16.gmra.mxu2 %v9142_v62  ;;  %v9190_v62 = vor.u32 %v11081_v49, %v9189_v48 }
  0xa1   : > { %1348 = vmatmul.bf16.gmra.mxu3 %v9146_v63  ;;  %v9194_v63 = vor.u32 %v11079_v50, %v9191_v51 }
  0xae   : > { %1086 = vmatmul.bf16.gmra.mxu0 %v9150_v8 }
  0xaf   : > { %1175 = vmatmul.bf16.gmra.mxu1 %v9154_v9 }
  0xb0   : > { %1264 = vmatmul.bf16.gmra.mxu2 %v9158_v10 }
  0xb1   : > { %1353 = vmatmul.bf16.gmra.mxu3 %v9162_v11 }
  0xbb   : > { %v1052_v25 = vpop.f32.mrf.mxu0 }
  0xbc   : > { %v1141_v26 = vpop.f32.mrf.mxu1  ;;  %v1053_v29 = vadd.f32 %v1052_v25, %v12181_v14 }
  0xbe   : > { %1091 = vmatmul.bf16.gmra.mxu0 %v9166_v23  ;;  %v1142_v33 = vadd.f32 %v1141_v26, %v1053_v29  ;;  %v11083_v23 = vld [vmem:[%s12055_s15 + $0x14c] sm:$0xf]  ;;  %v9198_v29 = vor.u32 %v11084_v17, %v9197_v16 }
  0xbf   : > { %1180 = vmatmul.bf16.gmra.mxu1 %v9170_v24  ;;  %v9207_v24 = vld [vmem:[%s12055_s15 + $0x158] sm:$0xf0] }
  0xc0   : > { %1269 = vmatmul.bf16.gmra.mxu2 %v9174_v27 }
  0xc1   : > { %1358 = vmatmul.bf16.gmra.mxu3 %v9178_v28 }
  0xc3   : > { %v1230_v34 = vpop.f32.mrf.mxu2  ;;  %v1054_v37 = vpop.f32.mrf.mxu0 }
  0xc4   : > { %v1319_v35 = vpop.f32.mrf.mxu3  ;;  %v1231_v36 = vadd.f32 %v1230_v34, %v1142_v33  ;;  %v1143_v38 = vpop.f32.mrf.mxu1  ;;  %v1055_v41 = vadd.f32 %v1054_v37, %v12181_v14 }
  0xc6   : > { %v1320_v39 = vadd.f32 %v1319_v35, %v1231_v36  ;;  %v1144_v53 = vadd.f32 %v1143_v38, %v1055_v41  ;;  %v9206_v35 = vor.u32 %v11085_v22, %v9205_v20  ;;  %v9210_v36 = vor.u32 %v11083_v23, %v9207_v24  ;;  %v11149_v38 = vld [vmem:[%s14994_s2 + $0x58] sm:$0xff]  ;;  %v11164_v20 = vld [vmem:[%s14994_s2 + $0x90] sm:$0xff] }
  0xc7   : > { %v11181_v41 = vld [vmem:[%s14994_s2 + $0xd8] sm:$0xff]  ;;  %1799 = vmatpush.bf16.msrb.mxu0 %v11149_v38  ;;  %2108 = vmatpush.bf16.msrb.mxu2 %v11164_v20 }
  0xc8   : > { %v1399_v45 = vmax.f32 %v1320_v39, 0.0  ;;  %2311 = vmatpush.bf16.msrb.mxu3 %v11181_v41  ;;  %v9237_v41 = vld [vmem:[%s12055_s15 + $0x188] sm:$0xf]  ;;  %v9255_v20 = vld [vmem:[%s12055_s15 + $0x1b8] sm:$0xf0] }
  0xca   : > { %v1432_v52 = vmul.f32 %v12201_v40, %v1399_v45 }
  0xcb   : > { %v1232_v54 = vpop.f32.mrf.mxu2  ;;  %v1057_v60 = vpop.f32.mrf.mxu0 }
  0xcc   : > { %v1321_v55 = vpop.f32.mrf.mxu3  ;;  %v1465_v58 = vadd.f32 %v12207_v46, %v1432_v52  ;;  %v1233_v59 = vadd.f32 %v1232_v54, %v1144_v53  ;;  %v1146_v61 = vpop.f32.mrf.mxu1  ;;  %v1058_v0 = vadd.f32 %v1057_v60, %v12181_v14  ;;  %v9221_v60 = vld [vmem:[%s12055_s15 + $0x168] sm:$0xf] }
  0xce   : > { %1497 = vst [vmem:[#allocation3] sm:$0xff] %v1465_v58  ;;  %v1322_v1 = vadd.f32 %v1321_v55, %v1233_v59  ;;  %1096 = vmatmul.bf16.gmra.mxu0 %v9182_v56  ;;  %v1147_v4 = vadd.f32 %v1146_v61, %v1058_v0  ;;  %v9213_v55 = vld [vmem:[%s12055_s15 + $0x160] sm:$0xf]  ;;  %v11088_v56 = vld [vmem:[%s12055_s15 + $0x16c] sm:$0xf0] }
  0xcf   : > { %1185 = vmatmul.bf16.gmra.mxu1 %v9186_v57  ;;  %v11086_v57 = vld [vmem:[%s12055_s15 + $0x164] sm:$0xf]  ;;  %v9215_v59 = vld [vmem:[%s12055_s15 + $0x170] sm:$0xf0]  ;;  %v11089_v61 = vld [vmem:[%s12055_s15 + $0x174] sm:$0xf0] }
  0xd0   : > { %v1400_v3 = vmax.f32 %v1322_v1, 0.0  ;;  %1274 = vmatmul.bf16.gmra.mxu2 %v9190_v62  ;;  %v11087_v62 = vld [vmem:[%s12055_s15 + $0x16c] sm:$0xf] }
  0xd1   : > { %1363 = vmatmul.bf16.gmra.mxu3 %v9194_v63  ;;  %v9223_v63 = vld [vmem:[%s12055_s15 + $0x178] sm:$0xf0] }
  0xd2   : > { %v1433_v5 = vmul.f32 %v12201_v40, %v1400_v3 }
  0xd3   : > { %v1235_v7 = vpop.f32.mrf.mxu2  ;;  %v1059_v11 = vpop.f32.mrf.mxu0 }
  0xd4   : > { %v1324_v8 = vpop.f32.mrf.mxu3  ;;  %v1466_v9 = vadd.f32 %v12207_v46, %v1433_v5  ;;  %v1236_v10 = vadd.f32 %v1235_v7, %v1147_v4  ;;  %v1148_v12 = vpop.f32.mrf.mxu1  ;;  %v1060_v15 = vadd.f32 %v1059_v11, %v12181_v14  ;;  %v9214_v7 = vor.u32 %v11088_v56, %v9213_v55 }
  0xd5   : > { %v9238_v56 = vor.u32 %v11093_v42, %v9237_v41  ;;  %v11163_v41 = vld [vmem:[%s14994_s2 + $0x88] sm:$0xff] }
  0xd6   : > { %1498 = vst [vmem:[#allocation3 + $0x8] sm:$0xff] %v1466_v9  ;;  %v1325_v13 = vadd.f32 %v1324_v8, %v1236_v10  ;;  %v1149_v26 = vadd.f32 %v1148_v12, %v1060_v15  ;;  %v9218_v8 = vor.u32 %v11086_v57, %v9215_v59  ;;  %v9226_v15 = vor.u32 %v11087_v62, %v9223_v63  ;;  %v11140_v62 = vld [vmem:[%s14994_s2 + $0x10] sm:$0xff] }
  0xd7   : > { %1921 = vmatpush.bf16.msrb.mxu1 %v11140_v62  ;;  %2109 = vmatpush.bf16.msrb.mxu2 %v11163_v41  ;;  %v11139_v62 = vld [vmem:[%s14994_s2 + $0x8] sm:$0xff] }
  0xd8   : > { %v1401_v21 = vmax.f32 %v1325_v13, 0.0  ;;  %v9222_v13 = vor.u32 %v11089_v61, %v9221_v60  ;;  %v11148_v60 = vld [vmem:[%s14994_s2 + $0x50] sm:$0xff] }
  0xd9   : > { %v11180_v61 = vld [vmem:[%s14994_s2 + $0xd0] sm:$0xff]  ;;  %1800 = vmatpush.bf16.msrb.mxu0 %v11148_v60  ;;  %v11147_v60 = vld [vmem:[%s14994_s2 + $0x48] sm:$0xff] }
  0xda   : > { %v1434_v25 = vmul.f32 %v12201_v40, %v1401_v21  ;;  %2312 = vmatpush.bf16.msrb.mxu3 %v11180_v61  ;;  %v11179_v61 = vld [vmem:[%s14994_s2 + $0xc8] sm:$0xff] }
  0xdb   : > { %v1237_v27 = vpop.f32.mrf.mxu2  ;;  %v1062_v33 = vpop.f32.mrf.mxu0  ;;  %1922 = vmatpush.bf16.msrb.mxu1 %v11139_v62 }
  0xdc   : > { %v1326_v28 = vpop.f32.mrf.mxu3  ;;  %v1467_v31 = vadd.f32 %v12207_v46, %v1434_v25  ;;  %v1238_v32 = vadd.f32 %v1237_v27, %v1149_v26  ;;  %v1151_v34 = vpop.f32.mrf.mxu1  ;;  %v1063_v37 = vadd.f32 %v1062_v33, %v12181_v14 }
  0xdd   : > { %v1529_v2 = vld [vmem:[#allocation3] ss:$2 sm:$0xff]  ;;  %v1561_v3 = vld [vmem:[#allocation3 + $0x1] ss:$2 sm:$0xff]  ;;  %1801 = vmatpush.bf16.msrb.mxu0 %v11147_v60 }
  0xde   : > { %1499 = vst [vmem:[#allocation3 + $0x10] sm:$0xff] %v1467_v31  ;;  %v1327_v39 = vadd.f32 %v1326_v28, %v1238_v32  ;;  %1101 = vmatmul.bf16.gmra.mxu0 %v9198_v29  ;;  %v1152_v44 = vadd.f32 %v1151_v34, %v1063_v37  ;;  %v1592_v21 = vmax.f32 %v1529_v2, %v1561_v3  ;;  %v11090_v37 = vld [vmem:[%s12055_s15 + $0x184] sm:$0xf] }
  0xdf   : > { %1190 = vmatmul.bf16.gmra.mxu1 %v9202_v30  ;;  %2313 = vmatpush.bf16.msrb.mxu3 %v11179_v61 }
  0xe0   : > { %v1402_v43 = vmax.f32 %v1327_v39, 0.0  ;;  %1279 = vmatmul.bf16.gmra.mxu2 %v9206_v35  ;;  %v9229_v35 = vld [vmem:[%s12055_s15 + $0x180] sm:$0xf]  ;;  %v9231_v39 = vld [vmem:[%s12055_s15 + $0x190] sm:$0xf0] }
  0xe1   : > { %1368 = vmatmul.bf16.gmra.mxu3 %v9210_v36  ;;  %v11092_v36 = vld [vmem:[%s12055_s15 + $0x18c] sm:$0xf0] }
  0xe2   : > { %v1435_v45 = vmul.f32 %v12201_v40, %v1402_v43  ;;  %v11091_v43 = vld [vmem:[%s12055_s15 + $0x18c] sm:$0xf] }
  0xe3   : > { %v1240_v47 = vpop.f32.mrf.mxu2  ;;  %v1064_v51 = vpop.f32.mrf.mxu0 }
  0xe4   : > { %v1329_v48 = vpop.f32.mrf.mxu3  ;;  %v1468_v49 = vadd.f32 %v12207_v46, %v1435_v45  ;;  %v1241_v50 = vadd.f32 %v1240_v47, %v1152_v44  ;;  %v1153_v52 = vpop.f32.mrf.mxu1  ;;  %v1065_v54 = vadd.f32 %v1064_v51, %v12181_v14  ;;  %v9239_v44 = vld [vmem:[%s12055_s15 + $0x198] sm:$0xf0]  ;;  %v9234_v51 = vor.u32 %v11090_v37, %v9231_v39 }
  0xe5   : > { %v9242_v57 = vor.u32 %v11091_v43, %v9239_v44 }
  0xe6   : > { %1500 = vst [vmem:[#allocation3 + $0x18] sm:$0xff] %v1468_v49  ;;  %v1330_v53 = vadd.f32 %v1329_v48, %v1241_v50  ;;  %v1154_v1 = vadd.f32 %v1153_v52, %v1065_v54  ;;  %v9230_v50 = vor.u32 %v11092_v36, %v9229_v35 }
  0xe8   : > { %v1403_v58 = vmax.f32 %v1330_v53, 0.0 }
  0xea   : > { %v1436_v0 = vmul.f32 %v12201_v40, %v1403_v58 }
  0xeb   : > { %v1242_v4 = vpop.f32.mrf.mxu2  ;;  %v1067_v11 = vpop.f32.mrf.mxu0 }
  0xec   : > { %v1331_v5 = vpop.f32.mrf.mxu3  ;;  %v1469_v9 = vadd.f32 %v12207_v46, %v1436_v0  ;;  %v1243_v10 = vadd.f32 %v1242_v4, %v1154_v1  ;;  %v1156_v12 = vpop.f32.mrf.mxu1  ;;  %v1068_v18 = vadd.f32 %v1067_v11, %v12181_v14  ;;  %v9245_v11 = vld [vmem:[%s12055_s15 + $0x1a0] sm:$0xf] }
  0xed   : > { %v1531_v16 = vld [vmem:[#allocation3 + $0x10] ss:$2 sm:$0xff]  ;;  %v1563_v17 = vld [vmem:[#allocation3 + $0x11] ss:$2 sm:$0xff] }
  0xee   : > { %1501 = vst [vmem:[#allocation3 + $0x20] sm:$0xff] %v1469_v9  ;;  %v1332_v19 = vadd.f32 %v1331_v5, %v1243_v10  ;;  %v1593_v22 = vmax.f32 %v1531_v16, %v1563_v17  ;;  %1106 = vmatmul.bf16.gmra.mxu0 %v9214_v7  ;;  %v1157_v24 = vadd.f32 %v1156_v12, %v1068_v18  ;;  %v11096_v12 = vld [vmem:[%s12055_s15 + $0x1ac] sm:$0xf0]  ;;  %v9247_v16 = vld [vmem:[%s12055_s15 + $0x1b0] sm:$0xf0] }
  0xef   : > { %1195 = vmatmul.bf16.gmra.mxu1 %v9218_v8  ;;  %v9253_v17 = vld [vmem:[%s12055_s15 + $0x1a8] sm:$0xf]  ;;  %v11097_v18 = vld [vmem:[%s12055_s15 + $0x1b4] sm:$0xf0] }
  0xf0   : > { %v1404_v23 = vmax.f32 %v1332_v19, 0.0  ;;  %1284 = vmatmul.bf16.gmra.mxu2 %v9222_v13  ;;  %v12268_v25 = vpack.c.bf16 %v1593_v22, %v1592_v21  ;;  %v11094_v13 = vld [vmem:[%s12055_s15 + $0x1a4] sm:$0xf]  ;;  %v11095_v19 = vld [vmem:[%s12055_s15 + $0x1ac] sm:$0xf] }
  0xf1   : > { %1373 = vmatmul.bf16.gmra.mxu3 %v9226_v15  ;;  %v9258_v35 = vor.u32 %v11095_v19, %v9255_v20 }
  0xf2   : > { %v1437_v26 = vmul.f32 %v12201_v40, %v1404_v23  ;;  %11556 = vst [vmem:[#allocation2 + $0x10] sm:$0xff] %v12268_v25  }
  0xf3   : > { %v1245_v27 = vpop.f32.mrf.mxu2  ;;  %v1069_v31 = vpop.f32.mrf.mxu0 }
  0xf4   : > { %v1334_v28 = vpop.f32.mrf.mxu3  ;;  %v1470_v29 = vadd.f32 %v12207_v46, %v1437_v26  ;;  %v1246_v30 = vadd.f32 %v1245_v27, %v1157_v24  ;;  %v1158_v32 = vpop.f32.mrf.mxu1  ;;  %v1070_v34 = vadd.f32 %v1069_v31, %v12181_v14 }
  0xf6   : > { %1502 = vst [vmem:[#allocation3 + $0x28] sm:$0xff] %v1470_v29  ;;  %v1335_v33 = vadd.f32 %v1334_v28, %v1246_v30  ;;  %v1159_v47 = vadd.f32 %v1158_v32, %v1070_v34  ;;  %v9246_v28 = vor.u32 %v11096_v12, %v9245_v11  ;;  %v9250_v29 = vor.u32 %v11094_v13, %v9247_v16  ;;  %v11146_v12 = vld [vmem:[%s14994_s2 + $0x40] sm:$0xff] }
  0xf7   : > { %v9254_v34 = vor.u32 %v11097_v18, %v9253_v17  ;;  %v11138_v13 = vld [vmem:[%s14994_s2] sm:$0xff]  ;;  %1802 = vmatpush.bf16.msrb.mxu0 %v11146_v12 }
  0xf8   : > { %v1405_v38 = vmax.f32 %v1335_v33, 0.0  ;;  %1923 = vmatpush.bf16.msrb.mxu1 %v11138_v13 }
  0xfa   : > { %v1438_v45 = vmul.f32 %v12201_v40, %v1405_v38 }
  0xfb   : > { %v1247_v48 = vpop.f32.mrf.mxu2  ;;  %v1072_v54 = vpop.f32.mrf.mxu0 }
  0xfc   : > { %v1336_v49 = vpop.f32.mrf.mxu3  ;;  %v1471_v52 = vadd.f32 %v12207_v46, %v1438_v45  ;;  %v1248_v53 = vadd.f32 %v1247_v48, %v1159_v47  ;;  %v1161_v55 = vpop.f32.mrf.mxu1  ;;  %v1073_v58 = vadd.f32 %v1072_v54, %v12181_v14 }
  0xfd   : > { %v1533_v23 = vld [vmem:[#allocation3 + $0x20] ss:$2 sm:$0xff]  ;;  %v1565_v24 = vld [vmem:[#allocation3 + $0x21] ss:$2 sm:$0xff] }
  0xfe   : > { %1503 = vst [vmem:[#allocation3 + $0x30] sm:$0xff] %v1471_v52  ;;  %v1337_v59 = vadd.f32 %v1336_v49, %v1248_v53  ;;  %1111 = vmatmul.bf16.gmra.mxu0 %v9230_v50  ;;  %v1162_v0 = vadd.f32 %v1161_v55, %v1073_v58  ;;  %v1594_v42 = vmax.f32 %v1533_v23, %v1565_v24  ;;  %v11100_v58 = vld [vmem:[%s12055_s15 + $0x1cc] sm:$0xf0] }
  0xff   : > { %1200 = vmatmul.bf16.gmra.mxu1 %v9234_v51 }
 0x100   : > { %v1406_v63 = vmax.f32 %v1337_v59, 0.0  ;;  %1289 = vmatmul.bf16.gmra.mxu2 %v9238_v56  ;;  %v11098_v59 = vld [vmem:[%s12055_s15 + $0x1c4] sm:$0xf] }
 0x101   : > { %1378 = vmatmul.bf16.gmra.mxu3 %v9242_v57  ;;  %v9261_v57 = vld [vmem:[%s12055_s15 + $0x1c0] sm:$0xf] }
 0x102   : > { %v1439_v1 = vmul.f32 %v12201_v40, %v1406_v63 }
 0x103   : > { %v1250_v2 = vpop.f32.mrf.mxu2  ;;  %v1074_v7 = vpop.f32.mrf.mxu0 }
 0x104   : > { %v1339_v3 = vpop.f32.mrf.mxu3  ;;  %v1472_v4 = vadd.f32 %v12207_v46, %v1439_v1  ;;  %v1251_v5 = vadd.f32 %v1250_v2, %v1162_v0  ;;  %v1163_v8 = vpop.f32.mrf.mxu1  ;;  %v1075_v10 = vadd.f32 %v1074_v7, %v12181_v14  ;;  %v9263_v0 = vld [vmem:[%s12055_s15 + $0x1d0] sm:$0xf0]  ;;  %v9269_v1 = vld [vmem:[%s12055_s15 + $0x1c8] sm:$0xf]  ;;  %v11101_v2 = vld [vmem:[%s12055_s15 + $0x1d4] sm:$0xf0] }
 0x105   : > { %v9266_v11 = vor.u32 %v11098_v59, %v9263_v0  ;;  %v9270_v20 = vor.u32 %v11101_v2, %v9269_v1 }
 0x106   : > { %1504 = vst [vmem:[#allocation3 + $0x38] sm:$0xff] %v1472_v4  ;;  %v1340_v9 = vadd.f32 %v1339_v3, %v1251_v5  ;;  %v1164_v22 = vadd.f32 %v1163_v8, %v1075_v10  ;;  %v11099_v3 = vld [vmem:[%s12055_s15 + $0x1cc] sm:$0xf]  ;;  %v9271_v4 = vld [vmem:[%s12055_s15 + $0x1d8] sm:$0xf0]  ;;  %v9262_v10 = vor.u32 %v11100_v58, %v9261_v57 }
 0x108   : > { %v1407_v15 = vmax.f32 %v1340_v9, 0.0 }
 0x10a   : > { %v1440_v21 = vmul.f32 %v12201_v40, %v1407_v15  ;;  %v11162_v15 = vld [vmem:[%s14994_s2 + $0x80] sm:$0xff] }
 0x10b   : > { %v1252_v26 = vpop.f32.mrf.mxu2  ;;  %v1077_v32 = vpop.f32.mrf.mxu0  ;;  %2110 = vmatpush.bf16.msrb.mxu2 %v11162_v15 }
 0x10c   : > { %v1341_v27 = vpop.f32.mrf.mxu3  ;;  %v1473_v30 = vadd.f32 %v12207_v46, %v1440_v21  ;;  %v1253_v31 = vadd.f32 %v1252_v26, %v1164_v22  ;;  %v1166_v33 = vpop.f32.mrf.mxu1  ;;  %v1078_v38 = vadd.f32 %v1077_v32, %v12181_v14  ;;  %v9274_v21 = vor.u32 %v11099_v3, %v9271_v4  ;;  %v11178_v22 = vld [vmem:[%s14994_s2 + $0xc0] sm:$0xff] }
 0x10d   : > { %v1535_v36 = vld [vmem:[#allocation3 + $0x30] ss:$2 sm:$0xff]  ;;  %v1567_v37 = vld [vmem:[#allocation3 + $0x31] ss:$2 sm:$0xff]  ;;  %2314 = vmatpush.bf16.msrb.mxu3 %v11178_v22 }
 0x10e   : > { %1505 = vst [vmem:[#allocation3 + $0x40] sm:$0xff] %v1473_v30  ;;  %v1342_v39 = vadd.f32 %v1341_v27, %v1253_v31  ;;  %v1595_v43 = vmax.f32 %v1535_v36, %v1567_v37  ;;  %1116 = vmatmul.bf16.gmra.mxu0 %v9246_v28  ;;  %v1167_v45 = vadd.f32 %v1166_v33, %v1078_v38  ;;  %v9277_v37 = vld [vmem:[%s12055_s15 + $0x1e0] sm:$0xf]  ;;  %v11104_v38 = vld [vmem:[%s12055_s15 + $0x1ec] sm:$0xf0] }
 0x10f   : > { %1205 = vmatmul.bf16.gmra.mxu1 %v9250_v29 }
 0x110   : > { %v1408_v44 = vmax.f32 %v1342_v39, 0.0  ;;  %1294 = vmatmul.bf16.gmra.mxu2 %v9254_v34  ;;  %v12311_v47 = vpack.c.bf16 %v1595_v43, %v1594_v42  ;;  %v11102_v39 = vld [vmem:[%s12055_s15 + $0x1e4] sm:$0xf]  ;;  %v9279_v42 = vld [vmem:[%s12055_s15 + $0x1f0] sm:$0xf0] }
 0x111   : > { %1383 = vmatmul.bf16.gmra.mxu3 %v9258_v35  ;;  %v9285_v43 = vld [vmem:[%s12055_s15 + $0x1e8] sm:$0xf] }
 0x112   : > { %v1441_v48 = vmul.f32 %v12201_v40, %v1408_v44  ;;  %11557 = vst [vmem:[#allocation2 + $0x18] sm:$0xff] %v12311_v47   ;;  %v11105_v44 = vld [vmem:[%s12055_s15 + $0x1f4] sm:$0xf0] }
 0x113   : > { %v1255_v49 = vpop.f32.mrf.mxu2  ;;  %v1079_v53 = vpop.f32.mrf.mxu0  ;;  %v9286_v61 = vor.u32 %v11105_v44, %v9285_v43 }
 0x114   : > { %v1344_v50 = vpop.f32.mrf.mxu3  ;;  %v1474_v51 = vadd.f32 %v12207_v46, %v1441_v48  ;;  %v1256_v52 = vadd.f32 %v1255_v49, %v1167_v45  ;;  %v1168_v54 = vpop.f32.mrf.mxu1  ;;  %v1080_v56 = vadd.f32 %v1079_v53, %v12181_v14  ;;  %v11103_v45 = vld [vmem:[%s12055_s15 + $0x1ec] sm:$0xf]  ;;  %v9287_v48 = vld [vmem:[%s12055_s15 + $0x1f8] sm:$0xf0]  ;;  %s11856_s15 = smov 112  }
 0x115   : > { %v9290_v62 = vor.u32 %v11103_v45, %v9287_v48 }
 0x116   : > { %1506 = vst [vmem:[#allocation3 + $0x48] sm:$0xff] %v1474_v51  ;;  %v1345_v55 = vadd.f32 %v1344_v50, %v1256_v52  ;;  %v1169_v7 = vadd.f32 %v1168_v54, %v1080_v56  ;;  %v9282_v56 = vor.u32 %v11102_v39, %v9279_v42 }
 0x118   : > { %v1409_v63 = vmax.f32 %v1345_v55, 0.0  ;;  %v9278_v55 = vor.u32 %v11104_v38, %v9277_v37 }
 0x11a   : > { %v1442_v5 = vmul.f32 %v12201_v40, %v1409_v63 }
 0x11b   : > { %v1257_v8 = vpop.f32.mrf.mxu2  ;;  %v1082_v18 = vpop.f32.mrf.mxu0 }
 0x11c   : > { %v1346_v9 = vpop.f32.mrf.mxu3  ;;  %v1475_v16 = vadd.f32 %v12207_v46, %v1442_v5  ;;  %v1258_v17 = vadd.f32 %v1257_v8, %v1169_v7  ;;  %v1171_v19 = vpop.f32.mrf.mxu1  ;;  %v1083_v23 = vadd.f32 %v1082_v18, %v12181_v14 }
 0x11d   : > { %v1537_v51 = vld [vmem:[#allocation3 + $0x40] ss:$2 sm:$0xff]  ;;  %v1569_v52 = vld [vmem:[#allocation3 + $0x41] ss:$2 sm:$0xff] }
 0x11e   : > { %1507 = vst [vmem:[#allocation3 + $0x50] sm:$0xff] %v1475_v16  ;;  %v1347_v24 = vadd.f32 %v1346_v9, %v1258_v17  ;;  %1121 = vmatmul.bf16.gmra.mxu0 %v9262_v10  ;;  %v1172_v27 = vadd.f32 %v1171_v19, %v1083_v23  ;;  %v1596_v2 = vmax.f32 %v1537_v51, %v1569_v52 }
 0x11f   : > { %1210 = vmatmul.bf16.gmra.mxu1 %v9266_v11 }
 0x120   : > { %v1410_v26 = vmax.f32 %v1347_v24, 0.0  ;;  %1299 = vmatmul.bf16.gmra.mxu2 %v9270_v20  ;;  %v11664_v24 = vld [vmem:[#allocation2 + $0x4] sm:$0xff]  }
 0x121   : > { %1388 = vmatmul.bf16.gmra.mxu3 %v9274_v21 }
 0x122   : > { %v1443_v28 = vmul.f32 %v12201_v40, %v1410_v26 }
 0x123   : > { %v1260_v29 = vpop.f32.mrf.mxu2  ;;  %v1084_v33 = vpop.f32.mrf.mxu0 }
 0x124   : > { %v1349_v30 = vpop.f32.mrf.mxu3  ;;  %v1476_v31 = vadd.f32 %v12207_v46, %v1443_v28  ;;  %v1261_v32 = vadd.f32 %v1260_v29, %v1172_v27  ;;  %v1173_v34 = vpop.f32.mrf.mxu1  ;;  %v1085_v36 = vadd.f32 %v1084_v33, %v12181_v14 }
 0x126   : > { %1508 = vst [vmem:[#allocation3 + $0x58] sm:$0xff] %v1476_v31  ;;  %v1350_v35 = vadd.f32 %v1349_v30, %v1261_v32  ;;  %v1174_v50 = vadd.f32 %v1173_v34, %v1085_v36  ;;  %v11473_v30 = vld [vmem:[#allocation2] sm:$0xff]   ;;  %v11154_v31 = vld [vmem:[#allocation2 + $0x8] sm:$0xff] }
 0x127   : > { %v11170_v34 = vld [vmem:[#allocation2 + $0xc] sm:$0xff] }
 0x128   : > { %v1411_v41 = vmax.f32 %v1350_v35, 0.0 }
 0x12a   : > { %v1444_v49 = vmul.f32 %v12201_v40, %v1411_v41 }
 0x12b   : > { %v1262_v53 = vpop.f32.mrf.mxu2  ;;  %v1087_v59 = vpop.f32.mrf.mxu0 }
 0x12c   : > { %v1351_v54 = vpop.f32.mrf.mxu3  ;;  %v1477_v57 = vadd.f32 %v12207_v46, %v1444_v49  ;;  %v1263_v58 = vadd.f32 %v1262_v53, %v1174_v50  ;;  %v1176_v60 = vpop.f32.mrf.mxu1  ;;  %v1088_v1 = vadd.f32 %v1087_v59, %v12181_v14 }
 0x12d   : > { %v1539_v63 = vld [vmem:[#allocation3 + $0x50] ss:$2 sm:$0xff]  ;;  %v1571_v0 = vld [vmem:[#allocation3 + $0x51] ss:$2 sm:$0xff] }
 0x12e   : > { %v1597_v3 = vmax.f32 %v1539_v63, %v1571_v0  ;;  %1509 = vst [vmem:[#allocation3 + $0x60] sm:$0xff] %v1477_v57  ;;  %v1352_v4 = vadd.f32 %v1351_v54, %v1263_v58  ;;  %1126 = vmatmul.bf16.gmra.mxu0 %v9278_v55  ;;  %v1177_v7 = vadd.f32 %v1176_v60, %v1088_v1  ;;  %v11564_v60 = vld [vmem:[#allocation2 + $0x8] sm:$0xff]  }
 0x12f   : > { %1215 = vmatmul.bf16.gmra.mxu1 %v9282_v56  ;;  %v11666_v0 = vld [vmem:[#allocation2 + $0xc] sm:$0xff]  }
 0x130   : > { %v1412_v5 = vmax.f32 %v1352_v4, 0.0  ;;  %1304 = vmatmul.bf16.gmra.mxu2 %v9286_v61  ;;  %v12363_v8 = vpack.c.bf16 %v1597_v3, %v1596_v2  ;;  %v11155_v4 = vld [vmem:[#allocation2 + $0x10] sm:$0xff] }
 0x131   : > { %1393 = vmatmul.bf16.gmra.mxu3 %v9290_v62 }
 0x132   : > { %v1445_v9 = vmul.f32 %v12201_v40, %v1412_v5  ;;  %11558 = vst [vmem:[#allocation2 + $0x20] sm:$0xff] %v12363_v8   ;;  %v11171_v5 = vld [vmem:[#allocation2 + $0x14] sm:$0xff] }
 0x133   : > { %v1265_v10 = vpop.f32.mrf.mxu2  ;;  %v1089_v15 = vpop.f32.mrf.mxu0 }
 0x134   : > { %v1354_v11 = vpop.f32.mrf.mxu3  ;;  %v1478_v12 = vadd.f32 %v12207_v46, %v1445_v9  ;;  %v1266_v13 = vadd.f32 %v1265_v10, %v1177_v7  ;;  %v1178_v16 = vpop.f32.mrf.mxu1  ;;  %v1090_v18 = vadd.f32 %v1089_v15, %v12181_v14  ;;  %v11233_v7 = vld [vmem:[%s14994_s2 + $0x1b8] sm:$0xff] }
 0x135   : > { %2919 = vmatpush.bf16.msra.mxu2 %v11233_v7  ;;  %v11232_v7 = vld [vmem:[%s14994_s2 + $0x1b0] sm:$0xff] }
 0x136   : > { %1510 = vst [vmem:[#allocation3 + $0x68] sm:$0xff] %v1478_v12  ;;  %v1355_v17 = vadd.f32 %v1354_v11, %v1266_v13  ;;  %v1179_v21 = vadd.f32 %v1178_v16, %v1090_v18 }
 0x138   : > { %v1413_v19 = vmax.f32 %v1355_v17, 0.0 }
 0x139   : > { %2920 = vmatpush.bf16.msra.mxu2 %v11232_v7 }
 0x13a   : > { %v1446_v20 = vmul.f32 %v12201_v40, %v1413_v19 }
 0x13b   : > { %v1267_v22 = vpop.f32.mrf.mxu2  ;;  %v1092_v28 = vpop.f32.mrf.mxu0 }
 0x13c   : > { %v1356_v23 = vpop.f32.mrf.mxu3  ;;  %v1479_v26 = vadd.f32 %v12207_v46, %v1446_v20  ;;  %v1268_v27 = vadd.f32 %v1267_v22, %v1179_v21  ;;  %v1181_v29 = vpop.f32.mrf.mxu1  ;;  %v1093_v32 = vadd.f32 %v1092_v28, %v12181_v14 }
 0x13d   : > { %v1541_v52 = vld [vmem:[#allocation3 + $0x60] ss:$2 sm:$0xff]  ;;  %v1573_v53 = vld [vmem:[#allocation3 + $0x61] ss:$2 sm:$0xff] }
 0x13e   : > { %1511 = vst [vmem:[#allocation3 + $0x70] sm:$0xff] %v1479_v26  ;;  %v1357_v33 = vadd.f32 %v1356_v23, %v1268_v27  ;;  %1803 = vmatmul.bf16.vlgmr.msrb.gmra.mxu0 %v11664_v24  ;;  %v1182_v36 = vadd.f32 %v1181_v29, %v1093_v32  ;;  %v1598_v1 = vmax.f32 %v1541_v52, %v1573_v53 }
 0x13f   : > { %1924 = vmatmul.bf16.vlgmr.msrb.gmra.mxu1 %v11473_v30 }
 0x140   : > { %v1414_v35 = vmax.f32 %v1357_v33, 0.0  ;;  %2111 = vmatmul.bf16.vlgmr.msrb.gmra.mxu2 %v11154_v31  ;;  %v11668_v33 = vld [vmem:[#allocation2 + $0x14] sm:$0xff]  }
 0x141   : > { %2315 = vmatmul.bf16.vlgmr.msrb.gmra.mxu3 %v11170_v34  ;;  %v11156_v34 = vld [vmem:[#allocation2 + $0x18] sm:$0xff] }
 0x142   : > { %v1447_v37 = vmul.f32 %v12201_v40, %v1414_v35  ;;  %v11201_v35 = vld [vmem:[%s14994_s2 + $0x138] sm:$0xff] }
 0x143   : > { %v1270_v38 = vpop.f32.mrf.mxu2  ;;  %v1094_v43 = vpop.f32.mrf.mxu0  ;;  %2511 = vmatpush.bf16.msra.mxu0 %v11201_v35 }
 0x144   : > { %v1359_v39 = vpop.f32.mrf.mxu3  ;;  %v1480_v41 = vadd.f32 %v12207_v46, %v1447_v37  ;;  %v1271_v42 = vadd.f32 %v1270_v38, %v1182_v36  ;;  %v1183_v44 = vpop.f32.mrf.mxu1  ;;  %v1095_v48 = vadd.f32 %v1094_v43, %v12181_v14  ;;  %v11172_v37 = vld [vmem:[#allocation2 + $0x1c] sm:$0xff] }
 0x145   : > { %v11249_v38 = vld [vmem:[%s14994_s2 + $0x1f8] sm:$0xff] }
 0x146   : > { %1512 = vst [vmem:[#allocation3 + $0x78] sm:$0xff] %v1480_v41  ;;  %v1360_v45 = vadd.f32 %v1359_v39, %v1271_v42  ;;  %v1184_v51 = vadd.f32 %v1183_v44, %v1095_v48  ;;  %v11217_v39 = vld [vmem:[%s14994_s2 + $0x178] sm:$0xff]  ;;  %3123 = vmatpush.bf16.msra.mxu3 %v11249_v38 }
 0x147   : > { %2715 = vmatpush.bf16.msra.mxu1 %v11217_v39 }
 0x148   : > { %v1415_v49 = vmax.f32 %v1360_v45, 0.0 }
 0x14a   : > { %v1448_v50 = vmul.f32 %v12201_v40, %v1415_v49 }
 0x14b   : > { %v1272_v54 = vpop.f32.mrf.mxu2  ;;  %v1097_v58 = vpop.f32.mrf.mxu0 }
 0x14c   : > { %v1361_v55 = vpop.f32.mrf.mxu3  ;;  %v1481_v56 = vadd.f32 %v12207_v46, %v1448_v50  ;;  %v1273_v57 = vadd.f32 %v1272_v54, %v1184_v51  ;;  %v1186_v59 = vpop.f32.mrf.mxu1  ;;  %v1098_v63 = vadd.f32 %v1097_v58, %v12181_v14 }
 0x14d   : > { %v1543_v61 = vld [vmem:[#allocation3 + $0x70] ss:$2 sm:$0xff]  ;;  %v1575_v62 = vld [vmem:[#allocation3 + $0x71] ss:$2 sm:$0xff] }
 0x14e   : > { %v1599_v2 = vmax.f32 %v1543_v61, %v1575_v62  ;;  %1513 = vst [vmem:[#allocation3 + $0x80] sm:$0xff] %v1481_v56  ;;  %v1362_v3 = vadd.f32 %v1361_v55, %v1273_v57  ;;  %1808 = vmatmul.bf16.gmra.mxu0 %v11666_v0  ;;  %v1187_v10 = vadd.f32 %v1186_v59, %v1098_v63  ;;  %v11670_v0 = vld [vmem:[#allocation2 + $0x1c] sm:$0xff]  }
 0x14f   : > { %1929 = vmatmul.bf16.gmra.mxu1 %v11564_v60 }
 0x150   : > { %v1416_v9 = vmax.f32 %v1362_v3, 0.0  ;;  %2116 = vmatmul.bf16.gmra.mxu2 %v11155_v4  ;;  %v12381_v11 = vpack.c.bf16 %v1599_v2, %v1598_v1  ;;  %v11157_v1 = vld [vmem:[#allocation2 + $0x20] sm:$0xff] }
 0x151   : > { %2320 = vmatmul.bf16.gmra.mxu3 %v11171_v5 }
 0x152   : > { %v1449_v12 = vmul.f32 %v12201_v40, %v1416_v9  ;;  %11559 = vst [vmem:[#allocation2 + $0x28] sm:$0xff] %v12381_v11  }
 0x153   : > { %v1275_v13 = vpop.f32.mrf.mxu2  ;;  %v1099_v18 = vpop.f32.mrf.mxu0 }
 0x154   : > { %v1364_v15 = vpop.f32.mrf.mxu3  ;;  %v1482_v16 = vadd.f32 %v12207_v46, %v1449_v12  ;;  %v1276_v17 = vadd.f32 %v1275_v13, %v1187_v10  ;;  %v1188_v19 = vpop.f32.mrf.mxu1  ;;  %v1100_v21 = vadd.f32 %v1099_v18, %v12181_v14  ;;  %v11200_v10 = vld [vmem:[%s14994_s2 + $0x130] sm:$0xff] }
 0x155   : > { %v11248_v12 = vld [vmem:[%s14994_s2 + $0x1f0] sm:$0xff]  ;;  %2512 = vmatpush.bf16.msra.mxu0 %v11200_v10 }
 0x156   : > { %1514 = vst [vmem:[#allocation3 + $0x88] sm:$0xff] %v1482_v16  ;;  %v1365_v20 = vadd.f32 %v1364_v15, %v1276_v17  ;;  %v1189_v24 = vadd.f32 %v1188_v19, %v1100_v21  ;;  %v11216_v16 = vld [vmem:[%s14994_s2 + $0x170] sm:$0xff]  ;;  %3124 = vmatpush.bf16.msra.mxu3 %v11248_v12 }
 0x157   : > { %2716 = vmatpush.bf16.msra.mxu1 %v11216_v16 }
 0x158   : > { %v1417_v22 = vmax.f32 %v1365_v20, 0.0 }
 0x159   : > { %v11173_v2 = vld [vmem:[#allocation2 + $0x24] sm:$0xff] }
 0x15a   : > { %v1450_v23 = vmul.f32 %v12201_v40, %v1417_v22 }
 0x15b   : > { %v1277_v26 = vpop.f32.mrf.mxu2  ;;  %v1102_v30 = vpop.f32.mrf.mxu0 }
 0x15c   : > { %v1366_v27 = vpop.f32.mrf.mxu3  ;;  %v1483_v28 = vadd.f32 %v12207_v46, %v1450_v23  ;;  %v1278_v29 = vadd.f32 %v1277_v26, %v1189_v24  ;;  %v1191_v31 = vpop.f32.mrf.mxu1  ;;  %v1103_v32 = vadd.f32 %v1102_v30, %v12181_v14 }
 0x15d   : > { %v1545_v56 = vld [vmem:[#allocation3 + $0x80] ss:$2 sm:$0xff]  ;;  %v1577_v57 = vld [vmem:[#allocation3 + $0x81] ss:$2 sm:$0xff] }
 0x15e   : > { %1515 = vst [vmem:[#allocation3 + $0x90] sm:$0xff] %v1483_v28  ;;  %v1367_v36 = vadd.f32 %v1366_v27, %v1278_v29  ;;  %1813 = vmatmul.bf16.gmra.mxu0 %v11668_v33  ;;  %v1192_v42 = vadd.f32 %v1191_v31, %v1103_v32  ;;  %v1600_v13 = vmax.f32 %v1545_v56, %v1577_v57 }
 0x15f   : > { %1934 = vmatmul.bf16.gmra.mxu1 %v12268_v25 }
 0x160   : > { %v1418_v41 = vmax.f32 %v1367_v36, 0.0  ;;  %2121 = vmatmul.bf16.gmra.mxu2 %v11156_v34 }
 0x161   : > { %2325 = vmatmul.bf16.gmra.mxu3 %v11172_v37 }
 0x162   : > { %v1451_v43 = vmul.f32 %v12201_v40, %v1418_v41 }
 0x163   : > { %v1280_v44 = vpop.f32.mrf.mxu2  ;;  %v1104_v50 = vpop.f32.mrf.mxu0 }
 0x164   : > { %v1369_v45 = vpop.f32.mrf.mxu3  ;;  %v1484_v48 = vadd.f32 %v12207_v46, %v1451_v43  ;;  %v1281_v49 = vadd.f32 %v1280_v44, %v1192_v42  ;;  %v1193_v51 = vpop.f32.mrf.mxu1  ;;  %v1105_v25 = vadd.f32 %v1104_v50, %v12181_v14  ;;  %v11158_v50 = vld [vmem:[#allocation2 + $0x28] sm:$0xff] }
 0x166   : > { %1516 = vst [vmem:[#allocation3 + $0x98] sm:$0xff] %v1484_v48  ;;  %v1370_v52 = vadd.f32 %v1369_v45, %v1281_v49  ;;  %v1194_v55 = vadd.f32 %v1193_v51, %v1105_v25  ;;  %v11672_v49 = vld [vmem:[#allocation2 + $0x24] sm:$0xff]  }
 0x167   : > { %v11231_v51 = vld [vmem:[%s14994_s2 + $0x1a8] sm:$0xff] }
 0x168   : > { %v1419_v53 = vmax.f32 %v1370_v52, 0.0  ;;  %v11199_v25 = vld [vmem:[%s14994_s2 + $0x128] sm:$0xff]  ;;  %2921 = vmatpush.bf16.msra.mxu2 %v11231_v51 }
 0x169   : > { %2513 = vmatpush.bf16.msra.mxu0 %v11199_v25 }
 0x16a   : > { %v1452_v54 = vmul.f32 %v12201_v40, %v1419_v53  ;;  %v11247_v53 = vld [vmem:[%s14994_s2 + $0x1e8] sm:$0xff] }
 0x16b   : > { %v1282_v58 = vpop.f32.mrf.mxu2  ;;  %v1107_v62 = vpop.f32.mrf.mxu0  ;;  %3125 = vmatpush.bf16.msra.mxu3 %v11247_v53 }
 0x16c   : > { %v1371_v59 = vpop.f32.mrf.mxu3  ;;  %v1485_v60 = vadd.f32 %v12207_v46, %v1452_v54  ;;  %v1283_v61 = vadd.f32 %v1282_v58, %v1194_v55  ;;  %v1196_v63 = vpop.f32.mrf.mxu1  ;;  %v1108_v5 = vadd.f32 %v1107_v62, %v12181_v14  ;;  %v11215_v54 = vld [vmem:[%s14994_s2 + $0x168] sm:$0xff] }
 0x16d   : > { %v1547_v3 = vld [vmem:[#allocation3 + $0x90] ss:$2 sm:$0xff]  ;;  %v1579_v4 = vld [vmem:[#allocation3 + $0x91] ss:$2 sm:$0xff]  ;;  %2717 = vmatpush.bf16.msra.mxu1 %v11215_v54 }
 0x16e   : > { %1517 = vst [vmem:[#allocation3 + $0xa0] sm:$0xff] %v1485_v60  ;;  %v1372_v9 = vadd.f32 %v1371_v59, %v1283_v61  ;;  %v1601_v15 = vmax.f32 %v1547_v3, %v1579_v4  ;;  %1818 = vmatmul.bf16.gmra.mxu0 %v11670_v0  ;;  %v1197_v18 = vadd.f32 %v1196_v63, %v1108_v5 }
 0x16f   : > { %1939 = vmatmul.bf16.gmra.mxu1 %v12311_v47 }
 0x170   : > { %v1420_v17 = vmax.f32 %v1372_v9, 0.0  ;;  %2126 = vmatmul.bf16.gmra.mxu2 %v11157_v1  ;;  %v12419_v19 = vpack.c.bf16 %v1601_v15, %v1600_v13 }
 0x171   : > { %2330 = vmatmul.bf16.gmra.mxu3 %v11173_v2 }
 0x172   : > { %v1453_v20 = vmul.f32 %v12201_v40, %v1420_v17  ;;  %11560 = vst [vmem:[#allocation2 + $0x30] sm:$0xff] %v12419_v19  }
 0x173   : > { %v1285_v21 = vpop.f32.mrf.mxu2  ;;  %v1109_v47 = vpop.f32.mrf.mxu0 }
 0x174   : > { %v1374_v22 = vpop.f32.mrf.mxu3  ;;  %v1486_v23 = vadd.f32 %v12207_v46, %v1453_v20  ;;  %v1286_v24 = vadd.f32 %v1285_v21, %v1197_v18  ;;  %v1198_v26 = vpop.f32.mrf.mxu1  ;;  %v1110_v28 = vadd.f32 %v1109_v47, %v12181_v14  ;;  %v11230_v20 = vld [vmem:[%s14994_s2 + $0x1a0] sm:$0xff] }
 0x175   : > { %v11246_v47 = vld [vmem:[%s14994_s2 + $0x1e0] sm:$0xff]  ;;  %2922 = vmatpush.bf16.msra.mxu2 %v11230_v20 }
 0x176   : > { %1518 = vst [vmem:[#allocation3 + $0xa8] sm:$0xff] %v1486_v23  ;;  %v1375_v27 = vadd.f32 %v1374_v22, %v1286_v24  ;;  %v1199_v32 = vadd.f32 %v1198_v26, %v1110_v28  ;;  %v11198_v24 = vld [vmem:[%s14994_s2 + $0x120] sm:$0xff]  ;;  %3126 = vmatpush.bf16.msra.mxu3 %v11246_v47 }
 0x177   : > { %v11214_v26 = vld [vmem:[%s14994_s2 + $0x160] sm:$0xff]  ;;  %2514 = vmatpush.bf16.msra.mxu0 %v11198_v24 }
 0x178   : > { %v1421_v29 = vmax.f32 %v1375_v27, 0.0  ;;  %2718 = vmatpush.bf16.msra.mxu1 %v11214_v26  ;;  %v11210_v47 = vld [vmem:[%s14994_s2 + $0x140] sm:$0xff] }
 0x179   : > { %v11174_v30 = vld [vmem:[#allocation2 + $0x2c] sm:$0xff] }
 0x17a   : > { %v1454_v31 = vmul.f32 %v12201_v40, %v1421_v29  ;;  %v12426_v33 = vld [vmem:[#allocation2 + $0x2c] sm:$0xff]  }
 0x17b   : > { %v12428_v34 = vld [vmem:[#allocation2 + $0x2c] sm:$0xff]  ;;  %v1287_v36 = vpop.f32.mrf.mxu2  ;;  %v1112_v44 = vpop.f32.mrf.mxu0 }
 0x17c   : > { %v12430_v35 = vld [vmem:[#allocation2 + $0x2c] sm:$0xff]  ;;  %v1376_v37 = vpop.f32.mrf.mxu3  ;;  %v1487_v42 = vadd.f32 %v12207_v46, %v1454_v31  ;;  %v1288_v43 = vadd.f32 %v1287_v36, %v1199_v32  ;;  %v1201_v45 = vpop.f32.mrf.mxu1  ;;  %v1113_v48 = vadd.f32 %v1112_v44, %v12181_v14 }
 0x17d   : > { %v12432_v38 = vld [vmem:[#allocation2 + $0x30] sm:$0xff]  ;;  %v1549_v4 = vld [vmem:[#allocation3 + $0xa0] ss:$2 sm:$0xff]  ;;  %v1581_v5 = vld [vmem:[#allocation3 + $0xa1] ss:$2 sm:$0xff] }
 0x17e   : > { %v12434_v39 = vld [vmem:[#allocation2 + $0x30] sm:$0xff]  ;;  %1519 = vst [vmem:[#allocation3 + $0xb0] sm:$0xff] %v1487_v42  ;;  %v1377_v52 = vadd.f32 %v1376_v37, %v1288_v43  ;;  %1823 = vmatmul.bf16.gmra.mxu0 %v11672_v49  ;;  %v1202_v56 = vadd.f32 %v1201_v45, %v1113_v48  ;;  %v1602_v22 = vmax.f32 %v1549_v4, %v1581_v5 }
 0x17f   : > { %v12436_v41 = vld [vmem:[#allocation2 + $0x30] sm:$0xff]  ;;  %1944 = vmatmul.bf16.gmra.mxu1 %v12363_v8 }
 0x180   : > { %4063 = vst [vmem:[#allocation2 + $0x30] sm:$0xf] %v14968_v6  ;;  %v1422_v55 = vmax.f32 %v1377_v52, 0.0  ;;  %2131 = vmatmul.bf16.gmra.mxu2 %v11158_v50 }
 0x181   : > { %4064 = vst [vmem:[#allocation2 + $0x34] sm:$0xf] %v14968_v6  ;;  %2335 = vmatmul.bf16.gmra.mxu3 %v11174_v30 }
 0x182   : > { %v1455_v57 = vmul.f32 %v12201_v40, %v1422_v55 }
 0x183   : > { %v1290_v58 = vpop.f32.mrf.mxu2  ;;  %v1114_v62 = vpop.f32.mrf.mxu0 }
 0x184   : > { %v1379_v59 = vpop.f32.mrf.mxu3  ;;  %v1488_v60 = vadd.f32 %v12207_v46, %v1455_v57  ;;  %v1291_v61 = vadd.f32 %v1290_v58, %v1202_v56  ;;  %v1203_v63 = vpop.f32.mrf.mxu1  ;;  %v1115_v8 = vadd.f32 %v1114_v62, %v12181_v14 }
 0x186   : > { %1520 = vst [vmem:[#allocation3 + $0xb8] sm:$0xff] %v1488_v60  ;;  %v1380_v0 = vadd.f32 %v1379_v59, %v1291_v61  ;;  %v1204_v3 = vadd.f32 %v1203_v63, %v1115_v8  ;;  %v11229_v61 = vld [vmem:[%s14994_s2 + $0x198] sm:$0xff] }
 0x187   : > { %v11197_v63 = vld [vmem:[%s14994_s2 + $0x118] sm:$0xff]  ;;  %2923 = vmatpush.bf16.msra.mxu2 %v11229_v61  ;;  %v11227_v61 = vld [vmem:[%s14994_s2 + $0x188] sm:$0xff] }
 0x188   : > { %v1423_v1 = vmax.f32 %v1380_v0, 0.0  ;;  %v11245_v0 = vld [vmem:[%s14994_s2 + $0x1d8] sm:$0xff]  ;;  %2515 = vmatpush.bf16.msra.mxu0 %v11197_v63  ;;  %v11243_v63 = vld [vmem:[%s14994_s2 + $0x1c8] sm:$0xff] }
 0x189   : > { %v11213_v8 = vld [vmem:[%s14994_s2 + $0x158] sm:$0xff]  ;;  %3127 = vmatpush.bf16.msra.mxu3 %v11245_v0 }
 0x18a   : > { %v1456_v2 = vmul.f32 %v12201_v40, %v1423_v1  ;;  %2719 = vmatpush.bf16.msra.mxu1 %v11213_v8 }
 0x18b   : > { %v1292_v7 = vpop.f32.mrf.mxu2  ;;  %v1117_v13 = vpop.f32.mrf.mxu0 }
 0x18c   : > { %v1381_v9 = vpop.f32.mrf.mxu3  ;;  %v1489_v10 = vadd.f32 %v12207_v46, %v1456_v2  ;;  %v1293_v12 = vadd.f32 %v1292_v7, %v1204_v3  ;;  %v1206_v15 = vpop.f32.mrf.mxu1  ;;  %v1118_v18 = vadd.f32 %v1117_v13, %v12181_v14  ;;  %v11212_v7 = vld [vmem:[%s14994_s2 + $0x150] sm:$0xff] }
 0x18d   : > { %v1551_v16 = vld [vmem:[#allocation3 + $0xb0] ss:$2 sm:$0xff]  ;;  %v1583_v17 = vld [vmem:[#allocation3 + $0xb1] ss:$2 sm:$0xff] }
 0x18e   : > { %1521 = vst [vmem:[#allocation3 + $0xc0] sm:$0xff] %v1489_v10  ;;  %v1382_v21 = vadd.f32 %v1381_v9, %v1293_v12  ;;  %v1603_v23 = vmax.f32 %v1551_v16, %v1583_v17  ;;  %1828 = vmatmul.bf16.gmra.mxu0 %v12426_v33  ;;  %v1207_v28 = vadd.f32 %v1206_v15, %v1118_v18  ;;  %v11211_v16 = vld [vmem:[%s14994_s2 + $0x148] sm:$0xff] }
 0x18f   : > { %1949 = vmatmul.bf16.gmra.mxu1 %v12381_v11 }
 0x190   : > { %v1424_v27 = vmax.f32 %v1382_v21, 0.0  ;;  %2136 = vmatmul.bf16.gmra.mxu2 %v12432_v38  ;;  %v12476_v29 = vpack.c.bf16 %v1603_v23, %v1602_v22  ;;  %2720 = vmatpush.bf16.msra.mxu1 %v11212_v7  ;;  %v11194_v7 = vld [vmem:[%s14994_s2 + $0x100] sm:$0xff] }
 0x192   : > { %v1457_v30 = vmul.f32 %v12201_v40, %v1424_v27  ;;  %11561 = vst [vmem:[#allocation2 + $0x38] sm:$0xff] %v12476_v29  }
 0x193   : > { %v1295_v31 = vpop.f32.mrf.mxu2  ;;  %v1119_v11 = vpop.f32.mrf.mxu0 }
 0x194   : > { %v1384_v32 = vpop.f32.mrf.mxu3  ;;  %v1490_v33 = vadd.f32 %v12207_v46, %v1457_v30  ;;  %v1296_v36 = vadd.f32 %v1295_v31, %v1207_v28  ;;  %v1208_v37 = vpop.f32.mrf.mxu1  ;;  %v1120_v38 = vadd.f32 %v1119_v11, %v12181_v14  ;;  %2721 = vmatpush.bf16.msra.mxu1 %v11211_v16 }
 0x196   : > { %1522 = vst [vmem:[#allocation3 + $0xc8] sm:$0xff] %v1490_v33  ;;  %v1385_v42 = vadd.f32 %v1384_v32, %v1296_v36  ;;  %v1209_v48 = vadd.f32 %v1208_v37, %v1120_v38  ;;  %v11228_v36 = vld [vmem:[%s14994_s2 + $0x190] sm:$0xff] }
 0x197   : > { %v11196_v38 = vld [vmem:[%s14994_s2 + $0x110] sm:$0xff]  ;;  %2924 = vmatpush.bf16.msra.mxu2 %v11228_v36 }
 0x198   : > { %v1425_v43 = vmax.f32 %v1385_v42, 0.0  ;;  %2722 = vmatpush.bf16.msra.mxu1 %v11210_v47  ;;  %2516 = vmatpush.bf16.msra.mxu0 %v11196_v38 }
 0x199   : > { %v11175_v44 = vld [vmem:[#allocation2 + $0x34] sm:$0xff] }
 0x19a   : > { %v1458_v45 = vmul.f32 %v12201_v40, %v1425_v43  ;;  %v11675_v49 = vld [vmem:[#allocation2 + $0x34] sm:$0xff]   ;;  %2340 = vmatmul.bf16.gmra.mxu3 %v11175_v44 }
 0x19b   : > { %v12483_v50 = vld [vmem:[#allocation2 + $0x34] sm:$0xff]  ;;  %v1297_v52 = vpop.f32.mrf.mxu2  ;;  %v1122_v58 = vpop.f32.mrf.mxu0  ;;  %2925 = vmatpush.bf16.msra.mxu2 %v11227_v61 }
 0x19c   : > { %v12485_v51 = vld [vmem:[#allocation2 + $0x34] sm:$0xff]  ;;  %v1386_v25 = vpop.f32.mrf.mxu3  ;;  %v1491_v56 = vadd.f32 %v12207_v46, %v1458_v45  ;;  %v1298_v57 = vadd.f32 %v1297_v52, %v1209_v48  ;;  %v1211_v59 = vpop.f32.mrf.mxu1  ;;  %v1123_v60 = vadd.f32 %v1122_v58, %v12181_v14 }
 0x19d   : > { %v11160_v53 = vld [vmem:[#allocation2 + $0x38] sm:$0xff]  ;;  %v1553_v21 = vld [vmem:[#allocation3 + $0xc0] ss:$2 sm:$0xff]  ;;  %v1585_v22 = vld [vmem:[#allocation3 + $0xc1] ss:$2 sm:$0xff] }
 0x19e   : > { %v12487_v54 = vld [vmem:[#allocation2 + $0x38] sm:$0xff]  ;;  %1523 = vst [vmem:[#allocation3 + $0xd0] sm:$0xff] %v1491_v56  ;;  %v1387_v62 = vadd.f32 %v1386_v25, %v1298_v57  ;;  %1833 = vmatmul.bf16.gmra.mxu0 %v11675_v49  ;;  %v1212_v2 = vadd.f32 %v1211_v59, %v1123_v60  ;;  %v1604_v37 = vmax.f32 %v1553_v21, %v1585_v22  ;;  %v11244_v43 = vld [vmem:[%s14994_s2 + $0x1d0] sm:$0xff] }
 0x19f   : > { %v12489_v55 = vld [vmem:[#allocation2 + $0x38] sm:$0xff]  ;;  %1954 = vmatmul.bf16.gmra.mxu1 %v12419_v19  ;;  %3128 = vmatpush.bf16.msra.mxu3 %v11244_v43 }
 0x1a0   : > { %4065 = vst [vmem:[#allocation2 + $0x38] sm:$0xf] %v14968_v6  ;;  %v1426_v1 = vmax.f32 %v1387_v62, 0.0  ;;  %2141 = vmatmul.bf16.gmra.mxu2 %v11160_v53  ;;  %v11195_v62 = vld [vmem:[%s14994_s2 + $0x108] sm:$0xff] }
 0x1a1   : > { %4066 = vst [vmem:[#allocation2 + $0x3c] sm:$0xf] %v14968_v6  ;;  %2517 = vmatpush.bf16.msra.mxu0 %v11195_v62 }
 0x1a2   : > { %v1459_v3 = vmul.f32 %v12201_v40, %v1426_v1 }
 0x1a3   : > { %v1300_v4 = vpop.f32.mrf.mxu2  ;;  %v1124_v12 = vpop.f32.mrf.mxu0  ;;  %3129 = vmatpush.bf16.msra.mxu3 %v11243_v63 }
 0x1a4   : > { %v1389_v5 = vpop.f32.mrf.mxu3  ;;  %v1492_v9 = vadd.f32 %v12207_v46, %v1459_v3  ;;  %v1301_v10 = vadd.f32 %v1300_v4, %v1212_v2  ;;  %v1213_v19 = vpop.f32.mrf.mxu1  ;;  %v1125_v15 = vadd.f32 %v1124_v12, %v12181_v14  ;;  %v11503_v4 = vunpack.c.h.b16 %v12476_v29 }
 0x1a5   : > { %2518 = vmatpush.bf16.msra.mxu0 %v11194_v7 }
 0x1a6   : > { %1524 = vst [vmem:[#allocation3 + $0xd8] sm:$0xff] %v1492_v9  ;;  %v1390_v13 = vadd.f32 %v1389_v5, %v1301_v10  ;;  %v1214_v20 = vadd.f32 %v1213_v19, %v1125_v15 }
 0x1a8   : > { %v1427_v17 = vmax.f32 %v1390_v13, 0.0 }
 0x1aa   : > { %v1460_v18 = vmul.f32 %v12201_v40, %v1427_v17 }
 0x1ab   : > { %v1302_v23 = vpop.f32.mrf.mxu2  ;;  %v1127_v28 = vpop.f32.mrf.mxu0 }
 0x1ac   : > { %v1391_v24 = vpop.f32.mrf.mxu3  ;;  %v1493_v26 = vadd.f32 %v12207_v46, %v1460_v18  ;;  %v1303_v27 = vadd.f32 %v1302_v23, %v1214_v20  ;;  %v1216_v30 = vpop.f32.mrf.mxu1  ;;  %v1128_v33 = vadd.f32 %v1127_v28, %v12181_v14 }
 0x1ad   : > { %v1555_v31 = vld [vmem:[#allocation3 + $0xd0] ss:$2 sm:$0xff]  ;;  %v1587_v32 = vld [vmem:[#allocation3 + $0xd1] ss:$2 sm:$0xff] }
 0x1ae   : > { %1525 = vst [vmem:[#allocation3 + $0xe0] sm:$0xff] %v1493_v26  ;;  %v1392_v11 = vadd.f32 %v1391_v24, %v1303_v27  ;;  %v1605_v42 = vmax.f32 %v1555_v31, %v1587_v32  ;;  %v1217_v45 = vadd.f32 %v1216_v30, %v1128_v33  ;;  %v11226_v30 = vld [vmem:[%s14994_s2 + $0x180] sm:$0xff] }
 0x1af   : > { %1959 = vmatmul.bf16.gmra.mxu1 %v12476_v29  ;;  %2926 = vmatpush.bf16.msra.mxu2 %v11226_v30 }
 0x1b0   : > { %v1428_v44 = vmax.f32 %v1392_v11, 0.0  ;;  %v11465_v48 = vpack.c.bf16 %v1605_v42, %v1604_v37 }
 0x1b2   : > { %v1461_v49 = vmul.f32 %v12201_v40, %v1428_v44  ;;  %11562 = vst [vmem:[#allocation2 + $0x40] sm:$0xff] %v11465_v48  }
 0x1b3   : > { %v1305_v52 = vpop.f32.mrf.mxu2  ;;  %v1129_v57 = vpop.f32.mrf.mxu0 }
 0x1b4   : > { %v1394_v25 = vpop.f32.mrf.mxu3  ;;  %v1494_v53 = vadd.f32 %v12207_v46, %v1461_v49  ;;  %v1306_v56 = vadd.f32 %v1305_v52, %v1217_v45  ;;  %v1218_v58 = vpop.f32.mrf.mxu1  ;;  %v1130_v60 = vadd.f32 %v1129_v57, %v12181_v14  ;;  %v11202_v45 = vld [vmem:[#allocation2 + $0x14] sm:$0xff] }
 0x1b6   : > { %1526 = vst [vmem:[#allocation3 + $0xe8] sm:$0xff] %v1494_v53  ;;  %v1395_v59 = vadd.f32 %v1394_v25, %v1306_v56  ;;  %v1219_v3 = vadd.f32 %v1218_v58, %v1130_v60 }
 0x1b8   : > { %v1429_v0 = vmax.f32 %v1395_v59, 0.0 }
 0x1b9   : > { %v11161_v8 = vld [vmem:[#allocation2 + $0x40] sm:$0xff] }
 0x1ba   : > { %v11176_v1 = vld [vmem:[#allocation2 + $0x3c] sm:$0xff]  ;;  %v1462_v14 = vmul.f32 %v12201_v40, %v1429_v0  ;;  %2146 = vmatmul.bf16.gmra.mxu2 %v11161_v8 }
 0x1bb   : > { %v1660_v2 = vld [vmem:[#allocation2 + $0x40] sm:$0xff]   ;;  %v1307_v9 = vpop.f32.mrf.mxu2  ;;  %2345 = vmatmul.bf16.gmra.mxu3 %v11176_v1  ;;  %v1804_v13 = vpop.f32.mrf.mxu0 }
 0x1bc   : > { %v1727_v5 = vunpack.c.l.b16 %v1660_v2  ;;  %v1396_v10 = vpop.f32.mrf.mxu3  ;;  %v1495_v12 = vadd.f32 %v12207_v46, %v1462_v14  ;;  %v1308_v19 = vadd.f32 %v1307_v9, %v1219_v3  ;;  %v1925_v15 = vpop.f32.mrf.mxu1  ;;  %v1728_v31 = vunpack.c.h.b16 %v1660_v2  ;;  %v11186_v14 = vld [vmem:[#allocation2 + $0x10] sm:$0xff] }
 0x1bd   : > { %v1926_v17 = vadd.f32 %v1925_v15, %v1804_v13  ;;  %v1589_v32 = vld [vmem:[#allocation3 + $0xe1] ss:$2 sm:$0xff] }
 0x1be   : > { %v1736_v16 = vpack.c.b16 %v1727_v5, %v11503_v4  ;;  %v1858_v18 = vpack.c.b16 %v1727_v5, %v1727_v5  ;;  %1527 = vst [vmem:[#allocation3 + $0xf0] sm:$0xff] %v1495_v12  ;;  %v1397_v29 = vadd.f32 %v1396_v10, %v1308_v19  ;;  %v1737_v42 = vpack.c.b16 %v1728_v31, %v1728_v31  ;;  %v11203_v4 = vld [vmem:[#allocation2 + $0x1c] sm:$0xff] }
 0x1c0   : > { %1838 = vmatmul.bf16.gmra.mxu0 %v1736_v16  ;;  %1964 = vmatmul.bf16.gmra.mxu1 %v1858_v18  ;;  %v1430_v20 = vmax.f32 %v1397_v29, 0.0 }
 0x1c2   : > { %v1463_v21 = vmul.f32 %v12201_v40, %v1430_v20  ;;  %v11242_v40 = vld [vmem:[%s14994_s2 + $0x1c0] sm:$0xff]  ;;  %v11187_v20 = vld [vmem:[#allocation2 + $0x18] sm:$0xff]  ;;  %s11800_s2 = scalar_lea.hbm %s14966_s11, 16 }
 0x1c3   : > { %v2112_v22 = vpop.f32.mrf.mxu2  ;;  %v12553_v26 = vpop.f32.mrf.mxu0  ;;  %3130 = vmatpush.bf16.msra.mxu3 %v11242_v40 }
 0x1c4   : > { %v2316_v23 = vpop.f32.mrf.mxu3  ;;  %v1496_v24 = vadd.f32 %v12207_v46, %v1463_v21  ;;  %v2156_v47 = vadd.f32 %v2112_v22, %v1926_v17  ;;  %v12555_v27 = vpop.f32.mrf.mxu1  ;;  %v1557_v46 = vld [vmem:[#allocation3 + $0xe0] ss:$2 sm:$0xff]  ;;  %v11218_v21 = vld [vmem:[#allocation2 + $0x18] sm:$0xff] }
 0x1c5   : > { %v1606_v48 = vmax.f32 %v1557_v46, %v1589_v32  ;;  %v11234_v32 = vld [vmem:[#allocation2 + $0x1c] sm:$0xff] }
 0x1c6   : > { %1528 = vst [vmem:[#allocation3 + $0xf8] sm:$0xff] %v1496_v24  ;;  %v12557_v28 = vadd.f32 %v2316_v23, %v2156_v47  ;;  %v11204_v23 = vld [vmem:[#allocation2 + $0x24] sm:$0xff] }
 0x1cb   : > { %v12565_v33 = vpop.f32.mrf.mxu2  ;;  %v1809_v11 = vpop.f32.mrf.mxu0 }
 0x1cc   : > { %v12567_v36 = vpop.f32.mrf.mxu3  ;;  %v1930_v37 = vpop.f32.mrf.mxu1 }
 0x1cd   : > { %v1559_v38 = vld [vmem:[#allocation3 + $0xf0] ss:$2 sm:$0xff]  ;;  %v1591_v43 = vld [vmem:[#allocation3 + $0xf1] ss:$2 sm:$0xff]  ;;  %v1931_v44 = vadd.f32 %v1930_v37, %v1809_v11 }
 0x1ce   : > { %v1607_v49 = vmax.f32 %v1559_v38, %v1591_v43  ;;  %v11188_v43 = vld [vmem:[#allocation2 + $0x20] sm:$0xff] }
 0x1d0   : > { %1843 = vmatmul.bf16.gmra.mxu0 %v1737_v42  ;;  %2723 = vmatmul.bf16.vlgmr.msra.gmra.mxu1 %v11202_v45  ;;  %v11470_v52 = vpack.c.bf16 %v1607_v49, %v1606_v48 }
 0x1d2   : > { %11563 = vst [vmem:[#allocation2 + $0x48] sm:$0xff] %v11470_v52  }
 0x1d3   : > { %v2117_v25 = vpop.f32.mrf.mxu2  ;;  %v12569_v57 = vpop.f32.mrf.mxu0 }
 0x1d4   : > { %v2321_v53 = vpop.f32.mrf.mxu3  ;;  %v2158_v56 = vadd.f32 %v2117_v25, %v1931_v44  ;;  %v12571_v58 = vpop.f32.mrf.mxu1  ;;  %v11219_v44 = vld [vmem:[#allocation2 + $0x20] sm:$0xff] }
 0x1d6   : > { %v12573_v59 = vadd.f32 %v2321_v53, %v2158_v56 }
 0x1d9   : > { %v11177_v60 = vld [vmem:[#allocation2 + $0x44] sm:$0xff] }
 0x1da   : > { %v1985_v61 = vld [vmem:[#allocation2 + $0x48] sm:$0xff]   ;;  %2350 = vmatmul.bf16.gmra.mxu3 %v11177_v60 }
 0x1db   : > { %v2036_v62 = vunpack.c.l.b16 %v1985_v61  ;;  %v12575_v63 = vpop.f32.mrf.mxu2  ;;  %v1814_v8 = vpop.f32.mrf.mxu0  ;;  %v2240_v19 = vunpack.c.h.b16 %v1985_v61  ;;  %v11235_v60 = vld [vmem:[#allocation2 + $0x24] sm:$0xff] }
 0x1dc   : > { %v12577_v0 = vpop.f32.mrf.mxu3  ;;  %v1935_v1 = vpop.f32.mrf.mxu1 }
 0x1dd   : > { %v2045_v2 = vpack.c.b16 %v2036_v62, %v2036_v62  ;;  %v1936_v3 = vadd.f32 %v1935_v1, %v1814_v8  ;;  %v2249_v15 = vpack.c.b16 %v2240_v19, %v2240_v19  ;;  %v11189_v1 = vld [vmem:[#allocation2 + $0x28] sm:$0xff] }
 0x1df   : > { %2151 = vmatmul.bf16.gmra.mxu2 %v2045_v2  ;;  %v11220_v2 = vld [vmem:[#allocation2 + $0x28] sm:$0xff] }
 0x1e0   : > { %2519 = vmatmul.bf16.vlgmr.msra.gmra.mxu0 %v11186_v14  ;;  %2728 = vmatmul.bf16.gmra.mxu1 %v11203_v4 }
 0x1e3   : > { %v2122_v5 = vpop.f32.mrf.mxu2  ;;  %v12579_v10 = vpop.f32.mrf.mxu0 }
 0x1e4   : > { %v2326_v7 = vpop.f32.mrf.mxu3  ;;  %v2160_v9 = vadd.f32 %v2122_v5, %v1936_v3  ;;  %v12581_v12 = vpop.f32.mrf.mxu1 }
 0x1e6   : > { %v12583_v13 = vadd.f32 %v2326_v7, %v2160_v9 }
 0x1ea   : > { %2355 = vmatmul.bf16.gmra.mxu3 %v2249_v15 }
 0x1eb   : > { %v12585_v16 = vpop.f32.mrf.mxu2  ;;  %v1819_v18 = vpop.f32.mrf.mxu0 }
 0x1ec   : > { %v12587_v17 = vpop.f32.mrf.mxu3  ;;  %v1940_v29 = vpop.f32.mrf.mxu1 }
 0x1ed   : > { %v1941_v22 = vadd.f32 %v1940_v29, %v1819_v18  ;;  %v11207_v29 = vld [vmem:[#allocation2 + $0x3c] sm:$0xff] }
 0x1ef   : > { %2927 = vmatmul.bf16.vlgmr.msra.gmra.mxu2 %v11218_v21 }
 0x1f0   : > { %2524 = vmatmul.bf16.gmra.mxu0 %v11187_v20  ;;  %2733 = vmatmul.bf16.gmra.mxu1 %v11204_v23 }
 0x1f3   : > { %v2127_v24 = vpop.f32.mrf.mxu2  ;;  %v12589_v40 = vpop.f32.mrf.mxu0 }
 0x1f4   : > { %v2331_v47 = vpop.f32.mrf.mxu3  ;;  %v2162_v30 = vadd.f32 %v2127_v24, %v1941_v22  ;;  %v12591_v31 = vpop.f32.mrf.mxu1 }
 0x1f6   : > { %v12593_v46 = vadd.f32 %v2331_v47, %v2162_v30 }
 0x1fa   : > { %3131 = vmatmul.bf16.vlgmr.msra.gmra.mxu3 %v11234_v32  ;;  %v11238_v32 = vld [vmem:[#allocation2 + $0x3c] sm:$0xff] }
 0x1fb   : > { %v12595_v11 = vpop.f32.mrf.mxu2  ;;  %v1824_v42 = vpop.f32.mrf.mxu0 }
 0x1fc   : > { %v12597_v37 = vpop.f32.mrf.mxu3  ;;  %v1945_v38 = vpop.f32.mrf.mxu1 }
 0x1fd   : > { %v1946_v45 = vadd.f32 %v1945_v38, %v1824_v42 }
 0x1ff   : > { %2932 = vmatmul.bf16.gmra.mxu2 %v11219_v44  ;;  %v11223_v44 = vld [vmem:[#allocation2 + $0x40] sm:$0xff] }
 0x200   : > { %2529 = vmatmul.bf16.gmra.mxu0 %v11188_v43  ;;  %2738 = vmatmul.bf16.gmra.mxu1 %v12428_v34  ;;  %v11192_v43 = vld [vmem:[#allocation2 + $0x40] sm:$0xff] }
 0x203   : > { %v2132_v48 = vpop.f32.mrf.mxu2  ;;  %v12600_v52 = vpop.f32.mrf.mxu0 }
 0x204   : > { %v2164_v49 = vadd.f32 %v2132_v48, %v1946_v45  ;;  %v12602_v25 = vpop.f32.mrf.mxu1  ;;  %v2336_v53 = vpop.f32.mrf.mxu3  ;;  %v11209_v45 = vld [vmem:[#allocation2 + $0x4c] sm:$0xff] }
 0x206   : > { %v12604_v56 = vadd.f32 %v2336_v53, %v2164_v49 }
 0x20a   : > { %3136 = vmatmul.bf16.gmra.mxu3 %v11235_v60 }
 0x20b   : > { %v12606_v61 = vpop.f32.mrf.mxu2  ;;  %v1829_v62 = vpop.f32.mrf.mxu0 }
 0x20c   : > { %v1950_v8 = vpop.f32.mrf.mxu1  ;;  %v12613_v7 = vpop.f32.mrf.mxu3 }
 0x20d   : > { %v1951_v14 = vadd.f32 %v1950_v8, %v1829_v62  ;;  %v2393_v62 = vld [vmem:[#allocation2 + $0x50] sm:$0xff]  }
 0x20e   : > { %v2648_v8 = vunpack.c.h.b16 %v2393_v62 }
 0x20f   : > { %2937 = vmatmul.bf16.gmra.mxu2 %v11220_v2 }
 0x210   : > { %2534 = vmatmul.bf16.gmra.mxu0 %v11189_v1  ;;  %2743 = vmatmul.bf16.gmra.mxu1 %v12483_v50  ;;  %v11239_v1 = vld [vmem:[#allocation2 + $0x44] sm:$0xff] }
 0x213   : > { %v2137_v34 = vpop.f32.mrf.mxu2  ;;  %v12609_v4 = vpop.f32.mrf.mxu0 }
 0x214   : > { %v2166_v3 = vadd.f32 %v2137_v34, %v1951_v14  ;;  %v12611_v5 = vpop.f32.mrf.mxu1  ;;  %v2657_v14 = vpack.c.b16 %v2648_v8, %v2648_v8 }
 0x21a   : > { %3141 = vmatmul.bf16.gmra.mxu3 %v12430_v35  ;;  %v11208_v35 = vld [vmem:[#allocation2 + $0x44] sm:$0xff] }
 0x21b   : > { %v12615_v9 = vpop.f32.mrf.mxu2  ;;  %v1834_v19 = vpop.f32.mrf.mxu0 }
 0x21c   : > { %v1955_v15 = vpop.f32.mrf.mxu1 }
 0x21d   : > { %v1956_v18 = vadd.f32 %v1955_v15, %v1834_v19  ;;  %v2341_v50 = vpop.f32.mrf.mxu3  ;;  %v11193_v19 = vld [vmem:[#allocation2 + $0x48] sm:$0xff] }
 0x21e   : > { %v12620_v20 = vadd.f32 %v2341_v50, %v2166_v3  ;;  %v11224_v15 = vld [vmem:[#allocation2 + $0x48] sm:$0xff] }
 0x21f   : > { %2942 = vmatmul.bf16.gmra.mxu2 %v12436_v41 }
 0x220   : > { %2539 = vmatmul.bf16.gmra.mxu0 %v12434_v39  ;;  %2748 = vmatmul.bf16.gmra.mxu1 %v11207_v29 }
 0x223   : > { %v2142_v21 = vpop.f32.mrf.mxu2  ;;  %v12627_v39 = vpop.f32.mrf.mxu0 }
 0x224   : > { %v2168_v22 = vadd.f32 %v2142_v21, %v1956_v18  ;;  %v12622_v23 = vpop.f32.mrf.mxu1  ;;  %v2444_v21 = vunpack.c.l.b16 %v2393_v62 }
 0x225   : > { %v12631_v47 = vpop.f32.mrf.mxu3 }
 0x22a   : > { %3146 = vmatmul.bf16.gmra.mxu3 %v12485_v51 }
 0x22b   : > { %v12633_v30 = vpop.f32.mrf.mxu2 }
 0x22c   : > { %v1960_v24 = vpop.f32.mrf.mxu1 }
 0x22f   : > { %2947 = vmatmul.bf16.gmra.mxu2 %v12489_v55 }
 0x230   : > { %2544 = vmatmul.bf16.gmra.mxu0 %v12487_v54  ;;  %2753 = vmatmul.bf16.gmra.mxu1 %v11208_v35  ;;  %v2453_v35 = vpack.c.b16 %v2444_v21, %v2444_v21 }
 0x234   : > { %v12629_v41 = vpop.f32.mrf.mxu1 }
 0x235   : > { %14995 = vst [vmem:[#allocation9_spill] sm:$0xff] %v12629_v41 }
 0x23a   : > { %3151 = vmatmul.bf16.gmra.mxu3 %v11238_v32  ;;  %v11225_v32 = vld [vmem:[#allocation2 + $0x50] sm:$0xff] }
 0x23d   : > { %v1839_v42 = vpop.f32.mrf.mxu0  ;;  %v1965_v51 = vpop.f32.mrf.mxu1 }
 0x23e   : > { %v1961_v38 = vadd.f32 %v1960_v24, %v1839_v42  ;;  %v2147_v54 = vpop.f32.mrf.mxu2  ;;  %v2346_v55 = vpop.f32.mrf.mxu3  ;;  %v11240_v24 = vld [vmem:[#allocation2 + $0x4c] sm:$0xff] }
 0x23f   : > { %2952 = vmatmul.bf16.gmra.mxu2 %v11223_v44  ;;  %v12635_v49 = vadd.f32 %v2346_v55, %v2168_v22  ;;  %v2801_v55 = vld [vmem:[#allocation2 + $0x58] sm:$0xff]  }
 0x240   : > { %2549 = vmatmul.bf16.gmra.mxu0 %v11192_v43  ;;  %v2170_v48 = vadd.f32 %v2147_v54, %v1961_v38  ;;  %2758 = vmatmul.bf16.gmra.mxu1 %v11209_v45  ;;  %v2852_v8 = vunpack.c.l.b16 %v2801_v55 }
 0x245   : > { %v12637_v53 = vpop.f32.mrf.mxu0  ;;  %v1967_v60 = vpop.f32.mrf.mxu1 }
 0x246   : > { %14996 = vst [vmem:[#allocation10_spill] sm:$0xff] %v12637_v53  ;;  %v12639_v50 = vpop.f32.mrf.mxu3  ;;  %v12641_v22 = vpop.f32.mrf.mxu2 }
 0x247   : > { %14997 = vst [vmem:[#allocation11_spill] sm:$0xff] %v12641_v22 }
 0x24a   : > { %3156 = vmatmul.bf16.gmra.mxu3 %v11239_v1  ;;  %v11241_v1 = vld [vmem:[#allocation2 + $0x54] sm:$0xff] }
 0x24d   : > { %v1844_v2 = vpop.f32.mrf.mxu0  ;;  %v2724_v3 = vpop.f32.mrf.mxu1 }
 0x24e   : > { %v1966_v34 = vadd.f32 %v1965_v51, %v1844_v2 }
 0x24f   : > { %2957 = vmatmul.bf16.gmra.mxu2 %v11224_v15 }
 0x250   : > { %2554 = vmatmul.bf16.gmra.mxu0 %v11193_v19  ;;  %2763 = vmatmul.bf16.gmra.mxu1 %v2657_v14  ;;  %v2861_v14 = vpack.c.b16 %v2852_v8, %v2852_v8 }
 0x255   : > { %v1846_v18 = vpop.f32.mrf.mxu0  ;;  %v2726_v29 = vpop.f32.mrf.mxu1 }
 0x25a   : > { %3161 = vmatmul.bf16.gmra.mxu3 %v11240_v24 }
 0x25d   : > { %v2520_v42 = vpop.f32.mrf.mxu0  ;;  %v2729_v38 = vpop.f32.mrf.mxu1 }
 0x25e   : > { %v2351_v51 = vpop.f32.mrf.mxu3 }
 0x25f   : > { %2962 = vmatmul.bf16.gmra.mxu2 %v11225_v32  ;;  %v12643_v43 = vadd.f32 %v2351_v51, %v2170_v48  ;;  %v1928_v32 = vadd.f32 %v12555_v27, %v12553_v26 }
 0x260   : > { %2559 = vmatmul.bf16.gmra.mxu0 %v2453_v35 }
 0x262   : > { %v2152_v44 = vpop.f32.mrf.mxu2 }
 0x263   : > { %v2172_v45 = vadd.f32 %v2152_v44, %v1966_v34  ;;  %v3056_v34 = vunpack.c.h.b16 %v2801_v55 }
 0x265   : > { %v2522_v54 = vpop.f32.mrf.mxu0  ;;  %v12645_v60 = vpop.f32.mrf.mxu1  ;;  %v3065_v44 = vpack.c.b16 %v3056_v34, %v3056_v34 }
 0x266   : > { %v12647_v62 = vpop.f32.mrf.mxu3 }
 0x267   : > { %14998 = vst [vmem:[#allocation12_spill] sm:$0xff] %v12647_v62 }
 0x26a   : > { %v2154_v2 = vpop.f32.mrf.mxu2  ;;  %3166 = vmatmul.bf16.gmra.mxu3 %v11241_v1 }
 0x26b   : > { %v2157_v2 = vadd.f32 %v12565_v33, %v1928_v32 }
 0x26d   : > { %v2525_v19 = vpop.f32.mrf.mxu0  ;;  %v2734_v15 = vpop.f32.mrf.mxu1 }
 0x26e   : > { %v2356_v18 = vpop.f32.mrf.mxu3 }
 0x26f   : > { %2967 = vmatmul.bf16.gmra.mxu2 %v2861_v14  ;;  %v12649_v21 = vadd.f32 %v2356_v18, %v2172_v45  ;;  %v2361_v45 = vadd.f32 %v12567_v36, %v2157_v2  ;;  %v2564_v18 = vadd.f32 %v2520_v42, %v12557_v28  ;;  %v1933_v36 = vadd.f32 %v12571_v58, %v12569_v57 }
 0x270   : > { %v2566_v28 = vadd.f32 %v2525_v19, %v12573_v59 }
 0x271   : > { %v2565_v22 = vadd.f32 %v2522_v54, %v2361_v45  ;;  %v2768_v41 = vadd.f32 %v2724_v3, %v2564_v18  ;;  %v2159_v3 = vadd.f32 %v12575_v63, %v1933_v36 }
 0x272   : > { %v2928_v48 = vpop.f32.mrf.mxu2  ;;  %v2770_v54 = vadd.f32 %v2729_v38, %v2566_v28 }
 0x273   : > { %v2972_v27 = vadd.f32 %v2928_v48, %v2768_v41  ;;  %v2769_v34 = vadd.f32 %v2726_v29, %v2565_v22  ;;  %v2363_v63 = vadd.f32 %v12577_v0, %v2159_v3 }
 0x275   : > { %v2527_v24 = vpop.f32.mrf.mxu0  ;;  %v12651_v35 = vpop.f32.mrf.mxu1 }
 0x276   : > { %v2358_v51 = vpop.f32.mrf.mxu3 }
 0x27a   : > { %v2930_v8 = vpop.f32.mrf.mxu2  ;;  %3171 = vmatmul.bf16.gmra.mxu3 %v3065_v44 }
 0x27b   : > { %v2973_v32 = vadd.f32 %v2930_v8, %v2769_v34  ;;  %v2567_v8 = vadd.f32 %v2527_v24, %v2363_v63 }
 0x27d   : > { %v2530_v6 = vpop.f32.mrf.mxu0  ;;  %v2739_v14 = vpop.f32.mrf.mxu1  ;;  %v2771_v24 = vadd.f32 %v12645_v60, %v2567_v8 }
 0x27e   : > { %v2568_v1 = vadd.f32 %v2530_v6, %v12583_v13  ;;  %v3132_v55 = vpop.f32.mrf.mxu3 }
 0x27f   : > { %v12665_v44 = vadd.f32 %v3132_v55, %v2972_v27 }
 0x280   : > { %v12659_v62 = vadd.f32 %v2734_v15, %v2568_v1 }
 0x281   : > { %v3313_v22 = vrot.slane %v12665_v44, 2  ;;  %v3211_v45 = vrot.slane %v12665_v44, 1  ;;  %v3415_v3 = vrot.slane %v12665_v44, 3 }
 0x282   : > { %v2933_v26 = vpop.f32.mrf.mxu2 }
 0x283   : > { %v2974_v19 = vadd.f32 %v2933_v26, %v2770_v54 }
 0x285   : > { %v12661_v51 = vpop.f32.mrf.mxu0  ;;  %v12663_v33 = vpop.f32.mrf.mxu1 }
 0x286   : > { %v3134_v6 = vpop.f32.mrf.mxu3 }
 0x287   : > { %v12670_v13 = vadd.f32 %v3134_v6, %v2973_v32 }
 0x289   : > { %v3823_v29 = vrot.slane %v12670_v13, 7  ;;  %v3314_v42 = vrot.slane %v12670_v13, 2  ;;  %v3212_v38 = vrot.slane %v12670_v13, 1  ;;  %v3518_v54 = vrot.slane %v12670_v13, 4 }
 0x28a   : > { %v2935_v41 = vpop.f32.mrf.mxu2 }
 0x28b   : > { %3854 = vrot.lane.b32.xlu0 %v3823_v29, %s11854_s30  ;;  %v3315_v57 = vsel %vm3312_vm0, %v3313_v22, %v3314_v42  ;;  %v3213_v0 = vsel %vm3210_vm1, %v3211_v45, %v3212_v38  ;;  %v2975_v6 = vadd.f32 %v2935_v41, %v2771_v24 }
 0x28c   : > { %3346 = vrot.lane.b32.xlu1 %v3315_v57, %s11855_s12 }
 0x28d   : > { %v2535_v15 = vpop.f32.mrf.mxu0  ;;  %v2744_v59 = vpop.f32.mrf.mxu1 }
 0x28e   : > { %v2570_v58 = vadd.f32 %v2535_v15, %v12593_v46  ;;  %v3137_v48 = vpop.f32.mrf.mxu3  ;;  %v3416_v46 = vrot.slane %v12670_v13, 3 }
 0x28f   : > { %v12684_v1 = vadd.f32 %v3137_v48, %v2974_v19 }
 0x290   : > { %v2774_v2 = vadd.f32 %v2739_v14, %v2570_v58  ;;  %v3417_v15 = vsel %vm3414_vm2, %v3415_v3, %v3416_v46 }
 0x291   : > { %v3418_v55 = vrot.slane %v12684_v1, 3  ;;  %v3316_v27 = vrot.slane %v12684_v1, 2  ;;  %v3520_v60 = vrot.slane %v12684_v1, 4  ;;  %v3622_v45 = vrot.slane %v12684_v1, 5 }
 0x292   : > { %v12687_v18 = vpop.f32.mrf.mxu2  ;;  %v3724_v3 = vrot.slane %v12684_v1, 6 }
 0x293   : > { %3244 = vrot.lane.b32.xlu0 %v3213_v0, %s11856_s15  ;;  %v3419_v26 = vsel %vm3414_vm2, %v3416_v46, %v3418_v55  ;;  %v3317_v34 = vsel %vm3312_vm0, %v3314_v42, %v3316_v27  ;;  %v3521_v41 = vsel %vm3516_vm3, %v3518_v54, %v3520_v60  ;;  %v3517_v0 = vrot.slane %v12665_v44, 4 }
 0x294   : > { %3450 = vrot.lane.b32.xlu1 %v3419_v26, %s14981_s13  ;;  %3348 = vrot.lane.b32.xlu2 %v3317_v34, %s11855_s12  ;;  %v3620_v26 = vrot.slane %v12670_v13, 5 }
 0x295   : > { %v12696_v14 = vpop.f32.mrf.mxu0  ;;  %v12703_v32 = vpop.f32.mrf.mxu1 }
 0x296   : > { %v3139_v36 = vpop.f32.mrf.mxu3 }
 0x297   : > { %v12705_v28 = vadd.f32 %v3139_v36, %v2975_v6 }
 0x299   : > { %v14972_v42 = vrot.slane %v12705_v28, 2  ;;  %v14970_v46 = vrot.slane %v12705_v28, 3 }
 0x29a   : > { %v12709_v22 = vpop.f32.mrf.mxu2 }
 0x29b   : > { %3448 = vrot.lane.b32.xlu0 %v3417_v15, %s14981_s13  ;;  %v3319_v58 = vsel %vm3312_vm0, %v3316_v27, %v14972_v42  ;;  %v3421_v6 = vsel %vm3414_vm2, %v3418_v55, %v14970_v46  ;;  %v3619_v15 = vrot.slane %v12665_v44, 5  ;;  %v3826_v42 = vrot.slane %v12705_v28, 7 }
 0x29c   : > { %3552 = vrot.lane.b32.xlu1 %v3521_v41, %s14979_s14  ;;  %3350 = vrot.lane.b32.xlu2 %v3319_v58, %s11855_s12  ;;  %v3722_v41 = vrot.slane %v12670_v13, 6 }
 0x29d   : > { %v2540_v57 = vpop.f32.mrf.mxu0  ;;  %v2749_v19 = vpop.f32.mrf.mxu1  ;;  %v3621_v55 = vsel %vm3618_vm4, %v3619_v15, %v3620_v26  ;;  %v3624_v15 = vrot.slane %v12705_v28, 5 }
 0x29e   : > { %v2572_v63 = vadd.f32 %v2540_v57, %v12604_v56  ;;  %v3142_v48 = vpop.f32.mrf.mxu3  ;;  %v3519_v56 = vsel %vm3516_vm3, %v3517_v0, %v3518_v54  ;;  %v14971_v54 = vrot.slane %v12705_v28, 4 }
 0x2a0   : > { %v2776_v8 = vadd.f32 %v2744_v59, %v2572_v63  ;;  %v3623_v59 = vsel %vm3618_vm4, %v3620_v26, %v3622_v45  ;;  %v3725_v63 = vsel %vm3720_vm5, %v3722_v41, %v3724_v3  ;;  %v3523_v0 = vsel %vm3516_vm3, %v3520_v60, %v14971_v54 }
 0x2a2   : > { %v2943_v24 = vpop.f32.mrf.mxu2 }
 0x2a3   : > { %v12726_v27 = vadd.f32 %v2943_v24, %v2774_v2  ;;  %3550 = vrot.lane.b32.xlu0 %v3519_v56, %s14979_s14 }
 0x2a4   : > { %3654 = vrot.lane.b32.xlu1 %v3623_v59, %s14977_s16  ;;  %3452 = vrot.lane.b32.xlu2 %v3421_v6, %s14981_s13  ;;  %v3824_v6 = vrot.slane %v12684_v1, 7 }
 0x2a5   : > { %v12729_v34 = vpop.f32.mrf.mxu0  ;;  %v12738_v2 = vpop.f32.mrf.mxu1 }
 0x2a6   : > { %v12740_v36 = vpop.f32.mrf.mxu3 }
 0x2aa   : > { %v12745_v57 = vpop.f32.mrf.mxu2 }
 0x2ab   : > { %3652 = vrot.lane.b32.xlu0 %v3621_v55, %s14977_s16  ;;  %v3721_v55 = vrot.slane %v12665_v44, 6 }
 0x2ac   : > { %3756 = vrot.lane.b32.xlu1 %v3725_v63, %s14975_s22  ;;  %3554 = vrot.lane.b32.xlu2 %v3523_v0, %s14979_s14  ;;  %v3825_v63 = vsel %vm3822_vm6, %v3823_v29, %v3824_v6 }
 0x2ad   : > { %v2545_v58 = vpop.f32.mrf.mxu0  ;;  %v2754_v56 = vpop.f32.mrf.mxu1 }
 0x2ae   : > { %v2574_v24 = vadd.f32 %v2545_v58, %v12620_v20  ;;  %v12757_v59 = vpop.f32.mrf.mxu3  ;;  %v3723_v20 = vsel %vm3720_vm5, %v3721_v55, %v3722_v41  ;;  %v3216_v41 = vrot.slane %v12705_v28, 1  ;;  %v2976_v55 = vadd.f32 %v12687_v18, %v12659_v62 }
 0x2b0   : > { %v2778_v26 = vadd.f32 %v2749_v19, %v2574_v24  ;;  %v3625_v19 = vsel %vm3618_vm4, %v3622_v45, %v3624_v15  ;;  %v12783_v45 = vadd.f32 %v3142_v48, %v2976_v55 }
 0x2b2   : > { %v2948_v46 = vpop.f32.mrf.mxu2 }
 0x2b3   : > { %v2980_v60 = vadd.f32 %v2948_v46, %v2776_v8  ;;  %3754 = vrot.lane.b32.xlu0 %v3723_v20, %s14975_s22  ;;  %v3214_v8 = vrot.slane %v12684_v1, 1  ;;  %v14973_v46 = vrot.slane %v12705_v28, 6 }
 0x2b4   : > { %3856 = vrot.lane.b32.xlu1 %v3825_v63, %s11854_s30  ;;  %3656 = vrot.lane.b32.xlu2 %v3625_v19, %s14977_s16  ;;  %v1938_v63 = vadd.f32 %v12581_v12, %v12579_v10  ;;  %v3218_v10 = vrot.slane %v12783_v45, 1 }
 0x2b5   : > { %v12763_v58 = vpop.f32.mrf.mxu0  ;;  %v12772_v0 = vpop.f32.mrf.mxu1  ;;  %v3215_v20 = vsel %vm3210_vm1, %v3212_v38, %v3214_v8  ;;  %v3727_v54 = vsel %vm3720_vm5, %v3724_v3, %v14973_v46  ;;  %v3217_v62 = vsel %vm3210_vm1, %v3214_v8, %v3216_v41  ;;  %v3320_v3 = vrot.slane %v12783_v45, 2 }
 0x2b6   : > { %v12774_v24 = vpop.f32.mrf.mxu3  ;;  %v2161_v38 = vadd.f32 %v12585_v16, %v1938_v63  ;;  %v3827_v16 = vsel %vm3822_vm6, %v3824_v6, %v3826_v42  ;;  %v3626_v6 = vrot.slane %v12783_v45, 5 }
 0x2b8   : > { %v2365_v8 = vadd.f32 %v12587_v17, %v2161_v38 }
 0x2ba   : > { %v12781_v29 = vpop.f32.mrf.mxu2 }
 0x2bb   : > { %3246 = vrot.lane.b32.xlu0 %v3215_v20, %s11856_s15 }
 0x2bc   : > { %3758 = vrot.lane.b32.xlu2 %v3727_v54, %s14975_s22  ;;  %3248 = vrot.lane.b32.xlu1 %v3217_v62, %s11856_s15  ;;  %v3219_v54 = vsel %vm3210_vm1, %v3216_v41, %v3218_v10  ;;  %v2569_v62 = vadd.f32 %v12661_v51, %v2365_v8  ;;  %v3524_v51 = vrot.slane %v12783_v45, 4  ;;  %v3422_v41 = vrot.slane %v12783_v45, 3 }
 0x2bd   : > { %v2550_v19 = vpop.f32.mrf.mxu0  ;;  %v2759_v48 = vpop.f32.mrf.mxu1 }
 0x2be   : > { %v2576_v18 = vadd.f32 %v2550_v19, %v12635_v49  ;;  %v3152_v55 = vpop.f32.mrf.mxu3 }
 0x2bf   : > { %v12800_v20 = vadd.f32 %v3152_v55, %v2980_v60  ;;  %v15001_v55 = vrot.slane %v12705_v28, 4 }
 0x2c0   : > { %v2780_v12 = vadd.f32 %v2754_v56, %v2576_v18  ;;  %v14999_v56 = vrot.slane %v12705_v28, 2 }
 0x2c1   : > { %v3525_v8 = vsel %vm3516_vm3, %v15001_v55, %v3524_v51  ;;  %v3728_v55 = vrot.slane %v12783_v45, 6 }
 0x2c2   : > { %v2953_v49 = vpop.f32.mrf.mxu2  ;;  %v3321_v60 = vsel %vm3312_vm0, %v14999_v56, %v3320_v3 }
 0x2c3   : > { %v2982_v19 = vadd.f32 %v2953_v49, %v2778_v26  ;;  %3250 = vrot.lane.b32.xlu0 %v3219_v54, %s11856_s15  ;;  %v2773_v26 = vadd.f32 %v12651_v35, %v2569_v62  ;;  %v15002_v35 = vrot.slane %v12705_v28, 3 }
 0x2c4   : > { %3858 = vrot.lane.b32.xlu2 %v3827_v16, %s11854_s30  ;;  %3352 = vrot.lane.b32.xlu1 %v3321_v60, %s11855_s12  ;;  %v3627_v16 = vsel %vm3618_vm4, %v3624_v15, %v3626_v6 }
 0x2c5   : > { %v12807_v46 = vpop.f32.mrf.mxu0  ;;  %v12815_v63 = vpop.f32.mrf.mxu1  ;;  %v2977_v18 = vadd.f32 %v12709_v22, %v2773_v26  ;;  %v3423_v62 = vsel %vm3414_vm2, %v15002_v35, %v3422_v41 }
 0x2c6   : > { %15000 = vst [vmem:[#allocation13_spill] sm:$0xff] %v12815_v63  ;;  %v12818_v17 = vpop.f32.mrf.mxu3 }
 0x2c7   : > { %v12831_v49 = vadd.f32 %v12740_v36, %v2977_v18  ;;  %v3828_v36 = vrot.slane %v12783_v45, 7 }
 0x2c9   : > { %v3829_v15 = vsel %vm3822_vm6, %v3826_v42, %v3828_v36  ;;  %v3322_v42 = vrot.slane %v12831_v49, 2 }
 0x2ca   : > { %v12825_v38 = vpop.f32.mrf.mxu2 }
 0x2cb   : > { %3556 = vrot.lane.b32.xlu0 %v3525_v8, %s14979_s14  ;;  %v3220_v8 = vrot.slane %v12831_v49, 1 }
 0x2cc   : > { %3454 = vrot.lane.b32.xlu2 %v3423_v62, %s14981_s13  ;;  %3658 = vrot.lane.b32.xlu1 %v3627_v16, %s14977_s16 }
 0x2cd   : > { %v2555_v54 = vpop.f32.mrf.mxu0  ;;  %v2764_v56 = vpop.f32.mrf.mxu1 }
 0x2ce   : > { %v2578_v22 = vadd.f32 %v2555_v54, %v12643_v43  ;;  %v3157_v60 = vpop.f32.mrf.mxu3  ;;  %v15004_v54 = vrot.slane %v12705_v28, 6 }
 0x2cf   : > { %v12842_v18 = vadd.f32 %v3157_v60, %v2982_v19 }
 0x2d0   : > { %v2782_v26 = vadd.f32 %v2759_v48, %v2578_v22  ;;  %v3729_v62 = vsel %vm3720_vm5, %v15004_v54, %v3728_v55  ;;  %v3221_v48 = vsel %vm3210_vm1, %v3218_v10, %v3220_v8  ;;  %v3526_v22 = vrot.slane %v12831_v49, 4 }
 0x2d1   : > { %v3323_v10 = vsel %vm3312_vm0, %v3320_v3, %v3322_v42  ;;  %v1943_v3 = vadd.f32 %v12591_v31, %v12589_v40 }
 0x2d2   : > { %v2958_v35 = vpop.f32.mrf.mxu2  ;;  %v3527_v54 = vsel %vm3516_vm3, %v3524_v51, %v3526_v22 }
 0x2d3   : > { %v2984_v63 = vadd.f32 %v2958_v35, %v2780_v12  ;;  %3860 = vrot.lane.b32.xlu0 %v3829_v15, %s11854_s30  ;;  %v3424_v12 = vrot.slane %v12831_v49, 3 }
 0x2d4   : > { %3760 = vrot.lane.b32.xlu2 %v3729_v62, %s14975_s22  ;;  %3252 = vrot.lane.b32.xlu1 %v3221_v48, %s11856_s15 }
 0x2d5   : > { %v12847_v43 = vpop.f32.mrf.mxu0  ;;  %v2766_v19 = vpop.f32.mrf.mxu1  ;;  %v3425_v35 = vsel %vm3414_vm2, %v3422_v41, %v3424_v12  ;;  %v3628_v41 = vrot.slane %v12831_v49, 5 }
 0x2d6   : > { %15003 = vst [vmem:[#allocation14_spill] sm:$0xff] %v12847_v43  ;;  %v12856_v16 = vpop.f32.mrf.mxu3  ;;  %v3730_v43 = vrot.slane %v12831_v49, 6 }
 0x2da   : > { %v12861_v60 = vpop.f32.mrf.mxu2 }
 0x2db   : > { %15005 = vst [vmem:[#allocation15_spill] sm:$0xff] %v12861_v60  ;;  %3456 = vrot.lane.b32.xlu0 %v3425_v35, %s14981_s13  ;;  %v3830_v35 = vrot.slane %v12831_v49, 7 }
 0x2dc   : > { %3354 = vrot.lane.b32.xlu2 %v3323_v10, %s11855_s12  ;;  %3558 = vrot.lane.b32.xlu1 %v3527_v54, %s14979_s14  ;;  %v2163_v54 = vadd.f32 %v12595_v11, %v1943_v3 }
 0x2dd   : > { %v2560_v15 = vpop.f32.mrf.mxu0 }
 0x2de   : > { %v2580_v62 = vadd.f32 %v2560_v15, %v12649_v21  ;;  %v3162_v19 = vpop.f32.mrf.mxu3  ;;  %v12879_v21 = vadd.f32 %v12757_v59, %v12726_v27  ;;  %v3831_v15 = vsel %vm3822_vm6, %v3828_v36, %v3830_v35 }
 0x2df   : > { %v12871_v53 = vadd.f32 %v3162_v19, %v2984_v63  ;;  %v3629_v63 = vsel %vm3618_vm4, %v3626_v6, %v3628_v41 }
 0x2e0   : > { %v2784_v48 = vadd.f32 %v2764_v56, %v2580_v62  ;;  %v3731_v56 = vsel %vm3720_vm5, %v3728_v55, %v3730_v43  ;;  %v3324_v31 = vrot.slane %v12879_v21, 2  ;;  %v3222_v27 = vrot.slane %v12879_v21, 1 }
 0x2e1   : > { %v3426_v59 = vrot.slane %v12879_v21, 3  ;;  %v3630_v3 = vrot.slane %v12879_v21, 5 }
 0x2e2   : > { %v2963_v60 = vpop.f32.mrf.mxu2  ;;  %v3325_v11 = vsel %vm3312_vm0, %v3322_v42, %v3324_v31  ;;  %v3223_v55 = vsel %vm3210_vm1, %v3220_v8, %v3222_v27  ;;  %v3528_v42 = vrot.slane %v12879_v21, 4 }
 0x2e3   : > { %v2986_v51 = vadd.f32 %v2963_v60, %v2782_v26  ;;  %3762 = vrot.lane.b32.xlu0 %v3731_v56, %s14975_s22  ;;  %v2367_v26 = vadd.f32 %v12597_v37, %v2163_v54  ;;  %v3427_v60 = vsel %vm3414_vm2, %v3424_v12, %v3426_v59  ;;  %v3732_v56 = vrot.slane %v12879_v21, 6 }
 0x2e4   : > { %3660 = vrot.lane.b32.xlu2 %v3629_v63, %s14977_s16  ;;  %3862 = vrot.lane.b32.xlu1 %v3831_v15, %s11854_s30 }
 0x2e5   : > { %v2562_v10 = vpop.f32.mrf.mxu0  ;;  %v2571_v36 = vadd.f32 %v12696_v14, %v2367_v26 }
 0x2e6   : > { %v12888_v40 = vpop.f32.mrf.mxu3  ;;  %v3529_v10 = vsel %vm3516_vm3, %v3526_v22, %v3528_v42 }
 0x2e7   : > { %v2775_v62 = vadd.f32 %v12663_v33, %v2571_v36  ;;  %v3631_v33 = vsel %vm3618_vm4, %v3628_v41, %v3630_v3 }
 0x2e9   : > { %v2979_v8 = vadd.f32 %v12745_v57, %v2775_v62 }
 0x2ea   : > { %v12894_v6 = vpop.f32.mrf.mxu2 }
 0x2eb   : > { %3356 = vrot.lane.b32.xlu0 %v3325_v11, %s11855_s12  ;;  %v12913_v63 = vadd.f32 %v12774_v24, %v2979_v8 }
 0x2ec   : > { %3254 = vrot.lane.b32.xlu2 %v3223_v55, %s11856_s15  ;;  %3458 = vrot.lane.b32.xlu1 %v3427_v60, %s14981_s13 }
 0x2ed   : > { %v3224_v24 = vrot.slane %v12913_v63, 1  ;;  %v3326_v41 = vrot.slane %v12913_v63, 2  ;;  %v3530_v62 = vrot.slane %v12913_v63, 4 }
 0x2ee   : > { %v3167_v19 = vpop.f32.mrf.mxu3  ;;  %v12904_v37 = vpop.permute.xlu2 %3348 }
 0x2ef   : > { %v12907_v14 = vadd.f32 %v3167_v19, %v2986_v51  ;;  %v3733_v51 = vsel %vm3720_vm5, %v3730_v43, %v3732_v56  ;;  %v3225_v36 = vsel %vm3210_vm1, %v3222_v27, %v3224_v24  ;;  %v3327_v22 = vsel %vm3312_vm0, %v3324_v31, %v3326_v41 }
 0x2f0   : > { %v3428_v27 = vrot.slane %v12913_v63, 3  ;;  %v3531_v31 = vsel %vm3516_vm3, %v3528_v42, %v3530_v62  ;;  %v3734_v42 = vrot.slane %v12913_v63, 6 }
 0x2f2   : > { %v2968_v12 = vpop.f32.mrf.mxu2 }
 0x2f3   : > { %v2988_v15 = vadd.f32 %v2968_v12, %v2784_v48  ;;  %3662 = vrot.lane.b32.xlu0 %v3631_v33, %s14977_s16  ;;  %v3832_v48 = vrot.slane %v12879_v21, 7  ;;  %v3429_v12 = vsel %vm3414_vm2, %v3426_v59, %v3428_v27  ;;  %v1948_v59 = vadd.f32 %v12602_v25, %v12600_v52 }
 0x2f4   : > { %3560 = vrot.lane.b32.xlu2 %v3529_v10, %s14979_s14  ;;  %3764 = vrot.lane.b32.xlu1 %v3733_v51, %s14975_s22  ;;  %v3834_v51 = vrot.slane %v12913_v63, 7  ;;  %v3328_v25 = vrot.slane %v12800_v20, 2 }
 0x2f5   : > { %v3833_v43 = vsel %vm3822_vm6, %v3830_v35, %v3832_v48  ;;  %v3632_v35 = vrot.slane %v12913_v63, 5 }
 0x2f6   : > { %v12921_v54 = vpop.f32.mrf.mxu3  ;;  %v12923_v57 = vpop.permute.xlu2 %3350 }
 0x2f7   : > { %v3633_v33 = vsel %vm3618_vm4, %v3630_v3, %v3632_v35  ;;  %v3835_v3 = vsel %vm3822_vm6, %v3832_v48, %v3834_v51  ;;  %v3532_v48 = vrot.slane %v12800_v20, 4 }
 0x2fa   : > { %v2970_v26 = vpop.f32.mrf.mxu2 }
 0x2fb   : > { %3256 = vrot.lane.b32.xlu0 %v3225_v36, %s11856_s15 }
 0x2fc   : > { %3864 = vrot.lane.b32.xlu2 %v3833_v43, %s11854_s30  ;;  %3358 = vrot.lane.b32.xlu1 %v3327_v22, %s11855_s12  ;;  %v3226_v43 = vrot.slane %v12800_v20, 1  ;;  %v3735_v22 = vsel %vm3720_vm5, %v3732_v56, %v3734_v42 }
 0x2fd   : > { %v12934_v11 = vpop.permute.xlu0 %3854 }
 0x2fe   : > { %v3172_v55 = vpop.f32.mrf.mxu3  ;;  %v3347_v60 = vpop.permute.xlu1 %3346 }
 0x2ff   : > { %v12937_v19 = vadd.f32 %v3172_v55, %v2988_v15  ;;  %v12939_v8 = vpop.permute.xlu2 %3452  ;;  %v3227_v55 = vsel %vm3210_vm1, %v3224_v24, %v3226_v43 }
 0x301   : > { %15006 = vst [vmem:[#allocation16_spill] sm:$0xff] %v12937_v19 }
 0x303   : > { %3562 = vrot.lane.b32.xlu0 %v3531_v31, %s14979_s14  ;;  %v2165_v31 = vadd.f32 %v12606_v61, %v1948_v59  ;;  %v3329_v59 = vsel %vm3312_vm0, %v3326_v41, %v3328_v25 }
 0x304   : > { %3460 = vrot.lane.b32.xlu2 %v3429_v12, %s14981_s13  ;;  %3664 = vrot.lane.b32.xlu1 %v3633_v33, %s14977_s16 }
 0x305   : > { %v3245_v15 = vpop.permute.xlu0 %3244  ;;  %v2369_v56 = vadd.f32 %v12613_v7, %v2165_v31  ;;  %v3736_v7 = vrot.slane %v12800_v20, 6  ;;  %v3836_v31 = vrot.slane %v12800_v20, 7 }
 0x306   : > { %v12949_v10 = vpop.permute.xlu1 %3450  ;;  %v3174_v26 = vpop.f32.mrf.mxu3 }
 0x307   : > { %v12952_v36 = vpop.permute.xlu2 %3554  ;;  %v3430_v26 = vrot.slane %v12800_v20, 3  ;;  %v2573_v24 = vadd.f32 %v12729_v34, %v2369_v56  ;;  %v3295_v56 = vadd.f32 %v3245_v15, %v12665_v44 }
 0x309   : > { %v3431_v61 = vsel %vm3414_vm2, %v3428_v27, %v3430_v26  ;;  %v3634_v27 = vrot.slane %v12800_v20, 5 }
 0x30b   : > { %3866 = vrot.lane.b32.xlu0 %v3835_v3, %s11854_s30  ;;  %v3533_v3 = vsel %vm3516_vm3, %v3530_v62, %v3532_v48 }
 0x30c   : > { %3766 = vrot.lane.b32.xlu2 %v3735_v22, %s14975_s22  ;;  %3258 = vrot.lane.b32.xlu1 %v3227_v55, %s11856_s15  ;;  %v2777_v55 = vadd.f32 %v12703_v32, %v2573_v24  ;;  %v3635_v32 = vsel %vm3618_vm4, %v3632_v35, %v3634_v27  ;;  %v3837_v24 = vsel %vm3822_vm6, %v3834_v51, %v3836_v31 }
 0x30d   : > { %v3449_v12 = vpop.permute.xlu0 %3448 }
 0x30e   : > { %v12965_v33 = vpop.permute.xlu1 %3552  ;;  %v2981_v41 = vadd.f32 %v12781_v29, %v2777_v55 }
 0x30f   : > { %v12968_v52 = vpop.permute.xlu2 %3656 }
 0x310   : > { %v12990_v62 = vadd.f32 %v12818_v17, %v2981_v41 }
 0x312   : > { %v3330_v44 = vrot.slane %v12990_v62, 2  ;;  %v3432_v35 = vrot.slane %v12990_v62, 3 }
 0x313   : > { %3462 = vrot.lane.b32.xlu0 %v3431_v61, %s14981_s13  ;;  %v3737_v61 = vsel %vm3720_vm5, %v3734_v42, %v3736_v7  ;;  %v3228_v42 = vrot.slane %v12990_v62, 1 }
 0x314   : > { %3360 = vrot.lane.b32.xlu2 %v3329_v59, %s11855_s12  ;;  %3564 = vrot.lane.b32.xlu1 %v3533_v3, %s14979_s14  ;;  %v3397_v59 = vadd.f32 %v3347_v60, %v3295_v56  ;;  %v3331_v51 = vsel %vm3312_vm0, %v3328_v25, %v3330_v44  ;;  %v3433_v41 = vsel %vm3414_vm2, %v3430_v26, %v3432_v35  ;;  %v9979_v56 = vld [vmem:[%s14964_s9 + $0x4] sm:$0x7]  ;;  %v3534_v26 = vrot.slane %v12990_v62, 4 }
 0x315   : > { %v3551_v22 = vpop.permute.xlu0 %3550  ;;  %v3229_v60 = vsel %vm3210_vm1, %v3226_v43, %v3228_v42  ;;  %v3636_v43 = vrot.slane %v12990_v62, 5 }
 0x316   : > { %v12981_v19 = vpop.permute.xlu1 %3654  ;;  %v3499_v3 = vadd.f32 %v3449_v12, %v3397_v59  ;;  %v3738_v59 = vrot.slane %v12990_v62, 6 }
 0x317   : > { %v12984_v34 = vpop.permute.xlu2 %3758 }
 0x318   : > { %v3601_v55 = vadd.f32 %v3551_v22, %v3499_v3  ;;  %v13021_v22 = vperm.slane %v9979_v56, 0  ;;  %v11250_v3 = vld [vmem:[%s14958_s3] sm:$0xff] }
 0x319   : > { %4194 = vmatpush.bf16.msrb.mxu1 %v11250_v3  ;;  %v13052_v3 = vperm.slane %v9979_v56, 2 }
 0x31b   : > { %3768 = vrot.lane.b32.xlu0 %v3737_v61, %s14975_s22 }
 0x31c   : > { %3666 = vrot.lane.b32.xlu2 %v3635_v32, %s14977_s16  ;;  %3868 = vrot.lane.b32.xlu1 %v3837_v24, %s11854_s30 }
 0x31d   : > { %v3653_v29 = vpop.permute.xlu0 %3652 }
 0x31e   : > { %v13001_v17 = vpop.permute.xlu1 %3756  ;;  %v3703_v61 = vadd.f32 %v3653_v29, %v3601_v55  ;;  %v11251_v29 = vld [vmem:[%s14958_s3 + $0x8] sm:$0xff] }
 0x31f   : > { %v13004_v15 = vpop.permute.xlu2 %3858  ;;  %4133 = vmatpush.bf16.msrb.mxu0 %v11251_v29  ;;  %v1953_v29 = vadd.f32 %v12611_v5, %v12609_v4  ;;  %v3230_v5 = vrot.slane %v12842_v18, 1 }
 0x323   : > { %3362 = vrot.lane.b32.xlu0 %v3331_v51, %s11855_s12  ;;  %v13037_v51 = vperm.slane %v9979_v56, 1 }
 0x324   : > { %3260 = vrot.lane.b32.xlu2 %v3229_v60, %s11856_s15  ;;  %3464 = vrot.lane.b32.xlu1 %v3433_v41, %s14981_s13  ;;  %v3637_v41 = vsel %vm3618_vm4, %v3634_v27, %v3636_v43 }
 0x325   : > { %v3755_v12 = vpop.permute.xlu0 %3754 }
 0x326   : > { %v3805_v25 = vadd.f32 %v3755_v12, %v3703_v61  ;;  %v13023_v32 = vpop.permute.xlu1 %3856  ;;  %v11678_v61 = vld [vmem:[#allocation2 + $0x4] sm:$0xff]   ;;  %v3535_v12 = vsel %vm3516_vm3, %v3532_v48, %v3534_v26  ;;  %v2167_v48 = vadd.f32 %v12615_v9, %v1953_v29 }
 0x327   : > { %v13026_v24 = vpop.permute.xlu2 %3454  ;;  %9986 = vmatmul.msk.bf16.vlgmr.msrb.gmra.mxu0 %vm3997_vm7, %v11678_v61  ;;  %v3332_v61 = vrot.slane %v12842_v18, 2 }
 0x328   : > { %v3905_v55 = vadd.f32 %v12934_v11, %v3805_v25  ;;  %v3739_v11 = vsel %vm3720_vm5, %v3736_v7, %v3738_v59  ;;  %v11505_v25 = vld [vmem:[#allocation2] sm:$0xff]  }
 0x329   : > { %9995 = vmatmul.msk.bf16.vlgmr.msrb.gmra.mxu1 %vm3997_vm7, %v11505_v25  ;;  %v2371_v25 = vadd.f32 %v12631_v47, %v2167_v48 }
 0x32a   : > { %v3925_v60 = vadd.f32 %v13021_v22, %v3905_v55 }
 0x32b   : > { %3668 = vrot.lane.b32.xlu0 %v3637_v41, %s14977_s16 }
 0x32c   : > { %v3942_v55 = vmax.f32 %v3925_v60, 0.0  ;;  %3566 = vrot.lane.b32.xlu2 %v3535_v12, %s14979_s14  ;;  %3770 = vrot.lane.b32.xlu1 %v3739_v11, %s14975_s22  ;;  %v3838_v12 = vrot.slane %v12990_v62, 7 }
 0x32d   : > { %v3247_v27 = vpop.permute.xlu0 %3246 }
 0x32e   : > { %v3960_v7 = vmul.f32 %v13037_v51, %v3942_v55  ;;  %v3296_v41 = vadd.f32 %v3247_v27, %v12670_v13  ;;  %v3249_v4 = vpop.permute.xlu1 %3248  ;;  %v2575_v55 = vadd.f32 %v12763_v58, %v2371_v25  ;;  %v3839_v47 = vsel %vm3822_vm6, %v3836_v31, %v3838_v12 }
 0x32f   : > { %v3297_v56 = vadd.f32 %v3249_v4, %v12684_v1  ;;  %v13063_v60 = vpop.permute.xlu2 %3760  ;;  %v3231_v1 = vsel %vm3210_vm1, %v3228_v42, %v3230_v5  ;;  %v3638_v4 = vrot.slane %v12842_v18, 5 }
 0x330   : > { %v3978_v11 = vadd.f32 %v13052_v3, %v3960_v7  ;;  %v3398_v9 = vadd.f32 %v12904_v37, %v3296_v41  ;;  %v3333_v37 = vsel %vm3312_vm0, %v3330_v44, %v3332_v61  ;;  %v3536_v44 = vrot.slane %v12842_v18, 4 }
 0x331   : > { %v3399_v13 = vadd.f32 %v12923_v57, %v3297_v56 }
 0x332   : > { %3996 = vst.msk [vmem:[#allocation3 - $0x1] sm:$0xfe] %vm3995_vm8, %v3978_v11  ;;  %v3500_v29 = vadd.f32 %v12949_v10, %v3398_v9  ;;  %v11256_v10 = vld [vmem:[%s14958_s3 + $0x10] sm:$0xff]  ;;  %v11252_v11 = vld [vmem:[#allocation2 + $0x8] sm:$0xff]  ;;  %v3537_v25 = vsel %vm3516_vm3, %v3534_v26, %v3536_v44 }
 0x333   : > { %v3501_v27 = vadd.f32 %v12939_v8, %v3399_v13  ;;  %3262 = vrot.lane.b32.xlu0 %v3231_v1, %s11856_s15  ;;  %4283 = vmatpush.bf16.msrb.mxu2 %v11256_v10 }
 0x334   : > { %v3602_v57 = vadd.f32 %v12965_v33, %v3500_v29  ;;  %3870 = vrot.lane.b32.xlu2 %v3839_v47, %s11854_s30  ;;  %3364 = vrot.lane.b32.xlu1 %v3333_v37, %s11855_s12  ;;  %v2779_v33 = vadd.f32 %v12738_v2, %v2575_v55  ;;  %v3740_v37 = vrot.slane %v12842_v18, 6 }
 0x335   : > { %v3603_v58 = vadd.f32 %v12952_v36, %v3501_v27  ;;  %v3251_v8 = vpop.permute.xlu0 %3250  ;;  %v3434_v36 = vrot.slane %v12842_v18, 3  ;;  %v3840_v27 = vrot.slane %v12842_v18, 7 }
 0x336   : > { %v3704_v31 = vadd.f32 %v12981_v19, %v3602_v57  ;;  %v3298_v42 = vadd.f32 %v3251_v8, %v12705_v28  ;;  %v3353_v48 = vpop.permute.xlu1 %3352  ;;  %v11261_v19 = vld [vmem:[%s14958_s3 + $0x18] sm:$0xff]  ;;  %v2983_v9 = vadd.f32 %v12825_v38, %v2779_v33  ;;  %10022 = vmatmul.msk.bf16.vlgmr.msrb.gmra.mxu2 %vm3997_vm7, %v11252_v11 }
 0x337   : > { %v3705_v7 = vadd.f32 %v12968_v52, %v3603_v58  ;;  %v13101_v41 = vpop.permute.xlu2 %3354  ;;  %4381 = vmatpush.bf16.msrb.mxu3 %v11261_v19  ;;  %v3435_v38 = vsel %vm3414_vm2, %v3432_v35, %v3434_v36 }
 0x338   : > { %v3806_v28 = vadd.f32 %v13001_v17, %v3704_v31  ;;  %v3400_v56 = vadd.f32 %v3353_v48, %v3298_v42  ;;  %v13119_v13 = vadd.f32 %v12856_v16, %v2983_v9  ;;  %v3841_v31 = vsel %vm3822_vm6, %v3838_v12, %v3840_v27 }
 0x339   : > { %v3807_v2 = vadd.f32 %v12984_v34, %v3705_v7  ;;  %v3639_v34 = vsel %vm3618_vm4, %v3636_v43, %v3638_v4  ;;  %v3741_v48 = vsel %vm3720_vm5, %v3738_v59, %v3740_v37 }
 0x33a   : > { %v3906_v52 = vadd.f32 %v13023_v32, %v3806_v28  ;;  %v11571_v32 = vld [vmem:[#allocation2 + $0x8] sm:$0xff]   ;;  %v3502_v16 = vadd.f32 %v13026_v24, %v3400_v56  ;;  %v3232_v57 = vrot.slane %v13119_v13, 1  ;;  %v3436_v59 = vrot.slane %v13119_v13, 3 }
 0x33b   : > { %v3907_v17 = vadd.f32 %v13004_v15, %v3807_v2  ;;  %3568 = vrot.lane.b32.xlu0 %v3537_v25, %s14979_s14  ;;  %9996 = vmatmul.msk.bf16.gmra.mxu1 %vm3997_vm7, %v11571_v32  ;;  %v3334_v11 = vrot.slane %v13119_v13, 2 }
 0x33c   : > { %v3926_v26 = vadd.f32 %v13021_v22, %v3906_v52  ;;  %3466 = vrot.lane.b32.xlu2 %v3435_v38, %s14981_s13  ;;  %3670 = vrot.lane.b32.xlu1 %v3639_v34, %s14977_s16  ;;  %v3233_v33 = vsel %vm3210_vm1, %v3230_v5, %v3232_v57  ;;  %v3538_v5 = vrot.slane %v13119_v13, 4  ;;  %v3437_v25 = vsel %vm3414_vm2, %v3434_v36, %v3436_v59 }
 0x33d   : > { %v3927_v15 = vadd.f32 %v13021_v22, %v3907_v17  ;;  %v3557_v29 = vpop.permute.xlu0 %3556  ;;  %v3335_v17 = vsel %vm3312_vm0, %v3332_v61, %v3334_v11 }
 0x33e   : > { %v3943_v35 = vmax.f32 %v3926_v26, 0.0  ;;  %v3604_v1 = vadd.f32 %v3557_v29, %v3502_v16  ;;  %v3659_v55 = vpop.permute.xlu1 %3658  ;;  %v3539_v38 = vsel %vm3516_vm3, %v3536_v44, %v3538_v5  ;;  %v3742_v29 = vrot.slane %v13119_v13, 6 }
 0x33f   : > { %v3944_v43 = vmax.f32 %v3927_v15, 0.0  ;;  %v3661_v47 = vpop.permute.xlu2 %3660  ;;  %v3640_v44 = vrot.slane %v13119_v13, 5 }
 0x340   : > { %v3961_v58 = vmul.f32 %v13037_v51, %v3943_v35  ;;  %v3706_v8 = vadd.f32 %v3659_v55, %v3604_v1  ;;  %v3842_v1 = vrot.slane %v13119_v13, 7 }
 0x341   : > { %v3962_v24 = vmul.f32 %v13037_v51, %v3944_v43 }
 0x342   : > { %v3979_v10 = vadd.f32 %v13052_v3, %v3961_v58  ;;  %v3808_v12 = vadd.f32 %v13063_v60, %v3706_v8  ;;  %v3641_v58 = vsel %vm3618_vm4, %v3638_v4, %v3640_v44  ;;  %v3843_v8 = vsel %vm3822_vm6, %v3840_v27, %v3842_v1 }
 0x343   : > { %v3980_v42 = vadd.f32 %v13052_v3, %v3962_v24  ;;  %3872 = vrot.lane.b32.xlu0 %v3841_v31, %s11854_s30  ;;  %v1958_v24 = vadd.f32 %v12622_v23, %v12627_v39  ;;  %v3438_v27 = vrot.slane %v12871_v53, 3 }
 0x344   : > { %3998 = vst.msk [vmem:[#allocation3 + $0x7] sm:$0xff] %vm3997_vm7, %v3979_v10  ;;  %3772 = vrot.lane.b32.xlu2 %v3741_v48, %s14975_s22  ;;  %3264 = vrot.lane.b32.xlu1 %v3233_v33, %s11856_s15  ;;  %v3336_v33 = vrot.slane %v12871_v53, 2 }
 0x345   : > { %3999 = vst.msk [vmem:[#allocation3 + $0xf] sm:$0xff] %vm3997_vm7, %v3980_v42  ;;  %v3861_v7 = vpop.permute.xlu0 %3860 }
 0x346   : > { %v3908_v19 = vadd.f32 %v3861_v7, %v3808_v12  ;;  %v3253_v28 = vpop.permute.xlu1 %3252  ;;  %v3234_v12 = vrot.slane %v12871_v53, 1 }
 0x347   : > { %v3255_v56 = vpop.permute.xlu2 %3254  ;;  %v3299_v2 = vadd.f32 %v3253_v28, %v12783_v45 }
 0x348   : > { %v3928_v9 = vadd.f32 %v13021_v22, %v3908_v19 }
 0x349   : > { %v3401_v45 = vadd.f32 %v13101_v41, %v3299_v2  ;;  %v3743_v41 = vsel %vm3720_vm5, %v3740_v37, %v3742_v29  ;;  %v2169_v37 = vadd.f32 %v12633_v30, %v1958_v24  ;;  %v3337_v30 = vsel %vm3312_vm0, %v3334_v11, %v3336_v33 }
 0x34a   : > { %v3945_v52 = vmax.f32 %v3928_v9, 0.0  ;;  %v3235_v9 = vsel %vm3210_vm1, %v3232_v57, %v3234_v12  ;;  %v3642_v57 = vrot.slane %v12871_v53, 5 }
 0x34b   : > { %v4015_v60 = vld [vmem:[#allocation3] ss:$2 sm:$0xff]  ;;  %3468 = vrot.lane.b32.xlu0 %v3437_v25, %s14981_s13  ;;  %v2373_v7 = vadd.f32 %v12639_v50, %v2169_v37  ;;  %v3439_v50 = vsel %vm3414_vm2, %v3436_v59, %v3438_v27  ;;  %v3744_v59 = vrot.slane %v12871_v53, 6 }
 0x34c   : > { %v4030_v34 = vld [vmem:[#allocation3 + $0x1] ss:$2 sm:$0xff]  ;;  %v3963_v32 = vmul.f32 %v13037_v51, %v3945_v52  ;;  %3366 = vrot.lane.b32.xlu2 %v3335_v17, %s11855_s12  ;;  %3570 = vrot.lane.b32.xlu1 %v3539_v38, %s14979_s14 }
 0x34d   : > { %v3457_v36 = vpop.permute.xlu0 %3456  ;;  %v4038_v26 = vmax.f32 %v4015_v60, %v4030_v34  ;;  %v2577_v28 = vadd.f32 %v12807_v46, %v2373_v7  ;;  %v3300_v46 = vadd.f32 %v3255_v56, %v12831_v49  ;;  %v3540_v34 = vrot.slane %v12871_v53, 4  ;;  %v15007_v49 = vld [vmem:[#allocation15_spill] sm:$0xff] }
 0x34e   : > { %v3981_v16 = vadd.f32 %v13052_v3, %v3963_v32  ;;  %v3503_v61 = vadd.f32 %v3457_v36, %v3401_v45  ;;  %v3559_v15 = vpop.permute.xlu1 %3558 }
 0x34f   : > { %v3561_v35 = vpop.permute.xlu2 %3560  ;;  %v4046_v55 = vpack.c.bf16 %v4038_v26, %v4038_v26  ;;  %v2781_v11 = vadd.f32 %v12772_v0, %v2577_v28  ;;  %v3643_v0 = vsel %vm3618_vm4, %v3640_v44, %v3642_v57  ;;  %v3541_v26 = vsel %vm3516_vm3, %v3538_v5, %v3540_v34 }
 0x350   : > { %4000 = vst.msk [vmem:[#allocation3 + $0x17] sm:$0xff] %vm3997_vm7, %v3981_v16  ;;  %v3605_v43 = vadd.f32 %v3559_v15, %v3503_v61  ;;  %v3745_v16 = vsel %vm3720_vm5, %v3742_v29, %v3744_v59 }
 0x351   : > { %4055 = vst.msk [vmem:[#allocation2 + $0x10] sm:$0xf] %vm4054_vm9, %v4046_v55  ;;  %v2985_v56 = vadd.f32 %v15007_v49, %v2781_v11 }
 0x352   : > { %v3707_v10 = vadd.f32 %v3661_v47, %v3605_v43 }
 0x353   : > { %3774 = vrot.lane.b32.xlu0 %v3743_v41, %s14975_s22  ;;  %v13226_v36 = vadd.f32 %v12888_v40, %v2985_v56  ;;  %v3844_v41 = vrot.slane %v12871_v53, 7  ;;  %v15008_v56 = vld [vmem:[#allocation10_spill] sm:$0xff] }
 0x354   : > { %3672 = vrot.lane.b32.xlu2 %v3641_v58, %s14977_s16  ;;  %3874 = vrot.lane.b32.xlu1 %v3843_v8, %s11854_s30 }
 0x355   : > { %v3763_v31 = vpop.permute.xlu0 %3762  ;;  %v3236_v44 = vrot.slane %v13226_v36, 1  ;;  %v3338_v58 = vrot.slane %v13226_v36, 2 }
 0x356   : > { %v3809_v42 = vadd.f32 %v3763_v31, %v3707_v10  ;;  %v3863_v48 = vpop.permute.xlu1 %3862 }
 0x357   : > { %v3865_v4 = vpop.permute.xlu2 %3864  ;;  %v4017_v8 = vld [vmem:[#allocation3 + $0x10] ss:$2 sm:$0xff]  ;;  %v3237_v31 = vsel %vm3210_vm1, %v3234_v12, %v3236_v44  ;;  %v3339_v37 = vsel %vm3312_vm0, %v3336_v33, %v3338_v58  ;;  %v3644_v33 = vrot.slane %v13226_v36, 5 }
 0x358   : > { %v3909_v23 = vadd.f32 %v3863_v48, %v3809_v42  ;;  %v11680_v39 = vld [vmem:[#allocation2 + $0xc] sm:$0xff]  }
 0x359   : > { %v11257_v19 = vld [vmem:[#allocation2 + $0xc] sm:$0xff]  ;;  %9987 = vmatmul.msk.bf16.gmra.mxu0 %vm3997_vm7, %v11680_v39 }
 0x35a   : > { %v3929_v47 = vadd.f32 %v13021_v22, %v3909_v23  ;;  %10049 = vmatmul.msk.bf16.vlgmr.msrb.gmra.mxu3 %vm3997_vm7, %v11257_v19  ;;  %v3440_v19 = vrot.slane %v13226_v36, 3 }
 0x35b   : > { %3368 = vrot.lane.b32.xlu0 %v3337_v30, %s11855_s12 }
 0x35c   : > { %v3946_v2 = vmax.f32 %v3929_v47, 0.0  ;;  %3266 = vrot.lane.b32.xlu2 %v3235_v9, %s11856_s15  ;;  %3470 = vrot.lane.b32.xlu1 %v3439_v50, %s14981_s13  ;;  %v3645_v50 = vsel %vm3618_vm4, %v3642_v57, %v3644_v33  ;;  %v3746_v57 = vrot.slane %v13226_v36, 6 }
 0x35d   : > { %v3357_v52 = vpop.permute.xlu0 %3356 }
 0x35e   : > { %v3964_v25 = vmul.f32 %v13037_v51, %v3946_v2  ;;  %v3402_v60 = vadd.f32 %v3357_v52, %v3300_v46  ;;  %v3459_v17 = vpop.permute.xlu1 %3458 }
 0x35f   : > { %v3461_v38 = vpop.permute.xlu2 %3460 }
 0x360   : > { %v3982_v32 = vadd.f32 %v13052_v3, %v3964_v25  ;;  %v3504_v45 = vadd.f32 %v3459_v17, %v3402_v60 }
 0x362   : > { %4001 = vst.msk [vmem:[#allocation3 + $0x1f] sm:$0xff] %vm3997_vm7, %v3982_v32  ;;  %v3606_v40 = vadd.f32 %v3561_v35, %v3504_v45  ;;  %v3845_v35 = vsel %vm3822_vm6, %v3842_v1, %v3844_v41  ;;  %v3542_v1 = vrot.slane %v13226_v36, 4  ;;  %v15009_v32 = vld [vmem:[#allocation9_spill] sm:$0xff] }
 0x363   : > { %3674 = vrot.lane.b32.xlu0 %v3643_v0, %s14977_s16  ;;  %v3747_v0 = vsel %vm3720_vm5, %v3744_v59, %v3746_v57  ;;  %v3544_v59 = vrot.slane %v12907_v14, 4 }
 0x364   : > { %3572 = vrot.lane.b32.xlu2 %v3541_v26, %s14979_s14  ;;  %3776 = vrot.lane.b32.xlu1 %v3745_v16, %s14975_s22  ;;  %v3543_v9 = vsel %vm3516_vm3, %v3540_v34, %v3542_v1  ;;  %v3238_v34 = vrot.slane %v12907_v14, 1 }
 0x365   : > { %v3663_v61 = vpop.permute.xlu0 %3662 }
 0x366   : > { %v3708_v15 = vadd.f32 %v3663_v61, %v3606_v40  ;;  %v3765_v55 = vpop.permute.xlu1 %3764  ;;  %v3239_v26 = vsel %vm3210_vm1, %v3236_v44, %v3238_v34  ;;  %v15010_v61 = vld [vmem:[#allocation11_spill] sm:$0xff] }
 0x367   : > { %v3767_v43 = vpop.permute.xlu2 %3766 }
 0x368   : > { %v3810_v5 = vadd.f32 %v3765_v55, %v3708_v15 }
 0x369   : > { %v4031_v24 = vld [vmem:[#allocation3 + $0x11] ss:$2 sm:$0xff] }
 0x36a   : > { %v4039_v10 = vmax.f32 %v4017_v8, %v4031_v24  ;;  %v3910_v29 = vadd.f32 %v3865_v4, %v3810_v5  ;;  %v3442_v5 = vrot.slane %v12907_v14, 3  ;;  %v3340_v24 = vrot.slane %v12907_v14, 2 }
 0x36b   : > { %3268 = vrot.lane.b32.xlu0 %v3237_v31, %s11856_s15 }
 0x36c   : > { %v4047_v42 = vpack.c.bf16 %v4039_v10, %v4039_v10  ;;  %v3930_v48 = vadd.f32 %v13021_v22, %v3910_v29  ;;  %3876 = vrot.lane.b32.xlu2 %v3845_v35, %s11854_s30  ;;  %3370 = vrot.lane.b32.xlu1 %v3339_v37, %s11855_s12  ;;  %v15011_v10 = vld [vmem:[#allocation12_spill] sm:$0xff]  ;;  %v15012_v35 = vld [vmem:[#allocation14_spill] sm:$0xff] }
 0x36d   : > { %v3257_v4 = vpop.permute.xlu0 %3256 }
 0x36e   : > { %4056 = vst.msk [vmem:[#allocation2 + $0x14] sm:$0xf] %vm4054_vm9, %v4047_v42  ;;  %v3947_v12 = vmax.f32 %v3930_v48, 0.0  ;;  %v3301_v7 = vadd.f32 %v3257_v4, %v12879_v21  ;;  %v3359_v23 = vpop.permute.xlu1 %3358  ;;  %v3441_v21 = vsel %vm3414_vm2, %v3438_v27, %v3440_v19  ;;  %v3846_v27 = vrot.slane %v13226_v36, 7 }
 0x36f   : > { %v3361_v39 = vpop.permute.xlu2 %3360  ;;  %v3443_v42 = vsel %vm3414_vm2, %v3440_v19, %v3442_v5  ;;  %v3341_v48 = vsel %vm3312_vm0, %v3338_v58, %v3340_v24  ;;  %v3545_v4 = vsel %vm3516_vm3, %v3542_v1, %v3544_v59  ;;  %v3748_v58 = vrot.slane %v12907_v14, 6 }
 0x370   : > { %v3965_v28 = vmul.f32 %v13037_v51, %v3947_v12  ;;  %v3403_v47 = vadd.f32 %v3359_v23, %v3301_v7  ;;  %v3847_v45 = vsel %vm3822_vm6, %v3844_v41, %v3846_v27  ;;  %v15013_v23 = vld [vmem:[#allocation13_spill] sm:$0xff]  ;;  %v3848_v1 = vrot.slane %v12907_v14, 7 }
 0x372   : > { %v3983_v30 = vadd.f32 %v13052_v3, %v3965_v28  ;;  %v3505_v46 = vadd.f32 %v3461_v38, %v3403_v47  ;;  %v1963_v38 = vadd.f32 %v15009_v32, %v15008_v56 }
 0x373   : > { %3574 = vrot.lane.b32.xlu0 %v3543_v9, %s14979_s14 }
 0x374   : > { %4002 = vst.msk [vmem:[#allocation3 + $0x27] sm:$0xff] %vm3997_vm7, %v3983_v30  ;;  %3472 = vrot.lane.b32.xlu2 %v3441_v21, %s14981_s13  ;;  %3676 = vrot.lane.b32.xlu1 %v3645_v50, %s14977_s16  ;;  %v2171_v15 = vadd.f32 %v15010_v61, %v1963_v38  ;;  %v3646_v21 = vrot.slane %v12907_v14, 5 }
 0x375   : > { %v3563_v2 = vpop.permute.xlu0 %3562  ;;  %v11572_v52 = vld [vmem:[#allocation2 + $0x10] sm:$0xff]  }
 0x376   : > { %v11253_v11 = vld [vmem:[#allocation2 + $0x10] sm:$0xff]  ;;  %v3607_v25 = vadd.f32 %v3563_v2, %v3505_v46  ;;  %v3665_v60 = vpop.permute.xlu1 %3664  ;;  %9997 = vmatmul.msk.bf16.gmra.mxu1 %vm3997_vm7, %v11572_v52  ;;  %v2375_v29 = vadd.f32 %v15011_v10, %v2171_v15  ;;  %v3749_v2 = vsel %vm3720_vm5, %v3746_v57, %v3748_v58  ;;  %v3647_v52 = vsel %vm3618_vm4, %v3644_v33, %v3646_v21 }
 0x377   : > { %v3667_v17 = vpop.permute.xlu2 %3666  ;;  %10023 = vmatmul.msk.bf16.gmra.mxu2 %vm3997_vm7, %v11253_v11  ;;  %v3849_v11 = vsel %vm3822_vm6, %v3846_v27, %v3848_v1 }
 0x378   : > { %v3709_v49 = vadd.f32 %v3665_v60, %v3607_v25 }
 0x37a   : > { %v3811_v16 = vadd.f32 %v3767_v43, %v3709_v49  ;;  %v2579_v43 = vadd.f32 %v15012_v35, %v2375_v29 }
 0x37b   : > { %3878 = vrot.lane.b32.xlu0 %v3847_v45, %s11854_s30  ;;  %v4019_v49 = vld [vmem:[#allocation3 + $0x20] ss:$2 sm:$0xff] }
 0x37c   : > { %3778 = vrot.lane.b32.xlu2 %v3747_v0, %s14975_s22  ;;  %3270 = vrot.lane.b32.xlu1 %v3239_v26, %s11856_s15  ;;  %v2783_v19 = vadd.f32 %v15013_v23, %v2579_v43 }
 0x37d   : > { %v3867_v40 = vpop.permute.xlu0 %3866 }
 0x37e   : > { %v3911_v55 = vadd.f32 %v3867_v40, %v3811_v16  ;;  %v3259_v41 = vpop.permute.xlu1 %3258  ;;  %v2987_v50 = vadd.f32 %v12894_v6, %v2783_v19  ;;  %v15014_v19 = vld [vmem:[#allocation16_spill] sm:$0xff] }
 0x37f   : > { %v3261_v8 = vpop.permute.xlu2 %3260  ;;  %v3302_v31 = vadd.f32 %v3259_v41, %v12913_v63 }
 0x380   : > { %v3931_v44 = vadd.f32 %v13021_v22, %v3911_v55  ;;  %v3303_v61 = vadd.f32 %v3261_v8, %v12800_v20 }
 0x381   : > { %v3404_v63 = vadd.f32 %v3361_v39, %v3302_v31  ;;  %v13315_v39 = vadd.f32 %v12921_v54, %v2987_v50 }
 0x382   : > { %v3948_v37 = vmax.f32 %v3931_v44, 0.0 }
 0x383   : > { %3474 = vrot.lane.b32.xlu0 %v3443_v42, %s14981_s13  ;;  %v3342_v57 = vrot.slane %v13315_v39, 2  ;;  %v3240_v38 = vrot.slane %v13315_v39, 1  ;;  %v3444_v33 = vrot.slane %v13315_v39, 3  ;;  %v3546_v44 = vrot.slane %v13315_v39, 4 }
 0x384   : > { %v3966_v12 = vmul.f32 %v13037_v51, %v3948_v37  ;;  %3372 = vrot.lane.b32.xlu2 %v3341_v48, %s11855_s12  ;;  %3576 = vrot.lane.b32.xlu1 %v3545_v4, %s14979_s14 }
 0x385   : > { %v3463_v7 = vpop.permute.xlu0 %3462  ;;  %v3241_v16 = vsel %vm3210_vm1, %v3238_v34, %v3240_v38  ;;  %v3445_v40 = vsel %vm3414_vm2, %v3442_v5, %v3444_v33  ;;  %v3648_v34 = vrot.slane %v13315_v39, 5  ;;  %v3750_v5 = vrot.slane %v13315_v39, 6 }
 0x386   : > { %v3984_v28 = vadd.f32 %v13052_v3, %v3966_v12  ;;  %v3506_v47 = vadd.f32 %v3463_v7, %v3404_v63  ;;  %v3565_v30 = vpop.permute.xlu1 %3564  ;;  %v3547_v35 = vsel %vm3516_vm3, %v3544_v59, %v3546_v44  ;;  %v3850_v59 = vrot.slane %v13315_v39, 7 }
 0x387   : > { %v3567_v9 = vpop.permute.xlu2 %3566  ;;  %v3649_v8 = vsel %vm3618_vm4, %v3646_v21, %v3648_v34  ;;  %v3751_v43 = vsel %vm3720_vm5, %v3748_v58, %v3750_v5 }
 0x388   : > { %4003 = vst.msk [vmem:[#allocation3 + $0x2f] sm:$0xff] %vm3997_vm7, %v3984_v28  ;;  %v3608_v46 = vadd.f32 %v3565_v30, %v3506_v47  ;;  %v3344_v28 = vrot.slane %v15014_v19, 2  ;;  %v3242_v30 = vrot.slane %v15014_v19, 1  ;;  %v3851_v58 = vsel %vm3822_vm6, %v3848_v1, %v3850_v59 }
 0x389   : > { %v3446_v1 = vrot.slane %v15014_v19, 3 }
 0x38a   : > { %v3710_v6 = vadd.f32 %v3667_v17, %v3608_v46  ;;  %v3343_v17 = vsel %vm3312_vm0, %v3340_v24, %v3342_v57 }
 0x38b   : > { %3780 = vrot.lane.b32.xlu0 %v3749_v2, %s14975_s22 }
 0x38c   : > { %3678 = vrot.lane.b32.xlu2 %v3647_v52, %s14977_s16  ;;  %3880 = vrot.lane.b32.xlu1 %v3849_v11, %s11854_s30 }
 0x38d   : > { %v3769_v25 = vpop.permute.xlu0 %3768 }
 0x38e   : > { %v3812_v54 = vadd.f32 %v3769_v25, %v3710_v6  ;;  %v3869_v60 = vpop.permute.xlu1 %3868  ;;  %v3650_v25 = vrot.slane %v15014_v19, 5 }
 0x38f   : > { %v4032_v56 = vld [vmem:[#allocation3 + $0x21] ss:$2 sm:$0xff]  ;;  %v3871_v32 = vpop.permute.xlu2 %3870 }
 0x390   : > { %v4040_v45 = vmax.f32 %v4019_v49, %v4032_v56  ;;  %v3912_v0 = vadd.f32 %v3869_v60, %v3812_v54  ;;  %v3548_v60 = vrot.slane %v15014_v19, 4 }
 0x392   : > { %v4048_v27 = vpack.c.bf16 %v4040_v45, %v4040_v45  ;;  %v3932_v26 = vadd.f32 %v13021_v22, %v3912_v0 }
 0x393   : > { %3374 = vrot.lane.b32.xlu0 %v3343_v17, %s11855_s12 }
 0x394   : > { %4057 = vst.msk [vmem:[#allocation2 + $0x18] sm:$0xf] %vm4054_vm9, %v4048_v27  ;;  %v3949_v15 = vmax.f32 %v3932_v26, 0.0  ;;  %3272 = vrot.lane.b32.xlu2 %v3241_v16, %s11856_s15  ;;  %3476 = vrot.lane.b32.xlu1 %v3445_v40, %s14981_s13  ;;  %v3243_v27 = vsel %vm3210_vm1, %v3240_v38, %v3242_v30  ;;  %v3345_v16 = vsel %vm3312_vm0, %v3342_v57, %v3344_v28 }
 0x395   : > { %v3363_v55 = vpop.permute.xlu0 %3362  ;;  %v3447_v40 = vsel %vm3414_vm2, %v3444_v33, %v3446_v1 }
 0x396   : > { %v3967_v41 = vmul.f32 %v13037_v51, %v3949_v15  ;;  %v3405_v24 = vadd.f32 %v3363_v55, %v3303_v61  ;;  %v3465_v10 = vpop.permute.xlu1 %3464 }
 0x397   : > { %v3467_v29 = vpop.permute.xlu2 %3466 }
 0x398   : > { %v3985_v31 = vadd.f32 %v13052_v3, %v3967_v41  ;;  %v3507_v20 = vadd.f32 %v3465_v10, %v3405_v24 }
 0x39a   : > { %4004 = vst.msk [vmem:[#allocation3 + $0x37] sm:$0xff] %vm3997_vm7, %v3985_v31  ;;  %v3609_v48 = vadd.f32 %v3567_v9, %v3507_v20  ;;  %v3549_v20 = vsel %vm3516_vm3, %v3546_v44, %v3548_v60 }
 0x39b   : > { %3680 = vrot.lane.b32.xlu0 %v3649_v8, %s14977_s16  ;;  %v11681_v37 = vld [vmem:[#allocation2 + $0x14] sm:$0xff]   ;;  %v3651_v8 = vsel %vm3618_vm4, %v3648_v34, %v3650_v25 }
 0x39c   : > { %v11258_v42 = vld [vmem:[#allocation2 + $0x14] sm:$0xff]  ;;  %3578 = vrot.lane.b32.xlu2 %v3547_v35, %s14979_s14  ;;  %3782 = vrot.lane.b32.xlu1 %v3751_v43, %s14975_s22 }
 0x39d   : > { %v3669_v4 = vpop.permute.xlu0 %3668  ;;  %9988 = vmatmul.msk.bf16.gmra.mxu0 %vm3997_vm7, %v11681_v37  ;;  %10050 = vmatmul.msk.bf16.gmra.mxu3 %vm3997_vm7, %v11258_v42 }
 0x39e   : > { %v3711_v12 = vadd.f32 %v3669_v4, %v3609_v48  ;;  %v3771_v63 = vpop.permute.xlu1 %3770 }
 0x39f   : > { %v3773_v7 = vpop.permute.xlu2 %3772 }
 0x3a0   : > { %v3813_v23 = vadd.f32 %v3771_v63, %v3711_v12 }
 0x3a1   : > { %v4021_v26 = vld [vmem:[#allocation3 + $0x30] ss:$2 sm:$0xff] }
 0x3a2   : > { %v3913_v47 = vadd.f32 %v3871_v32, %v3813_v23 }
 0x3a3   : > { %3378 = vrot.lane.b32.xlu0 %v3344_v28, %s11855_s12 }
 0x3a4   : > { %v3933_v9 = vadd.f32 %v13021_v22, %v3913_v47  ;;  %3882 = vrot.lane.b32.xlu2 %v3851_v58, %s11854_s30  ;;  %3276 = vrot.lane.b32.xlu1 %v3242_v30, %s11856_s15  ;;  %v4135_v43 = vpop.f32.mrf.mxu0 }
 0x3a5   : > { %v3263_v21 = vpop.permute.xlu0 %3262 }
 0x3a6   : > { %v3950_v50 = vmax.f32 %v3933_v9, 0.0  ;;  %v3304_v46 = vadd.f32 %v3263_v21, %v12990_v62  ;;  %v3365_v2 = vpop.permute.xlu1 %3364  ;;  %v4196_v37 = vpop.f32.mrf.mxu1 }
 0x3a7   : > { %v3367_v52 = vpop.permute.xlu2 %3366  ;;  %v4197_v44 = vadd.f32 %v4196_v37, %v4135_v43 }
 0x3a8   : > { %v3968_v11 = vmul.f32 %v13037_v51, %v3950_v50  ;;  %v3406_v6 = vadd.f32 %v3365_v2, %v3304_v46 }
 0x3aa   : > { %v3986_v54 = vadd.f32 %v13052_v3, %v3968_v11  ;;  %v3508_v62 = vadd.f32 %v3467_v29, %v3406_v6  ;;  %v3752_v29 = vrot.slane %v15014_v19, 6 }
 0x3ab   : > { %3684 = vrot.lane.b32.xlu0 %v3650_v25, %s14977_s16 }
 0x3ac   : > { %4005 = vst.msk [vmem:[#allocation3 + $0x3f] sm:$0xff] %vm3997_vm7, %v3986_v54  ;;  %3480 = vrot.lane.b32.xlu2 %v3446_v1, %s14981_s13  ;;  %3582 = vrot.lane.b32.xlu1 %v3548_v60, %s14979_s14  ;;  %v3753_v35 = vsel %vm3720_vm5, %v3750_v5, %v3752_v29  ;;  %v13438_v1 = vpop.f32.mrf.mxu0 }
 0x3ad   : > { %v3569_v49 = vpop.permute.xlu0 %3568 }
 0x3ae   : > { %v3610_v56 = vadd.f32 %v3569_v49, %v3508_v62  ;;  %v3671_v32 = vpop.permute.xlu1 %3670  ;;  %v13435_v6 = vpop.f32.mrf.mxu1 }
 0x3af   : > { %v3673_v45 = vpop.permute.xlu2 %3672 }
 0x3b0   : > { %v3712_v0 = vadd.f32 %v3671_v32, %v3610_v56 }
 0x3b2   : > { %v3814_v15 = vadd.f32 %v3773_v7, %v3712_v0  ;;  %v3852_v7 = vrot.slane %v15014_v19, 7 }
 0x3b3   : > { %v4033_v17 = vld [vmem:[#allocation3 + $0x31] ss:$2 sm:$0xff]  ;;  %3274 = vrot.lane.b32.xlu0 %v3243_v27, %s11856_s15 }
 0x3b4   : > { %v4041_v61 = vmax.f32 %v4021_v26, %v4033_v17  ;;  %3376 = vrot.lane.b32.xlu2 %v3345_v16, %s11855_s12  ;;  %3478 = vrot.lane.b32.xlu1 %v3447_v40, %s14981_s13  ;;  %v3853_v58 = vsel %vm3822_vm6, %v3850_v59, %v3852_v7 }
 0x3b5   : > { %v3873_v55 = vpop.permute.xlu0 %3872 }
 0x3b6   : > { %v4049_v38 = vpack.c.bf16 %v4041_v61, %v4041_v61  ;;  %v3914_v41 = vadd.f32 %v3873_v55, %v3814_v15  ;;  %v3265_v24 = vpop.permute.xlu1 %3264 }
 0x3b7   : > { %v3267_v10 = vpop.permute.xlu2 %3266  ;;  %v3305_v31 = vadd.f32 %v3265_v24, %v12842_v18 }
 0x3b8   : > { %4058 = vst.msk [vmem:[#allocation2 + $0x1c] sm:$0xf] %vm4054_vm9, %v4049_v38  ;;  %v3934_v57 = vadd.f32 %v13021_v22, %v3914_v41  ;;  %v3306_v25 = vadd.f32 %v3267_v10, %v13119_v13  ;;  %v4201_v26 = vpop.f32.mrf.mxu1 }
 0x3b9   : > { %v3407_v18 = vadd.f32 %v3367_v52, %v3305_v31  ;;  %v4285_v4 = vpop.f32.mrf.mxu2 }
 0x3ba   : > { %v3951_v33 = vmax.f32 %v3934_v57, 0.0  ;;  %v4309_v23 = vadd.f32 %v4285_v4, %v4197_v44 }
 0x3bb   : > { %3580 = vrot.lane.b32.xlu0 %v3549_v20, %s14979_s14 }
 0x3bc   : > { %v3969_v42 = vmul.f32 %v13037_v51, %v3951_v33  ;;  %3682 = vrot.lane.b32.xlu2 %v3651_v8, %s14977_s16  ;;  %3784 = vrot.lane.b32.xlu1 %v3753_v35, %s14975_s22  ;;  %s15016_s16 = smov 48  }
 0x3bd   : > { %v3469_v48 = vpop.permute.xlu0 %3468 }
 0x3be   : > { %v3987_v12 = vadd.f32 %v13052_v3, %v3969_v42  ;;  %v3509_v63 = vadd.f32 %v3469_v48, %v3407_v18  ;;  %v3571_v34 = vpop.permute.xlu1 %3570 }
 0x3bf   : > { %v3573_v5 = vpop.permute.xlu2 %3572  ;;  %v13422_v28 = vld [vmem:[#allocation2 + $0x18] sm:$0xff]  }
 0x3c0   : > { %v11254_v47 = vld [vmem:[#allocation2 + $0x18] sm:$0xff]  ;;  %4006 = vst.msk [vmem:[#allocation3 + $0x47] sm:$0xff] %vm3997_vm7, %v3987_v12  ;;  %v3611_v30 = vadd.f32 %v3571_v34, %v3509_v63  ;;  %9998 = vmatmul.msk.bf16.gmra.mxu1 %vm3997_vm7, %v13422_v28 }
 0x3c1   : > { %10024 = vmatmul.msk.bf16.gmra.mxu2 %vm3997_vm7, %v11254_v47 }
 0x3c2   : > { %v3713_v9 = vadd.f32 %v3673_v45, %v3611_v30 }
 0x3c3   : > { %3884 = vrot.lane.b32.xlu0 %v3853_v58, %s11854_s30 }
 0x3c4   : > { %3786 = vrot.lane.b32.xlu2 %v3752_v29, %s14975_s22  ;;  %3886 = vrot.lane.b32.xlu1 %v3852_v7, %s11854_s30  ;;  %s15017_s22 = smov 32  }
 0x3c5   : > { %v3775_v21 = vpop.permute.xlu0 %3774 }
 0x3c6   : > { %v3815_v50 = vadd.f32 %v3775_v21, %v3713_v9  ;;  %v3875_v46 = vpop.permute.xlu1 %3874  ;;  %v13454_v9 = vpop.f32.mrf.mxu2 }
 0x3c7   : > { %v3877_v2 = vpop.permute.xlu2 %3876  ;;  %v4023_v15 = vld [vmem:[#allocation3 + $0x40] ss:$2 sm:$0xff] }
 0x3c8   : > { %v3915_v52 = vadd.f32 %v3875_v46, %v3815_v50 }
 0x3ca   : > { %v3935_v11 = vadd.f32 %v13021_v22, %v3915_v52 }
 0x3cc   : > { %v3952_v54 = vmax.f32 %v3935_v11, 0.0 }
 0x3cd   : > { %v3369_v59 = vpop.permute.xlu0 %3368 }
 0x3ce   : > { %v3970_v60 = vmul.f32 %v13037_v51, %v3952_v54  ;;  %v3408_v62 = vadd.f32 %v3369_v59, %v3306_v25  ;;  %v3471_v49 = vpop.permute.xlu1 %3470 }
 0x3cf   : > { %v3473_v32 = vpop.permute.xlu2 %3472 }
 0x3d0   : > { %v3988_v56 = vadd.f32 %v13052_v3, %v3970_v60  ;;  %v3510_v45 = vadd.f32 %v3471_v49, %v3408_v62 }
 0x3d2   : > { %4007 = vst.msk [vmem:[#allocation3 + $0x4f] sm:$0xff] %vm3997_vm7, %v3988_v56  ;;  %v3612_v0 = vadd.f32 %v3573_v5, %v3510_v45  ;;  %v11271_v56 = vld [vmem:[%s14958_s3 + $0x28] sm:$0xff] }
 0x3d3   : > { %4577 = vmatpush.bf16.msra.mxu1 %v11271_v56 }
 0x3d5   : > { %v3675_v27 = vpop.permute.xlu0 %3674 }
 0x3d6   : > { %v3714_v17 = vadd.f32 %v3675_v27, %v3612_v0  ;;  %v3777_v16 = vpop.permute.xlu1 %3776  ;;  %v4140_v13 = vpop.f32.mrf.mxu0 }
 0x3d7   : > { %v4202_v61 = vadd.f32 %v4201_v26, %v4140_v13  ;;  %v3779_v41 = vpop.permute.xlu2 %3778 }
 0x3d8   : > { %v3816_v40 = vadd.f32 %v3777_v16, %v3714_v17 }
 0x3d9   : > { %v4034_v55 = vld [vmem:[#allocation3 + $0x41] ss:$2 sm:$0xff] }
 0x3da   : > { %v4042_v38 = vmax.f32 %v4023_v15, %v4034_v55  ;;  %v3916_v24 = vadd.f32 %v3877_v2, %v3816_v40 }
 0x3dc   : > { %v4050_v10 = vpack.c.bf16 %v4042_v38, %v4042_v38  ;;  %v3936_v29 = vadd.f32 %v13021_v22, %v3916_v24 }
 0x3dd   : > { %v3269_v57 = vpop.permute.xlu0 %3268  ;;  %v4383_v31 = vpop.f32.mrf.mxu3 }
 0x3de   : > { %4059 = vst.msk [vmem:[#allocation2 + $0x20] sm:$0xf] %vm4054_vm9, %v4050_v10  ;;  %v3953_v33 = vmax.f32 %v3936_v29, 0.0  ;;  %v3307_v20 = vadd.f32 %v3269_v57, %v12871_v53  ;;  %v13446_v8 = vadd.f32 %v4383_v31, %v4309_v23  ;;  %v3371_v35 = vpop.permute.xlu1 %3370  ;;  %v11276_v57 = vld [vmem:[%s14958_s3 + $0x30] sm:$0xff]  ;;  %v11266_v31 = vld [vmem:[%s14958_s3 + $0x20] sm:$0xff] }
 0x3df   : > { %v3373_v18 = vpop.permute.xlu2 %3372  ;;  %4675 = vmatpush.bf16.msra.mxu2 %v11276_v57  ;;  %4479 = vmatpush.bf16.msra.mxu0 %v11266_v31 }
 0x3e0   : > { %v3971_v43 = vmul.f32 %v13037_v51, %v3953_v33  ;;  %v3409_v37 = vadd.f32 %v3371_v35, %v3307_v20 }
 0x3e2   : > { %v3989_v42 = vadd.f32 %v13052_v3, %v3971_v43  ;;  %v3511_v44 = vadd.f32 %v3473_v32, %v3409_v37 }
 0x3e4   : > { %4008 = vst.msk [vmem:[#allocation3 + $0x57] sm:$0xff] %vm3997_vm7, %v3989_v42 }
 0x3e5   : > { %v3575_v48 = vpop.permute.xlu0 %3574  ;;  %v11259_v4 = vld [vmem:[#allocation2 + $0x1c] sm:$0xff] }
 0x3e6   : > { %v3613_v12 = vadd.f32 %v3575_v48, %v3511_v44  ;;  %v3677_v63 = vpop.permute.xlu1 %3676  ;;  %10051 = vmatmul.msk.bf16.gmra.mxu3 %vm3997_vm7, %v11259_v4  ;;  %v13479_v33 = vld [vmem:[#allocation2 + $0x1c] sm:$0xff] }
 0x3e7   : > { %v3679_v23 = vpop.permute.xlu2 %3678  ;;  %v13481_v43 = vld [vmem:[#allocation2 + $0x1c] sm:$0xff] }
 0x3e8   : > { %v3715_v34 = vadd.f32 %v3677_v63, %v3613_v12  ;;  %v15015_v12 = vmov 0  }
 0x3ea   : > { %v3817_v53 = vadd.f32 %v3779_v41, %v3715_v34 }
 0x3eb   : > { %v4025_v0 = vld [vmem:[#allocation3 + $0x50] ss:$2 sm:$0xff] }
 0x3ed   : > { %v3879_v7 = vpop.permute.xlu0 %3878 }
 0x3ee   : > { %v3917_v5 = vadd.f32 %v3879_v7, %v3817_v53  ;;  %v3271_v47 = vpop.permute.xlu1 %3270 }
 0x3ef   : > { %v3308_v58 = vadd.f32 %v3271_v47, %v13226_v36  ;;  %v3273_v54 = vpop.permute.xlu2 %3272  ;;  %v13495_v47 = vpop.f32.mrf.mxu1 }
 0x3f0   : > { %v3937_v30 = vadd.f32 %v13021_v22, %v3917_v5 }
 0x3f1   : > { %v3410_v46 = vadd.f32 %v3373_v18, %v3308_v58  ;;  %v11519_v18 = vunpack.c.h.b16 %v13422_v28  ;;  %v13493_v28 = vpop.f32.mrf.mxu0 }
 0x3f2   : > { %v3954_v21 = vmax.f32 %v3937_v30, 0.0 }
 0x3f4   : > { %v3972_v50 = vmul.f32 %v13037_v51, %v3954_v21 }
 0x3f5   : > { %v3475_v2 = vpop.permute.xlu0 %3474 }
 0x3f6   : > { %v3990_v52 = vadd.f32 %v13052_v3, %v3972_v50  ;;  %v3512_v11 = vadd.f32 %v3475_v2, %v3410_v46  ;;  %v3577_v25 = vpop.permute.xlu1 %3576 }
 0x3f7   : > { %v3579_v13 = vpop.permute.xlu2 %3578 }
 0x3f8   : > { %4009 = vst.msk [vmem:[#allocation3 + $0x5f] sm:$0xff] %vm3997_vm7, %v3990_v52  ;;  %v3614_v59 = vadd.f32 %v3577_v25, %v3512_v11  ;;  %v13498_v52 = vpop.f32.mrf.mxu3  ;;  %v4206_v25 = vpop.f32.mrf.mxu1 }
 0x3fa   : > { %v4290_v60 = vpop.f32.mrf.mxu2  ;;  %v3716_v49 = vadd.f32 %v3679_v23, %v3614_v59 }
 0x3fb   : > { %v13459_v62 = vadd.f32 %v4290_v60, %v4202_v61  ;;  %v3309_v61 = vadd.f32 %v3273_v54, %v12907_v14  ;;  %v11281_v14 = vld [vmem:[%s14958_s3 + $0x38] sm:$0xff] }
 0x3fc   : > { %4773 = vmatpush.bf16.msra.mxu3 %v11281_v14 }
 0x3fd   : > { %v3781_v36 = vpop.permute.xlu0 %3780 }
 0x3fe   : > { %v3818_v32 = vadd.f32 %v3781_v36, %v3716_v49  ;;  %v3881_v45 = vpop.permute.xlu1 %3880 }
 0x3ff   : > { %v4035_v27 = vld [vmem:[#allocation3 + $0x51] ss:$2 sm:$0xff]  ;;  %v3883_v37 = vpop.permute.xlu2 %3882 }
 0x400   : > { %v4043_v26 = vmax.f32 %v4025_v0, %v4035_v27  ;;  %v3918_v17 = vadd.f32 %v3881_v45, %v3818_v32  ;;  %v11267_v45 = vld [vmem:[#allocation2 + $0x14] sm:$0xff] }
 0x402   : > { %v4051_v16 = vpack.c.bf16 %v4043_v26, %v4043_v26  ;;  %v3938_v40 = vadd.f32 %v13021_v22, %v3918_v17 }
 0x404   : > { %4060 = vst.msk [vmem:[#allocation2 + $0x24] sm:$0xf] %vm4054_vm9, %v4051_v16  ;;  %v3955_v15 = vmax.f32 %v3938_v40, 0.0 }
 0x405   : > { %v3375_v55 = vpop.permute.xlu0 %3374 }
 0x406   : > { %v3973_v38 = vmul.f32 %v13037_v51, %v3955_v15  ;;  %v3411_v41 = vadd.f32 %v3375_v55, %v3309_v61  ;;  %v3477_v24 = vpop.permute.xlu1 %3476 }
 0x407   : > { %v3481_v50 = vpop.permute.xlu2 %3480 }
 0x408   : > { %v3991_v10 = vadd.f32 %v13052_v3, %v3973_v38  ;;  %v3513_v29 = vadd.f32 %v3477_v24, %v3411_v41 }
 0x40a   : > { %4010 = vst.msk [vmem:[#allocation3 + $0x67] sm:$0xff] %vm3997_vm7, %v3991_v10  ;;  %v3615_v42 = vadd.f32 %v3579_v13, %v3513_v29 }
 0x40b   : > { %v11255_v20 = vld [vmem:[#allocation2 + $0x20] sm:$0xff] }
 0x40c   : > { %v11574_v35 = vld [vmem:[#allocation2 + $0x20] sm:$0xff]   ;;  %10025 = vmatmul.msk.bf16.gmra.mxu2 %vm3997_vm7, %v11255_v20 }
 0x40d   : > { %v11522_v44 = vunpack.c.l.b16 %v11574_v35  ;;  %v13484_v48 = vld [vmem:[#allocation2 + $0x20] sm:$0xff]  ;;  %v3681_v63 = vpop.permute.xlu0 %3680  ;;  %v11523_v60 = vunpack.c.h.b16 %v11574_v35  ;;  %v11262_v35 = vld [vmem:[#allocation2 + $0x10] sm:$0xff] }
 0x40e   : > { %v13486_v4 = vld [vmem:[#allocation2 + $0x20] sm:$0xff]  ;;  %v3717_v34 = vadd.f32 %v3681_v63, %v3615_v42  ;;  %v3783_v53 = vpop.permute.xlu1 %3782 }
 0x40f   : > { %5256 = vst [vmem:[#allocation2 + $0x20] sm:$0xf] %v15015_v12  ;;  %v4103_v7 = vpack.c.b16 %v11522_v44, %v11519_v18  ;;  %v4165_v23 = vpack.c.b16 %v11522_v44, %v11522_v44  ;;  %v4104_v32 = vpack.c.b16 %v11523_v60, %v11523_v60  ;;  %v3377_v0 = vpop.permute.xlu2 %3376  ;;  %v11263_v60 = vld [vmem:[#allocation2 + $0x18] sm:$0xff] }
 0x410   : > { %5257 = vst [vmem:[#allocation2 + $0x24] sm:$0xf] %v15015_v12  ;;  %v3819_v5 = vadd.f32 %v3783_v53, %v3717_v34 }
 0x411   : > { %9989 = vmatmul.msk.bf16.gmra.mxu0 %vm3997_vm7, %v4103_v7  ;;  %9999 = vmatmul.msk.bf16.gmra.mxu1 %vm3997_vm7, %v4165_v23  ;;  %v4027_v17 = vld [vmem:[#allocation3 + $0x60] ss:$2 sm:$0xff] }
 0x412   : > { %v3919_v30 = vadd.f32 %v3883_v37, %v3819_v5 }
 0x414   : > { %v3939_v58 = vadd.f32 %v13021_v22, %v3919_v30 }
 0x415   : > { %v3379_v21 = vpop.permute.xlu0 %3378 }
 0x416   : > { %v3956_v46 = vmax.f32 %v3939_v58, 0.0  ;;  %v3277_v2 = vpop.permute.xlu1 %3276 }
 0x417   : > { %v3311_v13 = vadd.f32 %v3277_v2, %v15014_v19  ;;  %v3683_v10 = vpop.permute.xlu2 %3682 }
 0x418   : > { %v3974_v11 = vmul.f32 %v13037_v51, %v3956_v46 }
 0x419   : > { %v3413_v41 = vadd.f32 %v3379_v21, %v3311_v13 }
 0x41a   : > { %v3992_v54 = vadd.f32 %v13052_v3, %v3974_v11  ;;  %v4145_v59 = vpop.f32.mrf.mxu0  ;;  %v13523_v11 = vpop.f32.mrf.mxu2 }
 0x41b   : > { %v13502_v49 = vadd.f32 %v4206_v25, %v4145_v59  ;;  %v3515_v29 = vadd.f32 %v3481_v50, %v3413_v41 }
 0x41c   : > { %4011 = vst.msk [vmem:[#allocation3 + $0x6f] sm:$0xff] %vm3997_vm7, %v3992_v54 }
 0x41d   : > { %v3685_v36 = vpop.permute.xlu0 %3684 }
 0x41e   : > { %v3583_v56 = vpop.permute.xlu1 %3582 }
 0x41f   : > { %v3617_v31 = vadd.f32 %v3583_v56, %v3515_v29  ;;  %v3787_v53 = vpop.permute.xlu2 %3786  ;;  %v13551_v29 = vpop.f32.mrf.mxu1 }
 0x420   : > { %v4388_v27 = vpop.f32.mrf.mxu3 }
 0x421   : > { %9990 = vmatmul.msk.bf16.gmra.mxu0 %vm3997_vm7, %v4104_v32  ;;  %10103 = vmatmul.msk.bf16.vlgmr.msra.gmra.mxu1 %vm3997_vm7, %v11267_v45  ;;  %v13508_v26 = vadd.f32 %v4388_v27, %v13459_v62  ;;  %v3719_v63 = vadd.f32 %v3685_v36, %v3617_v31 }
 0x423   : > { %v4036_v16 = vld [vmem:[#allocation3 + $0x61] ss:$2 sm:$0xff]  ;;  %v3821_v5 = vadd.f32 %v3787_v53, %v3719_v63 }
 0x424   : > { %v4044_v40 = vmax.f32 %v4027_v17, %v4036_v16 }
 0x425   : > { %v3275_v61 = vpop.permute.xlu0 %3274 }
 0x426   : > { %v4052_v15 = vpack.c.bf16 %v4044_v40, %v4044_v40  ;;  %v3310_v55 = vadd.f32 %v3275_v61, %v13315_v39  ;;  %v3479_v38 = vpop.permute.xlu1 %3478  ;;  %v4522_v61 = vld [vmem:[#allocation2 + $0x34] sm:$0xff]  }
 0x427   : > { %v4641_v31 = vunpack.c.h.b16 %v4522_v61 }
 0x428   : > { %4061 = vst.msk [vmem:[#allocation2 + $0x28] sm:$0xf] %vm4054_vm9, %v4052_v15  ;;  %v3412_v24 = vadd.f32 %v3377_v0, %v3310_v55  ;;  %v4543_v15 = vunpack.c.l.b16 %v4522_v61 }
 0x42a   : > { %v3514_v57 = vadd.f32 %v3479_v38, %v3412_v24  ;;  %v4548_v55 = vpack.c.b16 %v4543_v15, %v4543_v15 }
 0x42d   : > { %v3581_v62 = vpop.permute.xlu0 %3580 }
 0x42e   : > { %v3616_v14 = vadd.f32 %v3581_v62, %v3514_v57  ;;  %v3785_v20 = vpop.permute.xlu1 %3784  ;;  %v4646_v62 = vpack.c.b16 %v4641_v31, %v4641_v31 }
 0x42f   : > { %v11260_v37 = vld [vmem:[#allocation2 + $0x24] sm:$0xff] }
 0x430   : > { %v4228_v19 = vld [vmem:[#allocation2 + $0x28] sm:$0xf]  ;;  %v3718_v42 = vadd.f32 %v3683_v10, %v3616_v14  ;;  %10052 = vmatmul.msk.bf16.gmra.mxu3 %vm3997_vm7, %v11260_v37  ;;  %v11275_v10 = vld [vmem:[#allocation2 + $0x30] sm:$0xff] }
 0x431   : > { %10076 = vmatmul.msk.bf16.vlgmr.msra.gmra.mxu0 %vm3997_vm7, %v11262_v35  ;;  %10104 = vmatmul.msk.bf16.gmra.mxu1 %vm3997_vm7, %v13479_v33  ;;  %v4249_v39 = vunpack.c.l.b16 %v4228_v19  ;;  %v11269_v18 = vld [vmem:[#allocation2 + $0x24] sm:$0xff] }
 0x432   : > { %v13516_v44 = vld [vmem:[#allocation2 + $0x24] sm:$0xff]  ;;  %v3820_v7 = vadd.f32 %v3785_v20, %v3718_v42 }
 0x433   : > { %5258 = vst [vmem:[#allocation2 + $0x28] sm:$0xf] %v15015_v12  ;;  %v4254_v34 = vpack.c.b16 %v4249_v39, %v4249_v39 }
 0x435   : > { %10026 = vmatmul.msk.bf16.gmra.mxu2 %vm3997_vm7, %v4254_v34  ;;  %v3885_v23 = vpop.permute.xlu0 %3884  ;;  %v11280_v34 = vld [vmem:[#allocation2 + $0x34] sm:$0xff] }
 0x436   : > { %v3920_v30 = vadd.f32 %v3885_v23, %v3820_v7  ;;  %v3887_v58 = vpop.permute.xlu1 %3886 }
 0x437   : > { %v3921_v21 = vadd.f32 %v3887_v58, %v3821_v5  ;;  %v4718_v5 = vld [vmem:[#allocation2 + $0x3c] sm:$0xf] }
 0x438   : > { %v3940_v33 = vadd.f32 %v13021_v22, %v3920_v30  ;;  %v4739_v30 = vunpack.c.l.b16 %v4718_v5 }
 0x439   : > { %v3941_v50 = vadd.f32 %v13021_v22, %v3921_v21  ;;  %v11272_v22 = vld [vmem:[#allocation2 + $0x18] sm:$0xff] }
 0x43a   : > { %v3957_v46 = vmax.f32 %v3940_v33, 0.0  ;;  %v4744_v33 = vpack.c.b16 %v4739_v30, %v4739_v30 }
 0x43b   : > { %v3958_v2 = vmax.f32 %v3941_v50, 0.0 }
 0x43c   : > { %v3975_v25 = vmul.f32 %v13037_v51, %v3957_v46 }
 0x43d   : > { %v3976_v54 = vmul.f32 %v13037_v51, %v3958_v2  ;;  %v4211_v57 = vpop.f32.mrf.mxu1 }
 0x43e   : > { %v3993_v59 = vadd.f32 %v13052_v3, %v3975_v25 }
 0x43f   : > { %v3994_v36 = vadd.f32 %v13052_v3, %v3976_v54 }
 0x440   : > { %4012 = vst.msk [vmem:[#allocation3 + $0x77] sm:$0xff] %vm3997_vm7, %v3993_v59 }
 0x441   : > { %10077 = vmatmul.msk.bf16.gmra.mxu0 %vm3997_vm7, %v11263_v60  ;;  %10105 = vmatmul.msk.bf16.gmra.mxu1 %vm3997_vm7, %v11269_v18  ;;  %4014 = vst.msk [vmem:[#allocation3 + $0x7f] sm:$0x1] %vm4013_vm10, %v3994_v36 }
 0x444   : > { %v4295_v56 = vpop.f32.mrf.mxu2 }
 0x445   : > { %10130 = vmatmul.msk.bf16.vlgmr.msra.gmra.mxu2 %vm3997_vm7, %v11272_v22  ;;  %v4313_v51 = vadd.f32 %v4295_v56, %v13502_v49  ;;  %v13559_v14 = vpop.f32.mrf.mxu1 }
 0x447   : > { %v4029_v32 = vld [vmem:[#allocation3 + $0x70] ss:$2 sm:$0xff] }
 0x448   : > { %v4037_v45 = vld [vmem:[#allocation3 + $0x71] ss:$2 sm:$0xff] }
 0x449   : > { %v4045_v0 = vmax.f32 %v4029_v32, %v4037_v45 }
 0x44b   : > { %v4053_v27 = vpack.c.bf16 %v4045_v0, %v4045_v0 }
 0x44c   : > { %v13561_v35 = vpop.f32.mrf.mxu2 }
 0x44d   : > { %4062 = vst.msk [vmem:[#allocation2 + $0x2c] sm:$0xf] %vm4054_vm9, %v4053_v27 }
 0x451   : > { %10078 = vmatmul.msk.bf16.gmra.mxu0 %vm3997_vm7, %v13484_v48  ;;  %v13544_v48 = vpop.f32.mrf.mxu3 }
 0x454   : > { %v11270_v3 = vld [vmem:[#allocation2 + $0x2c] sm:$0xff] }
 0x455   : > { %10131 = vmatmul.msk.bf16.gmra.mxu2 %vm3997_vm7, %v13486_v4  ;;  %v4326_v17 = vld [vmem:[#allocation2 + $0x2c] sm:$0xff]   ;;  %10106 = vmatmul.msk.bf16.gmra.mxu1 %vm3997_vm7, %v11270_v3 }
 0x456   : > { %v4347_v16 = vunpack.c.l.b16 %v4326_v17  ;;  %v11265_v13 = vld [vmem:[#allocation2 + $0x28] sm:$0xff]  ;;  %v4445_v38 = vunpack.c.h.b16 %v4326_v17 }
 0x457   : > { %v11274_v40 = vld [vmem:[#allocation2 + $0x28] sm:$0xff] }
 0x458   : > { %5259 = vst [vmem:[#allocation2 + $0x2c] sm:$0xf] %v15015_v12  ;;  %v4352_v49 = vpack.c.b16 %v4347_v16, %v4347_v16  ;;  %v4450_v24 = vpack.c.b16 %v4445_v38, %v4445_v38 }
 0x45a   : > { %10053 = vmatmul.msk.bf16.gmra.mxu3 %vm3997_vm7, %v4352_v49 }
 0x45f   : > { %v11279_v20 = vld [vmem:[#allocation2 + $0x2c] sm:$0xff] }
 0x461   : > { %10079 = vmatmul.msk.bf16.gmra.mxu0 %vm3997_vm7, %v11265_v13 }
 0x465   : > { %10132 = vmatmul.msk.bf16.gmra.mxu2 %vm3997_vm7, %v11274_v40  ;;  %10107 = vmatmul.msk.bf16.gmra.mxu1 %vm3997_vm7, %v4548_v55 }
 0x469   : > { %v4393_v4 = vpop.f32.mrf.mxu3 }
 0x46a   : > { %10157 = vmatmul.msk.bf16.vlgmr.msra.gmra.mxu3 %vm3997_vm7, %v13481_v43  ;;  %v4411_v41 = vadd.f32 %v4393_v4, %v4313_v51  ;;  %v13557_v43 = vpop.f32.mrf.mxu0 }
 0x471   : > { %10080 = vmatmul.msk.bf16.gmra.mxu0 %vm3997_vm7, %v4450_v24  ;;  %v13568_v50 = vpop.f32.mrf.mxu3 }
 0x475   : > { %10133 = vmatmul.msk.bf16.gmra.mxu2 %vm3997_vm7, %v11275_v10 }
 0x47a   : > { %10158 = vmatmul.msk.bf16.gmra.mxu3 %vm3997_vm7, %v13516_v44 }
 0x485   : > { %10134 = vmatmul.msk.bf16.gmra.mxu2 %vm3997_vm7, %v4646_v62 }
 0x48a   : > { %10159 = vmatmul.msk.bf16.gmra.mxu3 %vm3997_vm7, %v11279_v20 }
 0x48e   : > { %v4150_v37 = vpop.f32.mrf.mxu0  ;;  %v4216_v19 = vpop.f32.mrf.mxu1 }
 0x48f   : > { %v4212_v42 = vadd.f32 %v4211_v57, %v4150_v37  ;;  %v4300_v39 = vpop.f32.mrf.mxu2 }
 0x491   : > { %v4315_v18 = vadd.f32 %v4300_v39, %v4212_v42 }
 0x496   : > { %v13564_v44 = vpop.f32.mrf.mxu0  ;;  %v4218_v63 = vpop.f32.mrf.mxu1 }
 0x497   : > { %v13571_v54 = vpop.f32.mrf.mxu2 }
 0x49a   : > { %10160 = vmatmul.msk.bf16.gmra.mxu3 %vm3997_vm7, %v11280_v34 }
 0x49e   : > { %v4155_v53 = vpop.f32.mrf.mxu0  ;;  %v4579_v7 = vpop.f32.mrf.mxu1 }
 0x49f   : > { %v4217_v23 = vadd.f32 %v4216_v19, %v4155_v53  ;;  %v4199_v19 = vadd.f32 %v13435_v6, %v13438_v1 }
 0x4a6   : > { %v4157_v58 = vpop.f32.mrf.mxu0  ;;  %v4581_v21 = vpop.f32.mrf.mxu1 }
 0x4aa   : > { %10161 = vmatmul.msk.bf16.gmra.mxu3 %vm3997_vm7, %v4744_v33 }
 0x4ae   : > { %v4481_v46 = vpop.f32.mrf.mxu0  ;;  %v4584_v2 = vpop.f32.mrf.mxu1 }
 0x4af   : > { %v4505_v25 = vadd.f32 %v4481_v46, %v13446_v8 }
 0x4b1   : > { %v4603_v59 = vadd.f32 %v4579_v7, %v4505_v25 }
 0x4b3   : > { %v4398_v60 = vpop.f32.mrf.mxu3 }
 0x4b4   : > { %v4413_v36 = vadd.f32 %v4398_v60, %v4315_v18  ;;  %v4310_v18 = vadd.f32 %v13454_v9, %v4199_v19  ;;  %v4204_v9 = vadd.f32 %v13495_v47, %v13493_v28 }
 0x4b6   : > { %v4483_v22 = vpop.f32.mrf.mxu0  ;;  %v13573_v56 = vpop.f32.mrf.mxu1  ;;  %v4408_v53 = vadd.f32 %v13498_v52, %v4310_v18 }
 0x4b8   : > { %v4305_v51 = vpop.f32.mrf.mxu2  ;;  %v4506_v5 = vadd.f32 %v4483_v22, %v4408_v53  ;;  %v4312_v22 = vadd.f32 %v13523_v11, %v4204_v9 }
 0x4b9   : > { %v4317_v32 = vadd.f32 %v4305_v51, %v4217_v23 }
 0x4ba   : > { %v4604_v6 = vadd.f32 %v4581_v21, %v4506_v5 }
 0x4bb   : > { %v13578_v4 = vpop.f32.mrf.mxu3 }
 0x4be   : > { %v4486_v45 = vpop.f32.mrf.mxu0  ;;  %v4589_v17 = vpop.f32.mrf.mxu1 }
 0x4bf   : > { %v4507_v0 = vadd.f32 %v4486_v45, %v13508_v26  ;;  %v4410_v45 = vadd.f32 %v13544_v48, %v4312_v22 }
 0x4c0   : > { %v4307_v27 = vpop.f32.mrf.mxu2 }
 0x4c1   : > { %v4605_v3 = vadd.f32 %v4584_v2, %v4507_v0 }
 0x4c6   : > { %v4488_v16 = vpop.f32.mrf.mxu0  ;;  %v13576_v40 = vpop.f32.mrf.mxu1 }
 0x4c7   : > { %v4508_v47 = vadd.f32 %v4488_v16, %v4410_v45 }
 0x4c8   : > { %v4677_v13 = vpop.f32.mrf.mxu2 }
 0x4c9   : > { %v4701_v51 = vadd.f32 %v4677_v13, %v4603_v59 }
 0x4ce   : > { %v4491_v8 = vpop.f32.mrf.mxu0 }
 0x4cf   : > { %v4509_v49 = vadd.f32 %v4491_v8, %v4411_v41 }
 0x4d0   : > { %v4679_v61 = vpop.f32.mrf.mxu2 }
 0x4d1   : > { %v4607_v15 = vadd.f32 %v4589_v17, %v4509_v49  ;;  %v4702_v1 = vadd.f32 %v4679_v61, %v4604_v6  ;;  %v4606_v49 = vadd.f32 %v13573_v56, %v4508_v47 }
 0x4d2   : > { %v4594_v55 = vpop.f32.mrf.mxu1 }
 0x4d6   : > { %v13580_v38 = vpop.f32.mrf.mxu0 }
 0x4d8   : > { %v4682_v24 = vpop.f32.mrf.mxu2 }
 0x4d9   : > { %v4703_v0 = vadd.f32 %v4682_v24, %v4605_v3 }
 0x4da   : > { %v13582_v10 = vpop.f32.mrf.mxu1 }
 0x4dd   : > { %v4403_v26 = vpop.f32.mrf.mxu3 }
 0x4de   : > { %v4415_v57 = vadd.f32 %v4403_v26, %v4317_v32  ;;  %v4496_v31 = vpop.f32.mrf.mxu0 }
 0x4df   : > { %v4511_v62 = vadd.f32 %v4496_v31, %v4413_v36 }
 0x4e0   : > { %v4684_v20 = vpop.f32.mrf.mxu2 }
 0x4e1   : > { %v4609_v37 = vadd.f32 %v4594_v55, %v4511_v62  ;;  %v4704_v3 = vadd.f32 %v4684_v20, %v4606_v49 }
 0x4e2   : > { %v4599_v41 = vpop.f32.mrf.mxu1 }
 0x4e5   : > { %v4405_v42 = vpop.f32.mrf.mxu3 }
 0x4e6   : > { %v13586_v39 = vpop.f32.mrf.mxu0 }
 0x4e8   : > { %v4687_v63 = vpop.f32.mrf.mxu2 }
 0x4e9   : > { %v13589_v34 = vadd.f32 %v4687_v63, %v4607_v15 }
 0x4ea   : > { %v4601_v7 = vpop.f32.mrf.mxu1 }
 0x4ed   : > { %v4775_v23 = vpop.f32.mrf.mxu3 }
 0x4ee   : > { %v4501_v30 = vpop.f32.mrf.mxu0  ;;  %v13605_v21 = vadd.f32 %v4775_v23, %v4701_v51 }
 0x4ef   : > { %v4513_v58 = vadd.f32 %v4501_v30, %v4415_v57 }
 0x4f0   : > { %v13592_v33 = vpop.f32.mrf.mxu2  ;;  %v4817_v59 = vrot.slane %v13605_v21, 1  ;;  %v4870_v24 = vrot.slane %v13605_v21, 2  ;;  %v4923_v18 = vrot.slane %v13605_v21, 3  ;;  %v4976_v6 = vrot.slane %v13605_v21, 4 }
 0x4f1   : > { %v4611_v46 = vadd.f32 %v4599_v41, %v4513_v58  ;;  %v5029_v45 = vrot.slane %v13605_v21, 5  ;;  %v5082_v49 = vrot.slane %v13605_v21, 6 }
 0x4f5   : > { %v4777_v2 = vpop.f32.mrf.mxu3 }
 0x4f6   : > { %v13594_v25 = vadd.f32 %v4777_v2, %v4702_v1  ;;  %v4503_v60 = vpop.f32.mrf.mxu0 }
 0x4f8   : > { %v4692_v36 = vpop.f32.mrf.mxu2  ;;  %v5135_v52 = vrot.slane %v13594_v25, 7  ;;  %v4818_v28 = vrot.slane %v13594_v25, 1  ;;  %v4871_v61 = vrot.slane %v13594_v25, 2  ;;  %v4924_v19 = vrot.slane %v13594_v25, 3 }
 0x4f9   : > { %v13599_v32 = vadd.f32 %v4692_v36, %v4609_v37  ;;  %v4977_v30 = vrot.slane %v13594_v25, 4  ;;  %v5030_v36 = vrot.slane %v13594_v25, 5 }
 0x4fa   : > { %5150 = vrot.lane.b32.xlu2 %v5135_v52, %s11854_s30  ;;  %v4819_v8 = vsel %vm3210_vm1, %v4817_v59, %v4818_v28  ;;  %v4872_v31 = vsel %vm3312_vm0, %v4870_v24, %v4871_v61  ;;  %v4925_v53 = vsel %vm3414_vm2, %v4923_v18, %v4924_v19  ;;  %v5083_v59 = vrot.slane %v13594_v25, 6 }
 0x4fb   : > { %v4978_v1 = vsel %vm3516_vm3, %v4976_v6, %v4977_v30 }
 0x4fd   : > { %v4780_v27 = vpop.f32.mrf.mxu3 }
 0x4fe   : > { %v13609_v17 = vadd.f32 %v4780_v27, %v4703_v0  ;;  %v5031_v0 = vsel %vm3618_vm4, %v5029_v45, %v5030_v36  ;;  %v4214_v45 = vadd.f32 %v13559_v14, %v13564_v44 }
 0x500   : > { %v13612_v13 = vpop.f32.mrf.mxu2  ;;  %v4820_v11 = vrot.slane %v13609_v17, 1  ;;  %v4873_v55 = vrot.slane %v13609_v17, 2  ;;  %v4926_v41 = vrot.slane %v13609_v17, 3  ;;  %v4979_v58 = vrot.slane %v13609_v17, 4 }
 0x501   : > { %v5032_v51 = vrot.slane %v13609_v17, 5  ;;  %v4316_v14 = vadd.f32 %v13571_v54, %v4214_v45 }
 0x502   : > { %4834 = vrot.lane.b32.xlu2 %v4819_v8, %s11856_s15  ;;  %v4821_v48 = vsel %vm3210_vm1, %v4818_v28, %v4820_v11  ;;  %v4874_v62 = vsel %vm3312_vm0, %v4871_v61, %v4873_v55  ;;  %v4927_v7 = vsel %vm3414_vm2, %v4924_v19, %v4926_v41  ;;  %v4980_v2 = vsel %vm3516_vm3, %v4977_v30, %v4979_v58 }
 0x503   : > { %4836 = vrot.lane.b32.xlu0 %v4821_v48, %s11856_s15  ;;  %v5033_v27 = vsel %vm3618_vm4, %v5030_v36, %v5032_v51  ;;  %v4209_v19 = vadd.f32 %v13551_v29, %v13557_v43 }
 0x505   : > { %v4782_v16 = vpop.f32.mrf.mxu3 }
 0x506   : > { %v13621_v15 = vadd.f32 %v4782_v16, %v4704_v3  ;;  %v5084_v3 = vsel %vm3720_vm5, %v5082_v49, %v5083_v59 }
 0x508   : > { %v4697_v26 = vpop.f32.mrf.mxu2  ;;  %v4822_v57 = vrot.slane %v13621_v15, 1  ;;  %v4875_v42 = vrot.slane %v13621_v15, 2  ;;  %v4981_v22 = vrot.slane %v13621_v15, 4  ;;  %v5034_v8 = vrot.slane %v13621_v15, 5 }
 0x509   : > { %v4709_v56 = vadd.f32 %v4697_v26, %v4611_v46  ;;  %v4928_v46 = vrot.slane %v13621_v15, 3  ;;  %v5138_v18 = vrot.slane %v13621_v15, 7 }
 0x50a   : > { %4887 = vrot.lane.b32.xlu2 %v4872_v31, %s11855_s12  ;;  %v4823_v20 = vsel %vm3210_vm1, %v4820_v11, %v4822_v57  ;;  %v4876_v23 = vsel %vm3312_vm0, %v4873_v55, %v4875_v42  ;;  %v4982_v28 = vsel %vm3516_vm3, %v4979_v58, %v4981_v22  ;;  %v5085_v11 = vrot.slane %v13609_v17, 6 }
 0x50b   : > { %4889 = vrot.lane.b32.xlu0 %v4874_v62, %s11855_s12  ;;  %4838 = vrot.lane.b32.xlu1 %v4823_v20, %s11856_s15  ;;  %v4929_v60 = vsel %vm3414_vm2, %v4926_v41, %v4928_v46  ;;  %v5035_v61 = vsel %vm3618_vm4, %v5032_v51, %v5034_v8  ;;  %v5087_v31 = vrot.slane %v13621_v15, 6 }
 0x50c   : > { %v5086_v16 = vsel %vm3720_vm5, %v5083_v59, %v5085_v11 }
 0x50d   : > { %v4785_v37 = vpop.f32.mrf.mxu3 }
 0x50e   : > { %v13677_v48 = vadd.f32 %v4785_v37, %v13589_v34  ;;  %v5136_v34 = vrot.slane %v13609_v17, 7  ;;  %v5088_v37 = vsel %vm3720_vm5, %v5085_v11, %v5087_v31 }
 0x510   : > { %v4699_v63 = vpop.f32.mrf.mxu2  ;;  %v4824_v24 = vrot.slane %v13677_v48, 1  ;;  %v5137_v20 = vsel %vm3822_vm6, %v5135_v52, %v5136_v34  ;;  %v4983_v41 = vrot.slane %v13677_v48, 4  ;;  %v5139_v29 = vsel %vm3822_vm6, %v5136_v34, %v5138_v18 }
 0x511   : > { %v4877_v63 = vrot.slane %v13677_v48, 2 }
 0x512   : > { %4940 = vrot.lane.b32.xlu2 %v4925_v53, %s14981_s13  ;;  %v4825_v62 = vsel %vm3210_vm1, %v4822_v57, %v4824_v24 }
 0x513   : > { %4942 = vrot.lane.b32.xlu0 %v4927_v7, %s14981_s13  ;;  %4891 = vrot.lane.b32.xlu1 %v4876_v23, %s11855_s12  ;;  %v4984_v7 = vsel %vm3516_vm3, %v4981_v22, %v4983_v41  ;;  %v4878_v43 = vsel %vm3312_vm0, %v4875_v42, %v4877_v63  ;;  %v5036_v23 = vrot.slane %v13677_v48, 5 }
 0x515   : > { %v13644_v5 = vpop.f32.mrf.mxu3 }
 0x51a   : > { %4993 = vrot.lane.b32.xlu2 %v4978_v1, %s14979_s14 }
 0x51b   : > { %4995 = vrot.lane.b32.xlu0 %v4980_v2, %s14979_s14  ;;  %4944 = vrot.lane.b32.xlu1 %v4929_v60, %s14981_s13 }
 0x51d   : > { %v13658_v9 = vpop.f32.mrf.mxu3 }
 0x522   : > { %5046 = vrot.lane.b32.xlu2 %v5031_v0, %s15016_s16  ;;  %v13746_v0 = vadd.f32 %v13658_v9, %v13599_v32 }
 0x523   : > { %5048 = vrot.lane.b32.xlu0 %v5033_v27, %s15016_s16  ;;  %4997 = vrot.lane.b32.xlu1 %v4982_v28, %s14979_s14 }
 0x524   : > { %v4881_v44 = vrot.slane %v13746_v0, 2 }
 0x525   : > { %v13670_v47 = vpop.f32.mrf.mxu3 }
 0x52a   : > { %5099 = vrot.lane.b32.xlu2 %v5084_v3, %s15017_s22 }
 0x52b   : > { %5101 = vrot.lane.b32.xlu0 %v5086_v16, %s15017_s22  ;;  %5050 = vrot.lane.b32.xlu1 %v5035_v61, %s15016_s16 }
 0x52d   : > { %v4795_v55 = vpop.f32.mrf.mxu3 }
 0x52e   : > { %v13686_v26 = vadd.f32 %v4795_v55, %v4709_v56  ;;  %v4314_v56 = vadd.f32 %v13561_v35, %v4209_v19 }
 0x530   : > { %v4412_v52 = vadd.f32 %v13568_v50, %v4314_v56  ;;  %v5140_v50 = vrot.slane %v13677_v48, 7  ;;  %v4885_v45 = vrot.slane %v13686_v26, 2 }
 0x532   : > { %4840 = vrot.lane.b32.xlu2 %v4825_v62, %s11856_s15  ;;  %v4510_v53 = vadd.f32 %v13580_v38, %v4412_v52  ;;  %v4930_v38 = vrot.slane %v13677_v48, 3  ;;  %v5141_v6 = vsel %vm3822_vm6, %v5138_v18, %v5140_v50  ;;  %v5144_v52 = vrot.slane %v13746_v0, 7 }
 0x533   : > { %5152 = vrot.lane.b32.xlu0 %v5137_v20, %s11854_s30  ;;  %5103 = vrot.lane.b32.xlu1 %v5088_v37, %s15017_s22 }
 0x534   : > { %v4608_v35 = vadd.f32 %v13576_v40, %v4510_v53  ;;  %v4931_v42 = vsel %vm3414_vm2, %v4928_v46, %v4930_v38  ;;  %v5037_v40 = vsel %vm3618_vm4, %v5034_v8, %v5036_v23  ;;  %v4414_v8 = vadd.f32 %v13578_v4, %v4316_v14 }
 0x535   : > { %v4797_v57 = vpop.f32.mrf.mxu3  ;;  %v4934_v4 = vrot.slane %v13746_v0, 3 }
 0x536   : > { %v4706_v30 = vadd.f32 %v13592_v33, %v4608_v35  ;;  %v5089_v33 = vrot.slane %v13677_v48, 6  ;;  %v4512_v49 = vadd.f32 %v13586_v39, %v4414_v8  ;;  %v4828_v39 = vrot.slane %v13746_v0, 1 }
 0x538   : > { %v13720_v58 = vadd.f32 %v13644_v5, %v4706_v30  ;;  %v5090_v60 = vsel %vm3720_vm5, %v5087_v31, %v5089_v33  ;;  %v4610_v55 = vadd.f32 %v13582_v10, %v4512_v49  ;;  %v5044_v49 = vrot.slane %v13686_v26, 5 }
 0x53a   : > { %4999 = vrot.lane.b32.xlu2 %v4984_v7, %s14979_s14  ;;  %v4932_v1 = vrot.slane %v13720_v58, 3  ;;  %v4826_v5 = vrot.slane %v13720_v58, 1  ;;  %v5091_v36 = vrot.slane %v13720_v58, 6  ;;  %v4879_v51 = vrot.slane %v13720_v58, 2 }
 0x53b   : > { %5154 = vrot.lane.b32.xlu1 %v5139_v29, %s11854_s30  ;;  %4893 = vrot.lane.b32.xlu0 %v4878_v43, %s11855_s12  ;;  %v4985_v22 = vrot.slane %v13720_v58, 4  ;;  %v5038_v32 = vrot.slane %v13720_v58, 5  ;;  %v5142_v9 = vrot.slane %v13720_v58, 7  ;;  %v4708_v34 = vadd.f32 %v13612_v13, %v4610_v55 }
 0x53c   : > { %v4933_v2 = vsel %vm3414_vm2, %v4930_v38, %v4932_v1  ;;  %v4827_v46 = vsel %vm3210_vm1, %v4824_v24, %v4826_v5  ;;  %v5092_v27 = vsel %vm3720_vm5, %v5089_v33, %v5091_v36  ;;  %v4880_v28 = vsel %vm3312_vm0, %v4877_v63, %v4879_v51 }
 0x53d   : > { %v4986_v59 = vsel %vm3516_vm3, %v4983_v41, %v4985_v22  ;;  %v4882_v3 = vsel %vm3312_vm0, %v4879_v51, %v4881_v44  ;;  %v5039_v16 = vsel %vm3618_vm4, %v5036_v23, %v5038_v32  ;;  %v5143_v61 = vsel %vm3822_vm6, %v5140_v50, %v5142_v9 }
 0x53e   : > { %v5040_v24 = vrot.slane %v13746_v0, 5  ;;  %v13774_v31 = vadd.f32 %v13670_v47, %v4708_v34  ;;  %v4935_v20 = vsel %vm3414_vm2, %v4932_v1, %v4934_v4  ;;  %v4829_v37 = vsel %vm3210_vm1, %v4826_v5, %v4828_v39 }
 0x53f   : > { %v5093_v13 = vrot.slane %v13746_v0, 6  ;;  %v4987_v47 = vrot.slane %v13746_v0, 4  ;;  %v5145_v29 = vsel %vm3822_vm6, %v5142_v9, %v5144_v52  ;;  %v4938_v51 = vrot.slane %v13686_v26, 3 }
 0x540   : > { %v5041_v62 = vsel %vm3618_vm4, %v5038_v32, %v5040_v24  ;;  %v4830_v19 = vrot.slane %v13774_v31, 1  ;;  %v4989_v63 = vrot.slane %v13774_v31, 4  ;;  %v4883_v53 = vrot.slane %v13774_v31, 2 }
 0x541   : > { %v5094_v41 = vsel %vm3720_vm5, %v5091_v36, %v5093_v13  ;;  %v4988_v57 = vsel %vm3516_vm3, %v4985_v22, %v4987_v47  ;;  %v5146_v38 = vrot.slane %v13774_v31, 7  ;;  %v4936_v23 = vrot.slane %v13774_v31, 3 }
 0x542   : > { %5156 = vrot.lane.b32.xlu2 %v5141_v6, %s11854_s30  ;;  %v4831_v56 = vsel %vm3210_vm1, %v4828_v39, %v4830_v19  ;;  %v4990_v7 = vsel %vm3516_vm3, %v4987_v47, %v4989_v63  ;;  %v4884_v43 = vsel %vm3312_vm0, %v4881_v44, %v4883_v53  ;;  %v5042_v30 = vrot.slane %v13774_v31, 5 }
 0x543   : > { %4946 = vrot.lane.b32.xlu1 %v4931_v42, %s14981_s13  ;;  %5052 = vrot.lane.b32.xlu0 %v5037_v40, %s15016_s16  ;;  %v5147_v6 = vsel %vm3822_vm6, %v5144_v52, %v5146_v38  ;;  %v4937_v42 = vsel %vm3414_vm2, %v4934_v4, %v4936_v23 }
 0x544   : > { %v5043_v40 = vsel %vm3618_vm4, %v5040_v24, %v5042_v30 }
 0x54a   : > { %4948 = vrot.lane.b32.xlu2 %v4933_v2, %s14981_s13 }
 0x54b   : > { %5105 = vrot.lane.b32.xlu1 %v5090_v60, %s15017_s22  ;;  %4842 = vrot.lane.b32.xlu0 %v4827_v46, %s11856_s15  ;;  %v5095_v46 = vrot.slane %v13774_v31, 6 }
 0x552   : > { %5107 = vrot.lane.b32.xlu2 %v5092_v27, %s15017_s22  ;;  %v10162_v27 = vld [vmem:[%s14964_s9 + $0x8] sm:$0x7] }
 0x553   : > { %4895 = vrot.lane.b32.xlu1 %v4880_v28, %s11855_s12  ;;  %5001 = vrot.lane.b32.xlu0 %v4986_v59, %s14979_s14  ;;  %v13826_v14 = vperm.slane %v10162_v27, 0  ;;  %v13836_v55 = vperm.slane %v10162_v27, 2 }
 0x554   : > { %v13754_v11 = vpop.permute.xlu2 %5150 }
 0x55a   : > { %4897 = vrot.lane.b32.xlu2 %v4882_v3, %s11855_s12  ;;  %v13830_v3 = vperm.slane %v10162_v27, 1  ;;  %v11282_v27 = vld [vmem:[%s14959_s4] sm:$0xff] }
 0x55b   : > { %5054 = vrot.lane.b32.xlu1 %v5039_v16, %s15016_s16  ;;  %5158 = vrot.lane.b32.xlu0 %v5143_v61, %s11854_s30  ;;  %v4886_v61 = vsel %vm3312_vm0, %v4883_v53, %v4885_v45 }
 0x55c   : > { %v4835_v54 = vpop.permute.xlu2 %4834  ;;  %5349 = vmatpush.bf16.msrb.mxu1 %v11282_v27 }
 0x55d   : > { %v4861_v1 = vadd.f32 %v4835_v54, %v13605_v21  ;;  %v5096_v21 = vsel %vm3720_vm5, %v5093_v13, %v5095_v46  ;;  %v4832_v54 = vrot.slane %v13686_v26, 1 }
 0x562   : > { %5056 = vrot.lane.b32.xlu2 %v5041_v62, %s15016_s16  ;;  %v5045_v62 = vsel %vm3618_vm4, %v5042_v30, %v5044_v49 }
 0x563   : > { %4950 = vrot.lane.b32.xlu0 %v4935_v20, %s14981_s13  ;;  %4844 = vrot.lane.b32.xlu1 %v4829_v37, %s11856_s15  ;;  %v4991_v20 = vrot.slane %v13686_v26, 4  ;;  %v4833_v37 = vsel %vm3210_vm1, %v4830_v19, %v4832_v54 }
 0x564   : > { %v4888_v10 = vpop.permute.xlu2 %4887 }
 0x565   : > { %v4914_v5 = vadd.f32 %v4888_v10, %v4861_v1 }
 0x56a   : > { %4846 = vrot.lane.b32.xlu2 %v4831_v56, %s11856_s15  ;;  %v5097_v56 = vrot.slane %v13686_v26, 6 }
 0x56b   : > { %5109 = vrot.lane.b32.xlu0 %v5094_v41, %s15017_s22  ;;  %5003 = vrot.lane.b32.xlu1 %v4988_v57, %s14979_s14  ;;  %v4939_v57 = vsel %vm3414_vm2, %v4936_v23, %v4938_v51 }
 0x56c   : > { %v4941_v18 = vpop.permute.xlu2 %4940  ;;  %v5098_v23 = vsel %vm3720_vm5, %v5095_v46, %v5097_v56 }
 0x56d   : > { %v4967_v36 = vadd.f32 %v4941_v18, %v4914_v5  ;;  %v4992_v18 = vsel %vm3516_vm3, %v4989_v63, %v4991_v20 }
 0x572   : > { %5005 = vrot.lane.b32.xlu2 %v4990_v7, %s14979_s14 }
 0x573   : > { %5160 = vrot.lane.b32.xlu1 %v5145_v29, %s11854_s30  ;;  %4899 = vrot.lane.b32.xlu0 %v4884_v43, %s11855_s12  ;;  %v5148_v29 = vrot.slane %v13686_v26, 7 }
 0x574   : > { %v4994_v35 = vpop.permute.xlu2 %4993 }
 0x575   : > { %v4837_v50 = vpop.permute.xlu0 %4836  ;;  %v5020_v22 = vadd.f32 %v4994_v35, %v4967_v36  ;;  %v5149_v63 = vsel %vm3822_vm6, %v5146_v38, %v5148_v29  ;;  %v11289_v38 = vld [vmem:[%s14959_s4 + $0x18] sm:$0xff]  ;;  %v11284_v36 = vld [vmem:[#allocation2 + $0x8] sm:$0xff] }
 0x576   : > { %v4862_v41 = vadd.f32 %v4837_v50, %v13594_v25  ;;  %5472 = vmatpush.bf16.msrb.mxu3 %v11289_v38 }
 0x57a   : > { %5162 = vrot.lane.b32.xlu2 %v5147_v6, %s11854_s30 }
 0x57b   : > { %4952 = vrot.lane.b32.xlu1 %v4937_v42, %s14981_s13  ;;  %5058 = vrot.lane.b32.xlu0 %v5043_v40, %s15016_s16 }
 0x57c   : > { %v5047_v33 = vpop.permute.xlu2 %5046 }
 0x57d   : > { %v4890_v2 = vpop.permute.xlu0 %4889  ;;  %v4839_v60 = vpop.permute.xlu1 %4838  ;;  %v5073_v28 = vadd.f32 %v5047_v33, %v5020_v22 }
 0x57e   : > { %v4915_v19 = vadd.f32 %v4890_v2, %v4862_v41  ;;  %v4863_v25 = vadd.f32 %v4839_v60, %v13609_v17  ;;  %v11286_v2 = vld [vmem:[%s14959_s4 + $0x10] sm:$0xff] }
 0x57f   : > { %5408 = vmatpush.bf16.msrb.mxu2 %v11286_v2 }
 0x582   : > { %4956 = vrot.lane.b32.xlu2 %v4938_v51, %s14981_s13  ;;  %10193 = vmatmul.msk.bf16.vlgmr.msrb.gmra.mxu2 %vm3997_vm7, %v11284_v36 }
 0x583   : > { %5111 = vrot.lane.b32.xlu1 %v5096_v21, %s15017_s22  ;;  %4903 = vrot.lane.b32.xlu0 %v4885_v45, %s11855_s12  ;;  %v11283_v21 = vld [vmem:[%s14959_s4 + $0x8] sm:$0xff] }
 0x584   : > { %v5100_v59 = vpop.permute.xlu2 %5099  ;;  %5306 = vmatpush.bf16.msrb.mxu0 %v11283_v21 }
 0x585   : > { %v5126_v44 = vadd.f32 %v5100_v59, %v5073_v28  ;;  %v4943_v32 = vpop.permute.xlu0 %4942  ;;  %v4892_v9 = vpop.permute.xlu1 %4891 }
 0x586   : > { %v4968_v7 = vadd.f32 %v4943_v32, %v4915_v19  ;;  %v4916_v30 = vadd.f32 %v4892_v9, %v4863_v25  ;;  %v11683_v9 = vld [vmem:[#allocation2 + $0x4] sm:$0xff]  }
 0x587   : > { %v5177_v8 = vadd.f32 %v13754_v11, %v5126_v44  ;;  %10169 = vmatmul.msk.bf16.vlgmr.msrb.gmra.mxu0 %vm3997_vm7, %v11683_v9  ;;  %v13899_v25 = vld [vmem:[#allocation2 + $0x8] sm:$0xff]  }
 0x589   : > { %v5189_v16 = vadd.f32 %v13826_v14, %v5177_v8 }
 0x58a   : > { %4901 = vrot.lane.b32.xlu2 %v4886_v61, %s11855_s12 }
 0x58b   : > { %v5198_v24 = vmax.f32 %v5189_v16, 0.0  ;;  %5062 = vrot.lane.b32.xlu0 %v5044_v49, %s15016_s16  ;;  %4850 = vrot.lane.b32.xlu1 %v4832_v54, %s11856_s15  ;;  %v13887_v49 = vld [vmem:[#allocation2] sm:$0xff]  }
 0x58c   : > { %v4841_v47 = vpop.permute.xlu2 %4840  ;;  %10176 = vmatmul.msk.bf16.vlgmr.msrb.gmra.mxu1 %vm3997_vm7, %v13887_v49 }
 0x58d   : > { %v5208_v11 = vmul.f32 %v13830_v3, %v5198_v24  ;;  %v4996_v4 = vpop.permute.xlu0 %4995  ;;  %v4945_v39 = vpop.permute.xlu1 %4944  ;;  %v4864_v16 = vadd.f32 %v4841_v47, %v13621_v15 }
 0x58e   : > { %v5021_v43 = vadd.f32 %v4996_v4, %v4968_v7  ;;  %v4969_v1 = vadd.f32 %v4945_v39, %v4916_v30 }
 0x58f   : > { %v5218_v34 = vadd.f32 %v13836_v55, %v5208_v11 }
 0x591   : > { %5227 = vst.msk [vmem:[#allocation3 - $0x1] sm:$0xfe] %vm3995_vm8, %v5218_v34 }
 0x592   : > { %5060 = vrot.lane.b32.xlu2 %v5045_v62, %s15016_s16 }
 0x593   : > { %5009 = vrot.lane.b32.xlu1 %v4991_v20, %s14979_s14  ;;  %4848 = vrot.lane.b32.xlu0 %v4833_v37, %s11856_s15 }
 0x594   : > { %v5000_v35 = vpop.permute.xlu2 %4999 }
 0x595   : > { %v5049_v10 = vpop.permute.xlu0 %5048  ;;  %v4998_v13 = vpop.permute.xlu1 %4997 }
 0x596   : > { %v5074_v50 = vadd.f32 %v5049_v10, %v5021_v43  ;;  %v5022_v5 = vadd.f32 %v4998_v13, %v4969_v1 }
 0x59a   : > { %5115 = vrot.lane.b32.xlu2 %v5097_v56, %s15017_s22 }
 0x59b   : > { %4954 = vrot.lane.b32.xlu1 %v4939_v57, %s14981_s13  ;;  %5007 = vrot.lane.b32.xlu0 %v4992_v18, %s14979_s14 }
 0x59c   : > { %v5157_v51 = vpop.permute.xlu2 %5156  ;;  %10177 = vmatmul.msk.bf16.gmra.mxu1 %vm3997_vm7, %v13899_v25 }
 0x59d   : > { %v5102_v52 = vpop.permute.xlu0 %5101  ;;  %v5051_v53 = vpop.permute.xlu1 %5050 }
 0x59e   : > { %v5127_v6 = vadd.f32 %v5102_v52, %v5074_v50  ;;  %v5075_v60 = vadd.f32 %v5051_v53, %v5022_v5 }
 0x5a3   : > { %5113 = vrot.lane.b32.xlu1 %v5098_v23, %s15017_s22  ;;  %5164 = vrot.lane.b32.xlu0 %v5149_v63, %s11854_s30 }
 0x5a4   : > { %v4949_v39 = vpop.permute.xlu2 %4948 }
 0x5a5   : > { %v5153_v42 = vpop.permute.xlu0 %5152  ;;  %v5104_v40 = vpop.permute.xlu1 %5103 }
 0x5a6   : > { %v5178_v33 = vadd.f32 %v5153_v42, %v5127_v6  ;;  %v5128_v45 = vadd.f32 %v5104_v40, %v5075_v60 }
 0x5a8   : > { %v5190_v17 = vadd.f32 %v13826_v14, %v5178_v33 }
 0x5aa   : > { %v5199_v46 = vmax.f32 %v5190_v17, 0.0 }
 0x5ab   : > { %5166 = vrot.lane.b32.xlu1 %v5148_v29, %s11854_s30 }
 0x5ac   : > { %v5209_v22 = vmul.f32 %v13830_v3, %v5199_v46  ;;  %v5108_v15 = vpop.permute.xlu2 %5107 }
 0x5ad   : > { %v5155_v28 = vpop.permute.xlu1 %5154  ;;  %v4894_v59 = vpop.permute.xlu0 %4893 }
 0x5ae   : > { %v5219_v44 = vadd.f32 %v13836_v55, %v5209_v22  ;;  %v5179_v32 = vadd.f32 %v5155_v28, %v5128_v45  ;;  %v4917_v24 = vadd.f32 %v4894_v59, %v4864_v16 }
 0x5b0   : > { %5228 = vst.msk [vmem:[#allocation3 + $0x7] sm:$0xff] %vm3997_vm7, %v5219_v44  ;;  %v5191_v8 = vadd.f32 %v13826_v14, %v5179_v32 }
 0x5b2   : > { %v5200_v61 = vmax.f32 %v5191_v8, 0.0 }
 0x5b4   : > { %v5210_v54 = vmul.f32 %v13830_v3, %v5200_v61  ;;  %v4898_v30 = vpop.permute.xlu2 %4897 }
 0x5b5   : > { %v4947_v11 = vpop.permute.xlu1 %4946  ;;  %v5053_v4 = vpop.permute.xlu0 %5052 }
 0x5b6   : > { %v5220_v34 = vadd.f32 %v13836_v55, %v5210_v54  ;;  %v4970_v62 = vadd.f32 %v4947_v11, %v4917_v24 }
 0x5b7   : > { %v5236_v41 = vld [vmem:[#allocation3] ss:$2 sm:$0xff] }
 0x5b8   : > { %5229 = vst.msk [vmem:[#allocation3 + $0xf] sm:$0xff] %vm3997_vm7, %v5220_v34  ;;  %v5023_v20 = vadd.f32 %v5000_v35, %v4970_v62 }
 0x5ba   : > { %v5076_v37 = vadd.f32 %v5053_v4, %v5023_v20 }
 0x5bc   : > { %v5057_v17 = vpop.permute.xlu2 %5056 }
 0x5bd   : > { %v5106_v10 = vpop.permute.xlu1 %5105  ;;  %v4843_v13 = vpop.permute.xlu0 %4842 }
 0x5be   : > { %v5129_v56 = vadd.f32 %v5106_v10, %v5076_v37  ;;  %v4865_v7 = vadd.f32 %v4843_v13, %v13677_v48 }
 0x5bf   : > { %v5240_v57 = vld [vmem:[#allocation3 + $0x1] ss:$2 sm:$0xff] }
 0x5c0   : > { %v5244_v47 = vmax.f32 %v5236_v41, %v5240_v57  ;;  %v5180_v18 = vadd.f32 %v5157_v51, %v5129_v56  ;;  %v11531_v56 = vunpack.c.h.b16 %v13899_v25 }
 0x5c2   : > { %v5248_v19 = vpack.c.bf16 %v5244_v47, %v5244_v47  ;;  %v5192_v52 = vadd.f32 %v13826_v14, %v5180_v18 }
 0x5c4   : > { %5252 = vst.msk [vmem:[#allocation2 + $0x10] sm:$0xf] %vm4054_vm9, %v5248_v19  ;;  %v5201_v53 = vmax.f32 %v5192_v52, 0.0  ;;  %v4847_v59 = vpop.permute.xlu2 %4846 }
 0x5c5   : > { %v4896_v29 = vpop.permute.xlu1 %4895  ;;  %v5002_v43 = vpop.permute.xlu0 %5001  ;;  %v4867_v34 = vadd.f32 %v4847_v59, %v13746_v0  ;;  %v11292_v0 = vld [vmem:[%s14959_s4 + $0x20] sm:$0xff] }
 0x5c6   : > { %v5211_v35 = vmul.f32 %v13830_v3, %v5201_v53  ;;  %v4918_v50 = vadd.f32 %v4896_v29, %v4865_v7  ;;  %5536 = vmatpush.bf16.msra.mxu0 %v11292_v0 }
 0x5c8   : > { %v5221_v23 = vadd.f32 %v13836_v55, %v5211_v35  ;;  %v4971_v63 = vadd.f32 %v4949_v39, %v4918_v50 }
 0x5ca   : > { %5230 = vst.msk [vmem:[#allocation3 + $0x17] sm:$0xff] %vm3997_vm7, %v5221_v23  ;;  %v5024_v42 = vadd.f32 %v5002_v43, %v4971_v63  ;;  %v11295_v43 = vld [vmem:[%s14959_s4 + $0x28] sm:$0xff] }
 0x5cb   : > { %v11287_v6 = vld [vmem:[#allocation2 + $0xc] sm:$0xff]  ;;  %5600 = vmatpush.bf16.msra.mxu1 %v11295_v43  ;;  %v11297_v43 = vld [vmem:[#allocation2 + $0x20] sm:$0xff] }
 0x5cc   : > { %10210 = vmatmul.msk.bf16.vlgmr.msrb.gmra.mxu3 %vm3997_vm7, %v11287_v6  ;;  %v5006_v4 = vpop.permute.xlu2 %5005 }
 0x5cd   : > { %v5055_v40 = vpop.permute.xlu1 %5054  ;;  %v5159_v48 = vpop.permute.xlu0 %5158 }
 0x5ce   : > { %v5077_v1 = vadd.f32 %v5055_v40, %v5024_v42 }
 0x5d0   : > { %v5130_v33 = vadd.f32 %v5108_v15, %v5077_v1 }
 0x5d1   : > { %v5237_v9 = vld [vmem:[#allocation3 + $0x10] ss:$2 sm:$0xff] }
 0x5d2   : > { %v5181_v5 = vadd.f32 %v5159_v48, %v5130_v33 }
 0x5d4   : > { %v5193_v2 = vadd.f32 %v13826_v14, %v5181_v5  ;;  %v5163_v52 = vpop.permute.xlu2 %5162 }
 0x5d5   : > { %v4951_v60 = vpop.permute.xlu0 %4950  ;;  %v4845_v46 = vpop.permute.xlu1 %4844 }
 0x5d6   : > { %v5202_v38 = vmax.f32 %v5193_v2, 0.0  ;;  %v4866_v36 = vadd.f32 %v4845_v46, %v13720_v58 }
 0x5d8   : > { %v5212_v51 = vmul.f32 %v13830_v3, %v5202_v38  ;;  %v4919_v22 = vadd.f32 %v4898_v30, %v4866_v36 }
 0x5da   : > { %v5222_v45 = vadd.f32 %v13836_v55, %v5212_v51  ;;  %v4972_v21 = vadd.f32 %v4951_v60, %v4919_v22 }
 0x5dc   : > { %5231 = vst.msk [vmem:[#allocation3 + $0x1f] sm:$0xff] %vm3997_vm7, %v5222_v45  ;;  %v4957_v6 = vpop.permute.xlu2 %4956 }
 0x5dd   : > { %v5110_v27 = vpop.permute.xlu0 %5109  ;;  %v5004_v28 = vpop.permute.xlu1 %5003 }
 0x5de   : > { %v5025_v44 = vadd.f32 %v5004_v28, %v4972_v21 }
 0x5e0   : > { %v5078_v32 = vadd.f32 %v5057_v17, %v5025_v44 }
 0x5e2   : > { %v5131_v61 = vadd.f32 %v5110_v27, %v5078_v32 }
 0x5e3   : > { %v5241_v8 = vld [vmem:[#allocation3 + $0x11] ss:$2 sm:$0xff] }
 0x5e4   : > { %v5245_v16 = vmax.f32 %v5237_v9, %v5241_v8  ;;  %v4902_v46 = vpop.permute.xlu2 %4901 }
 0x5e5   : > { %v5161_v54 = vpop.permute.xlu1 %5160  ;;  %v4900_v24 = vpop.permute.xlu0 %4899 }
 0x5e6   : > { %v5249_v58 = vpack.c.bf16 %v5245_v16, %v5245_v16  ;;  %v5182_v11 = vadd.f32 %v5161_v54, %v5131_v61  ;;  %v4920_v37 = vadd.f32 %v4900_v24, %v4867_v34  ;;  %v11301_v24 = vld [vmem:[%s14959_s4 + $0x38] sm:$0xff] }
 0x5e7   : > { %5728 = vmatpush.bf16.msra.mxu3 %v11301_v24 }
 0x5e8   : > { %5253 = vst.msk [vmem:[#allocation2 + $0x14] sm:$0xf] %vm4054_vm9, %v5249_v58  ;;  %v5194_v39 = vadd.f32 %v13826_v14, %v5182_v11 }
 0x5ea   : > { %v5203_v62 = vmax.f32 %v5194_v39, 0.0 }
 0x5ec   : > { %v5213_v20 = vmul.f32 %v13830_v3, %v5203_v62  ;;  %v5061_v8 = vpop.permute.xlu2 %5060 }
 0x5ed   : > { %v4953_v10 = vpop.permute.xlu1 %4952  ;;  %v5059_v13 = vpop.permute.xlu0 %5058 }
 0x5ee   : > { %v5223_v41 = vadd.f32 %v13836_v55, %v5213_v20  ;;  %v4973_v57 = vadd.f32 %v4953_v10, %v4920_v37 }
 0x5ef   : > { %v11576_v15 = vld [vmem:[#allocation2 + $0x10] sm:$0xff]  }
 0x5f0   : > { %v11285_v47 = vld [vmem:[#allocation2 + $0x10] sm:$0xff]  ;;  %v11534_v18 = vunpack.c.l.b16 %v11576_v15  ;;  %5232 = vst.msk [vmem:[#allocation3 + $0x27] sm:$0xff] %vm3997_vm7, %v5223_v41  ;;  %v5026_v19 = vadd.f32 %v5006_v4, %v4973_v57  ;;  %v11535_v33 = vunpack.c.h.b16 %v11576_v15 }
 0x5f1   : > { %10194 = vmatmul.msk.bf16.gmra.mxu2 %vm3997_vm7, %v11285_v47  ;;  %v11290_v61 = vld [vmem:[#allocation2 + $0x10] sm:$0xff] }
 0x5f2   : > { %v5282_v53 = vpack.c.b16 %v11534_v18, %v11531_v56  ;;  %v5326_v7 = vpack.c.b16 %v11534_v18, %v11534_v18  ;;  %v5079_v29 = vadd.f32 %v5059_v13, %v5026_v19  ;;  %v5283_v17 = vpack.c.b16 %v11535_v33, %v11535_v33 }
 0x5f4   : > { %10170 = vmatmul.msk.bf16.gmra.mxu0 %vm3997_vm7, %v5282_v53  ;;  %10178 = vmatmul.msk.bf16.gmra.mxu1 %vm3997_vm7, %v5326_v7  ;;  %v5116_v41 = vpop.permute.xlu2 %5115 }
 0x5f5   : > { %v5112_v35 = vpop.permute.xlu1 %5111  ;;  %v4904_v50 = vpop.permute.xlu0 %4903 }
 0x5f6   : > { %v5132_v23 = vadd.f32 %v5112_v35, %v5079_v29  ;;  %v5561_v35 = vld [vmem:[#allocation2 + $0x24] sm:$0xff]  }
 0x5f7   : > { %v5238_v36 = vld [vmem:[#allocation3 + $0x20] ss:$2 sm:$0xff]  ;;  %5998 = vst [vmem:[#allocation2 + $0x24] sm:$0xf] %v15015_v12 }
 0x5f8   : > { %v5183_v63 = vadd.f32 %v5163_v52, %v5132_v23 }
 0x5fa   : > { %v5195_v30 = vadd.f32 %v13826_v14, %v5183_v63 }
 0x5fc   : > { %v5204_v42 = vmax.f32 %v5195_v30, 0.0 }
 0x5fd   : > { %v5063_v40 = vpop.permute.xlu0 %5062  ;;  %v4851_v48 = vpop.permute.xlu1 %4850 }
 0x5fe   : > { %v5214_v1 = vmul.f32 %v13830_v3, %v5204_v42  ;;  %v4869_v45 = vadd.f32 %v4851_v48, %v13686_v26  ;;  %v11298_v26 = vld [vmem:[%s14959_s4 + $0x30] sm:$0xff] }
 0x5ff   : > { %5664 = vmatpush.bf16.msra.mxu2 %v11298_v26 }
 0x600   : > { %v5224_v5 = vadd.f32 %v13836_v55, %v5214_v1  ;;  %v4922_v44 = vadd.f32 %v4904_v50, %v4869_v45  ;;  %v5638_v45 = vunpack.c.h.b16 %v5561_v35 }
 0x602   : > { %5233 = vst.msk [vmem:[#allocation3 + $0x2f] sm:$0xff] %vm3997_vm7, %v5224_v5  ;;  %v4975_v16 = vadd.f32 %v4957_v6, %v4922_v44 }
 0x604   : > { %10171 = vmatmul.msk.bf16.gmra.mxu0 %vm3997_vm7, %v5283_v17  ;;  %v5308_v50 = vpop.f32.mrf.mxu0 }
 0x605   : > { %v5010_v2 = vpop.permute.xlu1 %5009  ;;  %v4849_v60 = vpop.permute.xlu0 %4848 }
 0x606   : > { %v4868_v38 = vadd.f32 %v4849_v60, %v13774_v31  ;;  %v5028_v54 = vadd.f32 %v5010_v2, %v4975_v16  ;;  %v11300_v2 = vld [vmem:[#allocation2 + $0x24] sm:$0xff] }
 0x607   : > { %5999 = vst [vmem:[#allocation2 + $0x28] sm:$0x3] %v15015_v12 }
 0x608   : > { %v4921_v27 = vadd.f32 %v4902_v46, %v4868_v38  ;;  %v5081_v37 = vadd.f32 %v5063_v40, %v5028_v54  ;;  %v5574_v46 = vunpack.c.l.b16 %v5561_v35 }
 0x609   : > { %v5242_v51 = vld [vmem:[#allocation3 + $0x21] ss:$2 sm:$0xff]  ;;  %v5351_v23 = vpop.f32.mrf.mxu1 }
 0x60a   : > { %v5246_v22 = vmax.f32 %v5238_v36, %v5242_v51  ;;  %v5134_v15 = vadd.f32 %v5116_v41, %v5081_v37  ;;  %v5352_v6 = vadd.f32 %v5351_v23, %v5308_v50  ;;  %v5577_v36 = vpack.c.b16 %v5574_v46, %v5574_v46 }
 0x60c   : > { %v5250_v21 = vpack.c.bf16 %v5246_v22, %v5246_v22  ;;  %v5310_v44 = vpop.f32.mrf.mxu0 }
 0x60d   : > { %v4955_v28 = vpop.permute.xlu1 %4954  ;;  %v5008_v59 = vpop.permute.xlu0 %5007 }
 0x60e   : > { %5254 = vst.msk [vmem:[#allocation2 + $0x18] sm:$0xf] %vm4054_vm9, %v5250_v21  ;;  %v4974_v32 = vadd.f32 %v4955_v28, %v4921_v27  ;;  %v5641_v21 = vpack.c.b16 %v5638_v45, %v5638_v45  ;;  %v5689_v28 = vld [vmem:[#allocation2 + $0x2c] sm:$0xf] }
 0x610   : > { %v5027_v9 = vadd.f32 %v5008_v59, %v4974_v32  ;;  %v5702_v32 = vunpack.c.l.b16 %v5689_v28 }
 0x611   : > { %v5353_v22 = vpop.f32.mrf.mxu1 }
 0x612   : > { %v5080_v31 = vadd.f32 %v5061_v8, %v5027_v9  ;;  %v5705_v8 = vpack.c.b16 %v5702_v32, %v5702_v32 }
 0x614   : > { %10227 = vmatmul.msk.bf16.vlgmr.msra.gmra.mxu0 %vm3997_vm7, %v11290_v61 }
 0x615   : > { %v5114_v58 = vpop.permute.xlu1 %5113  ;;  %v11288_v11 = vld [vmem:[#allocation2 + $0x14] sm:$0xff]  ;;  %v5165_v20 = vpop.permute.xlu0 %5164 }
 0x616   : > { %v11293_v4 = vld [vmem:[#allocation2 + $0x14] sm:$0xff]  ;;  %v5133_v34 = vadd.f32 %v5114_v58, %v5080_v31  ;;  %10211 = vmatmul.msk.bf16.gmra.mxu3 %vm3997_vm7, %v11288_v11 }
 0x617   : > { %v5369_v39 = vld [vmem:[#allocation2 + $0x18] sm:$0xf]  ;;  %10244 = vmatmul.msk.bf16.vlgmr.msra.gmra.mxu1 %vm3997_vm7, %v11293_v4 }
 0x618   : > { %v5382_v62 = vunpack.c.l.b16 %v5369_v39  ;;  %5995 = vst [vmem:[#allocation2 + $0x18] sm:$0xf] %v15015_v12  ;;  %v5184_v10 = vadd.f32 %v5165_v20, %v5133_v34 }
 0x619   : > { %v5356_v27 = vpop.f32.mrf.mxu1 }
 0x61a   : > { %v5385_v13 = vpack.c.b16 %v5382_v62, %v5382_v62  ;;  %v5196_v56 = vadd.f32 %v13826_v14, %v5184_v10 }
 0x61c   : > { %10195 = vmatmul.msk.bf16.gmra.mxu2 %vm3997_vm7, %v5385_v13  ;;  %v5205_v57 = vmax.f32 %v5196_v56, 0.0 }
 0x61d   : > { %v5167_v47 = vpop.permute.xlu1 %5166 }
 0x61e   : > { %v5215_v18 = vmul.f32 %v13830_v3, %v5205_v57  ;;  %v5185_v19 = vadd.f32 %v5167_v47, %v5134_v15 }
 0x620   : > { %v5225_v0 = vadd.f32 %v13836_v55, %v5215_v18  ;;  %v5197_v52 = vadd.f32 %v13826_v14, %v5185_v19  ;;  %v5410_v14 = vpop.f32.mrf.mxu2 }
 0x621   : > { %v13956_v40 = vadd.f32 %v5410_v14, %v5352_v6  ;;  %v5358_v59 = vpop.f32.mrf.mxu1 }
 0x622   : > { %5234 = vst.msk [vmem:[#allocation3 + $0x37] sm:$0xff] %vm3997_vm7, %v5225_v0  ;;  %v5206_v53 = vmax.f32 %v5197_v52, 0.0 }
 0x624   : > { %v5216_v7 = vmul.f32 %v13830_v3, %v5206_v53 }
 0x626   : > { %v5226_v29 = vadd.f32 %v13836_v55, %v5216_v7 }
 0x628   : > { %5235 = vst.msk [vmem:[#allocation3 + $0x3f] sm:$0x1] %vm4013_vm10, %v5226_v29  ;;  %v5412_v9 = vpop.f32.mrf.mxu2 }
 0x629   : > { %v5239_v63 = vld [vmem:[#allocation3 + $0x30] ss:$2 sm:$0xff] }
 0x62f   : > { %v5243_v30 = vld [vmem:[#allocation3 + $0x31] ss:$2 sm:$0xff] }
 0x630   : > { %v5247_v42 = vmax.f32 %v5239_v63, %v5243_v30  ;;  %v5354_v63 = vadd.f32 %v5353_v22, %v5310_v44 }
 0x632   : > { %v5251_v48 = vpack.c.bf16 %v5247_v42, %v5247_v42  ;;  %v5425_v14 = vadd.f32 %v5412_v9, %v5354_v63 }
 0x634   : > { %5255 = vst.msk [vmem:[#allocation2 + $0x1c] sm:$0xf] %vm4054_vm9, %v5251_v48 }
 0x63b   : > { %v11291_v3 = vld [vmem:[#allocation2 + $0x18] sm:$0xff] }
 0x63c   : > { %v11294_v55 = vld [vmem:[#allocation2 + $0x1c] sm:$0xff]  ;;  %10228 = vmatmul.msk.bf16.gmra.mxu0 %vm3997_vm7, %v11291_v3 }
 0x63d   : > { %v11296_v1 = vld [vmem:[#allocation2 + $0x18] sm:$0xff]  ;;  %10245 = vmatmul.msk.bf16.gmra.mxu1 %vm3997_vm7, %v11294_v55 }
 0x63e   : > { %v5433_v33 = vld [vmem:[#allocation2 + $0x1c] sm:$0xff]   ;;  %10261 = vmatmul.msk.bf16.vlgmr.msra.gmra.mxu2 %vm3997_vm7, %v11296_v1 }
 0x63f   : > { %v5446_v5 = vunpack.c.l.b16 %v5433_v33  ;;  %v11299_v17 = vld [vmem:[#allocation2 + $0x1c] sm:$0xff]  ;;  %v5510_v38 = vunpack.c.h.b16 %v5433_v33 }
 0x640   : > { %5996 = vst [vmem:[#allocation2 + $0x1c] sm:$0xf] %v15015_v12 }
 0x641   : > { %5997 = vst [vmem:[#allocation2 + $0x20] sm:$0xf] %v15015_v12  ;;  %v5449_v60 = vpack.c.b16 %v5446_v5, %v5446_v5  ;;  %v5513_v51 = vpack.c.b16 %v5510_v38, %v5510_v38 }
 0x643   : > { %10212 = vmatmul.msk.bf16.gmra.mxu3 %vm3997_vm7, %v5449_v60 }
 0x64c   : > { %10229 = vmatmul.msk.bf16.gmra.mxu0 %vm3997_vm7, %v5513_v51 }
 0x64d   : > { %10246 = vmatmul.msk.bf16.gmra.mxu1 %vm3997_vm7, %v5577_v36 }
 0x64e   : > { %10262 = vmatmul.msk.bf16.gmra.mxu2 %vm3997_vm7, %v11297_v43 }
 0x64f   : > { %v5474_v37 = vpop.f32.mrf.mxu3 }
 0x653   : > { %10278 = vmatmul.msk.bf16.vlgmr.msra.gmra.mxu3 %vm3997_vm7, %v11299_v17  ;;  %v5488_v17 = vadd.f32 %v5474_v37, %v13956_v40 }
 0x657   : > { %v5476_v41 = vpop.f32.mrf.mxu3 }
 0x658   : > { %v5489_v1 = vadd.f32 %v5476_v41, %v5425_v14 }
 0x65e   : > { %10263 = vmatmul.msk.bf16.gmra.mxu2 %vm3997_vm7, %v5641_v21 }
 0x663   : > { %10279 = vmatmul.msk.bf16.gmra.mxu3 %vm3997_vm7, %v11300_v2 }
 0x671   : > { %v5313_v16 = vpop.f32.mrf.mxu0  ;;  %v5361_v61 = vpop.f32.mrf.mxu1 }
 0x672   : > { %v5357_v54 = vadd.f32 %v5356_v27, %v5313_v16 }
 0x673   : > { %10280 = vmatmul.msk.bf16.gmra.mxu3 %vm3997_vm7, %v5705_v8 }
 0x674   : > { %v5415_v31 = vpop.f32.mrf.mxu2 }
 0x675   : > { %v5426_v26 = vadd.f32 %v5415_v31, %v5357_v54 }
 0x679   : > { %v5315_v24 = vpop.f32.mrf.mxu0  ;;  %v5363_v58 = vpop.f32.mrf.mxu1 }
 0x67a   : > { %v5359_v22 = vadd.f32 %v5358_v59, %v5315_v24 }
 0x67c   : > { %v5417_v34 = vpop.f32.mrf.mxu2 }
 0x67d   : > { %v5427_v32 = vadd.f32 %v5417_v34, %v5359_v22 }
 0x681   : > { %v5318_v11 = vpop.f32.mrf.mxu0 }
 0x682   : > { %v5362_v4 = vadd.f32 %v5361_v61, %v5318_v11 }
 0x689   : > { %v5320_v39 = vpop.f32.mrf.mxu0 }
 0x691   : > { %v5538_v13 = vpop.f32.mrf.mxu0 }
 0x692   : > { %v5552_v46 = vadd.f32 %v5538_v13, %v5488_v17 }
 0x694   : > { %v5602_v56 = vpop.f32.mrf.mxu1 }
 0x695   : > { %v5616_v27 = vadd.f32 %v5602_v56, %v5552_v46 }
 0x699   : > { %v5540_v57 = vpop.f32.mrf.mxu0  ;;  %v5479_v15 = vpop.f32.mrf.mxu3 }
 0x69a   : > { %v5553_v5 = vadd.f32 %v5540_v57, %v5489_v1  ;;  %v5490_v38 = vadd.f32 %v5479_v15, %v5426_v26 }
 0x69c   : > { %v5604_v47 = vpop.f32.mrf.mxu1 }
 0x69d   : > { %v5617_v2 = vadd.f32 %v5604_v47, %v5553_v5 }
 0x69f   : > { %v5420_v62 = vpop.f32.mrf.mxu2 }
 0x6a0   : > { %v5428_v20 = vadd.f32 %v5420_v62, %v5362_v4 }
 0x6a1   : > { %v5481_v0 = vpop.f32.mrf.mxu3 }
 0x6a2   : > { %v5491_v16 = vadd.f32 %v5481_v0, %v5427_v32 }
 0x6a7   : > { %v5422_v10 = vpop.f32.mrf.mxu2 }
 0x6b9   : > { %v5543_v18 = vpop.f32.mrf.mxu0 }
 0x6ba   : > { %v5607_v19 = vpop.f32.mrf.mxu1  ;;  %v5554_v45 = vadd.f32 %v5543_v18, %v5490_v38 }
 0x6bc   : > { %v5618_v9 = vadd.f32 %v5607_v19, %v5554_v45 }
 0x6c1   : > { %v5666_v52 = vpop.f32.mrf.mxu2  ;;  %v5545_v53 = vpop.f32.mrf.mxu0 }
 0x6c2   : > { %v5609_v7 = vpop.f32.mrf.mxu1  ;;  %v5680_v44 = vadd.f32 %v5666_v52, %v5616_v27  ;;  %v5555_v31 = vadd.f32 %v5545_v53, %v5491_v16 }
 0x6c4   : > { %v5619_v4 = vadd.f32 %v5609_v7, %v5555_v31 }
 0x6c6   : > { %v5484_v29 = vpop.f32.mrf.mxu3 }
 0x6c7   : > { %v5492_v43 = vadd.f32 %v5484_v29, %v5428_v20 }
 0x6c9   : > { %v5668_v35 = vpop.f32.mrf.mxu2  ;;  %v5548_v50 = vpop.f32.mrf.mxu0 }
 0x6ca   : > { %v5612_v23 = vpop.f32.mrf.mxu1  ;;  %v5556_v30 = vadd.f32 %v5548_v50, %v5492_v43  ;;  %v5681_v36 = vadd.f32 %v5668_v35, %v5617_v2 }
 0x6cc   : > { %v13973_v42 = vadd.f32 %v5612_v23, %v5556_v30 }
 0x6ce   : > { %v5486_v6 = vpop.f32.mrf.mxu3 }
 0x6d1   : > { %v5671_v48 = vpop.f32.mrf.mxu2  ;;  %v5550_v3 = vpop.f32.mrf.mxu0 }
 0x6d2   : > { %v5614_v55 = vpop.f32.mrf.mxu1  ;;  %v5682_v61 = vadd.f32 %v5671_v48, %v5618_v9 }
 0x6d6   : > { %v5730_v33 = vpop.f32.mrf.mxu3 }
 0x6d7   : > { %v13984_v8 = vadd.f32 %v5730_v33, %v5680_v44 }
 0x6d9   : > { %v5673_v60 = vpop.f32.mrf.mxu2  ;;  %v5754_v24 = vrot.slane %v13984_v8, 1  ;;  %v5783_v56 = vrot.slane %v13984_v8, 2  ;;  %v5812_v53 = vrot.slane %v13984_v8, 3  ;;  %v5841_v30 = vrot.slane %v13984_v8, 4 }
 0x6da   : > { %v5683_v62 = vadd.f32 %v5673_v60, %v5619_v4  ;;  %v5870_v33 = vrot.slane %v13984_v8, 5 }
 0x6de   : > { %v5732_v51 = vpop.f32.mrf.mxu3 }
 0x6df   : > { %v13976_v21 = vadd.f32 %v5732_v51, %v5681_v36  ;;  %v5899_v36 = vrot.slane %v13984_v8, 6 }
 0x6e1   : > { %v5928_v28 = vrot.slane %v13976_v21, 7  ;;  %v13982_v40 = vpop.f32.mrf.mxu2  ;;  %v5755_v54 = vrot.slane %v13976_v21, 1  ;;  %v5784_v37 = vrot.slane %v13976_v21, 2  ;;  %v5813_v19 = vrot.slane %v13976_v21, 3 }
 0x6e2   : > { %v5842_v35 = vrot.slane %v13976_v21, 4  ;;  %v5871_v3 = vrot.slane %v13976_v21, 5  ;;  %v5900_v60 = vrot.slane %v13976_v21, 6  ;;  %v5684_v22 = vadd.f32 %v13982_v40, %v13973_v42 }
 0x6e3   : > { %5935 = vrot.lane.b32.xlu2 %v5928_v28, %s11854_s30  ;;  %v5756_v11 = vsel %vm3210_vm1, %v5754_v24, %v5755_v54  ;;  %v5785_v57 = vsel %vm3312_vm0, %v5783_v56, %v5784_v37  ;;  %v5814_v7 = vsel %vm3414_vm2, %v5812_v53, %v5813_v19 }
 0x6e4   : > { %v5843_v6 = vsel %vm3516_vm3, %v5841_v30, %v5842_v35  ;;  %v5872_v5 = vsel %vm3618_vm4, %v5870_v33, %v5871_v3  ;;  %v5901_v51 = vsel %vm3720_vm5, %v5899_v36, %v5900_v60  ;;  %v10281_v33 = vld [vmem:[%s14964_s9 + $0xc] sm:$0x7] }
 0x6e6   : > { %v5735_v59 = vpop.f32.mrf.mxu3 }
 0x6e7   : > { %v13987_v26 = vadd.f32 %v5735_v59, %v5682_v61 }
 0x6e9   : > { %v5757_v58 = vrot.slane %v13987_v26, 1  ;;  %v5678_v34 = vpop.f32.mrf.mxu2  ;;  %v5786_v13 = vrot.slane %v13987_v26, 2  ;;  %v5815_v0 = vrot.slane %v13987_v26, 3  ;;  %v5844_v23 = vrot.slane %v13987_v26, 4 }
 0x6ea   : > { %v5873_v55 = vrot.slane %v13987_v26, 5  ;;  %v5902_v46 = vrot.slane %v13987_v26, 6  ;;  %v5929_v32 = vrot.slane %v13987_v26, 7 }
 0x6eb   : > { %5763 = vrot.lane.b32.xlu2 %v5756_v11, %s11856_s15  ;;  %v5758_v39 = vsel %vm3210_vm1, %v5755_v54, %v5757_v58  ;;  %v5787_v15 = vsel %vm3312_vm0, %v5784_v37, %v5786_v13  ;;  %v5816_v29 = vsel %vm3414_vm2, %v5813_v19, %v5815_v0  ;;  %v5845_v14 = vsel %vm3516_vm3, %v5842_v35, %v5844_v23  ;;  %v6002_v35 = vld [vmem:[#allocation2 + $0x8] sm:$0xff]  }
 0x6ec   : > { %5765 = vrot.lane.b32.xlu0 %v5758_v39, %s11856_s15  ;;  %v5874_v17 = vsel %vm3618_vm4, %v5871_v3, %v5873_v55  ;;  %v5903_v45 = vsel %vm3720_vm5, %v5900_v60, %v5902_v46  ;;  %v5930_v42 = vsel %vm3822_vm6, %v5928_v28, %v5929_v32 }
 0x6ee   : > { %v5737_v20 = vpop.f32.mrf.mxu3 }
 0x6ef   : > { %v13996_v10 = vadd.f32 %v5737_v20, %v5683_v62 }
 0x6f1   : > { %v5759_v41 = vrot.slane %v13996_v10, 1  ;;  %v5788_v52 = vrot.slane %v13996_v10, 2  ;;  %v5817_v63 = vrot.slane %v13996_v10, 3  ;;  %v5846_v1 = vrot.slane %v13996_v10, 4 }
 0x6f2   : > { %v5875_v38 = vrot.slane %v13996_v10, 5  ;;  %v5904_v9 = vrot.slane %v13996_v10, 6  ;;  %v5931_v61 = vrot.slane %v13996_v10, 7 }
 0x6f3   : > { %5792 = vrot.lane.b32.xlu2 %v5785_v57, %s11855_s12  ;;  %v5760_v47 = vsel %vm3210_vm1, %v5757_v58, %v5759_v41  ;;  %v5789_v43 = vsel %vm3312_vm0, %v5786_v13, %v5788_v52  ;;  %v5818_v48 = vsel %vm3414_vm2, %v5815_v0, %v5817_v63  ;;  %v5847_v2 = vsel %vm3516_vm3, %v5844_v23, %v5846_v1  ;;  %v6006_v23 = vld [vmem:[#allocation2 + $0xc] sm:$0x3] }
 0x6f4   : > { %5794 = vrot.lane.b32.xlu0 %v5787_v15, %s11855_s12  ;;  %5767 = vrot.lane.b32.xlu1 %v5760_v47, %s11856_s15  ;;  %v5876_v27 = vsel %vm3618_vm4, %v5873_v55, %v5875_v38  ;;  %v5905_v40 = vsel %vm3720_vm5, %v5902_v46, %v5904_v9  ;;  %v5932_v31 = vsel %vm3822_vm6, %v5929_v32, %v5931_v61  ;;  %v11302_v46 = vld [vmem:[%s14960_s5] sm:$0xff]  ;;  %v14122_v32 = vperm.slane %v10281_v33, 1 }
 0x6f5   : > { %6077 = vmatpush.bf16.msrb.mxu1 %v11302_v46 }
 0x6f6   : > { %v5740_v18 = vpop.f32.mrf.mxu3 }
 0x6f7   : > { %v14053_v44 = vadd.f32 %v5740_v18, %v5684_v22 }
 0x6f8   : > { %10294 = vmatmul.msk.bf16.vlgmr.msrb.gmra.mxu1 %vm3997_vm7, %v13887_v49 }
 0x6f9   : > { %v5790_v16 = vrot.slane %v14053_v44, 2  ;;  %v5877_v59 = vrot.slane %v14053_v44, 5  ;;  %v5761_v54 = vrot.slane %v14053_v44, 1  ;;  %v5819_v24 = vrot.slane %v14053_v44, 3 }
 0x6fa   : > { %v5848_v58 = vrot.slane %v14053_v44, 4  ;;  %v5933_v34 = vrot.slane %v14053_v44, 7  ;;  %v5906_v62 = vrot.slane %v14053_v44, 6 }
 0x6fb   : > { %5821 = vrot.lane.b32.xlu2 %v5814_v7, %s15018_s26  ;;  %v5762_v28 = vsel %vm3210_vm1, %v5759_v41, %v5761_v54  ;;  %v5791_v4 = vsel %vm3312_vm0, %v5788_v52, %v5790_v16  ;;  %v5820_v39 = vsel %vm3414_vm2, %v5817_v63, %v5819_v24  ;;  %v5878_v37 = vsel %vm3618_vm4, %v5875_v38, %v5877_v59 }
 0x6fc   : > { %5823 = vrot.lane.b32.xlu0 %v5816_v29, %s15018_s26  ;;  %5796 = vrot.lane.b32.xlu1 %v5789_v43, %s11855_s12  ;;  %v5849_v11 = vsel %vm3516_vm3, %v5846_v1, %v5848_v58  ;;  %v5934_v20 = vsel %vm3822_vm6, %v5931_v61, %v5933_v34  ;;  %v5907_v13 = vsel %vm3720_vm5, %v5904_v9, %v5906_v62  ;;  %v11303_v29 = vld [vmem:[%s14960_s5 + $0x8] sm:$0xff]  ;;  %v11539_v63 = vunpack.c.h.b16 %v13887_v49 }
 0x6fd   : > { %6043 = vmatpush.bf16.msrb.mxu0 %v11303_v29  ;;  %v14118_v38 = vperm.slane %v10281_v33, 0 }
 0x6fe   : > { %v5742_v50 = vpop.f32.mrf.mxu3 }
 0x6ff   : > { %v6005_v50 = vld [vmem:[#allocation2] sm:$0xc] }
 0x700   : > { %v6014_v30 = vunpack.c.l.b16 %v6005_v50 }
 0x702   : > { %v6018_v55 = vpack.c.b16 %v11539_v63, %v6014_v30 }
 0x703   : > { %5850 = vrot.lane.b32.xlu2 %v5843_v6, %s15019_s24  ;;  %v14103_v6 = vunpack.c.l.b16 %v6002_v35 }
 0x704   : > { %5852 = vrot.lane.b32.xlu0 %v5845_v14, %s15019_s24  ;;  %5825 = vrot.lane.b32.xlu1 %v5818_v48, %s15018_s26  ;;  %v6017_v14 = vunpack.c.l.b16 %v6006_v23  ;;  %v11305_v48 = vld [vmem:[%s14960_s5 + $0x18] sm:$0xff] }
 0x705   : > { %6168 = vmatpush.bf16.msrb.mxu3 %v11305_v48 }
 0x706   : > { %v6019_v1 = vpack.c.b16 %v6017_v14, %v14103_v6 }
 0x70b   : > { %5879 = vrot.lane.b32.xlu2 %v5872_v5, %s15016_s16 }
 0x70c   : > { %5881 = vrot.lane.b32.xlu0 %v5874_v17, %s15016_s16  ;;  %5854 = vrot.lane.b32.xlu1 %v5847_v2, %s15019_s24  ;;  %v6021_v17 = vrot.slane %v6018_v55, 2  ;;  %v6022_v2 = vrot.slane %v6019_v1, 2 }
 0x713   : > { %5908 = vrot.lane.b32.xlu2 %v5901_v51, %s15017_s22 }
 0x714   : > { %5910 = vrot.lane.b32.xlu0 %v5903_v45, %s15017_s22  ;;  %5883 = vrot.lane.b32.xlu1 %v5876_v27, %s15016_s16  ;;  %v6023_v45 = vsel %vm3312_vm0, %v6021_v17, %v6022_v2 }
 0x715   : > { %10288 = vmatmul.msk.bf16.vlgmr.msrb.gmra.mxu0 %vm3997_vm7, %v6023_v45 }
 0x71b   : > { %5800 = vrot.lane.b32.xlu2 %v5790_v16, %s11855_s12  ;;  %v14127_v16 = vperm.slane %v10281_v33, 2 }
 0x71c   : > { %5937 = vrot.lane.b32.xlu0 %v5930_v42, %s11854_s30  ;;  %5912 = vrot.lane.b32.xlu1 %v5905_v40, %s15017_s22 }
 0x723   : > { %5887 = vrot.lane.b32.xlu2 %v5877_v59, %s15016_s16 }
 0x724   : > { %5939 = vrot.lane.b32.xlu1 %v5932_v31, %s11854_s30  ;;  %5771 = vrot.lane.b32.xlu0 %v5761_v54, %s11856_s15  ;;  %v6094_v31 = vpack.c.b16 %v14103_v6, %v11539_v63 }
 0x725   : > { %10289 = vmatmul.msk.bf16.gmra.mxu0 %vm3997_vm7, %v6022_v2 }
 0x72b   : > { %5769 = vrot.lane.b32.xlu2 %v5762_v28, %s11856_s15 }
 0x72c   : > { %5829 = vrot.lane.b32.xlu1 %v5819_v24, %s15018_s26  ;;  %5858 = vrot.lane.b32.xlu0 %v5848_v58, %s15019_s24 }
 0x733   : > { %5856 = vrot.lane.b32.xlu2 %v5849_v11, %s15019_s24 }
 0x734   : > { %5798 = vrot.lane.b32.xlu1 %v5791_v4, %s11855_s12  ;;  %5827 = vrot.lane.b32.xlu0 %v5820_v39, %s15018_s26  ;;  %v6093_v39 = vunpack.c.h.b16 %v6002_v35  ;;  %v11308_v35 = vld [vmem:[%s14960_s5 + $0x30] sm:$0xff]  ;;  %s15021_s26 = sand.u32 1, %s11843_s18  }
 0x735   : > { %s8927_s0 = scalar_lea.sflag [#allocation5], %s15021_s26 }
 0x73b   : > { %5941 = vrot.lane.b32.xlu2 %v5934_v20, %s11854_s30 }
 0x73c   : > { %5885 = vrot.lane.b32.xlu1 %v5878_v37, %s15016_s16  ;;  %5914 = vrot.lane.b32.xlu0 %v5907_v13, %s15017_s22 }
 0x73d   : > { %v5936_v56 = vpop.permute.xlu2 %5935 }
 0x744   : > { %5916 = vrot.lane.b32.xlu1 %v5906_v62, %s15017_s22  ;;  %5943 = vrot.lane.b32.xlu0 %v5933_v34, %s11854_s30  ;;  %v6095_v62 = vpack.c.b16 %v6093_v39, %v6093_v39 }
 0x745   : > { %v5764_v41 = vpop.permute.xlu2 %5763 }
 0x746   : > { %v5778_v19 = vadd.f32 %v5764_v41, %v13984_v8  ;;  %v11304_v8 = vld [vmem:[%s14960_s5 + $0x10] sm:$0xff] }
 0x747   : > { %6115 = vmatpush.bf16.msrb.mxu2 %v11304_v8 }
 0x74a   : > { %10302 = vmatmul.msk.bf16.vlgmr.msrb.gmra.mxu2 %vm3997_vm7, %v6094_v31 }
 0x74b   : > { %6303 = vmatpush.bf16.msra.mxu2 %v11308_v35 }
 0x74d   : > { %v5793_v57 = vpop.permute.xlu2 %5792 }
 0x74e   : > { %v5807_v0 = vadd.f32 %v5793_v57, %v5778_v19 }
 0x755   : > { %v5822_v15 = vpop.permute.xlu2 %5821 }
 0x756   : > { %v5836_v43 = vadd.f32 %v5822_v15, %v5807_v0  ;;  %v11306_v15 = vld [vmem:[%s14960_s5 + $0x20] sm:$0xff] }
 0x757   : > { %6209 = vmatpush.bf16.msra.mxu0 %v11306_v15 }
 0x75a   : > { %10303 = vmatmul.msk.bf16.gmra.mxu2 %vm3997_vm7, %v6095_v62  ;;  %10318 = vmatmul.msk.bf16.vlgmr.msra.gmra.mxu0 %vm3997_vm7, %v13899_v25  ;;  %v14162_v62 = vld [vmem:[#allocation2 + $0x8] sm:$0xf0]  }
 0x75d   : > { %v5851_v47 = vpop.permute.xlu2 %5850 }
 0x75e   : > { %v5766_v18 = vpop.permute.xlu0 %5765  ;;  %v5865_v3 = vadd.f32 %v5851_v47, %v5836_v43 }
 0x75f   : > { %v5779_v49 = vadd.f32 %v5766_v18, %v13976_v21 }
 0x765   : > { %v5880_v52 = vpop.permute.xlu2 %5879 }
 0x766   : > { %v5795_v53 = vpop.permute.xlu0 %5794  ;;  %v5768_v7 = vpop.permute.xlu1 %5767  ;;  %v5894_v5 = vadd.f32 %v5880_v52, %v5865_v3 }
 0x767   : > { %v5808_v58 = vadd.f32 %v5795_v53, %v5779_v49  ;;  %v5780_v13 = vadd.f32 %v5768_v7, %v13987_v26 }
 0x76d   : > { %v5909_v60 = vpop.permute.xlu2 %5908 }
 0x76e   : > { %v5923_v36 = vadd.f32 %v5909_v60, %v5894_v5  ;;  %v5824_v51 = vpop.permute.xlu0 %5823  ;;  %v5797_v22 = vpop.permute.xlu1 %5796  ;;  %v6057_v5 = vpack.c.b16 %v14103_v6, %v14103_v6  ;;  %v11685_v6 = vld [vmem:[#allocation2 + $0x4] sm:$0xf0]  }
 0x76f   : > { %v5837_v34 = vadd.f32 %v5824_v51, %v5808_v58  ;;  %v5809_v41 = vadd.f32 %v5797_v22, %v5780_v13  ;;  %v11684_v58 = vld [vmem:[#allocation2 + $0xc] sm:$0xf] }
 0x770   : > { %v5950_v27 = vadd.f32 %v5936_v56, %v5923_v36  ;;  %10295 = vmatmul.msk.bf16.gmra.mxu1 %vm3997_vm7, %v6057_v5 }
 0x772   : > { %v5958_v9 = vadd.f32 %v14118_v38, %v5950_v27 }
 0x774   : > { %v5963_v42 = vmax.f32 %v5958_v9, 0.0 }
 0x775   : > { %v5801_v20 = vpop.permute.xlu2 %5800 }
 0x776   : > { %v5969_v40 = vmul.f32 %v14122_v32, %v5963_v42  ;;  %v5853_v61 = vpop.permute.xlu0 %5852  ;;  %v5826_v59 = vpop.permute.xlu1 %5825 }
 0x777   : > { %v5866_v37 = vadd.f32 %v5853_v61, %v5837_v34  ;;  %v5838_v18 = vadd.f32 %v5826_v59, %v5809_v41  ;;  %v11637_v61 = vld [vmem:[#allocation2 + $0x4] sm:$0xc] }
 0x778   : > { %v5975_v54 = vadd.f32 %v14127_v16, %v5969_v40 }
 0x77a   : > { %5980 = vst.msk [vmem:[#allocation3 - $0x1] sm:$0xfe] %vm3995_vm8, %v5975_v54 }
 0x77d   : > { %v5888_v53 = vpop.permute.xlu2 %5887 }
 0x77e   : > { %v5882_v28 = vpop.permute.xlu0 %5881  ;;  %v5855_v24 = vpop.permute.xlu1 %5854 }
 0x77f   : > { %v5895_v56 = vadd.f32 %v5882_v28, %v5866_v37  ;;  %v5867_v0 = vadd.f32 %v5855_v24, %v5838_v18  ;;  %v11638_v28 = vor.u32 %v11685_v6, %v11637_v61  ;;  %v11309_v18 = vld [vmem:[%s14960_s5 + $0x38] sm:$0xff] }
 0x780   : > { %6356 = vmatpush.bf16.msra.mxu3 %v11309_v18 }
 0x781   : > { %v6146_v37 = vrot.slane %v11638_v28, 2  ;;  %v11319_v28 = vld [vmem:[%s14960_s5 + $0x78] sm:$0xff] }
 0x785   : > { %v5770_v8 = vpop.permute.xlu2 %5769 }
 0x786   : > { %v5911_v11 = vpop.permute.xlu0 %5910  ;;  %v5884_v4 = vpop.permute.xlu1 %5883  ;;  %v5781_v33 = vadd.f32 %v5770_v8, %v13996_v10  ;;  %v11646_v8 = vld [vmem:[#allocation2 + $0xc] sm:$0xc] }
 0x787   : > { %v5924_v57 = vadd.f32 %v5911_v11, %v5895_v56  ;;  %v5896_v26 = vadd.f32 %v5884_v4, %v5867_v0 }
 0x78d   : > { %v5857_v36 = vpop.permute.xlu2 %5856 }
 0x78e   : > { %v5938_v21 = vpop.permute.xlu0 %5937  ;;  %v5913_v47 = vpop.permute.xlu1 %5912 }
 0x78f   : > { %v5951_v19 = vadd.f32 %v5938_v21, %v5924_v57  ;;  %v5925_v43 = vadd.f32 %v5913_v47, %v5896_v26 }
 0x791   : > { %v5959_v52 = vadd.f32 %v14118_v38, %v5951_v19 }
 0x793   : > { %v5964_v7 = vmax.f32 %v5959_v52, 0.0 }
 0x795   : > { %v5970_v29 = vmul.f32 %v14122_v32, %v5964_v7  ;;  %v5942_v49 = vpop.permute.xlu2 %5941 }
 0x796   : > { %v5940_v50 = vpop.permute.xlu1 %5939  ;;  %v5772_v23 = vpop.permute.xlu0 %5771 }
 0x797   : > { %v5976_v63 = vadd.f32 %v14127_v16, %v5970_v29  ;;  %v5952_v30 = vadd.f32 %v5940_v50, %v5925_v43  ;;  %v5782_v17 = vadd.f32 %v5772_v23, %v14053_v44  ;;  %v11310_v29 = vld [vmem:[%s14960_s5 + $0x40] sm:$0xff] }
 0x798   : > { %6397 = vmatpush.bf16.msrb.mxu0 %v11310_v29  ;;  %v10404_v29 = vld [vmem:[#allocation2 + $0x1c] sm:$0xc] }
 0x799   : > { %5981 = vst.msk [vmem:[#allocation3 + $0x7] sm:$0xff] %vm3997_vm7, %v5976_v63  ;;  %v5960_v25 = vadd.f32 %v14118_v38, %v5952_v30  ;;  %v5811_v9 = vadd.f32 %v5801_v20, %v5782_v17 }
 0x79b   : > { %v5965_v14 = vmax.f32 %v5960_v25, 0.0  ;;  %v11313_v25 = vld [vmem:[%s14960_s5 + $0x58] sm:$0xff] }
 0x79d   : > { %v5971_v48 = vmul.f32 %v14122_v32, %v5965_v14  ;;  %v11755_v14 = vld [vmem:[#allocation2 + $0x8] sm:$0xc] }
 0x79e   : > { %v5830_v3 = vpop.permute.xlu1 %5829  ;;  %v5859_v55 = vpop.permute.xlu0 %5858 }
 0x79f   : > { %v5977_v1 = vadd.f32 %v14127_v16, %v5971_v48  ;;  %v5840_v40 = vadd.f32 %v5830_v3, %v5811_v9  ;;  %v11689_v3 = vld [vmem:[#allocation2 + $0x14] sm:$0x30] }
 0x7a0   : > { %v5985_v51 = vld [vmem:[#allocation3] ss:$2 sm:$0xff] }
 0x7a1   : > { %5982 = vst.msk [vmem:[#allocation3 + $0xf] sm:$0xff] %vm3997_vm7, %v5977_v1  ;;  %v5869_v31 = vadd.f32 %v5859_v55, %v5840_v40 }
 0x7a3   : > { %v5898_v4 = vadd.f32 %v5888_v53, %v5869_v31  ;;  %v11307_v53 = vld [vmem:[%s14960_s5 + $0x28] sm:$0xff]  ;;  %v11314_v31 = vld [vmem:[%s14960_s5 + $0x60] sm:$0xff] }
 0x7a4   : > { %6262 = vmatpush.bf16.msra.mxu1 %v11307_v53  ;;  %6585 = vmatpush.bf16.msra.mxu0 %v11314_v31  ;;  %v6600_v53 = vld [vmem:[#allocation2 + $0x1c] sm:$0xff]  }
 0x7a6   : > { %v5799_v2 = vpop.permute.xlu1 %5798  ;;  %v5828_v60 = vpop.permute.xlu0 %5827 }
 0x7a7   : > { %v5810_v46 = vadd.f32 %v5799_v2, %v5781_v33 }
 0x7a8   : > { %v5987_v22 = vld [vmem:[#allocation3 + $0x1] ss:$2 sm:$0xff] }
 0x7a9   : > { %v5989_v45 = vmax.f32 %v5985_v51, %v5987_v22  ;;  %v5839_v27 = vadd.f32 %v5828_v60, %v5810_v46  ;;  %v11831_v51 = vld [vmem:[#allocation2 + $0x18] sm:$0xf] }
 0x7ab   : > { %v5991_v42 = vpack.c.bf16 %v5989_v45, %v5989_v45  ;;  %v5868_v10 = vadd.f32 %v5857_v36, %v5839_v27  ;;  %v11756_v27 = vor.u32 %v14162_v62, %v11755_v14  ;;  %v11692_v62 = vld [vmem:[#allocation2 + $0x1c] sm:$0x30] }
 0x7ad   : > { %5993 = vst.msk [vmem:[#allocation2 + $0x10] sm:$0xf] %vm4054_vm9, %v5991_v42 }
 0x7ae   : > { %v5886_v59 = vpop.permute.xlu1 %5885  ;;  %v5915_v44 = vpop.permute.xlu0 %5914 }
 0x7af   : > { %v5897_v54 = vadd.f32 %v5886_v59, %v5868_v10  ;;  %v11316_v59 = vld [vmem:[%s14960_s5 + $0x70] sm:$0xff] }
 0x7b1   : > { %v5926_v24 = vadd.f32 %v5915_v44, %v5897_v54  ;;  %v6240_v44 = vrot.slane %v11756_v27, 2 }
 0x7b3   : > { %v5953_v11 = vadd.f32 %v5942_v49, %v5926_v24  ;;  %v11315_v49 = vld [vmem:[%s14960_s5 + $0x68] sm:$0xff] }
 0x7b4   : > { %v6224_v39 = vld [vmem:[#allocation2 + $0xc] sm:$0xff]  }
 0x7b5   : > { %v14160_v34 = vld [vmem:[#allocation2 + $0x10] sm:$0xf]  ;;  %v5961_v13 = vadd.f32 %v14118_v38, %v5953_v11  ;;  %10334 = vmatmul.msk.bf16.vlgmr.msra.gmra.mxu2 %vm3997_vm7, %v6224_v39  ;;  %v11690_v11 = vld [vmem:[#allocation2 + $0x1c] sm:$0xf] }
 0x7b6   : > { %v11686_v20 = vld [vmem:[#allocation2 + $0xc] sm:$0x30]  ;;  %v5917_v41 = vpop.permute.xlu1 %5916  ;;  %v5944_v47 = vpop.permute.xlu0 %5943  ;;  %v6370_v39 = vld [vmem:[#allocation2 + $0x18] sm:$0xff]  }
 0x7b7   : > { %v11643_v56 = vor.u32 %v11686_v20, %v11684_v58  ;;  %v5966_v57 = vmax.f32 %v5961_v13, 0.0  ;;  %v5927_v15 = vadd.f32 %v5917_v41, %v5898_v4  ;;  %v11688_v48 = vld [vmem:[#allocation2 + $0xc] sm:$0xf0]   ;;  %v6045_v58 = vpop.f32.mrf.mxu0  ;;  %v11833_v4 = vld [vmem:[#allocation2 + $0x18] sm:$0x30]  ;;  %v6469_v41 = vunpack.c.h.b16 %v6370_v39 }
 0x7b8   : > { %v11647_v55 = vor.u32 %v11688_v48, %v11646_v8  ;;  %v11764_v20 = vld [vmem:[#allocation2 + $0x10] sm:$0xc] }
 0x7b9   : > { %v6147_v21 = vrot.slane %v11643_v56, 2  ;;  %v5972_v19 = vmul.f32 %v14122_v32, %v5966_v57  ;;  %v5954_v0 = vadd.f32 %v5944_v47, %v5927_v15  ;;  %v11661_v56 = vor.u32 %v11692_v62, %v11690_v11 }
 0x7ba   : > { %v6334_v40 = vrot.slane %v11647_v55, 2  ;;  %v11318_v55 = vld [vmem:[#allocation2 + $0x24] sm:$0x30] }
 0x7bb   : > { %v6148_v52 = vsel %vm3312_vm0, %v6146_v37, %v6147_v21  ;;  %v5978_v26 = vadd.f32 %v14127_v16, %v5972_v19  ;;  %v5962_v7 = vadd.f32 %v14118_v38, %v5954_v0  ;;  %v11312_v38 = vld [vmem:[%s14960_s5 + $0x50] sm:$0xff]  ;;  %v6375_v37 = vunpack.c.l.b16 %v6370_v39 }
 0x7bc   : > { %10310 = vmatmul.msk.bf16.vlgmr.msrb.gmra.mxu3 %vm3997_vm7, %v6148_v52  ;;  %6491 = vmatpush.bf16.msrb.mxu2 %v11312_v38  ;;  %v6523_v19 = vrot.slane %v11661_v56, 2  ;;  %v6471_v0 = vpack.c.b16 %v6469_v41, %v6469_v41  ;;  %v11579_v52 = vld [vmem:[#allocation2 + $0x18] sm:$0xff]  }
 0x7bd   : > { %5983 = vst.msk [vmem:[#allocation3 + $0x17] sm:$0xff] %vm3997_vm7, %v5978_v26  ;;  %v5967_v43 = vmax.f32 %v5962_v7, 0.0  ;;  %6544 = vmatpush.bf16.msrb.mxu3 %v11313_v25  ;;  %v6377_v47 = vpack.c.b16 %v6375_v37, %v6375_v37  ;;  %v11834_v26 = vld [vmem:[#allocation2 + $0x20] sm:$0xf]  ;;  %v11835_v7 = vld [vmem:[#allocation2 + $0x18] sm:$0xf0]  }
 0x7be   : > { %6832 = vst [vmem:[#allocation2 + $0x1c] sm:$0xf] %v15015_v12  ;;  %v11836_v25 = vld [vmem:[#allocation2 + $0x20] sm:$0x30] }
 0x7bf   : > { %v5973_v35 = vmul.f32 %v14122_v32, %v5967_v43  ;;  %v11311_v32 = vld [vmem:[%s14960_s5 + $0x48] sm:$0xff]  ;;  %v14220_v57 = vpop.f32.mrf.mxu0  ;;  %v6558_v43 = vld [vmem:[#allocation2 + $0x20] sm:$0xff]  }
 0x7c0   : > { %6450 = vmatpush.bf16.msrb.mxu1 %v11311_v32  ;;  %6679 = vmatpush.bf16.msra.mxu2 %v11316_v59 }
 0x7c1   : > { %v5979_v50 = vadd.f32 %v14127_v16, %v5973_v35  ;;  %v11317_v35 = vld [vmem:[#allocation2 + $0x1c] sm:$0xf0] }
 0x7c2   : > { %6833 = vst [vmem:[#allocation2 + $0x20] sm:$0xf] %v15015_v12 }
 0x7c3   : > { %5984 = vst.msk [vmem:[#allocation3 + $0x1f] sm:$0x1] %vm4013_vm10, %v5979_v50 }
 0x7c4   : > { %v5986_v23 = vld [vmem:[#allocation3 + $0x10] ss:$2 sm:$0xff] }
 0x7c7   : > { %v6050_v32 = vpop.f32.mrf.mxu0 }
 0x7ca   : > { %v5988_v63 = vld [vmem:[#allocation3 + $0x11] ss:$2 sm:$0xff] }
 0x7cb   : > { %v5990_v30 = vmax.f32 %v5986_v23, %v5988_v63  ;;  %v11773_v23 = vld [vmem:[#allocation2 + $0x18] sm:$0xc] }
 0x7cc   : > { %10311 = vmatmul.msk.bf16.gmra.mxu3 %vm3997_vm7, %v6147_v21  ;;  %v11770_v21 = vor.u32 %v11833_v4, %v11831_v51 }
 0x7cd   : > { %v5992_v16 = vpack.c.bf16 %v5990_v30, %v5990_v30  ;;  %v10408_v30 = vld [vmem:[#allocation2 + $0x24] sm:$0xf] }
 0x7ce   : > { %v6429_v38 = vrot.slane %v11770_v21, 2  ;;  %6834 = vst [vmem:[#allocation2 + $0x24] sm:$0x7] %v15015_v12 }
 0x7cf   : > { %5994 = vst.msk [vmem:[#allocation2 + $0x14] sm:$0xf] %vm4054_vm9, %v5992_v16  ;;  %v6117_v16 = vpop.f32.mrf.mxu2  ;;  %v6052_v8 = vpop.f32.mrf.mxu0 }
 0x7d6   : > { %v6182_v1 = vld [vmem:[#allocation2 + $0x10] sm:$0xff]  }
 0x7d7   : > { %v11578_v33 = vld [vmem:[#allocation2 + $0x10] sm:$0xff]   ;;  %v6187_v17 = vunpack.c.l.b16 %v6182_v1  ;;  %v6281_v2 = vunpack.c.h.b16 %v6182_v1  ;;  %v14232_v48 = vpop.f32.mrf.mxu2  ;;  %v6079_v1 = vpop.f32.mrf.mxu1 }
 0x7d8   : > { %v11687_v5 = vld [vmem:[#allocation2 + $0x14] sm:$0xf] }
 0x7d9   : > { %v11652_v60 = vor.u32 %v11689_v3, %v11687_v5  ;;  %v11830_v46 = vld [vmem:[#allocation2 + $0x10] sm:$0x30]  ;;  %v11655_v45 = vld [vmem:[#allocation2 + $0x14] sm:$0xc]  ;;  %v6189_v9 = vpack.c.b16 %v6187_v17, %v6187_v17  ;;  %v6283_v42 = vpack.c.b16 %v6281_v2, %v6281_v2  ;;  %v10409_v5 = vor.u32 %v11318_v55, %v10408_v30 }
 0x7da   : > { %v6412_v36 = vld [vmem:[#allocation2 + $0x14] sm:$0xff]   ;;  %v11761_v61 = vor.u32 %v11830_v46, %v14160_v34  ;;  %v6563_v17 = vunpack.c.l.b16 %v6558_v43  ;;  %v6657_v2 = vunpack.c.h.b16 %v6558_v43  ;;  %v11779_v46 = vor.u32 %v11836_v25, %v11834_v26 }
 0x7db   : > { %v11832_v22 = vld [vmem:[#allocation2 + $0x10] sm:$0xf0]   ;;  %v6335_v10 = vrot.slane %v11652_v60, 2  ;;  %10319 = vmatmul.msk.bf16.gmra.mxu0 %vm3997_vm7, %v6189_v9  ;;  %10335 = vmatmul.msk.bf16.gmra.mxu2 %vm3997_vm7, %v6283_v42  ;;  %v11691_v34 = vld [vmem:[#allocation2 + $0x14] sm:$0xf0]   ;;  %v11774_v60 = vor.u32 %v11835_v7, %v11773_v23  ;;  %v6711_v51 = vrot.slane %v10409_v5, 2 }
 0x7dc   : > { %6830 = vst [vmem:[#allocation2 + $0x14] sm:$0xf] %v15015_v12  ;;  %v6241_v54 = vrot.slane %v11761_v61, 2  ;;  %v11656_v13 = vor.u32 %v11691_v34, %v11655_v45  ;;  %v11765_v15 = vor.u32 %v11832_v22, %v11764_v20  ;;  %v6565_v45 = vpack.c.b16 %v6563_v17, %v6563_v17 }
 0x7dd   : > { %v6336_v6 = vsel %vm3312_vm0, %v6334_v40, %v6335_v10  ;;  %6831 = vst [vmem:[#allocation2 + $0x18] sm:$0xf] %v15015_v12  ;;  %v6080_v12 = vadd.f32 %v6079_v1, %v6045_v58  ;;  %v6659_v27 = vpack.c.b16 %v6657_v2, %v6657_v2  ;;  %v6616_v9 = vrot.slane %v11774_v60, 2 }
 0x7de   : > { %10342 = vmatmul.msk.bf16.vlgmr.msra.gmra.mxu3 %vm3997_vm7, %v6336_v6  ;;  %v6242_v24 = vsel %vm3312_vm0, %v6240_v44, %v6241_v54  ;;  %v6522_v18 = vrot.slane %v11656_v13, 2  ;;  %v6428_v50 = vrot.slane %v11765_v15, 2  ;;  %v6617_v42 = vrot.slane %v11779_v46, 2 }
 0x7df   : > { %6732 = vmatpush.bf16.msra.mxu3 %v11319_v28  ;;  %10326 = vmatmul.msk.bf16.vlgmr.msra.gmra.mxu1 %vm3997_vm7, %v6242_v24  ;;  %v6122_v3 = vpop.f32.mrf.mxu2  ;;  %v6081_v61 = vpop.f32.mrf.mxu1  ;;  %v6126_v6 = vadd.f32 %v6117_v16, %v6080_v12 }
 0x7e0   : > { %6638 = vmatpush.bf16.msra.mxu1 %v11315_v49  ;;  %v6524_v63 = vsel %vm3312_vm0, %v6522_v18, %v6523_v19  ;;  %v6430_v14 = vsel %vm3312_vm0, %v6428_v50, %v6429_v38  ;;  %v6211_v28 = vpop.f32.mrf.mxu0 }
 0x7e7   : > { %v6124_v22 = vpop.f32.mrf.mxu2 }
 0x7e8   : > { %v6213_v62 = vpop.f32.mrf.mxu0 }
 0x7eb   : > { %10350 = vmatmul.msk.bf16.vlgmr.msrb.gmra.mxu0 %vm3997_vm7, %v11578_v33  ;;  %10366 = vmatmul.msk.bf16.vlgmr.msrb.gmra.mxu2 %vm3997_vm7, %v6412_v36  ;;  %v10405_v33 = vor.u32 %v11317_v35, %v10404_v29 }
 0x7ed   : > { %v6710_v36 = vrot.slane %v10405_v33, 2  ;;  %v6084_v59 = vpop.f32.mrf.mxu1 }
 0x7ee   : > { %10343 = vmatmul.msk.bf16.gmra.mxu3 %vm3997_vm7, %v6335_v10  ;;  %v6618_v10 = vsel %vm3312_vm0, %v6616_v9, %v6617_v42  ;;  %v6085_v44 = vadd.f32 %v6084_v59, %v6050_v32 }
 0x7ef   : > { %10327 = vmatmul.msk.bf16.gmra.mxu1 %vm3997_vm7, %v6241_v54  ;;  %v6712_v40 = vsel %vm3312_vm0, %v6710_v36, %v6711_v51 }
 0x7f0   : > { %v6128_v31 = vadd.f32 %v6122_v3, %v6085_v44  ;;  %v6082_v3 = vadd.f32 %v6081_v61, %v14220_v57 }
 0x7f2   : > { %v6127_v1 = vadd.f32 %v14232_v48, %v6082_v3 }
 0x7f5   : > { %v6086_v54 = vpop.f32.mrf.mxu1 }
 0x7fb   : > { %10351 = vmatmul.msk.bf16.gmra.mxu0 %vm3997_vm7, %v6377_v47  ;;  %10367 = vmatmul.msk.bf16.gmra.mxu2 %vm3997_vm7, %v6471_v0 }
 0x7fe   : > { %10374 = vmatmul.msk.bf16.vlgmr.msrb.gmra.mxu3 %vm3997_vm7, %v6524_v63 }
 0x7ff   : > { %10358 = vmatmul.msk.bf16.vlgmr.msrb.gmra.mxu1 %vm3997_vm7, %v6430_v14 }
 0x80b   : > { %10382 = vmatmul.msk.bf16.vlgmr.msra.gmra.mxu0 %vm3997_vm7, %v11579_v52  ;;  %10398 = vmatmul.msk.bf16.vlgmr.msra.gmra.mxu2 %vm3997_vm7, %v6600_v53 }
 0x80e   : > { %10375 = vmatmul.msk.bf16.gmra.mxu3 %vm3997_vm7, %v6523_v19 }
 0x80f   : > { %10359 = vmatmul.msk.bf16.gmra.mxu1 %vm3997_vm7, %v6429_v38 }
 0x81b   : > { %10383 = vmatmul.msk.bf16.gmra.mxu0 %vm3997_vm7, %v6565_v45  ;;  %10399 = vmatmul.msk.bf16.gmra.mxu2 %vm3997_vm7, %v6659_v27 }
 0x81e   : > { %10414 = vmatmul.msk.bf16.vlgmr.msra.gmra.mxu3 %vm3997_vm7, %v6712_v40 }
 0x81f   : > { %10390 = vmatmul.msk.bf16.vlgmr.msra.gmra.mxu1 %vm3997_vm7, %v6618_v10 }
 0x82e   : > { %10415 = vmatmul.msk.bf16.gmra.mxu3 %vm3997_vm7, %v6711_v51 }
 0x82f   : > { %10391 = vmatmul.msk.bf16.gmra.mxu1 %vm3997_vm7, %v6617_v42 }
 0x838   : > { %v6305_v4 = vpop.f32.mrf.mxu2 }
 0x83f   : > { %v6170_v24 = vpop.f32.mrf.mxu3 }
 0x840   : > { %v6179_v49 = vadd.f32 %v6170_v24, %v6126_v6  ;;  %v6307_v37 = vpop.f32.mrf.mxu2 }
 0x842   : > { %v6220_v58 = vadd.f32 %v6211_v28, %v6179_v49 }
 0x847   : > { %v6172_v11 = vpop.f32.mrf.mxu3 }
 0x848   : > { %v6180_v33 = vadd.f32 %v6172_v11, %v6127_v1 }
 0x84a   : > { %v6221_v2 = vadd.f32 %v6213_v62, %v6180_v33 }
 0x84f   : > { %v6175_v39 = vpop.f32.mrf.mxu3 }
 0x850   : > { %v6181_v34 = vadd.f32 %v6175_v39, %v6128_v31 }
 0x857   : > { %v6177_v20 = vpop.f32.mrf.mxu3 }
 0x858   : > { %v6216_v13 = vpop.f32.mrf.mxu0 }
 0x859   : > { %v6222_v56 = vadd.f32 %v6216_v13, %v6181_v34 }
 0x85c   : > { %v6264_v41 = vpop.f32.mrf.mxu1 }
 0x85d   : > { %v6273_v15 = vadd.f32 %v6264_v41, %v6220_v58 }
 0x85e   : > { %v6310_v21 = vpop.f32.mrf.mxu2 }
 0x85f   : > { %v6314_v47 = vadd.f32 %v6305_v4, %v6273_v15 }
 0x860   : > { %v6218_v19 = vpop.f32.mrf.mxu0 }
 0x861   : > { %v6358_v18 = vpop.f32.mrf.mxu3 }
 0x862   : > { %v6367_v51 = vadd.f32 %v6358_v18, %v6314_v47 }
 0x864   : > { %v6266_v0 = vpop.f32.mrf.mxu1 }
 0x865   : > { %v6274_v46 = vadd.f32 %v6266_v0, %v6221_v2  ;;  %v11325_v2 = vld [vmem:[%s14961_s6 + $0x28] sm:$0xff] }
 0x866   : > { %v6312_v52 = vpop.f32.mrf.mxu2  ;;  %6958 = vmatpush.bf16.msrb.mxu2 %v11325_v2  ;;  %v7058_v2 = vld [vmem:[#allocation2 + $0xc] sm:$0x1] }
 0x867   : > { %v6315_v27 = vadd.f32 %v6307_v37, %v6274_v46  ;;  %v11327_v46 = vld [vmem:[%s14961_s6 + $0x38] sm:$0xff] }
 0x868   : > { %v6399_v26 = vpop.f32.mrf.mxu0  ;;  %7006 = vmatpush.bf16.msrb.mxu3 %v11327_v46 }
 0x869   : > { %v6360_v53 = vpop.f32.mrf.mxu3  ;;  %v6408_v9 = vadd.f32 %v6399_v26, %v6367_v51  ;;  %v6841_v51 = vld [vmem:[#allocation2] sm:$0xe] }
 0x86a   : > { %v6368_v10 = vadd.f32 %v6360_v53, %v6315_v27  ;;  %v6851_v27 = vunpack.c.l.b16 %v6841_v51 }
 0x86c   : > { %v6269_v7 = vpop.f32.mrf.mxu1 }
 0x86d   : > { %v6275_v29 = vadd.f32 %v6269_v7, %v6222_v56 }
 0x86e   : > { %v6493_v43 = vpop.f32.mrf.mxu2 }
 0x86f   : > { %v6316_v35 = vadd.f32 %v6310_v21, %v6275_v29 }
 0x870   : > { %v6401_v38 = vpop.f32.mrf.mxu0 }
 0x871   : > { %v6363_v50 = vpop.f32.mrf.mxu3  ;;  %v6409_v6 = vadd.f32 %v6401_v38, %v6368_v10 }
 0x872   : > { %v6369_v28 = vadd.f32 %v6363_v50, %v6316_v35 }
 0x874   : > { %v6271_v23 = vpop.f32.mrf.mxu1 }
 0x876   : > { %v6495_v63 = vpop.f32.mrf.mxu2 }
 0x878   : > { %v6404_v25 = vpop.f32.mrf.mxu0 }
 0x879   : > { %v6365_v30 = vpop.f32.mrf.mxu3  ;;  %v6410_v11 = vadd.f32 %v6404_v25, %v6369_v28  ;;  %v6969_v28 = vld [vmem:[#allocation2 + $0x8] sm:$0x7] }
 0x87c   : > { %v6452_v32 = vpop.f32.mrf.mxu1 }
 0x87d   : > { %v6461_v42 = vadd.f32 %v6452_v32, %v6408_v9 }
 0x87e   : > { %v6498_v16 = vpop.f32.mrf.mxu2 }
 0x87f   : > { %v6502_v61 = vadd.f32 %v6493_v43, %v6461_v42  ;;  %v11322_v42 = vld [vmem:[%s14961_s6 + $0x10] sm:$0xff] }
 0x880   : > { %v6406_v8 = vpop.f32.mrf.mxu0 }
 0x881   : > { %v6546_v14 = vpop.f32.mrf.mxu3 }
 0x882   : > { %v6555_v54 = vadd.f32 %v6546_v14, %v6502_v61 }
 0x884   : > { %v6454_v55 = vpop.f32.mrf.mxu1 }
 0x885   : > { %v6462_v44 = vadd.f32 %v6454_v55, %v6409_v6  ;;  %v6921_v6 = vld [vmem:[#allocation2] sm:$0xc] }
 0x886   : > { %v6500_v12 = vpop.f32.mrf.mxu2 }
 0x887   : > { %v6503_v49 = vadd.f32 %v6495_v63, %v6462_v44  ;;  %v6930_v44 = vunpack.c.l.b16 %v6921_v6 }
 0x888   : > { %v6587_v17 = vpop.f32.mrf.mxu0 }
 0x889   : > { %v6548_v5 = vpop.f32.mrf.mxu3  ;;  %v6596_v24 = vadd.f32 %v6587_v17, %v6555_v54 }
 0x88a   : > { %v6556_v62 = vadd.f32 %v6548_v5, %v6503_v49  ;;  %v11324_v49 = vld [vmem:[%s14961_s6 + $0x20] sm:$0xff] }
 0x88b   : > { %6959 = vmatpush.bf16.msrb.mxu2 %v11324_v49 }
 0x88c   : > { %v6457_v60 = vpop.f32.mrf.mxu1 }
 0x88d   : > { %v6463_v20 = vadd.f32 %v6457_v60, %v6410_v11  ;;  %v11323_v60 = vld [vmem:[%s14961_s6 + $0x18] sm:$0xff] }
 0x88e   : > { %v6681_v36 = vpop.f32.mrf.mxu2  ;;  %6881 = vmatpush.bf16.msrb.mxu0 %v11323_v60  ;;  %v11334_v60 = vld [vmem:[%s14961_s6 + $0x70] sm:$0xff] }
 0x88f   : > { %v6504_v41 = vadd.f32 %v6498_v16, %v6463_v20 }
 0x890   : > { %v6589_v45 = vpop.f32.mrf.mxu0 }
 0x891   : > { %v6551_v22 = vpop.f32.mrf.mxu3  ;;  %v6597_v37 = vadd.f32 %v6589_v45, %v6556_v62 }
 0x892   : > { %v6557_v0 = vadd.f32 %v6551_v22, %v6504_v41  ;;  %v6842_v22 = vld [vmem:[#allocation2 + $0x8] sm:$0x1]  ;;  %6882 = vmatpush.bf16.msrb.mxu0 %v11322_v42  ;;  %v11320_v41 = vld [vmem:[%s14961_s6] sm:$0xff]  ;;  %v11330_v42 = vld [vmem:[%s14961_s6 + $0x50] sm:$0xff] }
 0x893   : > { %v6853_v9 = vunpack.c.l.b16 %v6842_v22 }
 0x894   : > { %v6459_v40 = vpop.f32.mrf.mxu1 }
 0x895   : > { %v6855_v10 = vpack.c.b16 %v6853_v9, %v6853_v9 }
 0x896   : > { %v6683_v57 = vpop.f32.mrf.mxu2 }
 0x897   : > { %v6858_v61 = vrot.slane %v6855_v10, 1  ;;  %v10416_v10 = vld [vmem:[%s14964_s9 + $0x10] sm:$0x7] }
 0x898   : > { %v6592_v59 = vpop.f32.mrf.mxu0 }
 0x899   : > { %v6553_v48 = vpop.f32.mrf.mxu3  ;;  %v6598_v53 = vadd.f32 %v6592_v59, %v6557_v0 }
 0x89a   : > { %v6922_v48 = vld [vmem:[#allocation2 + $0x8] sm:$0x3] }
 0x89b   : > { %v6931_v54 = vunpack.c.l.b16 %v6922_v48 }
 0x89c   : > { %v6640_v31 = vpop.f32.mrf.mxu1 }
 0x89d   : > { %v6649_v4 = vadd.f32 %v6640_v31, %v6596_v24  ;;  %v6968_v31 = vld [vmem:[#allocation2] sm:$0x8]  ;;  %v11321_v24 = vld [vmem:[%s14961_s6 + $0x8] sm:$0xff]  ;;  %v6933_v11 = vpack.c.b16 %v6931_v54, %v6931_v54 }
 0x89e   : > { %v6686_v58 = vpop.f32.mrf.mxu2  ;;  %6913 = vmatpush.bf16.msrb.mxu1 %v11321_v24  ;;  %v6802_v24 = vperm.slane %v10416_v10, 0 }
 0x89f   : > { %v6690_v13 = vadd.f32 %v6681_v36, %v6649_v4  ;;  %v11553_v36 = vld [vmem:[#allocation2] sm:$0xff]   ;;  %v6977_v4 = vunpack.c.l.b16 %v6968_v31  ;;  %v6935_v20 = vrot.slane %v6933_v11, 2 }
 0x8a0   : > { %v6594_v34 = vpop.f32.mrf.mxu0  ;;  %v11555_v45 = vunpack.c.h.b16 %v11553_v36 }
 0x8a1   : > { %v6734_v39 = vpop.f32.mrf.mxu3  ;;  %v11326_v34 = vld [vmem:[%s14961_s6 + $0x30] sm:$0xff] }
 0x8a2   : > { %v14248_v47 = vadd.f32 %v6734_v39, %v6690_v13  ;;  %v6854_v40 = vpack.c.b16 %v11555_v45, %v6851_v27  ;;  %v6978_v39 = vunpack.c.l.b16 %v6969_v28  ;;  %7007 = vmatpush.bf16.msrb.mxu3 %v11326_v34  ;;  %6914 = vmatpush.bf16.msrb.mxu1 %v11320_v41  ;;  %v7069_v27 = vunpack.c.l.b16 %v7058_v2  ;;  %v11347_v2 = vld [vmem:[%s14961_s6 + $0xd8] sm:$0xff] }
 0x8a3   : > { %v6809_v34 = vperm.slane %v10416_v10, 1 }
 0x8a4   : > { %v6642_v56 = vpop.f32.mrf.mxu1  ;;  %v6749_v26 = vrot.slane %v14248_v47, 1  ;;  %v6766_v25 = vrot.slane %v14248_v47, 2  ;;  %v6783_v1 = vrot.slane %v14248_v47, 3  ;;  %v6980_v13 = vpack.c.b16 %v6978_v39, %v6978_v39 }
 0x8a5   : > { %v6650_v15 = vadd.f32 %v6642_v56, %v6597_v37  ;;  %v6979_v37 = vpack.c.b16 %v11555_v45, %v6977_v4  ;;  %10438 = vmatmul.msk.bf16.vlgmr.msrb.gmra.mxu1 %vm6819_vm11, %v11553_v36  ;;  %v7071_v6 = vpack.c.b16 %v7069_v27, %v7069_v27 }
 0x8a6   : > { %v6688_v21 = vpop.f32.mrf.mxu2 }
 0x8a7   : > { %v6691_v18 = vadd.f32 %v6683_v57, %v6650_v15  ;;  %v6857_v57 = vrot.slane %v6854_v40, 1  ;;  %v6982_v15 = vrot.slane %v6979_v37, 3  ;;  %v6983_v21 = vrot.slane %v6980_v13, 3 }
 0x8a8   : > { %v7073_v31 = vrot.slane %v7071_v6, 1  ;;  %v6813_v37 = vperm.slane %v10416_v10, 2  ;;  %v7240_v10 = vld [vmem:[#allocation2 + $0x8] sm:$0xe] }
 0x8a9   : > { %v6736_v19 = vpop.f32.mrf.mxu3  ;;  %v6859_v59 = vsel %vm3210_vm1, %v6857_v57, %v6858_v61 }
 0x8aa   : > { %v14250_v52 = vadd.f32 %v6736_v19, %v6691_v18  ;;  %10429 = vmatmul.msk.bf16.vlgmr.msrb.gmra.mxu0 %vm6819_vm11, %v6859_v59  ;;  %v11329_v18 = vld [vmem:[%s14961_s6 + $0x48] sm:$0xff]  ;;  %v6984_v19 = vsel %vm3414_vm2, %v6982_v15, %v6983_v21 }
 0x8ab   : > { %7046 = vmatpush.bf16.msra.mxu0 %v11329_v18  ;;  %10464 = vmatmul.msk.bf16.vlgmr.msrb.gmra.mxu3 %vm6819_vm11, %v6984_v19  ;;  %v11337_v59 = vld [vmem:[%s14961_s6 + $0x88] sm:$0xff]  ;;  %v11343_v19 = vld [vmem:[%s14961_s6 + $0xb8] sm:$0xff] }
 0x8ac   : > { %v6750_v7 = vrot.slane %v14250_v52, 1  ;;  %v6645_v29 = vpop.f32.mrf.mxu1  ;;  %v6767_v63 = vrot.slane %v14250_v52, 2  ;;  %v6784_v55 = vrot.slane %v14250_v52, 3  ;;  %v11341_v18 = vld [vmem:[%s14961_s6 + $0xa8] sm:$0xff] }
 0x8ad   : > { %v6651_v43 = vadd.f32 %v6645_v29, %v6598_v53  ;;  %v11328_v53 = vld [vmem:[%s14961_s6 + $0x40] sm:$0xff]  ;;  %v11333_v29 = vld [vmem:[%s14961_s6 + $0x68] sm:$0xff] }
 0x8ae   : > { %v6751_v35 = vsel %vm3210_vm1, %v6749_v26, %v6750_v7  ;;  %v6768_v16 = vsel %vm3312_vm0, %v6766_v25, %v6767_v63  ;;  %v6785_v12 = vsel %vm3414_vm2, %v6783_v1, %v6784_v55  ;;  %v14315_v26 = vld [vmem:[#allocation2 + $0x8] sm:$0xff]   ;;  %7143 = vmatpush.bf16.msra.mxu2 %v11333_v29  ;;  %v11342_v29 = vld [vmem:[%s14961_s6 + $0xb0] sm:$0xff] }
 0x8af   : > { %6754 = vrot.lane.b32.xlu1 %v6751_v35, %s11855_s12  ;;  %v6692_v50 = vadd.f32 %v6686_v58, %v6651_v43  ;;  %v6932_v58 = vpack.c.b16 %v11555_v45, %v6930_v44  ;;  %7047 = vmatpush.bf16.msra.mxu0 %v11328_v53  ;;  %v14321_v35 = vld [vmem:[#allocation2 + $0x8] sm:$0xff]   ;;  %v7207_v39 = vunpack.c.h.b16 %v14315_v26 }
 0x8b0   : > { %v7252_v6 = vunpack.c.h.b16 %v14321_v35 }
 0x8b1   : > { %v6739_v38 = vpop.f32.mrf.mxu3  ;;  %v6934_v62 = vrot.slane %v6932_v58, 2 }
 0x8b2   : > { %v14256_v23 = vadd.f32 %v6739_v38, %v6692_v50  ;;  %v7106_v50 = vld [vmem:[#allocation2 + $0x4] sm:$0xc]  ;;  %v7107_v38 = vld [vmem:[#allocation2 + $0xc] sm:$0x3] }
 0x8b3   : > { %v6936_v56 = vsel %vm3312_vm0, %v6934_v62, %v6935_v20  ;;  %v7115_v25 = vunpack.c.l.b16 %v7106_v50  ;;  %7230 = vmatpush.bf16.msrb.mxu0 %v11337_v59 }
 0x8b4   : > { %v6752_v30 = vrot.slane %v14256_v23, 1  ;;  %v6647_v32 = vpop.f32.mrf.mxu1  ;;  %v6769_v3 = vrot.slane %v14256_v23, 2  ;;  %v6786_v5 = vrot.slane %v14256_v23, 3  ;;  %10451 = vmatmul.msk.bf16.vlgmr.msrb.gmra.mxu2 %vm6819_vm11, %v6936_v56 }
 0x8b5   : > { %v7116_v32 = vunpack.c.l.b16 %v7107_v38  ;;  %v11338_v38 = vld [vmem:[%s14961_s6 + $0x90] sm:$0xff] }
 0x8b6   : > { %6758 = vrot.lane.b32.xlu0 %v6752_v30, %s11855_s12  ;;  %v6753_v14 = vsel %vm3210_vm1, %v6750_v7, %v6752_v30  ;;  %v6770_v33 = vsel %vm3312_vm0, %v6767_v63, %v6769_v3  ;;  %v6787_v17 = vsel %vm3414_vm2, %v6784_v55, %v6786_v5  ;;  %v7023_v7 = vunpack.c.l.b16 %v14315_v26  ;;  %v11335_v63 = vld [vmem:[%s14961_s6 + $0x78] sm:$0xff]  ;;  %v11345_v26 = vld [vmem:[%s14961_s6 + $0xc8] sm:$0xff] }
 0x8b7   : > { %6771 = vrot.lane.b32.xlu1 %v6768_v16, %s15019_s24  ;;  %6756 = vrot.lane.b32.xlu2 %v6753_v14, %s11855_s12  ;;  %v7068_v30 = vunpack.c.l.b16 %v14321_v35  ;;  %v7153_v16 = vld [vmem:[#allocation2 + $0x4] sm:$0x8]  ;;  %v7154_v14 = vld [vmem:[#allocation2 + $0xc] sm:$0x7]  ;;  %v7118_v1 = vpack.c.b16 %v7116_v32, %v7116_v32  ;;  %s14983_s12 = sand.u32 1, %s11843_s18  }
 0x8b8   : > { %v7024_v43 = vpack.c.b16 %v7023_v7, %v11555_v45  ;;  %7190 = vmatpush.bf16.msra.mxu3 %v11335_v63  ;;  %v11340_v7 = vld [vmem:[%s14961_s6 + $0xa0] sm:$0xff]  ;;  %s14412_s30 = sshll.u32 %s14983_s12, 3 }
 0x8b9   : > { %v6741_v8 = vpop.f32.mrf.mxu3  ;;  %v7117_v55 = vpack.c.b16 %v7068_v30, %v7115_v25  ;;  %v7120_v36 = vrot.slane %v7118_v1, 2  ;;  %v7208_v20 = vpack.c.b16 %v7207_v39, %v7068_v30  ;;  %s14984_s19 = scalar_lea.vmem [#allocation4], %s14412_s30  ;;  %s15020_s12 = scalar_lea.vmem [#allocation4], %s14412_s30 }
 0x8ba   : > { %10477 = vmatmul.msk.bf16.vlgmr.msra.gmra.mxu0 %vm6819_vm11, %v7024_v43  ;;  %v11331_v8 = vld [vmem:[%s14961_s6 + $0x58] sm:$0xff]  ;;  %s8942_s14 = sshll.u32 %s15020_s12, 4  ;;  %s8943_s14 = int_to_ptr.vmem [resolvable:$true] %s8942_s14 }
 0x8bb   : > { %7096 = vmatpush.bf16.msra.mxu1 %v11331_v8  ;;  %v7119_v46 = vrot.slane %v7117_v55, 2 }
 0x8bc   : > { %7191 = vmatpush.bf16.msra.mxu3 %v11334_v60  ;;  %v11353_v60 = vld [vmem:[%s14961_s6 + $0x108] sm:$0xff] }
 0x8bd   : > { %v7121_v9 = vsel %vm3312_vm0, %v7119_v46, %v7120_v36  ;;  %v11348_v36 = vld [vmem:[%s14961_s6 + $0xe0] sm:$0xff] }
 0x8be   : > { %6775 = vrot.lane.b32.xlu0 %v6769_v3, %s15019_s24  ;;  %v11332_v3 = vld [vmem:[%s14961_s6 + $0x60] sm:$0xff] }
 0x8bf   : > { %6788 = vrot.lane.b32.xlu1 %v6785_v12, %s15017_s22  ;;  %6773 = vrot.lane.b32.xlu2 %v6770_v33, %s15019_s24  ;;  %v7162_v12 = vunpack.c.l.b16 %v7153_v16  ;;  %v7163_v33 = vunpack.c.l.b16 %v7154_v14 }
 0x8c0   : > { %7144 = vmatpush.bf16.msra.mxu2 %v11332_v3  ;;  %7097 = vmatpush.bf16.msra.mxu1 %v11330_v42 }
 0x8c1   : > { %v7164_v51 = vpack.c.b16 %v7068_v30, %v7162_v12  ;;  %v7165_v22 = vpack.c.b16 %v7163_v33, %v7163_v33  ;;  %7374 = vmatpush.bf16.msrb.mxu3 %v11343_v19  ;;  %v11357_v19 = vld [vmem:[%s14961_s6 + $0x128] sm:$0xff] }
 0x8c3   : > { %v7166_v40 = vrot.slane %v7164_v51, 3  ;;  %v7167_v57 = vrot.slane %v7165_v22, 3  ;;  %v11350_v51 = vld [vmem:[%s14961_s6 + $0xf0] sm:$0xff]  ;;  %v11352_v22 = vld [vmem:[%s14961_s6 + $0x100] sm:$0xff] }
 0x8c4   : > { %10503 = vmatmul.msk.bf16.vlgmr.msra.gmra.mxu2 %vm6819_vm11, %v7121_v9 }
 0x8c5   : > { %v7168_v44 = vsel %vm3414_vm2, %v7166_v40, %v7167_v57  ;;  %7327 = vmatpush.bf16.msrb.mxu2 %v11341_v18  ;;  %7375 = vmatpush.bf16.msrb.mxu3 %v11342_v29  ;;  %v7290_v57 = vld [vmem:[#allocation2 + $0x8] sm:$0xc] }
 0x8c6   : > { %6792 = vrot.lane.b32.xlu0 %v6786_v5, %s15017_s22  ;;  %10516 = vmatmul.msk.bf16.vlgmr.msra.gmra.mxu3 %vm6819_vm11, %v7168_v44  ;;  %v7299_v59 = vunpack.c.l.b16 %v7290_v57 }
 0x8c7   : > { %6790 = vrot.lane.b32.xlu2 %v6787_v17, %s15017_s22  ;;  %v7056_v17 = vld [vmem:[#allocation2 + $0x4] sm:$0xe] }
 0x8c8   : > { %v7067_v45 = vunpack.c.l.b16 %v7056_v17  ;;  %v11349_v17 = vld [vmem:[%s14961_s6 + $0xe8] sm:$0xff] }
 0x8c9   : > { %7328 = vmatpush.bf16.msrb.mxu2 %v11340_v7 }
 0x8ca   : > { %v7070_v61 = vpack.c.b16 %v7068_v30, %v7067_v45  ;;  %v11346_v45 = vld [vmem:[%s14961_s6 + $0xd0] sm:$0xff] }
 0x8cc   : > { %v7072_v54 = vrot.slane %v7070_v61, 1  ;;  %v7337_v61 = vld [vmem:[#allocation2 + $0x8] sm:$0x8] }
 0x8cd   : > { %7511 = vmatpush.bf16.msra.mxu2 %v11349_v17  ;;  %v7346_v44 = vunpack.c.l.b16 %v7337_v61 }
 0x8ce   : > { %v7074_v11 = vsel %vm3210_vm1, %v7072_v54, %v7073_v31  ;;  %v7301_v31 = vpack.c.b16 %v7252_v6, %v7299_v59  ;;  %v11363_v59 = vld [vmem:[%s14961_s6 + $0x158] sm:$0xff] }
 0x8cf   : > { %10490 = vmatmul.msk.bf16.vlgmr.msra.gmra.mxu1 %vm6819_vm11, %v7074_v11 }
 0x8d1   : > { %7512 = vmatpush.bf16.msra.mxu2 %v11348_v36 }
 0x911   : > { %v6757_v0 = vpop.permute.xlu2 %6756 }
 0x912   : > { %v6764_v48 = vadd.f32 %v6757_v0, %v14250_v52  ;;  %v11336_v52 = vld [vmem:[%s14961_s6 + $0x80] sm:$0xff]  ;;  %v11339_v0 = vld [vmem:[%s14961_s6 + $0x98] sm:$0xff] }
 0x913   : > { %7231 = vmatpush.bf16.msrb.mxu0 %v11336_v52  ;;  %7280 = vmatpush.bf16.msrb.mxu1 %v11339_v0 }
 0x916   : > { %10529 = vmatmul.msk.bf16.vlgmr.msrb.gmra.mxu0 %vm6819_vm11, %v7208_v20 }
 0x917   : > { %7414 = vmatpush.bf16.msra.mxu0 %v11345_v26  ;;  %7281 = vmatpush.bf16.msrb.mxu1 %v11338_v38  ;;  %v11355_v26 = vld [vmem:[%s14961_s6 + $0x118] sm:$0xff] }
 0x919   : > { %v6774_v5 = vpop.permute.xlu2 %6773 }
 0x91a   : > { %v6781_v28 = vadd.f32 %v6774_v5, %v6764_v48  ;;  %v7251_v48 = vunpack.c.l.b16 %v7240_v10 }
 0x91b   : > { %7464 = vmatpush.bf16.msra.mxu1 %v11347_v2 }
 0x91c   : > { %v7254_v54 = vpack.c.b16 %v7252_v6, %v7251_v48  ;;  %v11367_v48 = vld [vmem:[%s14961_s6 + $0x178] sm:$0xff] }
 0x91f   : > { %7465 = vmatpush.bf16.msra.mxu1 %v11346_v45 }
 0x921   : > { %v6755_v49 = vpop.permute.xlu1 %6754  ;;  %v6791_v58 = vpop.permute.xlu2 %6790 }
 0x922   : > { %v6798_v4 = vadd.f32 %v6791_v58, %v6781_v28  ;;  %v6763_v53 = vadd.f32 %v6755_v49, %v14248_v47  ;;  %v11344_v47 = vld [vmem:[%s14961_s6 + $0xc0] sm:$0xff]  ;;  %v7348_v58 = vpack.c.b16 %v7252_v6, %v7346_v44 }
 0x923   : > { %7415 = vmatpush.bf16.msra.mxu0 %v11344_v47  ;;  %v7474_v47 = vld [vmem:[#allocation2 + $0xc] sm:$0xc] }
 0x924   : > { %v6804_v62 = vadd.f32 %v6802_v24, %v6798_v4 }
 0x926   : > { %v6807_v13 = vmax.f32 %v6804_v62, 0.0 }
 0x927   : > { %7598 = vmatpush.bf16.msrb.mxu0 %v11353_v60 }
 0x928   : > { %v6811_v56 = vmul.f32 %v6809_v34, %v6807_v13  ;;  %v6759_v41 = vpop.permute.xlu0 %6758  ;;  %v7303_v13 = vrot.slane %v7301_v31, 2  ;;  %v7610_v31 = vld [vmem:[#allocation2 + $0x18] sm:$0x1] }
 0x929   : > { %v6772_v15 = vpop.permute.xlu1 %6771  ;;  %v6765_v32 = vadd.f32 %v6759_v41, %v14256_v23  ;;  %v11351_v23 = vld [vmem:[%s14961_s6 + $0xf8] sm:$0xff]  ;;  %v7350_v41 = vrot.slane %v7348_v58, 3 }
 0x92a   : > { %v6815_v21 = vadd.f32 %v6813_v37, %v6811_v56  ;;  %v6780_v43 = vadd.f32 %v6772_v15, %v6763_v53  ;;  %7558 = vmatpush.bf16.msra.mxu3 %v11351_v23  ;;  %v11361_v15 = vld [vmem:[%s14961_s6 + $0x148] sm:$0xff]  ;;  %v11359_v53 = vld [vmem:[%s14961_s6 + $0x138] sm:$0xff] }
 0x92b   : > { %7599 = vmatpush.bf16.msrb.mxu0 %v11352_v22 }
 0x92c   : > { %6820 = vst.msk [vmem:[#allocation3 + $0x7] sm:$0xff] %vm6819_vm11, %v6815_v21 }
 0x92e   : > { %7559 = vmatpush.bf16.msra.mxu3 %v11350_v51 }
 0x930   : > { %v6776_v50 = vpop.permute.xlu0 %6775 }
 0x931   : > { %v6789_v63 = vpop.permute.xlu1 %6788  ;;  %v6782_v14 = vadd.f32 %v6776_v50, %v6765_v32  ;;  %v7426_v50 = vld [vmem:[#allocation2 + $0x14] sm:$0x1]  ;;  %v7521_v32 = vld [vmem:[#allocation2 + $0xc] sm:$0x8] }
 0x932   : > { %v6797_v30 = vadd.f32 %v6789_v63, %v6780_v43  ;;  %v7424_v43 = vld [vmem:[#allocation2 + $0xc] sm:$0xe]  ;;  %v7530_v17 = vunpack.c.l.b16 %v7521_v32 }
 0x934   : > { %v6803_v25 = vadd.f32 %v6802_v24, %v6797_v30  ;;  %v7475_v30 = vld [vmem:[#allocation2 + $0x14] sm:$0x3] }
 0x936   : > { %v6806_v16 = vmax.f32 %v6803_v25, 0.0  ;;  %v11360_v25 = vld [vmem:[%s14961_s6 + $0x140] sm:$0xff] }
 0x938   : > { %v6810_v8 = vmul.f32 %v6809_v34, %v6806_v16  ;;  %v6793_v3 = vpop.permute.xlu0 %6792  ;;  %v7522_v16 = vld [vmem:[#allocation2 + $0x14] sm:$0x7] }
 0x939   : > { %v6799_v55 = vadd.f32 %v6793_v3, %v6782_v14  ;;  %v11356_v14 = vld [vmem:[%s14961_s6 + $0x120] sm:$0xff]  ;;  %v11358_v3 = vld [vmem:[%s14961_s6 + $0x130] sm:$0xff]  ;;  %v7531_v23 = vunpack.c.l.b16 %v7522_v16 }
 0x93a   : > { %v6814_v1 = vadd.f32 %v6813_v37, %v6810_v8  ;;  %v7437_v8 = vunpack.c.l.b16 %v7426_v50  ;;  %v7792_v16 = vld [vmem:[#allocation2 + $0x14] sm:$0xe] }
 0x93b   : > { %v6805_v12 = vadd.f32 %v6802_v24, %v6799_v55  ;;  %v11354_v55 = vld [vmem:[%s14961_s6 + $0x110] sm:$0xff]  ;;  %v7533_v45 = vpack.c.b16 %v7531_v23, %v7531_v23 }
 0x93c   : > { %6818 = vst.msk [vmem:[#allocation3 - $0x1] sm:$0xfe] %vm6817_vm12, %v6814_v1  ;;  %v7439_v2 = vpack.c.b16 %v7437_v8, %v7437_v8  ;;  %v7794_v8 = vld [vmem:[#allocation2 + $0x1c] sm:$0x1]  ;;  %v7889_v23 = vld [vmem:[#allocation2 + $0x14] sm:$0x8] }
 0x93d   : > { %v6808_v33 = vmax.f32 %v6805_v12, 0.0  ;;  %v7435_v12 = vunpack.c.l.b16 %v7424_v43  ;;  %v7535_v61 = vrot.slane %v7533_v45, 3 }
 0x93f   : > { %v6812_v5 = vmul.f32 %v6809_v34, %v6808_v33  ;;  %v7256_v34 = vrot.slane %v7254_v54, 1  ;;  %v7483_v33 = vunpack.c.l.b16 %v7474_v47 }
 0x941   : > { %v6816_v46 = vadd.f32 %v6813_v37, %v6812_v5  ;;  %v7484_v5 = vunpack.c.l.b16 %v7475_v30 }
 0x943   : > { %6822 = vst.msk [vmem:[#allocation3 + $0xf] sm:$0x1] %vm6821_vm13, %v6816_v46  ;;  %v6823_v27 = vld [vmem:[#allocation3] ss:$2 sm:$0xff]  ;;  %v7486_v51 = vpack.c.b16 %v7484_v5, %v7484_v5 }
 0x945   : > { %v7488_v10 = vrot.slane %v7486_v51, 2  ;;  %v7805_v51 = vunpack.c.l.b16 %v7794_v8 }
 0x94a   : > { %v6824_v9 = vld [vmem:[#allocation3 + $0x1] ss:$2 sm:$0xff] }
 0x94b   : > { %v6825_v42 = vmax.f32 %v6823_v27, %v6824_v9  ;;  %v7441_v27 = vrot.slane %v7439_v2, 1  ;;  %v7890_v2 = vld [vmem:[#allocation2 + $0x1c] sm:$0x7] }
 0x94d   : > { %v6827_v40 = vpack.c.bf16 %v6825_v42, %v6825_v42  ;;  %6826 = vst.msk [vmem:[%s14984_s19] sm:$0xff] %vm6819_vm11, %v6825_v42  ;;  %s11038_s19 = sshll.u32 %s11942_s21, 3 }
 0x94e   : > { %s8940_s13 = scalar_lea.hbm %s14966_s11, %s11038_s19 }
 0x94f   : > { %6829 = vst.msk [vmem:[#allocation2 + $0x10] sm:$0xf] %vm6828_vm14, %v6827_v40  ;;  %s8944_s22 = sshll.u32 %s8940_s13, 4  ;;  %s8945_s22 = int_to_ptr.hbm [resolvable:$true] %s8944_s22 }
 0x950   : > { %s11794_s15 = sshra.s32 %s8945_s22, 4  ;;  %s11795_s15 = int_to_ptr.hbm [resolvable:$true] %s11794_s15 }
 0x951   : > { %p11801_p0 = scmp.lt.s32.totalorder %s11795_s15, %s14966_s11 }
 0x956   : > { %v14419_v28 = vld [vmem:[#allocation2 + $0x10] sm:$0xff]  }
 0x957   : > { %v7242_v24 = vld [vmem:[#allocation2 + $0x10] sm:$0x1]  ;;  %v7391_v11 = vunpack.c.l.b16 %v14419_v28  ;;  %v7575_v60 = vunpack.c.h.b16 %v14419_v28  ;;  %v7659_v28 = vld [vmem:[#allocation2 + $0x18] sm:$0x3]  ;;  %v7658_v58 = vld [vmem:[#allocation2 + $0x10] sm:$0xc] }
 0x958   : > { %v7291_v49 = vld [vmem:[#allocation2 + $0x10] sm:$0x3]  ;;  %v7253_v4 = vunpack.c.l.b16 %v7242_v24 }
 0x959   : > { %v7300_v52 = vunpack.c.l.b16 %v7291_v49  ;;  %v7338_v39 = vld [vmem:[#allocation2 + $0x10] sm:$0x7]  ;;  %v7392_v20 = vpack.c.b16 %v7391_v11, %v7252_v6  ;;  %v11365_v6 = vld [vmem:[%s14961_s6 + $0x168] sm:$0xff]  ;;  %v7706_v11 = vld [vmem:[#allocation2 + $0x18] sm:$0x7] }
 0x95a   : > { %v7347_v62 = vunpack.c.l.b16 %v7338_v39  ;;  %v7255_v37 = vpack.c.b16 %v7253_v4, %v7253_v4  ;;  %v7425_v63 = vld [vmem:[#allocation2 + $0x10] sm:$0xff]   ;;  %v11369_v39 = vld [vmem:[%s14961_s6 + $0x188] sm:$0xff] }
 0x95b   : > { %v7302_v35 = vpack.c.b16 %v7300_v52, %v7300_v52  ;;  %10581 = vmatmul.msk.bf16.vlgmr.msra.gmra.mxu0 %vm6819_vm11, %v7392_v20  ;;  %v7436_v1 = vunpack.c.l.b16 %v7425_v63  ;;  %v7608_v49 = vld [vmem:[#allocation2 + $0x10] sm:$0xe]  ;;  %v11364_v52 = vld [vmem:[%s14961_s6 + $0x160] sm:$0xff] }
 0x95c   : > { %v7349_v56 = vpack.c.b16 %v7347_v62, %v7347_v62  ;;  %v7257_v21 = vrot.slane %v7255_v37, 1  ;;  %7782 = vmatpush.bf16.msra.mxu0 %v11361_v15  ;;  %v7705_v4 = vld [vmem:[#allocation2 + $0x10] sm:$0x8]  ;;  %v7619_v37 = vunpack.c.l.b16 %v7608_v49 }
 0x95d   : > { %v7304_v18 = vrot.slane %v7302_v35, 2  ;;  %v7438_v46 = vpack.c.b16 %v7436_v1, %v7435_v12  ;;  %v7485_v36 = vpack.c.b16 %v7436_v1, %v7483_v33  ;;  %v7532_v22 = vpack.c.b16 %v7436_v1, %v7530_v17  ;;  %v11366_v62 = vld [vmem:[%s14961_s6 + $0x170] sm:$0xff]  ;;  %v11375_v12 = vld [vmem:[%s14961_s6 + $0x1b8] sm:$0xff] }
 0x95e   : > { %v7351_v0 = vrot.slane %v7349_v56, 3  ;;  %v7258_v7 = vsel %vm3210_vm1, %v7256_v34, %v7257_v21  ;;  %v7576_v9 = vpack.c.b16 %v7575_v60, %v7436_v1  ;;  %v7621_v34 = vunpack.c.l.b16 %v7610_v31  ;;  %v11362_v20 = vld [vmem:[%s14961_s6 + $0x150] sm:$0xff]  ;;  %v7843_v1 = vld [vmem:[#allocation2 + $0x1c] sm:$0x3] }
 0x95f   : > { %v7305_v29 = vsel %vm3312_vm0, %v7303_v13, %v7304_v18  ;;  %10542 = vmatmul.msk.bf16.vlgmr.msrb.gmra.mxu1 %vm6819_vm11, %v7258_v7  ;;  %v7440_v42 = vrot.slane %v7438_v46, 1  ;;  %v7487_v40 = vrot.slane %v7485_v36, 2  ;;  %v7534_v57 = vrot.slane %v7532_v22, 3  ;;  %v14485_v18 = vld [vmem:[#allocation2 + $0x18] sm:$0xff]  }
 0x960   : > { %10555 = vmatmul.msk.bf16.vlgmr.msrb.gmra.mxu2 %vm6819_vm11, %v7305_v29  ;;  %v7352_v38 = vsel %vm3414_vm2, %v7350_v41, %v7351_v0  ;;  %7648 = vmatpush.bf16.msrb.mxu1 %v11355_v26  ;;  %v7620_v35 = vunpack.c.h.b16 %v7425_v63  ;;  %v7667_v13 = vunpack.c.l.b16 %v7658_v58  ;;  %v7668_v56 = vunpack.c.l.b16 %v7659_v28  ;;  %v11368_v41 = vld [vmem:[%s14961_s6 + $0x180] sm:$0xff]  ;;  %v11371_v33 = vld [vmem:[%s14961_s6 + $0x198] sm:$0xff] }
 0x961   : > { %10568 = vmatmul.msk.bf16.vlgmr.msrb.gmra.mxu3 %vm6819_vm11, %v7352_v38  ;;  %7695 = vmatpush.bf16.msrb.mxu2 %v11357_v19  ;;  %v7442_v44 = vsel %vm3210_vm1, %v7440_v42, %v7441_v27  ;;  %v7489_v54 = vsel %vm3312_vm0, %v7487_v40, %v7488_v10  ;;  %v7536_v24 = vsel %vm3414_vm2, %v7534_v57, %v7535_v61  ;;  %v7714_v15 = vunpack.c.l.b16 %v7705_v4  ;;  %v11372_v27 = vld [vmem:[%s14961_s6 + $0x1a0] sm:$0xff]  ;;  %v11374_v10 = vld [vmem:[%s14961_s6 + $0x1b0] sm:$0xff] }
 0x962   : > { %7742 = vmatpush.bf16.msrb.mxu3 %v11359_v53  ;;  %7783 = vmatpush.bf16.msra.mxu0 %v11360_v25  ;;  %v7715_v21 = vunpack.c.l.b16 %v7706_v11  ;;  %v7623_v19 = vpack.c.b16 %v7621_v34, %v7621_v34  ;;  %v7622_v0 = vpack.c.b16 %v7620_v35, %v7619_v37  ;;  %v7669_v53 = vpack.c.b16 %v7620_v35, %v7667_v13  ;;  %v11370_v57 = vld [vmem:[%s14961_s6 + $0x190] sm:$0xff]  ;;  %v11376_v61 = vld [vmem:[%s14961_s6 + $0x1c0] sm:$0xff]  ;;  %v7976_v34 = vld [vmem:[#allocation2 + $0x18] sm:$0xe] }
 0x963   : > { %v7670_v26 = vpack.c.b16 %v7668_v56, %v7668_v56  ;;  %v7759_v7 = vunpack.c.l.b16 %v14485_v18  ;;  %v7716_v29 = vpack.c.b16 %v7620_v35, %v7714_v15  ;;  %v7803_v46 = vunpack.c.l.b16 %v7792_v16  ;;  %v7978_v37 = vld [vmem:[#allocation2 + $0x20] sm:$0x1]  ;;  %v11381_v13 = vld [vmem:[%s14961_s6 + $0x1e8] sm:$0xff]  ;;  %v11383_v15 = vld [vmem:[%s14961_s6 + $0x1f8] sm:$0xff] }
 0x964   : > { %7649 = vmatpush.bf16.msrb.mxu1 %v11354_v55  ;;  %v7717_v43 = vpack.c.b16 %v7715_v21, %v7715_v21  ;;  %v7625_v50 = vrot.slane %v7623_v19, 1  ;;  %v7624_v47 = vrot.slane %v7622_v0, 1  ;;  %v7671_v38 = vrot.slane %v7669_v53, 2  ;;  %v11373_v55 = vld [vmem:[%s14961_s6 + $0x1a8] sm:$0xff]  ;;  %v11379_v21 = vld [vmem:[%s14961_s6 + $0x1d8] sm:$0xff]  ;;  %v11378_v16 = vld [vmem:[%s14961_s6 + $0x1d0] sm:$0xff] }
 0x965   : > { %7696 = vmatpush.bf16.msrb.mxu2 %v11356_v14  ;;  %v7672_v63 = vrot.slane %v7670_v26, 2  ;;  %v7760_v30 = vpack.c.b16 %v7759_v7, %v7620_v35  ;;  %v7718_v25 = vrot.slane %v7716_v29, 3  ;;  %v14488_v14 = vld [vmem:[#allocation2 + $0x18] sm:$0xff]   ;;  %v7852_v45 = vunpack.c.l.b16 %v7843_v1  ;;  %v8074_v19 = vld [vmem:[#allocation2 + $0x20] sm:$0x7]  ;;  %v6884_v7 = vpop.f32.mrf.mxu0  ;;  %v6916_v29 = vpop.f32.mrf.mxu1 }
 0x966   : > { %7743 = vmatpush.bf16.msrb.mxu3 %v11358_v3  ;;  %v7719_v32 = vrot.slane %v7717_v43, 3  ;;  %v7842_v3 = vld [vmem:[#allocation2 + $0x14] sm:$0xc]  ;;  %v7626_v5 = vsel %vm3210_vm1, %v7624_v47, %v7625_v50  ;;  %v7804_v36 = vunpack.c.l.b16 %v14488_v14  ;;  %v7898_v42 = vunpack.c.l.b16 %v7889_v23  ;;  %v8026_v35 = vld [vmem:[#allocation2 + $0x18] sm:$0xc]  ;;  %v11380_v47 = vld [vmem:[%s14961_s6 + $0x1e0] sm:$0xff]  ;;  %v7009_v1 = vpop.f32.mrf.mxu3 }
 0x967   : > { %v7673_v17 = vsel %vm3312_vm0, %v7671_v38, %v7672_v63  ;;  %v7851_v22 = vunpack.c.l.b16 %v7842_v3  ;;  %v7899_v40 = vunpack.c.l.b16 %v7890_v2  ;;  %v7987_v0 = vunpack.c.l.b16 %v7976_v34 }
 0x968   : > { %v7720_v60 = vsel %vm3414_vm2, %v7718_v25, %v7719_v32  ;;  %v7900_v31 = vpack.c.b16 %v7804_v36, %v7898_v42  ;;  %v7988_v53 = vunpack.c.h.b16 %v14488_v14  ;;  %v7989_v26 = vunpack.c.l.b16 %v7978_v37  ;;  %v8120_v25 = vld [vmem:[#allocation2 + $0x20] sm:$0xf]  ;;  %v11382_v32 = vld [vmem:[%s14961_s6 + $0x1f0] sm:$0xff]  ;;  %v6961_v14 = vpop.f32.mrf.mxu2 }
 0x969   : > { %v7901_v28 = vpack.c.b16 %v7899_v40, %v7899_v40  ;;  %v8035_v43 = vunpack.c.l.b16 %v8026_v35  ;;  %v6917_v38 = vadd.f32 %v6916_v29, %v6884_v7  ;;  %v8160_v40 = vld [vmem:[#allocation2 + $0x1c] sm:$0xe] }
 0x96a   : > { %v7990_v3 = vpack.c.b16 %v7988_v53, %v7987_v0 }
 0x96b   : > { %10633 = vmatmul.msk.bf16.vlgmr.msrb.gmra.mxu0 %vm6819_vm11, %v7576_v9  ;;  %v11377_v9 = vld [vmem:[%s14961_s6 + $0x1c8] sm:$0xff]  ;;  %v6966_v8 = vadd.f32 %v6961_v14, %v6917_v38 }
 0x96c   : > { %7966 = vmatpush.bf16.msrb.mxu0 %v11369_v39  ;;  %v7903_v39 = vrot.slane %v7901_v28, 3 }
 0x96f   : > { %10594 = vmatmul.msk.bf16.vlgmr.msra.gmra.mxu1 %vm6819_vm11, %v7442_v44  ;;  %v7854_v44 = vpack.c.b16 %v7852_v45, %v7852_v45 }
 0x970   : > { %10607 = vmatmul.msk.bf16.vlgmr.msra.gmra.mxu2 %vm6819_vm11, %v7489_v54  ;;  %7832 = vmatpush.bf16.msra.mxu1 %v11363_v59  ;;  %v7853_v59 = vpack.c.b16 %v7804_v36, %v7851_v22  ;;  %v7943_v54 = vunpack.c.h.b16 %v14485_v18  ;;  %v8073_v18 = vld [vmem:[#allocation2 + $0x18] sm:$0x8]  ;;  %v6963_v29 = vpop.f32.mrf.mxu2 }
 0x971   : > { %10620 = vmatmul.msk.bf16.vlgmr.msra.gmra.mxu3 %vm6819_vm11, %v7536_v24  ;;  %7879 = vmatpush.bf16.msra.mxu2 %v11365_v6  ;;  %v7806_v6 = vpack.c.b16 %v7804_v36, %v7803_v46  ;;  %v7856_v11 = vrot.slane %v7854_v44, 2  ;;  %v8082_v63 = vunpack.c.l.b16 %v8073_v18  ;;  %v8258_v44 = vld [vmem:[#allocation2 + $0x24] sm:$0x7] }
 0x972   : > { %7926 = vmatpush.bf16.msra.mxu3 %v11367_v48  ;;  %7967 = vmatpush.bf16.msrb.mxu0 %v11368_v41  ;;  %v7807_v48 = vpack.c.b16 %v7805_v51, %v7805_v51  ;;  %v7855_v58 = vrot.slane %v7853_v59, 2  ;;  %v7944_v4 = vpack.c.b16 %v7943_v54, %v7804_v36  ;;  %v8027_v41 = vld [vmem:[#allocation2 + $0x20] sm:$0x3]  ;;  %v8257_v59 = vld [vmem:[#allocation2 + $0x1c] sm:$0x8]  ;;  %v8171_v54 = vunpack.c.l.b16 %v8160_v40 }
 0x973   : > { %v7808_v24 = vrot.slane %v7806_v6, 1  ;;  %v8036_v50 = vunpack.c.l.b16 %v8027_v41  ;;  %v8084_v23 = vpack.c.b16 %v7988_v53, %v8082_v63  ;;  %v8210_v6 = vld [vmem:[#allocation2 + $0x1c] sm:$0xc] }
 0x974   : > { %7833 = vmatpush.bf16.msra.mxu1 %v11362_v20  ;;  %v7809_v49 = vrot.slane %v7807_v48, 1  ;;  %v7857_v20 = vsel %vm3312_vm0, %v7855_v58, %v7856_v11  ;;  %v8211_v48 = vld [vmem:[#allocation2 + $0x24] sm:$0x3]  ;;  %v8266_v58 = vunpack.c.l.b16 %v8257_v59  ;;  %v8267_v11 = vunpack.c.l.b16 %v8258_v44 }
 0x975   : > { %7880 = vmatpush.bf16.msra.mxu2 %v11364_v52  ;;  %v7902_v52 = vrot.slane %v7900_v31, 3  ;;  %v8086_v45 = vrot.slane %v8084_v23, 3 }
 0x976   : > { %7927 = vmatpush.bf16.msra.mxu3 %v11366_v62  ;;  %v7810_v62 = vsel %vm3210_vm1, %v7808_v24, %v7809_v49  ;;  %v8219_v24 = vunpack.c.l.b16 %v8210_v6  ;;  %v8220_v49 = vunpack.c.l.b16 %v8211_v48 }
 0x977   : > { %v7904_v56 = vsel %vm3414_vm2, %v7902_v52, %v7903_v39 }
 0x978   : > { %v8222_v34 = vpack.c.b16 %v8220_v49, %v8220_v49  ;;  %v7146_v38 = vpop.f32.mrf.mxu2 }
 0x97b   : > { %10685 = vmatmul.msk.bf16.vlgmr.msra.gmra.mxu0 %vm6819_vm11, %v7760_v30  ;;  %v8083_v30 = vunpack.c.l.b16 %v8074_v19 }
 0x97c   : > { %8150 = vmatpush.bf16.msra.mxu0 %v11377_v9 }
 0x97d   : > { %v8085_v2 = vpack.c.b16 %v8083_v30, %v8083_v30 }
 0x97f   : > { %10646 = vmatmul.msk.bf16.vlgmr.msrb.gmra.mxu1 %vm6819_vm11, %v7626_v5  ;;  %v8127_v5 = vunpack.c.l.b16 %v8120_v25 }
 0x980   : > { %10659 = vmatmul.msk.bf16.vlgmr.msrb.gmra.mxu2 %vm6819_vm11, %v7673_v17  ;;  %8016 = vmatpush.bf16.msrb.mxu1 %v11371_v33  ;;  %v8038_v33 = vpack.c.b16 %v8036_v50, %v8036_v50  ;;  %v14549_v17 = vadd.f32 %v7009_v1, %v6966_v8 }
 0x981   : > { %10672 = vmatmul.msk.bf16.vlgmr.msrb.gmra.mxu3 %vm6819_vm11, %v7720_v60  ;;  %8063 = vmatpush.bf16.msrb.mxu2 %v11373_v55  ;;  %v7991_v55 = vpack.c.b16 %v7989_v26, %v7989_v26  ;;  %v7992_v60 = vrot.slane %v7990_v3, 1  ;;  %v8128_v22 = vpack.c.b16 %v8127_v5, %v7988_v53  ;;  %v6918_v26 = vpop.f32.mrf.mxu1 }
 0x982   : > { %8110 = vmatpush.bf16.msrb.mxu3 %v11375_v12  ;;  %8151 = vmatpush.bf16.msra.mxu0 %v11376_v61  ;;  %v8037_v12 = vpack.c.b16 %v7988_v53, %v8035_v43  ;;  %v8040_v51 = vrot.slane %v8038_v33, 2  ;;  %v8162_v61 = vld [vmem:[#allocation2 + $0x24] sm:$0x1]  ;;  %v7011_v43 = vpop.f32.mrf.mxu3 }
 0x983   : > { %v7993_v46 = vrot.slane %v7991_v55, 1  ;;  %v8173_v28 = vunpack.c.l.b16 %v8162_v61 }
 0x984   : > { %8017 = vmatpush.bf16.msrb.mxu1 %v11370_v57  ;;  %v8039_v36 = vrot.slane %v8037_v12, 2 }
 0x985   : > { %8064 = vmatpush.bf16.msrb.mxu2 %v11372_v27  ;;  %v8087_v27 = vrot.slane %v8085_v2, 3  ;;  %v7994_v9 = vsel %vm3210_vm1, %v7992_v60, %v7993_v46  ;;  %v8175_v52 = vpack.c.b16 %v8173_v28, %v8173_v28 }
 0x986   : > { %8111 = vmatpush.bf16.msrb.mxu3 %v11374_v10  ;;  %v8041_v42 = vsel %vm3312_vm0, %v8039_v36, %v8040_v51  ;;  %v8161_v10 = vld [vmem:[#allocation2 + $0x20] sm:$0xf] }
 0x987   : > { %v8088_v57 = vsel %vm3414_vm2, %v8086_v45, %v8087_v27  ;;  %v8172_v31 = vunpack.c.l.b16 %v8161_v10  ;;  %v8177_v35 = vrot.slane %v8175_v52, 1 }
 0x989   : > { %v8221_v39 = vpack.c.b16 %v8172_v31, %v8219_v24  ;;  %v7099_v50 = vpop.f32.mrf.mxu1 }
 0x98a   : > { %v7193_v63 = vpop.f32.mrf.mxu3 }
 0x98b   : > { %10737 = vmatmul.msk.bf16.vlgmr.msrb.gmra.mxu0 %vm6819_vm11, %v7944_v4  ;;  %v8174_v4 = vpack.c.b16 %v8172_v31, %v8171_v54 }
 0x98d   : > { %v8176_v37 = vrot.slane %v8174_v4, 1 }
 0x98f   : > { %10698 = vmatmul.msk.bf16.vlgmr.msra.gmra.mxu1 %vm6819_vm11, %v7810_v62  ;;  %v8268_v62 = vpack.c.b16 %v8172_v31, %v8266_v58  ;;  %v8178_v18 = vsel %vm3210_vm1, %v8176_v37, %v8177_v35 }
 0x990   : > { %10711 = vmatmul.msk.bf16.vlgmr.msra.gmra.mxu2 %vm6819_vm11, %v7857_v20  ;;  %8200 = vmatpush.bf16.msra.mxu1 %v11379_v21  ;;  %v8269_v20 = vpack.c.b16 %v8267_v11, %v8267_v11  ;;  %v6886_v21 = vpop.f32.mrf.mxu0 }
 0x991   : > { %10724 = vmatmul.msk.bf16.vlgmr.msra.gmra.mxu3 %vm6819_vm11, %v7904_v56  ;;  %8247 = vmatpush.bf16.msra.mxu2 %v11381_v13  ;;  %v8223_v13 = vrot.slane %v8221_v39, 2  ;;  %v8224_v56 = vrot.slane %v8222_v34, 2  ;;  %v8270_v41 = vrot.slane %v8268_v62, 3  ;;  %v7101_v30 = vpop.f32.mrf.mxu1  ;;  %v6919_v3 = vadd.f32 %v6918_v26, %v6886_v21 }
 0x992   : > { %8294 = vmatpush.bf16.msra.mxu3 %v11383_v15  ;;  %v8271_v15 = vrot.slane %v8269_v20, 3 }
 0x993   : > { %v8225_v19 = vsel %vm3312_vm0, %v8223_v13, %v8224_v56  ;;  %v6967_v1 = vadd.f32 %v6963_v29, %v6919_v3  ;;  %vm8330_vm0 = vcmask 523265  }
 0x994   : > { %8201 = vmatpush.bf16.msra.mxu1 %v11378_v16  ;;  %v8272_v0 = vsel %vm3414_vm2, %v8270_v41, %v8271_v15  ;;  %v7195_v16 = vpop.f32.mrf.mxu3 }
 0x995   : > { %8248 = vmatpush.bf16.msra.mxu2 %v11380_v47  ;;  %v7015_v2 = vadd.f32 %v7011_v43, %v6967_v1 }
 0x996   : > { %8295 = vmatpush.bf16.msra.mxu3 %v11382_v32  ;;  %v7148_v32 = vpop.f32.mrf.mxu2 }
 0x998   : > { %v7049_v53 = vpop.f32.mrf.mxu0 }
 0x999   : > { %v7054_v23 = vadd.f32 %v7049_v53, %v14549_v17 }
 0x99b   : > { %10789 = vmatmul.msk.bf16.vlgmr.msra.gmra.mxu0 %vm6819_vm11, %v8128_v22  ;;  %v7104_v36 = vadd.f32 %v7099_v50, %v7054_v23 }
 0x99d   : > { %v7151_v45 = vadd.f32 %v7146_v38, %v7104_v36 }
 0x99f   : > { %10750 = vmatmul.msk.bf16.vlgmr.msrb.gmra.mxu1 %vm6819_vm11, %v7994_v9  ;;  %v7198_v40 = vadd.f32 %v7193_v63, %v7151_v45 }
 0x9a0   : > { %10763 = vmatmul.msk.bf16.vlgmr.msrb.gmra.mxu2 %vm6819_vm11, %v8041_v42  ;;  %v7051_v7 = vpop.f32.mrf.mxu0 }
 0x9a1   : > { %10776 = vmatmul.msk.bf16.vlgmr.msrb.gmra.mxu3 %vm6819_vm11, %v8088_v57  ;;  %v7055_v46 = vadd.f32 %v7051_v7, %v7015_v2 }
 0x9a3   : > { %v7105_v27 = vadd.f32 %v7101_v30, %v7055_v46 }
 0x9a5   : > { %v7152_v10 = vadd.f32 %v7148_v32, %v7105_v27 }
 0x9a7   : > { %v7199_v48 = vadd.f32 %v7195_v16, %v7152_v10 }
 0x9a8   : > { %v7233_v47 = vpop.f32.mrf.mxu0 }
 0x9a9   : > { %v7238_v6 = vadd.f32 %v7233_v47, %v7198_v40 }
 0x9af   : > { %10802 = vmatmul.msk.bf16.vlgmr.msra.gmra.mxu1 %vm6819_vm11, %v8178_v18 }
 0x9b0   : > { %10815 = vmatmul.msk.bf16.vlgmr.msra.gmra.mxu2 %vm6819_vm11, %v8225_v19  ;;  %v7235_v25 = vpop.f32.mrf.mxu0 }
 0x9b1   : > { %10828 = vmatmul.msk.bf16.vlgmr.msra.gmra.mxu3 %vm6819_vm11, %v8272_v0  ;;  %v7239_v17 = vadd.f32 %v7235_v25, %v7199_v48 }
 0x9d8   : > { %v7417_v14 = vpop.f32.mrf.mxu0 }
 0x9dc   : > { %v7283_v8 = vpop.f32.mrf.mxu1 }
 0x9dd   : > { %v7288_v59 = vadd.f32 %v7283_v8, %v7238_v6 }
 0x9e0   : > { %v7419_v5 = vpop.f32.mrf.mxu0 }
 0x9e3   : > { %v7330_v55 = vpop.f32.mrf.mxu2 }
 0x9e4   : > { %v7377_v12 = vpop.f32.mrf.mxu3  ;;  %v7285_v33 = vpop.f32.mrf.mxu1  ;;  %v7335_v31 = vadd.f32 %v7330_v55, %v7288_v59 }
 0x9e5   : > { %v7289_v49 = vadd.f32 %v7285_v33, %v7239_v17 }
 0x9e6   : > { %v7382_v58 = vadd.f32 %v7377_v12, %v7335_v31 }
 0x9e8   : > { %v7601_v9 = vpop.f32.mrf.mxu0  ;;  %v7422_v39 = vadd.f32 %v7417_v14, %v7382_v58 }
 0x9eb   : > { %v7332_v60 = vpop.f32.mrf.mxu2 }
 0x9ec   : > { %v7379_v51 = vpop.f32.mrf.mxu3  ;;  %v7467_v22 = vpop.f32.mrf.mxu1  ;;  %v7336_v11 = vadd.f32 %v7332_v60, %v7289_v49 }
 0x9ed   : > { %v7472_v37 = vadd.f32 %v7467_v22, %v7422_v39 }
 0x9ee   : > { %v7383_v52 = vadd.f32 %v7379_v51, %v7336_v11 }
 0x9f0   : > { %v7603_v44 = vpop.f32.mrf.mxu0  ;;  %v7423_v13 = vadd.f32 %v7419_v5, %v7383_v52 }
 0x9f3   : > { %v7514_v42 = vpop.f32.mrf.mxu2 }
 0x9f4   : > { %v7561_v57 = vpop.f32.mrf.mxu3  ;;  %v7469_v61 = vpop.f32.mrf.mxu1  ;;  %v7519_v35 = vadd.f32 %v7514_v42, %v7472_v37 }
 0x9f5   : > { %v7473_v56 = vadd.f32 %v7469_v61, %v7423_v13 }
 0x9f6   : > { %v7566_v15 = vadd.f32 %v7561_v57, %v7519_v35 }
 0x9f8   : > { %v7785_v20 = vpop.f32.mrf.mxu0  ;;  %v7606_v26 = vadd.f32 %v7601_v9, %v7566_v15 }
 0x9fb   : > { %v7516_v54 = vpop.f32.mrf.mxu2 }
 0x9fc   : > { %v7563_v28 = vpop.f32.mrf.mxu3  ;;  %v7651_v24 = vpop.f32.mrf.mxu1  ;;  %v7520_v21 = vadd.f32 %v7516_v54, %v7473_v56  ;;  %v14574_v56 = vld [vmem:[%s14964_s9 + $0x14] sm:$0x7] }
 0x9fd   : > { %v7656_v7 = vadd.f32 %v7651_v24, %v7606_v26 }
 0x9fe   : > { %v7567_v53 = vadd.f32 %v7563_v28, %v7520_v21  ;;  %v8324_v21 = vperm.slane %v14574_v56, 1 }
 0xa00   : > { %v7787_v0 = vpop.f32.mrf.mxu0  ;;  %v7607_v50 = vadd.f32 %v7603_v44, %v7567_v53  ;;  %v10907_v53 = vld [vmem:[%s14962_s7 + $0x30] sm:$0xf] }
 0xa03   : > { %v7698_v4 = vpop.f32.mrf.mxu2 }
 0xa04   : > { %v7745_v34 = vpop.f32.mrf.mxu3  ;;  %v7653_v62 = vpop.f32.mrf.mxu1  ;;  %v7703_v43 = vadd.f32 %v7698_v4, %v7656_v7 }
 0xa05   : > { %v7657_v63 = vadd.f32 %v7653_v62, %v7607_v50  ;;  %v11407_v50 = vld [vmem:[%s14962_s7 + $0xb8] sm:$0xf0] }
 0xa06   : > { %v7750_v25 = vadd.f32 %v7745_v34, %v7703_v43  ;;  %v10876_v43 = vld [vmem:[%s14962_s7 + $0xb0] sm:$0xf] }
 0xa08   : > { %v7969_v30 = vpop.f32.mrf.mxu0  ;;  %v7790_v14 = vadd.f32 %v7785_v20, %v7750_v25  ;;  %v8327_v25 = vperm.slane %v14574_v56, 2 }
 0xa0b   : > { %v7700_v41 = vpop.f32.mrf.mxu2 }
 0xa0c   : > { %v7747_v18 = vpop.f32.mrf.mxu3  ;;  %v7835_v19 = vpop.f32.mrf.mxu1  ;;  %v7704_v32 = vadd.f32 %v7700_v41, %v7657_v63  ;;  %v8319_v41 = vperm.slane %v14574_v56, 0  ;;  %v11406_v63 = vld [vmem:[%s14962_s7 + $0xb0] sm:$0xf0]  ;;  %v11029_v56 = vld [vmem:[%s14962_s7 + $0x170] sm:$0xf] }
 0xa0d   : > { %v7840_v1 = vadd.f32 %v7835_v19, %v7790_v14  ;;  %v10919_v19 = vld [vmem:[%s14962_s7 + $0x48] sm:$0xf] }
 0xa0e   : > { %v7751_v8 = vadd.f32 %v7747_v18, %v7704_v32 }
 0xa10   : > { %v7791_v12 = vadd.f32 %v7787_v0, %v7751_v8  ;;  %v7971_v5 = vpop.f32.mrf.mxu0  ;;  %v11394_v0 = vld [vmem:[%s14962_s7 + $0x50] sm:$0xf0]  ;;  %v10870_v8 = vld [vmem:[%s14962_s7 + $0xb4] sm:$0xf0] }
 0xa11   : > { %v10920_v7 = vor.u32 %v11394_v0, %v10919_v19  ;;  %v11418_v19 = vld [vmem:[%s14962_s7 + $0x110] sm:$0xf0]  ;;  %v11393_v0 = vld [vmem:[%s14962_s7 + $0x4c] sm:$0xf] }
 0xa13   : > { %v7882_v29 = vpop.f32.mrf.mxu2  ;;  %8554 = vmatpush.bf16.msrb.mxu3 %v10920_v7  ;;  %v10927_v7 = vld [vmem:[%s14962_s7 + $0x50] sm:$0xf] }
 0xa14   : > { %v7929_v47 = vpop.f32.mrf.mxu3  ;;  %v7837_v38 = vpop.f32.mrf.mxu1  ;;  %v7887_v33 = vadd.f32 %v7882_v29, %v7840_v1  ;;  %v11391_v29 = vld [vmem:[%s14962_s7 + $0x38] sm:$0xf0]  ;;  %v11388_v1 = vld [vmem:[%s14962_s7 + $0x20] sm:$0xf0] }
 0xa15   : > { %v7841_v23 = vadd.f32 %v7837_v38, %v7791_v12  ;;  %v10868_v38 = vld [vmem:[%s14962_s7 + $0xa8] sm:$0xf]  ;;  %v10864_v12 = vld [vmem:[%s14962_s7 + $0x98] sm:$0xf] }
 0xa16   : > { %v7934_v60 = vadd.f32 %v7929_v47, %v7887_v33  ;;  %v10877_v47 = vor.u32 %v11407_v50, %v10876_v43  ;;  %v10869_v14 = vor.u32 %v11406_v63, %v10868_v38  ;;  %v11404_v33 = vld [vmem:[%s14962_s7 + $0xa0] sm:$0xf0]  ;;  %v11411_v38 = vld [vmem:[%s14962_s7 + $0xdc] sm:$0xf]  ;;  %v10948_v63 = vld [vmem:[%s14962_s7 + $0xe4] sm:$0xf0] }
 0xa18   : > { %v7974_v22 = vadd.f32 %v7969_v30, %v7934_v60  ;;  %v8153_v9 = vpop.f32.mrf.mxu0  ;;  %v11405_v30 = vld [vmem:[%s14962_s7 + $0xac] sm:$0xf]  ;;  %8474 = vmatpush.bf16.msrb.mxu2 %v10877_v47  ;;  %8448 = vmatpush.bf16.msrb.mxu0 %v10869_v14  ;;  %v11403_v60 = vld [vmem:[%s14962_s7 + $0x98] sm:$0xf0] }
 0xa19   : > { %v11415_v14 = vld [vmem:[%s14962_s7 + $0xf8] sm:$0xf0] }
 0xa1b   : > { %v7884_v16 = vpop.f32.mrf.mxu2 }
 0xa1c   : > { %v7931_v3 = vpop.f32.mrf.mxu3  ;;  %v8019_v55 = vpop.f32.mrf.mxu1  ;;  %v7888_v46 = vadd.f32 %v7884_v16, %v7841_v23  ;;  %v10908_v16 = vor.u32 %v11391_v29, %v10907_v53  ;;  %v10865_v23 = vor.u32 %v11404_v33, %v10864_v12  ;;  %v11395_v29 = vld [vmem:[%s14962_s7 + $0x58] sm:$0xf0]  ;;  %v11392_v12 = vld [vmem:[%s14962_s7 + $0x40] sm:$0xf0] }
 0xa1d   : > { %v8024_v27 = vadd.f32 %v8019_v55, %v7974_v22  ;;  %v10873_v55 = vor.u32 %v11405_v30, %v10870_v8  ;;  %v10883_v22 = vld [vmem:[%s14962_s7] sm:$0xf]  ;;  %v10928_v47 = vor.u32 %v11395_v29, %v10927_v7  ;;  %v10958_v30 = vld [vmem:[%s14962_s7 + $0xf0] sm:$0xf]  ;;  %v11390_v8 = vld [vmem:[%s14962_s7 + $0x34] sm:$0xf] }
 0xa1e   : > { %v7935_v45 = vadd.f32 %v7931_v3, %v7888_v46  ;;  %v10895_v3 = vld [vmem:[%s14962_s7 + $0x18] sm:$0xf]  ;;  %v11402_v46 = vld [vmem:[%s14962_s7 + $0x94] sm:$0xf]  ;;  %8555 = vmatpush.bf16.msrb.mxu3 %v10908_v16  ;;  %8475 = vmatpush.bf16.msrb.mxu2 %v10865_v23  ;;  %v10951_v16 = vor.u32 %v11411_v38, %v10948_v63  ;;  %v11408_v33 = vld [vmem:[%s14962_s7 + $0xc4] sm:$0xf] }
 0xa1f   : > { %8461 = vmatpush.bf16.msrb.mxu1 %v10873_v55  ;;  %v10959_v55 = vor.u32 %v11415_v14, %v10958_v30  ;;  %v11426_v7 = vld [vmem:[%s14962_s7 + $0x154] sm:$0xf]  ;;  %v11416_v38 = vld [vmem:[%s14962_s7 + $0x100] sm:$0xf0]  ;;  %v11011_v30 = vld [vmem:[%s14962_s7 + $0x15c] sm:$0xf0] }
 0xa20   : > { %v7975_v40 = vadd.f32 %v7971_v5, %v7935_v45  ;;  %v8155_v28 = vpop.f32.mrf.mxu0  ;;  %v11385_v45 = vld [vmem:[%s14962_s7 + $0x8] sm:$0xf0]  ;;  %v10993_v14 = vld [vmem:[%s14962_s7 + $0x128] sm:$0xf] }
 0xa23   : > { %v8066_v2 = vpop.f32.mrf.mxu2 }
 0xa24   : > { %v8113_v36 = vpop.f32.mrf.mxu3  ;;  %v8021_v51 = vpop.f32.mrf.mxu1  ;;  %v8071_v10 = vadd.f32 %v8066_v2, %v8024_v27  ;;  %v10856_v2 = vld [vmem:[%s14962_s7 + $0x90] sm:$0xf] }
 0xa25   : > { %v8025_v6 = vadd.f32 %v8021_v51, %v7975_v40  ;;  %v10858_v51 = vld [vmem:[%s14962_s7 + $0x9c] sm:$0xf0] }
 0xa26   : > { %v8118_v48 = vadd.f32 %v8113_v36, %v8071_v10  ;;  %v10857_v36 = vor.u32 %v11403_v60, %v10856_v2  ;;  %v10852_v40 = vld [vmem:[%s14962_s7 + $0x80] sm:$0xf]  ;;  %v11401_v10 = vld [vmem:[%s14962_s7 + $0x88] sm:$0xf0]  ;;  %v10936_v2 = vld [vmem:[%s14962_s7 + $0xcc] sm:$0xf0] }
 0xa27   : > { %v10946_v60 = vld [vmem:[%s14962_s7 + $0xd8] sm:$0xf] }
 0xa28   : > { %v8158_v54 = vadd.f32 %v8153_v9, %v8118_v48  ;;  %v10896_v9 = vor.u32 %v11388_v1, %v10895_v3  ;;  %v11399_v48 = vld [vmem:[%s14962_s7 + $0x7c] sm:$0xf]  ;;  %8449 = vmatpush.bf16.msrb.mxu0 %v10857_v36  ;;  %v10909_v3 = vld [vmem:[%s14962_s7 + $0x3c] sm:$0xf0]  ;;  %v10939_v36 = vor.u32 %v11408_v33, %v10936_v2  ;;  %v10997_v2 = vld [vmem:[%s14962_s7 + $0x138] sm:$0xf] }
 0xa29   : > { %v10912_v1 = vor.u32 %v11390_v8, %v10909_v3  ;;  %v11422_v8 = vld [vmem:[%s14962_s7 + $0x130] sm:$0xf0] }
 0xa2a   : > { %8556 = vmatpush.bf16.msrb.mxu3 %v10896_v9  ;;  %v11389_v9 = vld [vmem:[%s14962_s7 + $0x28] sm:$0xf0]  ;;  %v10994_v33 = vor.u32 %v11422_v8, %v10993_v14 }
 0xa2b   : > { %v8068_v42 = vpop.f32.mrf.mxu2 }
 0xa2c   : > { %v8115_v57 = vpop.f32.mrf.mxu3  ;;  %v8203_v61 = vpop.f32.mrf.mxu1  ;;  %v8072_v59 = vadd.f32 %v8068_v42, %v8025_v6  ;;  %v10861_v42 = vor.u32 %v11402_v46, %v10858_v51  ;;  %v11400_v6 = vld [vmem:[%s14962_s7 + $0x80] sm:$0xf0]  ;;  %v11387_v51 = vld [vmem:[%s14962_s7 + $0x1c] sm:$0xf] }
 0xa2d   : > { %v8208_v24 = vadd.f32 %v8203_v61, %v8158_v54  ;;  %v10853_v61 = vor.u32 %v11401_v10, %v10852_v40  ;;  %v11412_v46 = vld [vmem:[%s14962_s7 + $0xe0] sm:$0xf0] }
 0xa2e   : > { %v8119_v17 = vadd.f32 %v8115_v57, %v8072_v59  ;;  %v10844_v57 = vld [vmem:[%s14962_s7 + $0x78] sm:$0xf]  ;;  %v10846_v59 = vld [vmem:[%s14962_s7 + $0x84] sm:$0xf0]  ;;  %8462 = vmatpush.bf16.msrb.mxu1 %v10861_v42 }
 0xa2f   : > { %v10849_v54 = vor.u32 %v11399_v48, %v10846_v59  ;;  %8476 = vmatpush.bf16.msrb.mxu2 %v10853_v61  ;;  %v11409_v61 = vld [vmem:[%s14962_s7 + $0xc8] sm:$0xf0]  ;;  %v10885_v48 = vld [vmem:[%s14962_s7 + $0xc] sm:$0xf0] }
 0xa30   : > { %v8159_v58 = vadd.f32 %v8155_v28, %v8119_v17  ;;  %v10884_v17 = vor.u32 %v11385_v45, %v10883_v22  ;;  %v10972_v28 = vld [vmem:[%s14962_s7 + $0x114] sm:$0xf0]  ;;  %v10903_v22 = vld [vmem:[%s14962_s7 + $0x20] sm:$0xf] }
 0xa31   : > { %v10904_v40 = vor.u32 %v11389_v9, %v10903_v22 }
 0xa32   : > { %8463 = vmatpush.bf16.msrb.mxu1 %v10849_v54  ;;  %8557 = vmatpush.bf16.msrb.mxu3 %v10884_v17  ;;  %v11386_v54 = vld [vmem:[%s14962_s7 + $0x10] sm:$0xf0] }
 0xa33   : > { %v8250_v44 = vpop.f32.mrf.mxu2 }
 0xa34   : > { %v8297_v31 = vpop.f32.mrf.mxu3  ;;  %v8205_v49 = vpop.f32.mrf.mxu1  ;;  %v8255_v11 = vadd.f32 %v8250_v44, %v8208_v24  ;;  %v10845_v44 = vor.u32 %v11400_v6, %v10844_v57  ;;  %v10840_v24 = vld [vmem:[%s14962_s7 + $0x68] sm:$0xf]  ;;  %v10934_v57 = vld [vmem:[%s14962_s7 + $0xc0] sm:$0xf]  ;;  %v11384_v6 = vld [vmem:[%s14962_s7 + $0x4] sm:$0xf] }
 0xa35   : > { %v8209_v4 = vadd.f32 %v8205_v49, %v8159_v58  ;;  %v11398_v58 = vld [vmem:[%s14962_s7 + $0x70] sm:$0xf0]  ;;  %v10935_v59 = vor.u32 %v11409_v61, %v10934_v57  ;;  %v10888_v17 = vor.u32 %v11384_v6, %v10885_v48 }
 0xa36   : > { %v14565_v39 = vadd.f32 %v8297_v31, %v8255_v11  ;;  %8450 = vmatpush.bf16.msrb.mxu0 %v10845_v44  ;;  %v11417_v31 = vld [vmem:[%s14962_s7 + $0x10c] sm:$0xf]  ;;  %v10832_v11 = vld [vmem:[%s14962_s7 + $0x60] sm:$0xf]  ;;  %v10891_v44 = vld [vmem:[%s14962_s7 + $0x8] sm:$0xf] }
 0xa37   : > { %v10975_v49 = vor.u32 %v11417_v31, %v10972_v28  ;;  %v10892_v31 = vor.u32 %v11386_v54, %v10891_v44 }
 0xa38   : > { %v8306_v37 = vrot.slane %v14565_v39, 1 }
 0xa39   : > { %8690 = vmatpush.bf16.msra.mxu3 %v10975_v49 }
 0xa3b   : > { %v8252_v52 = vpop.f32.mrf.mxu2 }
 0xa3c   : > { %v8256_v34 = vadd.f32 %v8252_v52, %v8209_v4  ;;  %v8299_v62 = vpop.f32.mrf.mxu3  ;;  %v11397_v4 = vld [vmem:[%s14962_s7 + $0x68] sm:$0xf0]  ;;  %v10841_v52 = vor.u32 %v11398_v58, %v10840_v24 }
 0xa3e   : > { %v8303_v20 = vadd.f32 %v8299_v62, %v8256_v34  ;;  %v10833_v34 = vor.u32 %v11397_v4, %v10832_v11  ;;  %v11396_v62 = vld [vmem:[%s14962_s7 + $0x64] sm:$0xf]  ;;  %8477 = vmatpush.bf16.msrb.mxu2 %v10841_v52  ;;  %v11017_v4 = vld [vmem:[%s14962_s7 + $0x158] sm:$0xf] }
 0xa3f   : > { %v11428_v52 = vld [vmem:[%s14962_s7 + $0x160] sm:$0xf0] }
 0xa40   : > { %v8307_v35 = vrot.slane %v8303_v20, 1  ;;  %8451 = vmatpush.bf16.msrb.mxu0 %v10833_v34 }
 0xa42   : > { %8311 = vrot.lane.b32.xlu2 %v8307_v35, %s15019_s24  ;;  %v8308_v13 = vsel %vm3210_vm1, %v8306_v37, %v8307_v35  ;;  %v11414_v37 = vld [vmem:[%s14962_s7 + $0xf4] sm:$0xf]  ;;  %vm8440_vm1 = vcmask 523264  }
 0xa43   : > { %8309 = vrot.lane.b32.xlu1 %v8308_v13, %s15019_s24  ;;  %v10960_v13 = vld [vmem:[%s14962_s7 + $0xfc] sm:$0xf0]  ;;  %s11796_s24 = scalar_lea.hbm %s11795_s15, 8 }
 0xa44   : > { %p11797_p11 = scmp.ne.s32.totalorder %s11795_s15, %s11796_s24  ;;  %p11802_p1 = scmp.lt.s32.totalorder %s11800_s2, %s11796_s24 }
 0xa46   : > { %p11798_p12 = pnand %p11797_p11, %p11959_p5  ;;  %p11803_p2 = por %p11802_p1, %p11801_p0 }
 0xa48   : > { %p11799_p13 = pneg %p11798_p12 }
 0xa4a   : > { %p11804_p3 = pnand %p11803_p2, %p11799_p13 }
 0xa9c   : > { %v8312_v15 = vpop.permute.xlu2 %8311 }
 0xa9d   : > { %v8316_v18 = vadd.f32 %v8312_v15, %v8303_v20  ;;  %v10834_v20 = vld [vmem:[%s14962_s7 + $0x6c] sm:$0xf0]  ;;  %v10963_v15 = vor.u32 %v11414_v37, %v10960_v13  ;;  %v11419_v37 = vld [vmem:[%s14962_s7 + $0x118] sm:$0xf0]  ;;  %v11023_v13 = vld [vmem:[%s14962_s7 + $0x174] sm:$0xf0] }
 0xa9e   : > { %v10837_v35 = vor.u32 %v11396_v62, %v10834_v20  ;;  %v11429_v62 = vld [vmem:[%s14962_s7 + $0x16c] sm:$0xf]  ;;  %v10978_v20 = vld [vmem:[%s14962_s7 + $0x110] sm:$0xf] }
 0xa9f   : > { %v8321_v26 = vadd.f32 %v8319_v41, %v8316_v18  ;;  %8691 = vmatpush.bf16.msra.mxu3 %v10963_v15  ;;  %v10970_v18 = vld [vmem:[%s14962_s7 + $0x108] sm:$0xf] }
 0xaa0   : > { %8464 = vmatpush.bf16.msrb.mxu1 %v10837_v35  ;;  %v10971_v53 = vor.u32 %v11418_v19, %v10970_v18  ;;  %v11018_v35 = vor.u32 %v11428_v52, %v11017_v4  ;;  %v11021_v15 = vld [vmem:[%s14962_s7 + $0x168] sm:$0xf]  ;;  %v11430_v18 = vld [vmem:[%s14962_s7 + $0x170] sm:$0xf0] }
 0xaa1   : > { %v8323_v32 = vmax.f32 %v8321_v26, 0.0  ;;  %v10921_v26 = vld [vmem:[%s14962_s7 + $0x54] sm:$0xf0] }
 0xaa2   : > { %v10924_v50 = vor.u32 %v11393_v0, %v10921_v26  ;;  %8677 = vmatpush.bf16.msra.mxu2 %v10971_v53  ;;  %v11005_v0 = vld [vmem:[%s14962_s7 + $0x140] sm:$0xf]  ;;  %v11425_v53 = vld [vmem:[%s14962_s7 + $0x148] sm:$0xf0]  ;;  %v10979_v26 = vor.u32 %v11419_v37, %v10978_v20 }
 0xaa3   : > { %v8326_v5 = vmul.f32 %v8324_v21, %v8323_v32  ;;  %8692 = vmatpush.bf16.msra.mxu3 %v10951_v16  ;;  %v11006_v63 = vor.u32 %v11425_v53, %v11005_v0  ;;  %v11427_v16 = vld [vmem:[%s14962_s7 + $0x158] sm:$0xf0] }
 0xaa4   : > { %8567 = vmatpush.bf16.msra.mxu0 %v10924_v50  ;;  %8580 = vmatpush.bf16.msra.mxu1 %v10928_v47  ;;  %v11022_v50 = vor.u32 %v11430_v18, %v11021_v15  ;;  %v10966_v47 = vld [vmem:[%s14962_s7 + $0xf8] sm:$0xf] }
 0xaa5   : > { %v8329_v27 = vadd.f32 %v8327_v25, %v8326_v5  ;;  %v10967_v3 = vor.u32 %v11416_v38, %v10966_v47 }
 0xaa6   : > { %8678 = vmatpush.bf16.msra.mxu2 %v10959_v55  ;;  %v11014_v55 = vor.u32 %v11426_v7, %v11011_v30 }
 0xaa7   : > { %8333 = vst.msk [vmem:[#allocation3 + $0x7] sm:$0x1] %vm8332_vm15, %v8329_v27  ;;  %v10947_v27 = vor.u32 %v11412_v46, %v10946_v60  ;;  %8693 = vmatpush.bf16.msra.mxu3 %v10939_v36  ;;  %v11424_v60 = vld [vmem:[%s14962_s7 + $0x140] sm:$0xf0] }
 0xaa8   : > { %8568 = vmatpush.bf16.msra.mxu0 %v10912_v1  ;;  %v10998_v22 = vor.u32 %v11424_v60, %v10997_v2 }
 0xaaa   : > { %8679 = vmatpush.bf16.msra.mxu2 %v10947_v27  ;;  %v10987_v27 = vld [vmem:[%s14962_s7 + $0x12c] sm:$0xf0] }
 0xaae   : > { %8680 = vmatpush.bf16.msra.mxu2 %v10935_v59 }
 0xab5   : > { %v8310_v43 = vpop.permute.xlu1 %8309 }
 0xab6   : > { %v8315_v32 = vadd.f32 %v8310_v43, %v14565_v39  ;;  %v10915_v39 = vld [vmem:[%s14962_s7 + $0x38] sm:$0xf]  ;;  %v11026_v43 = vor.u32 %v11429_v62, %v11023_v13 }
 0xab7   : > { %v10916_v23 = vor.u32 %v11392_v12, %v10915_v39  ;;  %v10954_v39 = vld [vmem:[%s14962_s7 + $0xe0] sm:$0xf]  ;;  %v11413_v12 = vld [vmem:[%s14962_s7 + $0xe8] sm:$0xf0] }
 0xab8   : > { %v8320_v5 = vadd.f32 %v8319_v41, %v8315_v32  ;;  %v10897_v41 = vld [vmem:[%s14962_s7 + $0x24] sm:$0xf0]  ;;  %v11009_v32 = vld [vmem:[%s14962_s7 + $0x150] sm:$0xf]  ;;  %v10955_v46 = vor.u32 %v11413_v12, %v10954_v39 }
 0xab9   : > { %8581 = vmatpush.bf16.msra.mxu1 %v10916_v23  ;;  %v10900_v42 = vor.u32 %v11387_v51, %v10897_v41  ;;  %v11010_v1 = vor.u32 %v11427_v16, %v11009_v32  ;;  %v10999_v23 = vld [vmem:[%s14962_s7 + $0x144] sm:$0xf0]  ;;  %v11410_v41 = vld [vmem:[%s14962_s7 + $0xd0] sm:$0xf0] }
 0xaba   : > { %v8322_v45 = vmax.f32 %v8320_v5, 0.0  ;;  %v11423_v5 = vld [vmem:[%s14962_s7 + $0x13c] sm:$0xf]  ;;  %v10942_v51 = vld [vmem:[%s14962_s7 + $0xc8] sm:$0xf] }
 0xabb   : > { %8569 = vmatpush.bf16.msra.mxu0 %v10900_v42  ;;  %v11002_v36 = vor.u32 %v11423_v5, %v10999_v23  ;;  %v10985_v42 = vld [vmem:[%s14962_s7 + $0x120] sm:$0xf] }
 0xabc   : > { %v8325_v10 = vmul.f32 %v8324_v21, %v8322_v45  ;;  %v11420_v45 = vld [vmem:[%s14962_s7 + $0x124] sm:$0xf] }
 0xabd   : > { %8582 = vmatpush.bf16.msra.mxu1 %v10904_v40  ;;  %v11421_v40 = vld [vmem:[%s14962_s7 + $0x128] sm:$0xf0]  ;;  %v10990_v57 = vor.u32 %v11420_v45, %v10987_v27 }
 0xabe   : > { %v8328_v21 = vadd.f32 %v8327_v25, %v8325_v10  ;;  %v11431_v25 = vld [vmem:[%s14962_s7 + $0x178] sm:$0xf0]  ;;  %v10943_v10 = vor.u32 %v11410_v41, %v10942_v51  ;;  %v10986_v61 = vor.u32 %v11421_v40, %v10985_v42 }
 0xabf   : > { %8570 = vmatpush.bf16.msra.mxu0 %v10888_v17  ;;  %v11030_v58 = vor.u32 %v11431_v25, %v11029_v56 }
 0xac0   : > { %8331 = vst.msk [vmem:[#allocation3 - $0x1] sm:$0xfe] %vm8330_vm0, %v8328_v21 }
 0xac1   : > { %8583 = vmatpush.bf16.msra.mxu1 %v10892_v31 }
 0xac7   : > { %v8334_v28 = vld [vmem:[#allocation3] ss:$2 sm:$0xf]  ;;  %v8335_v24 = vld [vmem:[#allocation3 + $0x1] ss:$2 sm:$0xf] }
 0xac8   : > { %v8336_v49 = vmax.f32 %v8334_v28, %v8335_v24 }
 0xaca   : > { %v14791_v11 = vpack.c.bf16 %v8336_v49, %v8336_v49 }
 0xacc   : > { %10929 = vmatmul.msk.bf16.vlgmr.msrb.gmra.mxu3 %vm8440_vm1, %v14791_v11  ;;  %v8371_v34 = vunpack.c.l.b16 %v14791_v11 }
 0xacd   : > { %8829 = vmatpush.bf16.msrb.mxu3 %v11030_v58 }
 0xace   : > { %v8372_v19 = vpack.c.b16 %v8371_v34, %v8371_v34 }
 0xad0   : > { %v8374_v29 = vshrl.u32 %v8372_v19, 16  ;;  %v8605_v9 = vrot.slane %v8372_v19, 1 }
 0xad1   : > { %8830 = vmatpush.bf16.msrb.mxu3 %v11018_v35 }
 0xad2   : > { %10878 = vmatmul.msk.bf16.vlgmr.msrb.gmra.mxu0 %vm8440_vm1, %v8374_v29  ;;  %10879 = vmatmul.msk.bf16.vlgmr.msrb.gmra.mxu1 %vm8440_vm1, %v8374_v29  ;;  %v8731_v6 = vrot.slane %v8374_v29, 1 }
 0xad3   : > { %10880 = vmatmul.msk.bf16.vlgmr.msrb.gmra.mxu2 %vm8440_vm1, %v8374_v29  ;;  %8703 = vmatpush.bf16.msrb.mxu0 %v10979_v26 }
 0xad4   : > { %8816 = vmatpush.bf16.msrb.mxu2 %v11026_v43  ;;  %8803 = vmatpush.bf16.msrb.mxu1 %v11022_v50 }
 0xad5   : > { %8831 = vmatpush.bf16.msrb.mxu3 %v11006_v63 }
 0xad7   : > { %8704 = vmatpush.bf16.msrb.mxu0 %v10967_v3 }
 0xad8   : > { %8817 = vmatpush.bf16.msrb.mxu2 %v11014_v55  ;;  %8804 = vmatpush.bf16.msrb.mxu1 %v11010_v1 }
 0xad9   : > { %8832 = vmatpush.bf16.msrb.mxu3 %v10994_v33 }
 0xadb   : > { %8705 = vmatpush.bf16.msrb.mxu0 %v10955_v46 }
 0xadc   : > { %10981 = vmatmul.msk.bf16.vlgmr.msra.gmra.mxu3 %vm8440_vm1, %v8605_v9  ;;  %8818 = vmatpush.bf16.msrb.mxu2 %v11002_v36 }
 0xadd   : > { %8805 = vmatpush.bf16.msrb.mxu1 %v10998_v22 }
 0xadf   : > { %8706 = vmatpush.bf16.msrb.mxu0 %v10943_v10 }
 0xae0   : > { %8819 = vmatpush.bf16.msrb.mxu2 %v10990_v57 }
 0xae1   : > { %8806 = vmatpush.bf16.msrb.mxu1 %v10986_v61 }
 0xae2   : > { %10930 = vmatmul.msk.bf16.vlgmr.msra.gmra.mxu0 %vm8440_vm1, %v14791_v11  ;;  %10931 = vmatmul.msk.bf16.vlgmr.msra.gmra.mxu1 %vm8440_vm1, %v14791_v11 }
 0xae3   : > { %10980 = vmatmul.msk.bf16.vlgmr.msra.gmra.mxu2 %vm8440_vm1, %v8605_v9 }
 0xaec   : > { %11033 = vmatmul.msk.bf16.vlgmr.msrb.gmra.mxu3 %vm8440_vm1, %v8731_v6 }
 0xaf2   : > { %10982 = vmatmul.msk.bf16.vlgmr.msrb.gmra.mxu0 %vm8440_vm1, %v8605_v9  ;;  %11031 = vmatmul.msk.bf16.vlgmr.msrb.gmra.mxu1 %vm8440_vm1, %v8731_v6 }
 0xaf3   : > { %11032 = vmatmul.msk.bf16.vlgmr.msrb.gmra.mxu2 %vm8440_vm1, %v8731_v6 }
 0xaf4   : > { %11807 = shalt.err (!%p11804_p3)
}
 0xaf5   : > { %11694 = dma.vmem_to_hbm [thread:$0]  (%p11959_p5), %s8943_s14, 128, %s8945_s22, %s8927_s0   ;;  %v8841_v52 = vld [vmem:[%s14963_s8] sm:$0x7] }
 0xaf6   : > { %v8843_v35 = vperm.slane %v8841_v52, 0  ;;  %v8845_v53 = vperm.slane %v8841_v52, 2  ;;  %v8844_v38 = vperm.slane %v8841_v52, 1  ;;  %s11693_s27 = smul.u32 3, %s12031_s29 }
 0xaf8   : > { %s395_s13 = scalar_lea.vmem %s14965_s10, %s11693_s27 }
 0xb4f   : > { %v8453_v48 = vpop.f32.mrf.mxu0  ;;  %v8466_v21 = vpop.f32.mrf.mxu1 }
 0xb50   : > { %v8559_v59 = vpop.f32.mrf.mxu3 }
 0xb51   : > { %v8560_v34 = vadd.f32 %v8559_v59, %v8453_v48 }
 0xb56   : > { %v8479_v44 = vpop.f32.mrf.mxu2 }
 0xb57   : > { %v8455_v54 = vpop.f32.mrf.mxu0  ;;  %v8468_v17 = vpop.f32.mrf.mxu1 }
 0xb58   : > { %v8561_v31 = vpop.f32.mrf.mxu3 }
 0xb5e   : > { %v8481_v56 = vpop.f32.mrf.mxu2 }
 0xb5f   : > { %v8572_v25 = vpop.f32.mrf.mxu0  ;;  %v8585_v28 = vpop.f32.mrf.mxu1 }
 0xb60   : > { %v8695_v24 = vpop.f32.mrf.mxu3  ;;  %v8586_v62 = vadd.f32 %v8585_v28, %v8479_v44  ;;  %v8573_v26 = vadd.f32 %v8572_v25, %v8466_v21 }
 0xb62   : > { %v8713_v47 = vadd.f32 %v8695_v24, %v8573_v26 }
 0xb66   : > { %v8682_v49 = vpop.f32.mrf.mxu2 }
 0xb67   : > { %v8574_v58 = vpop.f32.mrf.mxu0  ;;  %v8587_v11 = vpop.f32.mrf.mxu1  ;;  %v8712_v20 = vadd.f32 %v8682_v49, %v8560_v34  ;;  %v8917_v49 = vlaneseq }
 0xb68   : > { %v8697_v4 = vpop.f32.mrf.mxu3 }
 0xb69   : > { %vm8919_vm0 = vcmp.lt.s32.totalorder %v8917_v49, 384 }
 0xb6e   : > { %v8684_v37 = vpop.f32.mrf.mxu2 }
 0xb6f   : > { %v8708_v13 = vpop.f32.mrf.mxu0  ;;  %v8808_v15 = vpop.f32.mrf.mxu1 }
 0xb70   : > { %v8714_v18 = vadd.f32 %v8708_v13, %v8586_v62  ;;  %v8838_v19 = vadd.f32 %v8808_v15, %v8712_v20  ;;  %v8834_v0 = vpop.f32.mrf.mxu3 }
 0xb72   : > { %v8849_v7 = vadd.f32 %v8843_v35, %v8838_v19  ;;  %v8840_v29 = vadd.f32 %v8834_v0, %v8714_v18 }
 0xb74   : > { %v11034_v43 = vmul.f32 -1.442695, %v8849_v7  ;;  %v8851_v50 = vadd.f32 %v8845_v53, %v8840_v29 }
 0xb76   : > { %11741 = vpow2.f32 %v11034_v43  ;;  %v11036_v63 = vmul.f32 -1.442695, %v8851_v50  ;;  %v8821_v30 = vpop.f32.mrf.mxu2 }
 0xb77   : > { %v8839_v32 = vadd.f32 %v8821_v30, %v8713_v47  ;;  %v8710_v16 = vpop.f32.mrf.mxu0  ;;  %v8810_v14 = vpop.f32.mrf.mxu1 }
 0xb78   : > { %11743 = vpow2.f32 %v11036_v63  ;;  %v8836_v8 = vpop.f32.mrf.mxu3 }
 0xb79   : > { %v8850_v3 = vadd.f32 %v8844_v38, %v8839_v32 }
 0xb7b   : > { %v11035_v55 = vmul.f32 -1.442695, %v8850_v3 }
 0xb7c   : > { %v11742_v1 = vpop.eup %11741 }
 0xb7d   : > { %v8861_v39 = vadd.f32 1.0, %v11742_v1  ;;  %11745 = vpow2.f32 %v11035_v55 }
 0xb7e   : > { %v11744_v12 = vpop.eup %11743  ;;  %v8823_v33 = vpop.f32.mrf.mxu2 }
 0xb7f   : > { %11747 = vrcp.f32 %v8861_v39  ;;  %v8863_v5 = vadd.f32 1.0, %v11744_v12  ;;  %vm8869_vm9 = vweird.f32 %v8861_v39  ;;  %v8875_v54 = vand.u32 2147483648, %v8861_v39 }
 0xb80   : > { %v8873_v56 = vand.u32 2147483647, %v8861_v39 }
 0xb81   : > { %11749 = vrcp.f32 %v8863_v5  ;;  %v8905_v10 = vand.u32 2147483648, %v8863_v5  ;;  %vm8899_vm4 = vweird.f32 %v8863_v5  ;;  %v8903_v61 = vand.u32 2147483647, %v8863_v5 }
 0xb82   : > { %v8876_v52 = vor.u32 1.1754944e-38, %v8875_v54  ;;  %vm8874_vm15 = vcmp.eq.f32.partialorder %v8873_v56, 8.507059e+37 }
 0xb83   : > { %v11746_v23 = vpop.eup %11745  ;;  %v8906_v25 = vor.u32 1.1754944e-38, %v8905_v10  ;;  %vm8904_vm12 = vcmp.eq.f32.partialorder %v8903_v61, 8.507059e+37 }
 0xb84   : > { %v8862_v2 = vadd.f32 1.0, %v11746_v23 }
 0xb85   : > { %v11748_v60 = vpop.eup %11747 }
 0xb86   : > { %v8865_v46 = vmul.f32 %v11748_v60, %v8861_v39  ;;  %11751 = vrcp.f32 %v8862_v2  ;;  %vm8870_vm3 = vweird.f32 %v11748_v60  ;;  %v8890_v6 = vand.u32 2147483648, %v8862_v2 }
 0xb87   : > { %v11750_v36 = vpop.eup %11749  ;;  %v8888_v44 = vand.u32 2147483647, %v8862_v2  ;;  %vm14926_vm10 = vmor %vm8869_vm9, %vm8870_vm3  ;;  %vm8884_vm11 = vweird.f32 %v8862_v2 }
 0xb88   : > { %v8866_v51 = vsub.f32 1.0, %v8865_v46  ;;  %v8895_v41 = vmul.f32 %v11750_v36, %v8863_v5  ;;  %vm8900_vm2 = vweird.f32 %v11750_v36  ;;  %v8891_v24 = vor.u32 1.1754944e-38, %v8890_v6 }
 0xb89   : > { %vm14920_vm7 = vmor %vm8899_vm4, %vm8900_vm2  ;;  %vm8889_vm14 = vcmp.eq.f32.partialorder %v8888_v44, 8.507059e+37 }
 0xb8a   : > { %v8896_v22 = vsub.f32 1.0, %v8895_v41  ;;  %v8867_v27 = vmul.f32 %v11748_v60, %v8866_v51 }
 0xb8c   : > { %v11752_v45 = vpop.eup %11751  ;;  %v8897_v9 = vmul.f32 %v11750_v36, %v8896_v22  ;;  %v8868_v48 = vadd.f32 %v11748_v60, %v8867_v27 }
 0xb8d   : > { %v8880_v42 = vmul.f32 %v11752_v45, %v8862_v2  ;;  %vm8885_vm8 = vweird.f32 %v11752_v45 }
 0xb8e   : > { %v8898_v40 = vadd.f32 %v11750_v36, %v8897_v9  ;;  %vm8886_vm13 = vmor %vm8884_vm11, %vm8885_vm8  ;;  %v8872_v58 = vsel %vm14926_vm10, %v11748_v60, %v8868_v48 }
 0xb8f   : > { %v8881_v57 = vsub.f32 1.0, %v8880_v42  ;;  %v8877_v20 = vsel %vm8874_vm15, %v8876_v52, %v8872_v58 }
 0xb90   : > { %v8902_v17 = vsel %vm14920_vm7, %v11750_v36, %v8898_v40 }
 0xb91   : > { %v8882_v59 = vmul.f32 %v11752_v45, %v8881_v57  ;;  %v8907_v11 = vsel %vm8904_vm12, %v8906_v25, %v8902_v17 }
 0xb92   : > { %v8913_v37 = vrot.slane %v8907_v11, 6 }
 0xb93   : > { %v8883_v28 = vadd.f32 %v11752_v45, %v8882_v59 }
 0xb95   : > { %v8887_v4 = vsel %vm8886_vm13, %v11752_v45, %v8883_v28 }
 0xb96   : > { %v8892_v34 = vsel %vm8889_vm14, %v8891_v24, %v8887_v4 }
 0xb97   : > { %v8912_v62 = vrot.slane %v8892_v34, 7 }
 0xb99   : > { %v8914_v35 = vsel %vm3822_vm6, %v8877_v20, %v8912_v62 }
 0xb9a   : > { %v8915_v13 = vsel %vm3720_vm5, %v8914_v35, %v8913_v37 }
 0xb9b   : > { %8921 = vst.msk [vmem:[%s395_s13] sm:$0x7] %vm8919_vm0, %v8915_v13 }
 0xb9c PF: > { %p11700_p4 = scmp.ge.s32.totalorder %s11851_s20, 2  ;;  %s8963_s29 = sand.u32 1, %s11839_s17  }
 0xb9d   : > { %s8964_s12 = scalar_lea.sflag [#allocation5], %s8963_s29 }
 0xb9e   : > { %p11697_p5 = pnand %p11700_p4, %p11963_p6 }
 0xba0   : > { %p11698_p7 = pneg %p11697_p5 }
 0xba2   : > { %11825 = dma.done.wait (%p11698_p7), %s8964_s12, 128  }
 0xba3   : > { %11827 = vsyncadd (%p11698_p7), %s8964_s12, 4294967168  ;;  %s15026_s14 = sld [smem:[#allocation7_spill]]  ;;  %p22_p8 = scmp.ge.s32.totalorder %s11946_s23, 4  }
 0xba4   : > { %s15027_s19 = sld [smem:[#allocation8_spill]]  ;;  %s15028_s17 = smov %s11843_s18 }
 0xba5   : > { %s15030_s20 = smov %s11946_s23  ;;  %24 = sbr.rel (!%p22_p8) target bundleno = 7 (0x7), region = 217 }
 0xba9   : > { %s15029_s18 = smov %s15026_s14 }
 0xbaa   :  { %8970 = vsyncpa [#allocation5], 1 }
 0xbab   :  { %8972 = vsyncpa [#allocation5 + $0x1], 1 }

</bundles_post_ra>
